<compile_context>
chip_gen: v5e
topology: v5e:2x2
jax: 0.10.0
libtpu: 0.0.40
codegen_flags: <defaults>
</compile_context>

<pallas_src>
import numpy as np

import jax
import jax.numpy as jnp
from jax.experimental import pallas as pl
from jax.experimental.pallas import tpu as pltpu

SCENES = ['Kitchens', 'Living_Rooms', 'Bedrooms', 'Bathrooms']
HW = 49  # 7 x 7 spatial positions

_COMPILER_PARAMS = pltpu.CompilerParams(vmem_limit_bytes=32 * 1024 * 1024)


# ----------------------------------------------------------------------------
# Kernel A: target/info/gdo/gdf chains, conv1, scene embedding + classifier
# ----------------------------------------------------------------------------
def _embed_kernel(
    # data
    t_info_ref, t_info_t_ref, t_ind_ref, t_app_ref, aprob_ref, state_hw_ref,
    # info embedding (pre-transposed)
    info_wt_ref, info_bc_ref,
    # graph_detection_other_info chain (gdo1 split by concat source, gdo2..5 transposed)
    g1a_ref, g1b_ref, g1bias_ref,
    g2t_ref, g2bc_ref, g3t_ref, g3bc_ref, g4t_ref, g4bc_ref, g5t_ref, g5bc_ref,
    # graph_detection_feature (gdf1 split by concat source, gdf2)
    f1a_ref, f1b_ref, f1c_ref, f1bias_ref, f2w_ref, f2bias_ref,
    # embed_action, conv1, scene embedding, scene classifier
    ea_w_ref, ea_b_ref, c1w_ref, c1b_ref,
    se_wi_ref, se_wx_ref, se_b_ref, sc_w4_ref, sc_b_ref,
    # outputs
    img_out, tgt_out, act_out, scene_out,
):
    f32 = jnp.float32
    dot = lambda a, b: jnp.dot(a, b, preferred_element_type=f32)
    relu = lambda v: jnp.maximum(v, 0.0)

    t_info = t_info_ref[...]          # (22, 5)
    t_ind = t_ind_ref[...]            # (22, 1)

    # info embedding kept directly in (HW, C) layout: relu(W_info @ info^T)
    info_hw = relu(dot(info_wt_ref[...], t_info_t_ref[...]) + info_bc_ref[...])  # (49, 22)

    # gdo chain, tracked transposed (U_k = ti_k^T) -> the reference's .t() is free
    u = relu(dot(t_info, g1a_ref[...]) + t_ind * g1b_ref[...] + g1bias_ref[...])  # (22, 22)
    u = relu(dot(g2t_ref[...], u) + g2bc_ref[...])
    u = relu(dot(g3t_ref[...], u) + g3bc_ref[...])
    u = relu(dot(g4t_ref[...], u) + g4bc_ref[...])
    u = relu(dot(g5t_ref[...], u) + g5bc_ref[...])
    target_appear = dot(u, t_app_ref[...])                                        # (22, 512)

    # gdf chain; the (appear | info | indicator) concat is folded into weight splits
    t1 = relu(dot(target_appear, f1a_ref[...]) + dot(t_info, f1b_ref[...])
              + t_ind * f1c_ref[...] + f1bias_ref[...])                           # (22, 128)
    tgt = relu(dot(t1, f2w_ref[...]) + f2bias_ref[...])                           # (22, 49)
    tgt_out[...] = tgt

    # action embedding
    act_out[...] = relu(dot(aprob_ref[...], ea_w_ref[...]) + ea_b_ref[...])       # (1, 10)

    # conv1 (1x1 conv == matmul over the 49 pixels)
    img = relu(dot(state_hw_ref[...], c1w_ref[...]) + c1b_ref[...])               # (49, 64)
    img_out[...] = img

    # scene embedding (concat folded into weight splits) + classifier + softmax
    se = relu(dot(info_hw, se_wi_ref[...]) + dot(img, se_wx_ref[...])
              + se_b_ref[...])                                                    # (49, 64)

    def cls_logit(f):
        # channel-major flatten of the classifier folded into a host-permuted
        # (4, 49, 64) weight -> per-class VPU multiply + reduce (no reshape).
        prod = se * sc_w4_ref[f]                                   # (49, 64)
        s = jnp.sum(prod, axis=1, keepdims=True)                   # (49, 1)
        return jnp.sum(s, axis=0, keepdims=True)                   # (1, 1)

    lane = jax.lax.broadcasted_iota(jnp.int32, (1, 4), 1)
    logits = (cls_logit(0) * (lane == 0).astype(f32)
              + cls_logit(1) * (lane == 1).astype(f32)
              + cls_logit(2) * (lane == 2).astype(f32)
              + cls_logit(3) * (lane == 3).astype(f32)) + sc_b_ref[...]           # (1, 4)
    m = jnp.max(logits, axis=1, keepdims=True)
    e = jnp.exp(logits - m)
    scene_out[...] = e * pl.reciprocal(jnp.sum(e, axis=1, keepdims=True), approx=True)


# ----------------------------------------------------------------------------
# Kernel B: GCN embed + pointwise 1x1-conv fusion
# ----------------------------------------------------------------------------
def _fuse_kernel(
    adj_ref, gcn_in_ref, sub_onehot_ref, img_ref, tgt_hw_ref, act_ref, scene_ref,
    w0_ref, pw_img_ref, pw_tgt_ref, pw_act_ref, pw_scene_ref, pw_sub_ref, pw_b_ref,
    pw_out,
):
    f32 = jnp.float32
    dot = lambda a, b: jnp.dot(a, b, preferred_element_type=f32)
    relu = lambda v: jnp.maximum(v, 0.0)

    # GCN: relu(W0(A @ x)); sub-goal row picked with a one-hot matmul (no gather)
    gx = relu(dot(dot(adj_ref[...], gcn_in_ref[...]), w0_ref[...]))   # (Z, 22)
    subgoal = dot(sub_onehot_ref[...], gx)                            # (1, 22)

    # pointwise 1x1 conv: the channel concat is split into per-source weights,
    # broadcast channels (action / scene / sub-goal) become a rank-1 row.
    row = (dot(act_ref[...], pw_act_ref[...])
           + dot(scene_ref[...], pw_scene_ref[...])
           + dot(subgoal, pw_sub_ref[...]) + pw_b_ref[...])           # (1, 64)
    pw_out[...] = relu(dot(img_ref[...], pw_img_ref[...])
                       + dot(tgt_hw_ref[...], pw_tgt_ref[...]) + row)  # (49, 64)


# ----------------------------------------------------------------------------
# Kernel C: 2-layer LSTM (seq len 1) + actor / critic heads
# ----------------------------------------------------------------------------
def _lstm_head_kernel(
    x_ref, h0_ref, c0_ref, h1_ref, c1_ref, aat_ref,
    wih0_ref, whh0_ref, b0_ref, wih1_ref, whh1_ref, b1_ref,
    aw_ref, ab_ref, cw1_ref, cb1_ref, cw2_ref, cb2_ref,
    actor_out, value_out, h0_out, c0_out, h1_out, c1_out,
):
    f32 = jnp.float32
    dot = lambda a, b: jnp.dot(a, b, preferred_element_type=f32)
    sigmoid = lambda v: 1.0 / (1.0 + jnp.exp(-v))

    def cell(x, h, c, wih_ref, whh_ref, b_ref):
        # per-gate weight slabs (PyTorch order i, f, g, o) -> lane-aligned gates
        gi = sigmoid(dot(x, wih_ref[0]) + dot(h, whh_ref[0]) + b_ref[0])
        gf = sigmoid(dot(x, wih_ref[1]) + dot(h, whh_ref[1]) + b_ref[1])
        gg = jnp.tanh(dot(x, wih_ref[2]) + dot(h, whh_ref[2]) + b_ref[2])
        go = sigmoid(dot(x, wih_ref[3]) + dot(h, whh_ref[3]) + b_ref[3])
        c_new = gf * c + gi * gg
        h_new = go * jnp.tanh(c_new)
        return h_new, c_new

    x = x_ref[...]
    h0, c0 = cell(x, h0_ref[...], c0_ref[...], wih0_ref, whh0_ref, b0_ref)
    h1, c1 = cell(h0, h1_ref[...], c1_ref[...], wih1_ref, whh1_ref, b1_ref)
    h0_out[...] = h0
    c0_out[...] = c0
    h1_out[...] = h1
    c1_out[...] = c1

    actor = dot(h1, aw_ref[...]) + ab_ref[...]
    actor_out[...] = actor * aat_ref[...]                  # fused action_at gating
    v = dot(h1, cw1_ref[...]) + cb1_ref[...]
    value_out[...] = dot(v, cw2_ref[...]) + cb2_ref[...]


# ----------------------------------------------------------------------------
# pallas_call wrappers (single invocation, whole operands resident in VMEM)
# ----------------------------------------------------------------------------
def _embed_call(prep, t_info, t_info_t, t_ind, t_app, action_probs, state_hw):
    num_cate = t_info.shape[0]
    out_shape = (
        jax.ShapeDtypeStruct((HW, prep["conv1_w"].shape[1]), jnp.float32),  # img_hw
        jax.ShapeDtypeStruct((num_cate, HW), jnp.float32),                  # tgt
        jax.ShapeDtypeStruct((1, prep["ea_w"].shape[1]), jnp.float32),      # act_emb
        jax.ShapeDtypeStruct((1, 4), jnp.float32),                          # scene_vec
    )
    return pl.pallas_call(
        _embed_kernel, out_shape=out_shape, compiler_params=_COMPILER_PARAMS,
    )(
        t_info, t_info_t, t_ind, t_app, action_probs, state_hw,
        prep["info_wt"], prep["info_bc"],
        prep["gdo1_wa"], prep["gdo1_wb"], prep["gdo1_b"],
        prep["gdo2_wt"], prep["gdo2_bc"], prep["gdo3_wt"], prep["gdo3_bc"],
        prep["gdo4_wt"], prep["gdo4_bc"], prep["gdo5_wt"], prep["gdo5_bc"],
        prep["gdf1_wa"], prep["gdf1_wb"], prep["gdf1_wc"], prep["gdf1_b"],
        prep["gdf2_w"], prep["gdf2_b"],
        prep["ea_w"], prep["ea_b"], prep["conv1_w"], prep["conv1_b"],
        prep["se_wi"], prep["se_wx"], prep["se_b"], prep["sc_w4"], prep["sc_b"],
    )


def _fuse_call(prep, adj, gcn_input, sub_onehot, img_hw, tgt_hw, act_emb, scene_vec):
    out_shape = jax.ShapeDtypeStruct((HW, prep["pw_img"].shape[1]), jnp.float32)
    return pl.pallas_call(
        _fuse_kernel, out_shape=out_shape, compiler_params=_COMPILER_PARAMS,
    )(adj, gcn_input, sub_onehot, img_hw, tgt_hw, act_emb, scene_vec,
      prep["W0_w"], prep["pw_img"], prep["pw_tgt"], prep["pw_act"],
      prep["pw_scene"], prep["pw_sub"], prep["pw_b"])


def _lstm_call(prep, x, h0, c0, h1, c1, action_at):
    H = h0.shape[1]
    out_shape = (
        jax.ShapeDtypeStruct((1, prep["actor_w"].shape[1]), jnp.float32),  # actor
        jax.ShapeDtypeStruct((1, 1), jnp.float32),                         # value
        jax.ShapeDtypeStruct((1, H), jnp.float32),                         # h0
        jax.ShapeDtypeStruct((1, H), jnp.float32),                         # c0
        jax.ShapeDtypeStruct((1, H), jnp.float32),                         # h1
        jax.ShapeDtypeStruct((1, H), jnp.float32),                         # c1
    )
    return pl.pallas_call(
        _lstm_head_kernel, out_shape=out_shape, compiler_params=_COMPILER_PARAMS,
    )(x, h0, c0, h1, c1, action_at,
      prep["wih0"], prep["whh0"], prep["b0"], prep["wih1"], prep["whh1"], prep["b1"],
      prep["actor_w"], prep["actor_b"], prep["critic1_w"], prep["critic1_b"],
      prep["critic2_w"], prep["critic2_b"])


# ----------------------------------------------------------------------------
# Forward pass (fully on device; jit-compiled once)
# ----------------------------------------------------------------------------
def hoz_forward(prep, state, t_info, t_ind, t_app, action_probs, hx, cx):
    C = state.shape[1]
    state_hw = state.reshape(C, HW).T                        # (49, C)
    t_info_t = t_info.T                                      # (5, 22)

    img_hw, tgt, act_emb, scene_vec = _embed_call(
        prep, t_info, t_info_t, t_ind, t_app, action_probs, state_hw)

    # ---- action_at (tiny elementwise) ---------------------------------------
    at = jnp.max(t_info[:, -1:] * t_ind) * prep["action_at_scale"]
    action_at = (at * prep["action_at_a"] + prep["action_at_b"]).reshape(1, -1)

    # ---- scene / zone / sub-goal selection (all on device, no host syncs) ----
    stat_vec = jnp.sign(t_info[:, -1])                       # (22,)
    scene_id = jnp.argmax(scene_vec[0])
    zones = prep["node_features"][scene_id]                  # (Z, 22)
    zcount = zones.shape[0]
    diff = stat_vec[None, :] - zones + 1e-6                  # F.pairwise_distance eps
    dist = jnp.sqrt(jnp.sum(diff * diff, axis=1))
    state_index = jnp.argmin(dist)
    fused = (prep["fuse_scale"] * stat_vec
             + (1.0 - prep["fuse_scale"]) * zones[state_index])
    gcn_input = zones.at[state_index].set(fused)
    cat_index = jnp.argmax(t_ind[:, 0] != 0)                 # first nonzero category
    target_index = jnp.argmax(zones[:, cat_index])
    sub_goal_index = prep["next_hop"][scene_id, state_index, target_index]
    sub_onehot = jax.nn.one_hot(sub_goal_index, zcount, dtype=jnp.float32)[None, :]
    adj = prep["edges"][scene_id]                            # (Z, Z)

    pw = _fuse_call(prep, adj, gcn_input, sub_onehot, img_hw,
                    tgt.T, act_emb, scene_vec)               # (49, 64)

    lstm_in = pw.T.reshape(1, -1)                            # channel-major flatten
    actor_out, value, h0, c0, h1, c1 = _lstm_call(
        prep, lstm_in, hx[0], cx[0], hx[1], cx[1], action_at)

    image_embedding = img_hw.T.reshape(1, img_hw.shape[1], 7, 7)   # NCHW
    hidden = (jnp.stack([h0, h1], axis=0), jnp.stack([c0, c1], axis=0))
    return {"value": value, "logit": actor_out, "hidden": hidden,
            "embedding": image_embedding}


# ----------------------------------------------------------------------------
# Host-side graph helpers (synthetic replacement for .mat scene graphs)
# ----------------------------------------------------------------------------
def normalize(x):
    x = -np.log(x)
    nozero_x = x[np.nonzero(x)]
    new_array = np.zeros(x.shape)
    x_max = np.max(nozero_x)
    x_min = np.min(nozero_x)
    x_ = x_max - x_min
    for i in range(x.shape[0]):
        for j in range(x.shape[1]):
            if x[i][j] == 0:
                continue
            new_array[i][j] = (x[i][j] - x_min) / x_
    return new_array.tolist()


def normalize_adj(adj):
    adj = np.asarray(adj, dtype=np.float64)
    rowsum = adj.sum(1)
    with np.errstate(divide='ignore'):
        d_inv_sqrt = np.power(rowsum, -0.5)
    d_inv_sqrt[np.isinf(d_inv_sqrt)] = 0.0
    d_mat = np.diag(d_inv_sqrt)
    return (adj @ d_mat).T @ d_mat


def dijkstra(graph, src):
    length = len(graph)
    nodes = [i for i in range(length)]
    visited = [src]
    path = {src: {src: []}}
    nodes.remove(src)
    distance_graph = {src: 0}
    pre = next_ = src
    while nodes:
        distance = float('inf')
        for v in visited:
            for d in nodes:
                new_dist = graph[src][v] + graph[v][d]
                if new_dist <= distance:
                    distance = new_dist
                    next_ = d
                    pre = v
                    graph[src][d] = new_dist
        path[src][next_] = [i for i in path[src][pre]]
        path[src][next_].append(next_)
        distance_graph[next_] = distance
        visited.append(next_)
        nodes.remove(next_)
    return distance_graph, path


def build_graph_data(zone_number=8, feature_length=22, seed=1):
    rng = np.random.RandomState(seed)
    graph_data, adj_list = {}, {}
    for s in SCENES:
        node_features = rng.uniform(0.0, 1.0,
                                    (zone_number, feature_length)).astype(np.float32)
        edges = rng.uniform(0.1, 0.9, (zone_number, zone_number))
        edges = (edges + edges.T) / 2.0
        np.fill_diagonal(edges, 0.5)
        adj_list[s] = normalize(edges.copy())
        A = normalize_adj(edges).astype(np.float32)
        graph_data[s] = {"node_features": node_features, "edges": A}
    return graph_data, adj_list


def build_next_hop_table(adj_list, zone_number):
    """Precompute sub_goal_index for every (scene, state_index, target_index)."""
    nh = np.zeros((len(SCENES), zone_number, zone_number), dtype=np.int32)
    for si, s in enumerate(SCENES):
        for src in range(zone_number):
            graph = [list(r) for r in adj_list[s]]   # dijkstra mutates its arg
            _, path = dijkstra(graph, src)
            for dst in range(zone_number):
                traj = path[src][dst] if dst in path[src] else []
                nh[si, src, dst] = dst if len(traj) == 0 else int(traj[0])
    return nh


# ----------------------------------------------------------------------------
# Parameters (deterministic synthetic init matching the module's shapes)
# ----------------------------------------------------------------------------
def init_params(key, hidden_sz, num_cate, action_space):
    keys = jax.random.split(key, 40)
    it = iter(keys)

    def w(shape, scale=0.05):
        return jax.random.normal(next(it), shape, jnp.float32) * scale

    p = {}
    p["conv1_w"] = w((hidden_sz, 64));            p["conv1_b"] = w((64,), 0.01)
    p["info_w"] = w((5, 49));                     p["info_b"] = w((49,), 0.01)
    p["gdo1_w"] = w((6, num_cate));               p["gdo1_b"] = w((num_cate,), 0.01)
    for name in ("gdo2", "gdo3", "gdo4", "gdo5"):
        p[name + "_w"] = w((num_cate, num_cate)); p[name + "_b"] = w((num_cate,), 0.01)
    p["gdf1_w"] = w((518, 128));                  p["gdf1_b"] = w((128,), 0.01)
    p["gdf2_w"] = w((128, 49));                   p["gdf2_b"] = w((49,), 0.01)
    p["embed_action_w"] = w((action_space, 10));  p["embed_action_b"] = w((10,), 0.01)
    p["scene_emb_w"] = w((64 + num_cate, 64));    p["scene_emb_b"] = w((64,), 0.01)
    p["scene_cls_w"] = w((64 * 49, 4));           p["scene_cls_b"] = w((4,), 0.01)
    pw_in = 64 + num_cate + 10 + num_cate + 4
    p["pointwise_w"] = w((pw_in, 64));            p["pointwise_b"] = w((64,), 0.01)
    lstm_in = 7 * 7 * 64
    p["lstm_wih0"] = w((lstm_in, 4 * hidden_sz))
    p["lstm_whh0"] = w((hidden_sz, 4 * hidden_sz))
    p["lstm_b0"] = jnp.zeros((4 * hidden_sz,), jnp.float32)   # biases filled 0 in ref
    p["lstm_wih1"] = w((hidden_sz, 4 * hidden_sz))
    p["lstm_whh1"] = w((hidden_sz, 4 * hidden_sz))
    p["lstm_b1"] = jnp.zeros((4 * hidden_sz,), jnp.float32)
    p["actor_w"] = w((hidden_sz, action_space), 0.01)
    p["actor_b"] = jnp.zeros((action_space,), jnp.float32)
    p["critic1_w"] = w((hidden_sz, 64));          p["critic1_b"] = jnp.zeros((64,), jnp.float32)
    p["critic2_w"] = w((64, 1));                  p["critic2_b"] = jnp.zeros((1,), jnp.float32)
    p["W0_w"] = w((num_cate, num_cate))           # W0 has no bias
    p["action_at_a"] = jnp.array([0., 0., 0., 0., 0., 1.], jnp.float32)
    p["action_at_b"] = jnp.array([1., 1., 1., 1., 1., 0.], jnp.float32)
    p["action_at_scale"] = jnp.float32(0.58)
    p["fuse_scale"] = jnp.float32(0.005)
    return p


def prepare_params(p, graph_data, adj_list, zone_number, hidden_sz, num_cate):
    """One-time host prep: transpose / slice / permute weights into kernel layout."""
    f32 = jnp.float32
    row = lambda b: jnp.asarray(b, f32).reshape(1, -1)
    col = lambda b: jnp.asarray(b, f32).reshape(-1, 1)
    prep = {}

    prep["info_wt"] = jnp.asarray(p["info_w"]).T                # (49, 5)
    prep["info_bc"] = col(p["info_b"])                          # (49, 1)

    prep["gdo1_wa"] = p["gdo1_w"][:5]                           # info rows
    prep["gdo1_wb"] = p["gdo1_w"][5:6]                          # indicator row
    prep["gdo1_b"] = row(p["gdo1_b"])
    for k in (2, 3, 4, 5):
        prep[f"gdo{k}_wt"] = jnp.asarray(p[f"gdo{k}_w"]).T
        prep[f"gdo{k}_bc"] = col(p[f"gdo{k}_b"])

    prep["gdf1_wa"] = p["gdf1_w"][:512]
    prep["gdf1_wb"] = p["gdf1_w"][512:517]
    prep["gdf1_wc"] = p["gdf1_w"][517:518]
    prep["gdf1_b"] = row(p["gdf1_b"])
    prep["gdf2_w"] = p["gdf2_w"]
    prep["gdf2_b"] = row(p["gdf2_b"])

    prep["ea_w"] = p["embed_action_w"];  prep["ea_b"] = row(p["embed_action_b"])
    prep["conv1_w"] = p["conv1_w"];      prep["conv1_b"] = row(p["conv1_b"])

    prep["se_wi"] = p["scene_emb_w"][:num_cate]                 # info channels
    prep["se_wx"] = p["scene_emb_w"][num_cate:]                 # image channels
    prep["se_b"] = row(p["scene_emb_b"])
    # channel-major flatten of (1,64,7,7) folded into a (class, pixel, channel) weight
    prep["sc_w4"] = jnp.asarray(p["scene_cls_w"]).reshape(64, HW, 4).transpose(2, 1, 0)
    prep["sc_b"] = row(p["scene_cls_b"])

    pw = p["pointwise_w"]                                       # (122, 64)
    prep["pw_img"] = pw[0:64]
    prep["pw_tgt"] = pw[64:64 + num_cate]
    prep["pw_act"] = pw[64 + num_cate:64 + num_cate + 10]
    prep["pw_scene"] = pw[64 + num_cate + 10:64 + num_cate + 14]
    prep["pw_sub"] = pw[64 + num_cate + 14:]
    prep["pw_b"] = row(p["pointwise_b"])

    prep["W0_w"] = p["W0_w"]

    H = hidden_sz

    def gates(w):   # (In, 4H) -> (4, In, H); PyTorch gate order i, f, g, o
        return jnp.stack([w[:, g * H:(g + 1) * H] for g in range(4)], axis=0)

    # NOTE: PyTorch keeps bias_ih and bias_hh separately; a real checkpoint must
    # sum them here (the reference zero-fills both, so the sum is zero).
    prep["wih0"] = gates(p["lstm_wih0"]);  prep["whh0"] = gates(p["lstm_whh0"])
    prep["b0"] = gates(p["lstm_b0"].reshape(1, -1))
    prep["wih1"] = gates(p["lstm_wih1"]);  prep["whh1"] = gates(p["lstm_whh1"])
    prep["b1"] = gates(p["lstm_b1"].reshape(1, -1))

    prep["actor_w"] = p["actor_w"];      prep["actor_b"] = row(p["actor_b"])
    prep["critic1_w"] = p["critic1_w"];  prep["critic1_b"] = row(p["critic1_b"])
    prep["critic2_w"] = p["critic2_w"];  prep["critic2_b"] = row(p["critic2_b"])

    prep["action_at_a"] = p["action_at_a"]
    prep["action_at_b"] = p["action_at_b"]
    prep["action_at_scale"] = p["action_at_scale"]
    prep["fuse_scale"] = p["fuse_scale"]

    # static per-scene graph tables, device-resident (no host syncs at runtime)
    prep["node_features"] = jnp.stack(
        [jnp.asarray(graph_data[s]["node_features"], f32) for s in SCENES])   # (4,Z,22)
    prep["edges"] = jnp.stack(
        [jnp.asarray(graph_data[s]["edges"], f32) for s in SCENES])           # (4,Z,Z)
    prep["next_hop"] = jnp.asarray(
        build_next_hop_table(adj_list, zone_number), jnp.int32)               # (4,Z,Z)
    return prep


# ----------------------------------------------------------------------------
if __name__ == "__main__":
    HIDDEN = 64          # hidden_state_sz == resnet_embedding_sz (small)
    NUM_CATE = 22        # forced by .view(1, 22, 7, 7) in the reference
    ACTION_SPACE = 6     # length of action_at parameters
    ZONES = 8

    key = jax.random.PRNGKey(0)
    kp, kd = jax.random.split(key)
    params = init_params(kp, HIDDEN, NUM_CATE, ACTION_SPACE)
    graph_data, adj_list = build_graph_data(zone_number=ZONES, feature_length=NUM_CATE)
    prep = prepare_params(params, graph_data, adj_list, ZONES, HIDDEN, NUM_CATE)

    ks = jax.random.split(kd, 8)
    state = jax.random.normal(ks[0], (1, HIDDEN, 7, 7), jnp.float32)
    target_info = jnp.abs(jax.random.normal(ks[1], (NUM_CATE, 5), jnp.float32))
    target_indicator = jnp.zeros((NUM_CATE, 1), jnp.float32).at[5, 0].set(1.0)
    target_appear = jax.random.normal(ks[2], (NUM_CATE, 512), jnp.float32) * 0.1
    action_probs = jax.nn.softmax(jax.random.normal(ks[3], (1, ACTION_SPACE), jnp.float32))
    hx = jnp.zeros((2, 1, HIDDEN), jnp.float32)
    cx = jnp.zeros((2, 1, HIDDEN), jnp.float32)

    forward = jax.jit(hoz_forward)
    out = forward(prep, state, target_info, target_indicator, target_appear,
                  action_probs, hx, cx)
    jax.block_until_ready(out)
    print("KERNEL_OK")
</pallas_src>

<mosaic_0001>
module attributes {stable_mosaic.version = 11 : i64} {
  func.func @_embed_kernel(%arg0: memref<22x5xf32, #tpu.memory_space<vmem>>, %arg1: memref<5x22xf32, #tpu.memory_space<vmem>>, %arg2: memref<22x1xf32, #tpu.memory_space<vmem>>, %arg3: memref<22x512xf32, #tpu.memory_space<vmem>>, %arg4: memref<1x6xf32, #tpu.memory_space<vmem>>, %arg5: memref<49x64xf32, #tpu.memory_space<vmem>>, %arg6: memref<49x5xf32, #tpu.memory_space<vmem>>, %arg7: memref<49x1xf32, #tpu.memory_space<vmem>>, %arg8: memref<5x22xf32, #tpu.memory_space<vmem>>, %arg9: memref<1x22xf32, #tpu.memory_space<vmem>>, %arg10: memref<1x22xf32, #tpu.memory_space<vmem>>, %arg11: memref<22x22xf32, #tpu.memory_space<vmem>>, %arg12: memref<22x1xf32, #tpu.memory_space<vmem>>, %arg13: memref<22x22xf32, #tpu.memory_space<vmem>>, %arg14: memref<22x1xf32, #tpu.memory_space<vmem>>, %arg15: memref<22x22xf32, #tpu.memory_space<vmem>>, %arg16: memref<22x1xf32, #tpu.memory_space<vmem>>, %arg17: memref<22x22xf32, #tpu.memory_space<vmem>>, %arg18: memref<22x1xf32, #tpu.memory_space<vmem>>, %arg19: memref<512x128xf32, #tpu.memory_space<vmem>>, %arg20: memref<5x128xf32, #tpu.memory_space<vmem>>, %arg21: memref<1x128xf32, #tpu.memory_space<vmem>>, %arg22: memref<1x128xf32, #tpu.memory_space<vmem>>, %arg23: memref<128x49xf32, #tpu.memory_space<vmem>>, %arg24: memref<1x49xf32, #tpu.memory_space<vmem>>, %arg25: memref<6x10xf32, #tpu.memory_space<vmem>>, %arg26: memref<1x10xf32, #tpu.memory_space<vmem>>, %arg27: memref<64x64xf32, #tpu.memory_space<vmem>>, %arg28: memref<1x64xf32, #tpu.memory_space<vmem>>, %arg29: memref<22x64xf32, #tpu.memory_space<vmem>>, %arg30: memref<64x64xf32, #tpu.memory_space<vmem>>, %arg31: memref<1x64xf32, #tpu.memory_space<vmem>>, %arg32: memref<4x49x64xf32, #tpu.memory_space<vmem>>, %arg33: memref<1x4xf32, #tpu.memory_space<vmem>>, %arg34: memref<49x64xf32, #tpu.memory_space<vmem>>, %arg35: memref<22x49xf32, #tpu.memory_space<vmem>>, %arg36: memref<1x10xf32, #tpu.memory_space<vmem>>, %arg37: memref<1x4xf32, #tpu.memory_space<vmem>>) attributes {dimension_semantics = [], scalar_prefetch = 0 : i64, scratch_operands = 0 : i64, tpu.core_type = #tpu.core_type<tc>} {
    %c0 = arith.constant 0 : index
    %c0_0 = arith.constant 0 : index
    %0 = vector.load %arg0[%c0, %c0_0] : memref<22x5xf32, #tpu.memory_space<vmem>>, vector<22x5xf32>
    %c0_1 = arith.constant 0 : index
    %c0_2 = arith.constant 0 : index
    %1 = vector.load %arg2[%c0_1, %c0_2] : memref<22x1xf32, #tpu.memory_space<vmem>>, vector<22x1xf32>
    %c0_3 = arith.constant 0 : index
    %c0_4 = arith.constant 0 : index
    %2 = vector.load %arg6[%c0_3, %c0_4] : memref<49x5xf32, #tpu.memory_space<vmem>>, vector<49x5xf32>
    %c0_5 = arith.constant 0 : index
    %c0_6 = arith.constant 0 : index
    %3 = vector.load %arg1[%c0_5, %c0_6] : memref<5x22xf32, #tpu.memory_space<vmem>>, vector<5x22xf32>
    %cst = arith.constant dense<0.000000e+00> : vector<49x22xf32>
    %4 = tpu.matmul %2, %3, %cst {dimension_numbers = #tpu.dot_dimension_numbers<[1], [0], [0], [1], [0, 0, 1, 1], [], []>} : vector<49x5xf32>, vector<5x22xf32>, vector<49x22xf32> -> vector<49x22xf32>
    %c0_7 = arith.constant 0 : index
    %c0_8 = arith.constant 0 : index
    %5 = vector.load %arg7[%c0_7, %c0_8] : memref<49x1xf32, #tpu.memory_space<vmem>>, vector<49x1xf32>
    %6 = vector.broadcast %5 : vector<49x1xf32> to vector<49x22xf32>
    %7 = arith.addf %4, %6 : vector<49x22xf32>
    %cst_9 = arith.constant 0.000000e+00 : f32
    %8 = vector.broadcast %cst_9 : f32 to vector<49x22xf32>
    %9 = arith.maximumf %7, %8 : vector<49x22xf32>
    %c0_10 = arith.constant 0 : index
    %c0_11 = arith.constant 0 : index
    %10 = vector.load %arg8[%c0_10, %c0_11] : memref<5x22xf32, #tpu.memory_space<vmem>>, vector<5x22xf32>
    %cst_12 = arith.constant dense<0.000000e+00> : vector<22x22xf32>
    %11 = tpu.matmul %0, %10, %cst_12 {dimension_numbers = #tpu.dot_dimension_numbers<[1], [0], [0], [1], [0, 0, 1, 1], [], []>} : vector<22x5xf32>, vector<5x22xf32>, vector<22x22xf32> -> vector<22x22xf32>
    %c0_13 = arith.constant 0 : index
    %c0_14 = arith.constant 0 : index
    %12 = vector.load %arg9[%c0_13, %c0_14] : memref<1x22xf32, #tpu.memory_space<vmem>>, vector<1x22xf32>
    %13 = vector.broadcast %1 : vector<22x1xf32> to vector<22x22xf32>
    %14 = vector.broadcast %12 : vector<1x22xf32> to vector<22x22xf32>
    %15 = arith.mulf %13, %14 : vector<22x22xf32>
    %16 = arith.addf %11, %15 : vector<22x22xf32>
    %c0_15 = arith.constant 0 : index
    %c0_16 = arith.constant 0 : index
    %17 = vector.load %arg10[%c0_15, %c0_16] : memref<1x22xf32, #tpu.memory_space<vmem>>, vector<1x22xf32>
    %18 = vector.broadcast %17 : vector<1x22xf32> to vector<22x22xf32>
    %19 = arith.addf %16, %18 : vector<22x22xf32>
    %cst_17 = arith.constant 0.000000e+00 : f32
    %20 = vector.broadcast %cst_17 : f32 to vector<22x22xf32>
    %21 = arith.maximumf %19, %20 : vector<22x22xf32>
    %c0_18 = arith.constant 0 : index
    %c0_19 = arith.constant 0 : index
    %22 = vector.load %arg11[%c0_18, %c0_19] : memref<22x22xf32, #tpu.memory_space<vmem>>, vector<22x22xf32>
    %cst_20 = arith.constant dense<0.000000e+00> : vector<22x22xf32>
    %23 = tpu.matmul %22, %21, %cst_20 {dimension_numbers = #tpu.dot_dimension_numbers<[1], [0], [0], [1], [0, 0, 1, 1], [], []>} : vector<22x22xf32>, vector<22x22xf32>, vector<22x22xf32> -> vector<22x22xf32>
    %c0_21 = arith.constant 0 : index
    %c0_22 = arith.constant 0 : index
    %24 = vector.load %arg12[%c0_21, %c0_22] : memref<22x1xf32, #tpu.memory_space<vmem>>, vector<22x1xf32>
    %25 = vector.broadcast %24 : vector<22x1xf32> to vector<22x22xf32>
    %26 = arith.addf %23, %25 : vector<22x22xf32>
    %cst_23 = arith.constant 0.000000e+00 : f32
    %27 = vector.broadcast %cst_23 : f32 to vector<22x22xf32>
    %28 = arith.maximumf %26, %27 : vector<22x22xf32>
    %c0_24 = arith.constant 0 : index
    %c0_25 = arith.constant 0 : index
    %29 = vector.load %arg13[%c0_24, %c0_25] : memref<22x22xf32, #tpu.memory_space<vmem>>, vector<22x22xf32>
    %cst_26 = arith.constant dense<0.000000e+00> : vector<22x22xf32>
    %30 = tpu.matmul %29, %28, %cst_26 {dimension_numbers = #tpu.dot_dimension_numbers<[1], [0], [0], [1], [0, 0, 1, 1], [], []>} : vector<22x22xf32>, vector<22x22xf32>, vector<22x22xf32> -> vector<22x22xf32>
    %c0_27 = arith.constant 0 : index
    %c0_28 = arith.constant 0 : index
    %31 = vector.load %arg14[%c0_27, %c0_28] : memref<22x1xf32, #tpu.memory_space<vmem>>, vector<22x1xf32>
    %32 = vector.broadcast %31 : vector<22x1xf32> to vector<22x22xf32>
    %33 = arith.addf %30, %32 : vector<22x22xf32>
    %cst_29 = arith.constant 0.000000e+00 : f32
    %34 = vector.broadcast %cst_29 : f32 to vector<22x22xf32>
    %35 = arith.maximumf %33, %34 : vector<22x22xf32>
    %c0_30 = arith.constant 0 : index
    %c0_31 = arith.constant 0 : index
    %36 = vector.load %arg15[%c0_30, %c0_31] : memref<22x22xf32, #tpu.memory_space<vmem>>, vector<22x22xf32>
    %cst_32 = arith.constant dense<0.000000e+00> : vector<22x22xf32>
    %37 = tpu.matmul %36, %35, %cst_32 {dimension_numbers = #tpu.dot_dimension_numbers<[1], [0], [0], [1], [0, 0, 1, 1], [], []>} : vector<22x22xf32>, vector<22x22xf32>, vector<22x22xf32> -> vector<22x22xf32>
    %c0_33 = arith.constant 0 : index
    %c0_34 = arith.constant 0 : index
    %38 = vector.load %arg16[%c0_33, %c0_34] : memref<22x1xf32, #tpu.memory_space<vmem>>, vector<22x1xf32>
    %39 = vector.broadcast %38 : vector<22x1xf32> to vector<22x22xf32>
    %40 = arith.addf %37, %39 : vector<22x22xf32>
    %cst_35 = arith.constant 0.000000e+00 : f32
    %41 = vector.broadcast %cst_35 : f32 to vector<22x22xf32>
    %42 = arith.maximumf %40, %41 : vector<22x22xf32>
    %c0_36 = arith.constant 0 : index
    %c0_37 = arith.constant 0 : index
    %43 = vector.load %arg17[%c0_36, %c0_37] : memref<22x22xf32, #tpu.memory_space<vmem>>, vector<22x22xf32>
    %cst_38 = arith.constant dense<0.000000e+00> : vector<22x22xf32>
    %44 = tpu.matmul %43, %42, %cst_38 {dimension_numbers = #tpu.dot_dimension_numbers<[1], [0], [0], [1], [0, 0, 1, 1], [], []>} : vector<22x22xf32>, vector<22x22xf32>, vector<22x22xf32> -> vector<22x22xf32>
    %c0_39 = arith.constant 0 : index
    %c0_40 = arith.constant 0 : index
    %45 = vector.load %arg18[%c0_39, %c0_40] : memref<22x1xf32, #tpu.memory_space<vmem>>, vector<22x1xf32>
    %46 = vector.broadcast %45 : vector<22x1xf32> to vector<22x22xf32>
    %47 = arith.addf %44, %46 : vector<22x22xf32>
    %cst_41 = arith.constant 0.000000e+00 : f32
    %48 = vector.broadcast %cst_41 : f32 to vector<22x22xf32>
    %49 = arith.maximumf %47, %48 : vector<22x22xf32>
    %c0_42 = arith.constant 0 : index
    %c0_43 = arith.constant 0 : index
    %50 = vector.load %arg3[%c0_42, %c0_43] : memref<22x512xf32, #tpu.memory_space<vmem>>, vector<22x512xf32>
    %cst_44 = arith.constant dense<0.000000e+00> : vector<22x512xf32>
    %51 = tpu.matmul %49, %50, %cst_44 {dimension_numbers = #tpu.dot_dimension_numbers<[1], [0], [0], [1], [0, 0, 1, 1], [], []>} : vector<22x22xf32>, vector<22x512xf32>, vector<22x512xf32> -> vector<22x512xf32>
    %c0_45 = arith.constant 0 : index
    %c0_46 = arith.constant 0 : index
    %52 = vector.load %arg19[%c0_45, %c0_46] : memref<512x128xf32, #tpu.memory_space<vmem>>, vector<512x128xf32>
    %cst_47 = arith.constant dense<0.000000e+00> : vector<22x128xf32>
    %53 = tpu.matmul %51, %52, %cst_47 {dimension_numbers = #tpu.dot_dimension_numbers<[1], [0], [0], [1], [0, 0, 1, 1], [], []>} : vector<22x512xf32>, vector<512x128xf32>, vector<22x128xf32> -> vector<22x128xf32>
    %c0_48 = arith.constant 0 : index
    %c0_49 = arith.constant 0 : index
    %54 = vector.load %arg20[%c0_48, %c0_49] : memref<5x128xf32, #tpu.memory_space<vmem>>, vector<5x128xf32>
    %cst_50 = arith.constant dense<0.000000e+00> : vector<22x128xf32>
    %55 = tpu.matmul %0, %54, %cst_50 {dimension_numbers = #tpu.dot_dimension_numbers<[1], [0], [0], [1], [0, 0, 1, 1], [], []>} : vector<22x5xf32>, vector<5x128xf32>, vector<22x128xf32> -> vector<22x128xf32>
    %56 = arith.addf %53, %55 : vector<22x128xf32>
    %c0_51 = arith.constant 0 : index
    %c0_52 = arith.constant 0 : index
    %57 = vector.load %arg21[%c0_51, %c0_52] : memref<1x128xf32, #tpu.memory_space<vmem>>, vector<1x128xf32>
    %58 = vector.broadcast %1 : vector<22x1xf32> to vector<22x128xf32>
    %59 = vector.broadcast %57 : vector<1x128xf32> to vector<22x128xf32>
    %60 = arith.mulf %58, %59 : vector<22x128xf32>
    %61 = arith.addf %56, %60 : vector<22x128xf32>
    %c0_53 = arith.constant 0 : index
    %c0_54 = arith.constant 0 : index
    %62 = vector.load %arg22[%c0_53, %c0_54] : memref<1x128xf32, #tpu.memory_space<vmem>>, vector<1x128xf32>
    %63 = vector.broadcast %62 : vector<1x128xf32> to vector<22x128xf32>
    %64 = arith.addf %61, %63 : vector<22x128xf32>
    %cst_55 = arith.constant 0.000000e+00 : f32
    %65 = vector.broadcast %cst_55 : f32 to vector<22x128xf32>
    %66 = arith.maximumf %64, %65 : vector<22x128xf32>
    %c0_56 = arith.constant 0 : index
    %c0_57 = arith.constant 0 : index
    %67 = vector.load %arg23[%c0_56, %c0_57] : memref<128x49xf32, #tpu.memory_space<vmem>>, vector<128x49xf32>
    %cst_58 = arith.constant dense<0.000000e+00> : vector<22x49xf32>
    %68 = tpu.matmul %66, %67, %cst_58 {dimension_numbers = #tpu.dot_dimension_numbers<[1], [0], [0], [1], [0, 0, 1, 1], [], []>} : vector<22x128xf32>, vector<128x49xf32>, vector<22x49xf32> -> vector<22x49xf32>
    %c0_59 = arith.constant 0 : index
    %c0_60 = arith.constant 0 : index
    %69 = vector.load %arg24[%c0_59, %c0_60] : memref<1x49xf32, #tpu.memory_space<vmem>>, vector<1x49xf32>
    %70 = vector.broadcast %69 : vector<1x49xf32> to vector<22x49xf32>
    %71 = arith.addf %68, %70 : vector<22x49xf32>
    %cst_61 = arith.constant 0.000000e+00 : f32
    %72 = vector.broadcast %cst_61 : f32 to vector<22x49xf32>
    %73 = arith.maximumf %71, %72 : vector<22x49xf32>
    %c0_62 = arith.constant 0 : index
    %c0_63 = arith.constant 0 : index
    %74 = vector.load %arg35[%c0_62, %c0_63] : memref<22x49xf32, #tpu.memory_space<vmem>>, vector<22x49xf32>
    tpu.vector_store %arg35[%c0_62, %c0_63], %73 {strides = array<i32>} : memref<22x49xf32, #tpu.memory_space<vmem>>, vector<22x49xf32>,
    %c0_64 = arith.constant 0 : index
    %c0_65 = arith.constant 0 : index
    %75 = vector.load %arg4[%c0_64, %c0_65] : memref<1x6xf32, #tpu.memory_space<vmem>>, vector<1x6xf32>
    %c0_66 = arith.constant 0 : index
    %c0_67 = arith.constant 0 : index
    %76 = vector.load %arg25[%c0_66, %c0_67] : memref<6x10xf32, #tpu.memory_space<vmem>>, vector<6x10xf32>
    %cst_68 = arith.constant dense<0.000000e+00> : vector<1x10xf32>
    %77 = tpu.matmul %75, %76, %cst_68 {dimension_numbers = #tpu.dot_dimension_numbers<[1], [0], [0], [1], [0, 0, 1, 1], [], []>} : vector<1x6xf32>, vector<6x10xf32>, vector<1x10xf32> -> vector<1x10xf32>
    %c0_69 = arith.constant 0 : index
    %c0_70 = arith.constant 0 : index
    %78 = vector.load %arg26[%c0_69, %c0_70] : memref<1x10xf32, #tpu.memory_space<vmem>>, vector<1x10xf32>
    %79 = arith.addf %77, %78 : vector<1x10xf32>
    %cst_71 = arith.constant 0.000000e+00 : f32
    %80 = vector.broadcast %cst_71 : f32 to vector<1x10xf32>
    %81 = arith.maximumf %79, %80 : vector<1x10xf32>
    %c0_72 = arith.constant 0 : index
    %c0_73 = arith.constant 0 : index
    %82 = vector.load %arg36[%c0_72, %c0_73] : memref<1x10xf32, #tpu.memory_space<vmem>>, vector<1x10xf32>
    tpu.vector_store %arg36[%c0_72, %c0_73], %81 {strides = array<i32>} : memref<1x10xf32, #tpu.memory_space<vmem>>, vector<1x10xf32>,
    %c0_74 = arith.constant 0 : index
    %c0_75 = arith.constant 0 : index
    %83 = vector.load %arg5[%c0_74, %c0_75] : memref<49x64xf32, #tpu.memory_space<vmem>>, vector<49x64xf32>
    %c0_76 = arith.constant 0 : index
    %c0_77 = arith.constant 0 : index
    %84 = vector.load %arg27[%c0_76, %c0_77] : memref<64x64xf32, #tpu.memory_space<vmem>>, vector<64x64xf32>
    %cst_78 = arith.constant dense<0.000000e+00> : vector<49x64xf32>
    %85 = tpu.matmul %83, %84, %cst_78 {dimension_numbers = #tpu.dot_dimension_numbers<[1], [0], [0], [1], [0, 0, 1, 1], [], []>} : vector<49x64xf32>, vector<64x64xf32>, vector<49x64xf32> -> vector<49x64xf32>
    %c0_79 = arith.constant 0 : index
    %c0_80 = arith.constant 0 : index
    %86 = vector.load %arg28[%c0_79, %c0_80] : memref<1x64xf32, #tpu.memory_space<vmem>>, vector<1x64xf32>
    %87 = vector.broadcast %86 : vector<1x64xf32> to vector<49x64xf32>
    %88 = arith.addf %85, %87 : vector<49x64xf32>
    %cst_81 = arith.constant 0.000000e+00 : f32
    %89 = vector.broadcast %cst_81 : f32 to vector<49x64xf32>
    %90 = arith.maximumf %88, %89 : vector<49x64xf32>
    %c0_82 = arith.constant 0 : index
    %c0_83 = arith.constant 0 : index
    %91 = vector.load %arg34[%c0_82, %c0_83] : memref<49x64xf32, #tpu.memory_space<vmem>>, vector<49x64xf32>
    tpu.vector_store %arg34[%c0_82, %c0_83], %90 {strides = array<i32>} : memref<49x64xf32, #tpu.memory_space<vmem>>, vector<49x64xf32>,
    %c0_84 = arith.constant 0 : index
    %c0_85 = arith.constant 0 : index
    %92 = vector.load %arg29[%c0_84, %c0_85] : memref<22x64xf32, #tpu.memory_space<vmem>>, vector<22x64xf32>
    %cst_86 = arith.constant dense<0.000000e+00> : vector<49x64xf32>
    %93 = tpu.matmul %9, %92, %cst_86 {dimension_numbers = #tpu.dot_dimension_numbers<[1], [0], [0], [1], [0, 0, 1, 1], [], []>} : vector<49x22xf32>, vector<22x64xf32>, vector<49x64xf32> -> vector<49x64xf32>
    %c0_87 = arith.constant 0 : index
    %c0_88 = arith.constant 0 : index
    %94 = vector.load %arg30[%c0_87, %c0_88] : memref<64x64xf32, #tpu.memory_space<vmem>>, vector<64x64xf32>
    %cst_89 = arith.constant dense<0.000000e+00> : vector<49x64xf32>
    %95 = tpu.matmul %90, %94, %cst_89 {dimension_numbers = #tpu.dot_dimension_numbers<[1], [0], [0], [1], [0, 0, 1, 1], [], []>} : vector<49x64xf32>, vector<64x64xf32>, vector<49x64xf32> -> vector<49x64xf32>
    %96 = arith.addf %93, %95 : vector<49x64xf32>
    %c0_90 = arith.constant 0 : index
    %c0_91 = arith.constant 0 : index
    %97 = vector.load %arg31[%c0_90, %c0_91] : memref<1x64xf32, #tpu.memory_space<vmem>>, vector<1x64xf32>
    %98 = vector.broadcast %97 : vector<1x64xf32> to vector<49x64xf32>
    %99 = arith.addf %96, %98 : vector<49x64xf32>
    %cst_92 = arith.constant 0.000000e+00 : f32
    %100 = vector.broadcast %cst_92 : f32 to vector<49x64xf32>
    %101 = arith.maximumf %99, %100 : vector<49x64xf32>
    %102 = tpu.iota {dimensions = array<i32: 1>} : vector<1x4xi32>
    %c0_93 = arith.constant 0 : index
    %c0_94 = arith.constant 0 : index
    %c0_95 = arith.constant 0 : index
    %103 = vector.load %arg32[%c0_93, %c0_94, %c0_95] : memref<4x49x64xf32, #tpu.memory_space<vmem>>, vector<1x49x64xf32>
    %104 = vector.shape_cast %103 : vector<1x49x64xf32> to vector<49x64xf32>
    %105 = arith.mulf %101, %104 : vector<49x64xf32>
    %cst_96 = arith.constant dense<0.000000e+00> : vector<49xf32>
    %106 = vector.multi_reduction <add>, %105, %cst_96 [1] : vector<49x64xf32> to vector<49xf32>
    %107 = vector.shape_cast %106 : vector<49xf32> to vector<49x1xf32>
    %cst_97 = arith.constant dense<0.000000e+00> : vector<1xf32>
    %108 = vector.multi_reduction <add>, %107, %cst_97 [0] : vector<49x1xf32> to vector<1xf32>
    %109 = vector.shape_cast %108 : vector<1xf32> to vector<1x1xf32>
    %c0_i32 = arith.constant 0 : i32
    %110 = vector.broadcast %c0_i32 : i32 to vector<1x4xi32>
    %111 = arith.cmpi eq, %102, %110 : vector<1x4xi32>
    %112 = arith.extui %111 : vector<1x4xi1> to vector<1x4xi32>
    %113 = arith.sitofp %112 : vector<1x4xi32> to vector<1x4xf32>
    %114 = vector.broadcast %109 : vector<1x1xf32> to vector<1x4xf32>
    %115 = arith.mulf %114, %113 : vector<1x4xf32>
    %c1 = arith.constant 1 : index
    %c0_98 = arith.constant 0 : index
    %c0_99 = arith.constant 0 : index
    %116 = vector.load %arg32[%c1, %c0_98, %c0_99] : memref<4x49x64xf32, #tpu.memory_space<vmem>>, vector<1x49x64xf32>
    %117 = vector.shape_cast %116 : vector<1x49x64xf32> to vector<49x64xf32>
    %118 = arith.mulf %101, %117 : vector<49x64xf32>
    %cst_100 = arith.constant dense<0.000000e+00> : vector<49xf32>
    %119 = vector.multi_reduction <add>, %118, %cst_100 [1] : vector<49x64xf32> to vector<49xf32>
    %120 = vector.shape_cast %119 : vector<49xf32> to vector<49x1xf32>
    %cst_101 = arith.constant dense<0.000000e+00> : vector<1xf32>
    %121 = vector.multi_reduction <add>, %120, %cst_101 [0] : vector<49x1xf32> to vector<1xf32>
    %122 = vector.shape_cast %121 : vector<1xf32> to vector<1x1xf32>
    %c1_i32 = arith.constant 1 : i32
    %123 = vector.broadcast %c1_i32 : i32 to vector<1x4xi32>
    %124 = arith.cmpi eq, %102, %123 : vector<1x4xi32>
    %125 = arith.extui %124 : vector<1x4xi1> to vector<1x4xi32>
    %126 = arith.sitofp %125 : vector<1x4xi32> to vector<1x4xf32>
    %127 = vector.broadcast %122 : vector<1x1xf32> to vector<1x4xf32>
    %128 = arith.mulf %127, %126 : vector<1x4xf32>
    %129 = arith.addf %115, %128 : vector<1x4xf32>
    %c2 = arith.constant 2 : index
    %c0_102 = arith.constant 0 : index
    %c0_103 = arith.constant 0 : index
    %130 = vector.load %arg32[%c2, %c0_102, %c0_103] : memref<4x49x64xf32, #tpu.memory_space<vmem>>, vector<1x49x64xf32>
    %131 = vector.shape_cast %130 : vector<1x49x64xf32> to vector<49x64xf32>
    %132 = arith.mulf %101, %131 : vector<49x64xf32>
    %cst_104 = arith.constant dense<0.000000e+00> : vector<49xf32>
    %133 = vector.multi_reduction <add>, %132, %cst_104 [1] : vector<49x64xf32> to vector<49xf32>
    %134 = vector.shape_cast %133 : vector<49xf32> to vector<49x1xf32>
    %cst_105 = arith.constant dense<0.000000e+00> : vector<1xf32>
    %135 = vector.multi_reduction <add>, %134, %cst_105 [0] : vector<49x1xf32> to vector<1xf32>
    %136 = vector.shape_cast %135 : vector<1xf32> to vector<1x1xf32>
    %c2_i32 = arith.constant 2 : i32
    %137 = vector.broadcast %c2_i32 : i32 to vector<1x4xi32>
    %138 = arith.cmpi eq, %102, %137 : vector<1x4xi32>
    %139 = arith.extui %138 : vector<1x4xi1> to vector<1x4xi32>
    %140 = arith.sitofp %139 : vector<1x4xi32> to vector<1x4xf32>
    %141 = vector.broadcast %136 : vector<1x1xf32> to vector<1x4xf32>
    %142 = arith.mulf %141, %140 : vector<1x4xf32>
    %143 = arith.addf %129, %142 : vector<1x4xf32>
    %c3 = arith.constant 3 : index
    %c0_106 = arith.constant 0 : index
    %c0_107 = arith.constant 0 : index
    %144 = vector.load %arg32[%c3, %c0_106, %c0_107] : memref<4x49x64xf32, #tpu.memory_space<vmem>>, vector<1x49x64xf32>
    %145 = vector.shape_cast %144 : vector<1x49x64xf32> to vector<49x64xf32>
    %146 = arith.mulf %101, %145 : vector<49x64xf32>
    %cst_108 = arith.constant dense<0.000000e+00> : vector<49xf32>
    %147 = vector.multi_reduction <add>, %146, %cst_108 [1] : vector<49x64xf32> to vector<49xf32>
    %148 = vector.shape_cast %147 : vector<49xf32> to vector<49x1xf32>
    %cst_109 = arith.constant dense<0.000000e+00> : vector<1xf32>
    %149 = vector.multi_reduction <add>, %148, %cst_109 [0] : vector<49x1xf32> to vector<1xf32>
    %150 = vector.shape_cast %149 : vector<1xf32> to vector<1x1xf32>
    %c3_i32 = arith.constant 3 : i32
    %151 = vector.broadcast %c3_i32 : i32 to vector<1x4xi32>
    %152 = arith.cmpi eq, %102, %151 : vector<1x4xi32>
    %153 = arith.extui %152 : vector<1x4xi1> to vector<1x4xi32>
    %154 = arith.sitofp %153 : vector<1x4xi32> to vector<1x4xf32>
    %155 = vector.broadcast %150 : vector<1x1xf32> to vector<1x4xf32>
    %156 = arith.mulf %155, %154 : vector<1x4xf32>
    %157 = arith.addf %143, %156 : vector<1x4xf32>
    %c0_110 = arith.constant 0 : index
    %c0_111 = arith.constant 0 : index
    %158 = vector.load %arg33[%c0_110, %c0_111] : memref<1x4xf32, #tpu.memory_space<vmem>>, vector<1x4xf32>
    %159 = arith.addf %157, %158 : vector<1x4xf32>
    %cst_112 = arith.constant dense<0xFF800000> : vector<1xf32>
    %160 = vector.multi_reduction <maximumf>, %159, %cst_112 [1] : vector<1x4xf32> to vector<1xf32>
    %161 = vector.shape_cast %160 : vector<1xf32> to vector<1x1xf32>
    %162 = vector.broadcast %161 : vector<1x1xf32> to vector<1x4xf32>
    %163 = arith.subf %159, %162 : vector<1x4xf32>
    %164 = math.exp %163 : vector<1x4xf32>
    %cst_113 = arith.constant dense<0.000000e+00> : vector<1xf32>
    %165 = vector.multi_reduction <add>, %164, %cst_113 [1] : vector<1x4xf32> to vector<1xf32>
    %166 = vector.shape_cast %165 : vector<1xf32> to vector<1x1xf32>
    %167 = tpu.reciprocal %166 {approx = true} : vector<1x1xf32> -> vector<1x1xf32>
    %168 = vector.broadcast %167 : vector<1x1xf32> to vector<1x4xf32>
    %169 = arith.mulf %164, %168 : vector<1x4xf32>
    %c0_114 = arith.constant 0 : index
    %c0_115 = arith.constant 0 : index
    %170 = vector.load %arg37[%c0_114, %c0_115] : memref<1x4xf32, #tpu.memory_space<vmem>>, vector<1x4xf32>
    tpu.vector_store %arg37[%c0_114, %c0_115], %169 {strides = array<i32>} : memref<1x4xf32, #tpu.memory_space<vmem>>, vector<1x4xf32>,
    return
  }
}

module attributes {stable_mosaic.version = 11 : i64} {
  func.func @_fuse_kernel(%arg0: memref<8x8xf32, #tpu.memory_space<vmem>>, %arg1: memref<8x22xf32, #tpu.memory_space<vmem>>, %arg2: memref<1x8xf32, #tpu.memory_space<vmem>>, %arg3: memref<49x64xf32, #tpu.memory_space<vmem>>, %arg4: memref<49x22xf32, #tpu.memory_space<vmem>>, %arg5: memref<1x10xf32, #tpu.memory_space<vmem>>, %arg6: memref<1x4xf32, #tpu.memory_space<vmem>>, %arg7: memref<22x22xf32, #tpu.memory_space<vmem>>, %arg8: memref<64x64xf32, #tpu.memory_space<vmem>>, %arg9: memref<22x64xf32, #tpu.memory_space<vmem>>, %arg10: memref<10x64xf32, #tpu.memory_space<vmem>>, %arg11: memref<4x64xf32, #tpu.memory_space<vmem>>, %arg12: memref<22x64xf32, #tpu.memory_space<vmem>>, %arg13: memref<1x64xf32, #tpu.memory_space<vmem>>, %arg14: memref<49x64xf32, #tpu.memory_space<vmem>>) attributes {dimension_semantics = [], scalar_prefetch = 0 : i64, scratch_operands = 0 : i64, tpu.core_type = #tpu.core_type<tc>} {
    %c0 = arith.constant 0 : index
    %c0_0 = arith.constant 0 : index
    %0 = vector.load %arg0[%c0, %c0_0] : memref<8x8xf32, #tpu.memory_space<vmem>>, vector<8x8xf32>
    %c0_1 = arith.constant 0 : index
    %c0_2 = arith.constant 0 : index
    %1 = vector.load %arg1[%c0_1, %c0_2] : memref<8x22xf32, #tpu.memory_space<vmem>>, vector<8x22xf32>
    %cst = arith.constant dense<0.000000e+00> : vector<8x22xf32>
    %2 = tpu.matmul %0, %1, %cst {dimension_numbers = #tpu.dot_dimension_numbers<[1], [0], [0], [1], [0, 0, 1, 1], [], []>} : vector<8x8xf32>, vector<8x22xf32>, vector<8x22xf32> -> vector<8x22xf32>
    %c0_3 = arith.constant 0 : index
    %c0_4 = arith.constant 0 : index
    %3 = vector.load %arg7[%c0_3, %c0_4] : memref<22x22xf32, #tpu.memory_space<vmem>>, vector<22x22xf32>
    %cst_5 = arith.constant dense<0.000000e+00> : vector<8x22xf32>
    %4 = tpu.matmul %2, %3, %cst_5 {dimension_numbers = #tpu.dot_dimension_numbers<[1], [0], [0], [1], [0, 0, 1, 1], [], []>} : vector<8x22xf32>, vector<22x22xf32>, vector<8x22xf32> -> vector<8x22xf32>
    %cst_6 = arith.constant 0.000000e+00 : f32
    %5 = vector.broadcast %cst_6 : f32 to vector<8x22xf32>
    %6 = arith.maximumf %4, %5 : vector<8x22xf32>
    %c0_7 = arith.constant 0 : index
    %c0_8 = arith.constant 0 : index
    %7 = vector.load %arg2[%c0_7, %c0_8] : memref<1x8xf32, #tpu.memory_space<vmem>>, vector<1x8xf32>
    %cst_9 = arith.constant dense<0.000000e+00> : vector<1x22xf32>
    %8 = tpu.matmul %7, %6, %cst_9 {dimension_numbers = #tpu.dot_dimension_numbers<[1], [0], [0], [1], [0, 0, 1, 1], [], []>} : vector<1x8xf32>, vector<8x22xf32>, vector<1x22xf32> -> vector<1x22xf32>
    %c0_10 = arith.constant 0 : index
    %c0_11 = arith.constant 0 : index
    %9 = vector.load %arg5[%c0_10, %c0_11] : memref<1x10xf32, #tpu.memory_space<vmem>>, vector<1x10xf32>
    %c0_12 = arith.constant 0 : index
    %c0_13 = arith.constant 0 : index
    %10 = vector.load %arg10[%c0_12, %c0_13] : memref<10x64xf32, #tpu.memory_space<vmem>>, vector<10x64xf32>
    %cst_14 = arith.constant dense<0.000000e+00> : vector<1x64xf32>
    %11 = tpu.matmul %9, %10, %cst_14 {dimension_numbers = #tpu.dot_dimension_numbers<[1], [0], [0], [1], [0, 0, 1, 1], [], []>} : vector<1x10xf32>, vector<10x64xf32>, vector<1x64xf32> -> vector<1x64xf32>
    %c0_15 = arith.constant 0 : index
    %c0_16 = arith.constant 0 : index
    %12 = vector.load %arg6[%c0_15, %c0_16] : memref<1x4xf32, #tpu.memory_space<vmem>>, vector<1x4xf32>
    %c0_17 = arith.constant 0 : index
    %c0_18 = arith.constant 0 : index
    %13 = vector.load %arg11[%c0_17, %c0_18] : memref<4x64xf32, #tpu.memory_space<vmem>>, vector<4x64xf32>
    %cst_19 = arith.constant dense<0.000000e+00> : vector<1x64xf32>
    %14 = tpu.matmul %12, %13, %cst_19 {dimension_numbers = #tpu.dot_dimension_numbers<[1], [0], [0], [1], [0, 0, 1, 1], [], []>} : vector<1x4xf32>, vector<4x64xf32>, vector<1x64xf32> -> vector<1x64xf32>
    %15 = arith.addf %11, %14 : vector<1x64xf32>
    %c0_20 = arith.constant 0 : index
    %c0_21 = arith.constant 0 : index
    %16 = vector.load %arg12[%c0_20, %c0_21] : memref<22x64xf32, #tpu.memory_space<vmem>>, vector<22x64xf32>
    %cst_22 = arith.constant dense<0.000000e+00> : vector<1x64xf32>
    %17 = tpu.matmul %8, %16, %cst_22 {dimension_numbers = #tpu.dot_dimension_numbers<[1], [0], [0], [1], [0, 0, 1, 1], [], []>} : vector<1x22xf32>, vector<22x64xf32>, vector<1x64xf32> -> vector<1x64xf32>
    %18 = arith.addf %15, %17 : vector<1x64xf32>
    %c0_23 = arith.constant 0 : index
    %c0_24 = arith.constant 0 : index
    %19 = vector.load %arg13[%c0_23, %c0_24] : memref<1x64xf32, #tpu.memory_space<vmem>>, vector<1x64xf32>
    %20 = arith.addf %18, %19 : vector<1x64xf32>
    %c0_25 = arith.constant 0 : index
    %c0_26 = arith.constant 0 : index
    %21 = vector.load %arg3[%c0_25, %c0_26] : memref<49x64xf32, #tpu.memory_space<vmem>>, vector<49x64xf32>
    %c0_27 = arith.constant 0 : index
    %c0_28 = arith.constant 0 : index
    %22 = vector.load %arg8[%c0_27, %c0_28] : memref<64x64xf32, #tpu.memory_space<vmem>>, vector<64x64xf32>
    %cst_29 = arith.constant dense<0.000000e+00> : vector<49x64xf32>
    %23 = tpu.matmul %21, %22, %cst_29 {dimension_numbers = #tpu.dot_dimension_numbers<[1], [0], [0], [1], [0, 0, 1, 1], [], []>} : vector<49x64xf32>, vector<64x64xf32>, vector<49x64xf32> -> vector<49x64xf32>
    %c0_30 = arith.constant 0 : index
    %c0_31 = arith.constant 0 : index
    %24 = vector.load %arg4[%c0_30, %c0_31] : memref<49x22xf32, #tpu.memory_space<vmem>>, vector<49x22xf32>
    %c0_32 = arith.constant 0 : index
    %c0_33 = arith.constant 0 : index
    %25 = vector.load %arg9[%c0_32, %c0_33] : memref<22x64xf32, #tpu.memory_space<vmem>>, vector<22x64xf32>
    %cst_34 = arith.constant dense<0.000000e+00> : vector<49x64xf32>
    %26 = tpu.matmul %24, %25, %cst_34 {dimension_numbers = #tpu.dot_dimension_numbers<[1], [0], [0], [1], [0, 0, 1, 1], [], []>} : vector<49x22xf32>, vector<22x64xf32>, vector<49x64xf32> -> vector<49x64xf32>
    %27 = arith.addf %23, %26 : vector<49x64xf32>
    %28 = vector.broadcast %20 : vector<1x64xf32> to vector<49x64xf32>
    %29 = arith.addf %27, %28 : vector<49x64xf32>
    %cst_35 = arith.constant 0.000000e+00 : f32
    %30 = vector.broadcast %cst_35 : f32 to vector<49x64xf32>
    %31 = arith.maximumf %29, %30 : vector<49x64xf32>
    %c0_36 = arith.constant 0 : index
    %c0_37 = arith.constant 0 : index
    %32 = vector.load %arg14[%c0_36, %c0_37] : memref<49x64xf32, #tpu.memory_space<vmem>>, vector<49x64xf32>
    tpu.vector_store %arg14[%c0_36, %c0_37], %31 {strides = array<i32>} : memref<49x64xf32, #tpu.memory_space<vmem>>, vector<49x64xf32>,
    return
  }
}

module attributes {stable_mosaic.version = 11 : i64} {
  func.func @_lstm_head_kernel(%arg0: memref<1x3136xf32, #tpu.memory_space<vmem>>, %arg1: memref<1x64xf32, #tpu.memory_space<vmem>>, %arg2: memref<1x64xf32, #tpu.memory_space<vmem>>, %arg3: memref<1x64xf32, #tpu.memory_space<vmem>>, %arg4: memref<1x64xf32, #tpu.memory_space<vmem>>, %arg5: memref<1x6xf32, #tpu.memory_space<vmem>>, %arg6: memref<4x3136x64xf32, #tpu.memory_space<vmem>>, %arg7: memref<4x64x64xf32, #tpu.memory_space<vmem>>, %arg8: memref<4x1x64xf32, #tpu.memory_space<vmem>>, %arg9: memref<4x64x64xf32, #tpu.memory_space<vmem>>, %arg10: memref<4x64x64xf32, #tpu.memory_space<vmem>>, %arg11: memref<4x1x64xf32, #tpu.memory_space<vmem>>, %arg12: memref<64x6xf32, #tpu.memory_space<vmem>>, %arg13: memref<1x6xf32, #tpu.memory_space<vmem>>, %arg14: memref<64x64xf32, #tpu.memory_space<vmem>>, %arg15: memref<1x64xf32, #tpu.memory_space<vmem>>, %arg16: memref<64x1xf32, #tpu.memory_space<vmem>>, %arg17: memref<1x1xf32, #tpu.memory_space<vmem>>, %arg18: memref<1x6xf32, #tpu.memory_space<vmem>>, %arg19: memref<1x1xf32, #tpu.memory_space<vmem>>, %arg20: memref<1x64xf32, #tpu.memory_space<vmem>>, %arg21: memref<1x64xf32, #tpu.memory_space<vmem>>, %arg22: memref<1x64xf32, #tpu.memory_space<vmem>>, %arg23: memref<1x64xf32, #tpu.memory_space<vmem>>) attributes {dimension_semantics = [], scalar_prefetch = 0 : i64, scratch_operands = 0 : i64, tpu.core_type = #tpu.core_type<tc>} {
    %c0 = arith.constant 0 : index
    %c0_0 = arith.constant 0 : index
    %0 = vector.load %arg0[%c0, %c0_0] : memref<1x3136xf32, #tpu.memory_space<vmem>>, vector<1x3136xf32>
    %c0_1 = arith.constant 0 : index
    %c0_2 = arith.constant 0 : index
    %1 = vector.load %arg1[%c0_1, %c0_2] : memref<1x64xf32, #tpu.memory_space<vmem>>, vector<1x64xf32>
    %c0_3 = arith.constant 0 : index
    %c0_4 = arith.constant 0 : index
    %2 = vector.load %arg2[%c0_3, %c0_4] : memref<1x64xf32, #tpu.memory_space<vmem>>, vector<1x64xf32>
    %c0_5 = arith.constant 0 : index
    %c0_6 = arith.constant 0 : index
    %c0_7 = arith.constant 0 : index
    %3 = vector.load %arg6[%c0_5, %c0_6, %c0_7] : memref<4x3136x64xf32, #tpu.memory_space<vmem>>, vector<1x3136x64xf32>
    %4 = vector.shape_cast %3 : vector<1x3136x64xf32> to vector<3136x64xf32>
    %cst = arith.constant dense<0.000000e+00> : vector<1x64xf32>
    %5 = tpu.matmul %0, %4, %cst {dimension_numbers = #tpu.dot_dimension_numbers<[1], [0], [0], [1], [0, 0, 1, 1], [], []>} : vector<1x3136xf32>, vector<3136x64xf32>, vector<1x64xf32> -> vector<1x64xf32>
    %c0_8 = arith.constant 0 : index
    %c0_9 = arith.constant 0 : index
    %c0_10 = arith.constant 0 : index
    %6 = vector.load %arg7[%c0_8, %c0_9, %c0_10] : memref<4x64x64xf32, #tpu.memory_space<vmem>>, vector<1x64x64xf32>
    %7 = vector.shape_cast %6 : vector<1x64x64xf32> to vector<64x64xf32>
    %cst_11 = arith.constant dense<0.000000e+00> : vector<1x64xf32>
    %8 = tpu.matmul %1, %7, %cst_11 {dimension_numbers = #tpu.dot_dimension_numbers<[1], [0], [0], [1], [0, 0, 1, 1], [], []>} : vector<1x64xf32>, vector<64x64xf32>, vector<1x64xf32> -> vector<1x64xf32>
    %9 = arith.addf %5, %8 : vector<1x64xf32>
    %c0_12 = arith.constant 0 : index
    %c0_13 = arith.constant 0 : index
    %c0_14 = arith.constant 0 : index
    %10 = vector.load %arg8[%c0_12, %c0_13, %c0_14] : memref<4x1x64xf32, #tpu.memory_space<vmem>>, vector<1x1x64xf32>
    %11 = vector.shape_cast %10 : vector<1x1x64xf32> to vector<1x64xf32>
    %12 = arith.addf %9, %11 : vector<1x64xf32>
    %cst_15 = arith.constant 0.000000e+00 : f32
    %13 = vector.broadcast %cst_15 : f32 to vector<1x64xf32>
    %14 = arith.subf %13, %12 : vector<1x64xf32>
    %15 = math.exp %14 : vector<1x64xf32>
    %cst_16 = arith.constant 1.000000e+00 : f32
    %16 = vector.broadcast %cst_16 : f32 to vector<1x64xf32>
    %17 = arith.addf %16, %15 : vector<1x64xf32>
    %cst_17 = arith.constant 1.000000e+00 : f32
    %18 = vector.broadcast %cst_17 : f32 to vector<1x64xf32>
    %19 = arith.divf %18, %17 : vector<1x64xf32>
    %c1 = arith.constant 1 : index
    %c0_18 = arith.constant 0 : index
    %c0_19 = arith.constant 0 : index
    %20 = vector.load %arg6[%c1, %c0_18, %c0_19] : memref<4x3136x64xf32, #tpu.memory_space<vmem>>, vector<1x3136x64xf32>
    %21 = vector.shape_cast %20 : vector<1x3136x64xf32> to vector<3136x64xf32>
    %cst_20 = arith.constant dense<0.000000e+00> : vector<1x64xf32>
    %22 = tpu.matmul %0, %21, %cst_20 {dimension_numbers = #tpu.dot_dimension_numbers<[1], [0], [0], [1], [0, 0, 1, 1], [], []>} : vector<1x3136xf32>, vector<3136x64xf32>, vector<1x64xf32> -> vector<1x64xf32>
    %c1_21 = arith.constant 1 : index
    %c0_22 = arith.constant 0 : index
    %c0_23 = arith.constant 0 : index
    %23 = vector.load %arg7[%c1_21, %c0_22, %c0_23] : memref<4x64x64xf32, #tpu.memory_space<vmem>>, vector<1x64x64xf32>
    %24 = vector.shape_cast %23 : vector<1x64x64xf32> to vector<64x64xf32>
    %cst_24 = arith.constant dense<0.000000e+00> : vector<1x64xf32>
    %25 = tpu.matmul %1, %24, %cst_24 {dimension_numbers = #tpu.dot_dimension_numbers<[1], [0], [0], [1], [0, 0, 1, 1], [], []>} : vector<1x64xf32>, vector<64x64xf32>, vector<1x64xf32> -> vector<1x64xf32>
    %26 = arith.addf %22, %25 : vector<1x64xf32>
    %c1_25 = arith.constant 1 : index
    %c0_26 = arith.constant 0 : index
    %c0_27 = arith.constant 0 : index
    %27 = vector.load %arg8[%c1_25, %c0_26, %c0_27] : memref<4x1x64xf32, #tpu.memory_space<vmem>>, vector<1x1x64xf32>
    %28 = vector.shape_cast %27 : vector<1x1x64xf32> to vector<1x64xf32>
    %29 = arith.addf %26, %28 : vector<1x64xf32>
    %cst_28 = arith.constant 0.000000e+00 : f32
    %30 = vector.broadcast %cst_28 : f32 to vector<1x64xf32>
    %31 = arith.subf %30, %29 : vector<1x64xf32>
    %32 = math.exp %31 : vector<1x64xf32>
    %cst_29 = arith.constant 1.000000e+00 : f32
    %33 = vector.broadcast %cst_29 : f32 to vector<1x64xf32>
    %34 = arith.addf %33, %32 : vector<1x64xf32>
    %cst_30 = arith.constant 1.000000e+00 : f32
    %35 = vector.broadcast %cst_30 : f32 to vector<1x64xf32>
    %36 = arith.divf %35, %34 : vector<1x64xf32>
    %c2 = arith.constant 2 : index
    %c0_31 = arith.constant 0 : index
    %c0_32 = arith.constant 0 : index
    %37 = vector.load %arg6[%c2, %c0_31, %c0_32] : memref<4x3136x64xf32, #tpu.memory_space<vmem>>, vector<1x3136x64xf32>
    %38 = vector.shape_cast %37 : vector<1x3136x64xf32> to vector<3136x64xf32>
    %cst_33 = arith.constant dense<0.000000e+00> : vector<1x64xf32>
    %39 = tpu.matmul %0, %38, %cst_33 {dimension_numbers = #tpu.dot_dimension_numbers<[1], [0], [0], [1], [0, 0, 1, 1], [], []>} : vector<1x3136xf32>, vector<3136x64xf32>, vector<1x64xf32> -> vector<1x64xf32>
    %c2_34 = arith.constant 2 : index
    %c0_35 = arith.constant 0 : index
    %c0_36 = arith.constant 0 : index
    %40 = vector.load %arg7[%c2_34, %c0_35, %c0_36] : memref<4x64x64xf32, #tpu.memory_space<vmem>>, vector<1x64x64xf32>
    %41 = vector.shape_cast %40 : vector<1x64x64xf32> to vector<64x64xf32>
    %cst_37 = arith.constant dense<0.000000e+00> : vector<1x64xf32>
    %42 = tpu.matmul %1, %41, %cst_37 {dimension_numbers = #tpu.dot_dimension_numbers<[1], [0], [0], [1], [0, 0, 1, 1], [], []>} : vector<1x64xf32>, vector<64x64xf32>, vector<1x64xf32> -> vector<1x64xf32>
    %43 = arith.addf %39, %42 : vector<1x64xf32>
    %c2_38 = arith.constant 2 : index
    %c0_39 = arith.constant 0 : index
    %c0_40 = arith.constant 0 : index
    %44 = vector.load %arg8[%c2_38, %c0_39, %c0_40] : memref<4x1x64xf32, #tpu.memory_space<vmem>>, vector<1x1x64xf32>
    %45 = vector.shape_cast %44 : vector<1x1x64xf32> to vector<1x64xf32>
    %46 = arith.addf %43, %45 : vector<1x64xf32>
    %47 = math.tanh %46 : vector<1x64xf32>
    %c3 = arith.constant 3 : index
    %c0_41 = arith.constant 0 : index
    %c0_42 = arith.constant 0 : index
    %48 = vector.load %arg6[%c3, %c0_41, %c0_42] : memref<4x3136x64xf32, #tpu.memory_space<vmem>>, vector<1x3136x64xf32>
    %49 = vector.shape_cast %48 : vector<1x3136x64xf32> to vector<3136x64xf32>
    %cst_43 = arith.constant dense<0.000000e+00> : vector<1x64xf32>
    %50 = tpu.matmul %0, %49, %cst_43 {dimension_numbers = #tpu.dot_dimension_numbers<[1], [0], [0], [1], [0, 0, 1, 1], [], []>} : vector<1x3136xf32>, vector<3136x64xf32>, vector<1x64xf32> -> vector<1x64xf32>
    %c3_44 = arith.constant 3 : index
    %c0_45 = arith.constant 0 : index
    %c0_46 = arith.constant 0 : index
    %51 = vector.load %arg7[%c3_44, %c0_45, %c0_46] : memref<4x64x64xf32, #tpu.memory_space<vmem>>, vector<1x64x64xf32>
    %52 = vector.shape_cast %51 : vector<1x64x64xf32> to vector<64x64xf32>
    %cst_47 = arith.constant dense<0.000000e+00> : vector<1x64xf32>
    %53 = tpu.matmul %1, %52, %cst_47 {dimension_numbers = #tpu.dot_dimension_numbers<[1], [0], [0], [1], [0, 0, 1, 1], [], []>} : vector<1x64xf32>, vector<64x64xf32>, vector<1x64xf32> -> vector<1x64xf32>
    %54 = arith.addf %50, %53 : vector<1x64xf32>
    %c3_48 = arith.constant 3 : index
    %c0_49 = arith.constant 0 : index
    %c0_50 = arith.constant 0 : index
    %55 = vector.load %arg8[%c3_48, %c0_49, %c0_50] : memref<4x1x64xf32, #tpu.memory_space<vmem>>, vector<1x1x64xf32>
    %56 = vector.shape_cast %55 : vector<1x1x64xf32> to vector<1x64xf32>
    %57 = arith.addf %54, %56 : vector<1x64xf32>
    %cst_51 = arith.constant 0.000000e+00 : f32
    %58 = vector.broadcast %cst_51 : f32 to vector<1x64xf32>
    %59 = arith.subf %58, %57 : vector<1x64xf32>
    %60 = math.exp %59 : vector<1x64xf32>
    %cst_52 = arith.constant 1.000000e+00 : f32
    %61 = vector.broadcast %cst_52 : f32 to vector<1x64xf32>
    %62 = arith.addf %61, %60 : vector<1x64xf32>
    %cst_53 = arith.constant 1.000000e+00 : f32
    %63 = vector.broadcast %cst_53 : f32 to vector<1x64xf32>
    %64 = arith.divf %63, %62 : vector<1x64xf32>
    %65 = arith.mulf %36, %2 : vector<1x64xf32>
    %66 = arith.mulf %19, %47 : vector<1x64xf32>
    %67 = arith.addf %65, %66 : vector<1x64xf32>
    %68 = math.tanh %67 : vector<1x64xf32>
    %69 = arith.mulf %64, %68 : vector<1x64xf32>
    %c0_54 = arith.constant 0 : index
    %c0_55 = arith.constant 0 : index
    %70 = vector.load %arg3[%c0_54, %c0_55] : memref<1x64xf32, #tpu.memory_space<vmem>>, vector<1x64xf32>
    %c0_56 = arith.constant 0 : index
    %c0_57 = arith.constant 0 : index
    %71 = vector.load %arg4[%c0_56, %c0_57] : memref<1x64xf32, #tpu.memory_space<vmem>>, vector<1x64xf32>
    %c0_58 = arith.constant 0 : index
    %c0_59 = arith.constant 0 : index
    %c0_60 = arith.constant 0 : index
    %72 = vector.load %arg9[%c0_58, %c0_59, %c0_60] : memref<4x64x64xf32, #tpu.memory_space<vmem>>, vector<1x64x64xf32>
    %73 = vector.shape_cast %72 : vector<1x64x64xf32> to vector<64x64xf32>
    %cst_61 = arith.constant dense<0.000000e+00> : vector<1x64xf32>
    %74 = tpu.matmul %69, %73, %cst_61 {dimension_numbers = #tpu.dot_dimension_numbers<[1], [0], [0], [1], [0, 0, 1, 1], [], []>} : vector<1x64xf32>, vector<64x64xf32>, vector<1x64xf32> -> vector<1x64xf32>
    %c0_62 = arith.constant 0 : index
    %c0_63 = arith.constant 0 : index
    %c0_64 = arith.constant 0 : index
    %75 = vector.load %arg10[%c0_62, %c0_63, %c0_64] : memref<4x64x64xf32, #tpu.memory_space<vmem>>, vector<1x64x64xf32>
    %76 = vector.shape_cast %75 : vector<1x64x64xf32> to vector<64x64xf32>
    %cst_65 = arith.constant dense<0.000000e+00> : vector<1x64xf32>
    %77 = tpu.matmul %70, %76, %cst_65 {dimension_numbers = #tpu.dot_dimension_numbers<[1], [0], [0], [1], [0, 0, 1, 1], [], []>} : vector<1x64xf32>, vector<64x64xf32>, vector<1x64xf32> -> vector<1x64xf32>
    %78 = arith.addf %74, %77 : vector<1x64xf32>
    %c0_66 = arith.constant 0 : index
    %c0_67 = arith.constant 0 : index
    %c0_68 = arith.constant 0 : index
    %79 = vector.load %arg11[%c0_66, %c0_67, %c0_68] : memref<4x1x64xf32, #tpu.memory_space<vmem>>, vector<1x1x64xf32>
    %80 = vector.shape_cast %79 : vector<1x1x64xf32> to vector<1x64xf32>
    %81 = arith.addf %78, %80 : vector<1x64xf32>
    %cst_69 = arith.constant 0.000000e+00 : f32
    %82 = vector.broadcast %cst_69 : f32 to vector<1x64xf32>
    %83 = arith.subf %82, %81 : vector<1x64xf32>
    %84 = math.exp %83 : vector<1x64xf32>
    %cst_70 = arith.constant 1.000000e+00 : f32
    %85 = vector.broadcast %cst_70 : f32 to vector<1x64xf32>
    %86 = arith.addf %85, %84 : vector<1x64xf32>
    %cst_71 = arith.constant 1.000000e+00 : f32
    %87 = vector.broadcast %cst_71 : f32 to vector<1x64xf32>
    %88 = arith.divf %87, %86 : vector<1x64xf32>
    %c1_72 = arith.constant 1 : index
    %c0_73 = arith.constant 0 : index
    %c0_74 = arith.constant 0 : index
    %89 = vector.load %arg9[%c1_72, %c0_73, %c0_74] : memref<4x64x64xf32, #tpu.memory_space<vmem>>, vector<1x64x64xf32>
    %90 = vector.shape_cast %89 : vector<1x64x64xf32> to vector<64x64xf32>
    %cst_75 = arith.constant dense<0.000000e+00> : vector<1x64xf32>
    %91 = tpu.matmul %69, %90, %cst_75 {dimension_numbers = #tpu.dot_dimension_numbers<[1], [0], [0], [1], [0, 0, 1, 1], [], []>} : vector<1x64xf32>, vector<64x64xf32>, vector<1x64xf32> -> vector<1x64xf32>
    %c1_76 = arith.constant 1 : index
    %c0_77 = arith.constant 0 : index
    %c0_78 = arith.constant 0 : index
    %92 = vector.load %arg10[%c1_76, %c0_77, %c0_78] : memref<4x64x64xf32, #tpu.memory_space<vmem>>, vector<1x64x64xf32>
    %93 = vector.shape_cast %92 : vector<1x64x64xf32> to vector<64x64xf32>
    %cst_79 = arith.constant dense<0.000000e+00> : vector<1x64xf32>
    %94 = tpu.matmul %70, %93, %cst_79 {dimension_numbers = #tpu.dot_dimension_numbers<[1], [0], [0], [1], [0, 0, 1, 1], [], []>} : vector<1x64xf32>, vector<64x64xf32>, vector<1x64xf32> -> vector<1x64xf32>
    %95 = arith.addf %91, %94 : vector<1x64xf32>
    %c1_80 = arith.constant 1 : index
    %c0_81 = arith.constant 0 : index
    %c0_82 = arith.constant 0 : index
    %96 = vector.load %arg11[%c1_80, %c0_81, %c0_82] : memref<4x1x64xf32, #tpu.memory_space<vmem>>, vector<1x1x64xf32>
    %97 = vector.shape_cast %96 : vector<1x1x64xf32> to vector<1x64xf32>
    %98 = arith.addf %95, %97 : vector<1x64xf32>
    %cst_83 = arith.constant 0.000000e+00 : f32
    %99 = vector.broadcast %cst_83 : f32 to vector<1x64xf32>
    %100 = arith.subf %99, %98 : vector<1x64xf32>
    %101 = math.exp %100 : vector<1x64xf32>
    %cst_84 = arith.constant 1.000000e+00 : f32
    %102 = vector.broadcast %cst_84 : f32 to vector<1x64xf32>
    %103 = arith.addf %102, %101 : vector<1x64xf32>
    %cst_85 = arith.constant 1.000000e+00 : f32
    %104 = vector.broadcast %cst_85 : f32 to vector<1x64xf32>
    %105 = arith.divf %104, %103 : vector<1x64xf32>
    %c2_86 = arith.constant 2 : index
    %c0_87 = arith.constant 0 : index
    %c0_88 = arith.constant 0 : index
    %106 = vector.load %arg9[%c2_86, %c0_87, %c0_88] : memref<4x64x64xf32, #tpu.memory_space<vmem>>, vector<1x64x64xf32>
    %107 = vector.shape_cast %106 : vector<1x64x64xf32> to vector<64x64xf32>
    %cst_89 = arith.constant dense<0.000000e+00> : vector<1x64xf32>
    %108 = tpu.matmul %69, %107, %cst_89 {dimension_numbers = #tpu.dot_dimension_numbers<[1], [0], [0], [1], [0, 0, 1, 1], [], []>} : vector<1x64xf32>, vector<64x64xf32>, vector<1x64xf32> -> vector<1x64xf32>
    %c2_90 = arith.constant 2 : index
    %c0_91 = arith.constant 0 : index
    %c0_92 = arith.constant 0 : index
    %109 = vector.load %arg10[%c2_90, %c0_91, %c0_92] : memref<4x64x64xf32, #tpu.memory_space<vmem>>, vector<1x64x64xf32>
    %110 = vector.shape_cast %109 : vector<1x64x64xf32> to vector<64x64xf32>
    %cst_93 = arith.constant dense<0.000000e+00> : vector<1x64xf32>
    %111 = tpu.matmul %70, %110, %cst_93 {dimension_numbers = #tpu.dot_dimension_numbers<[1], [0], [0], [1], [0, 0, 1, 1], [], []>} : vector<1x64xf32>, vector<64x64xf32>, vector<1x64xf32> -> vector<1x64xf32>
    %112 = arith.addf %108, %111 : vector<1x64xf32>
    %c2_94 = arith.constant 2 : index
    %c0_95 = arith.constant 0 : index
    %c0_96 = arith.constant 0 : index
    %113 = vector.load %arg11[%c2_94, %c0_95, %c0_96] : memref<4x1x64xf32, #tpu.memory_space<vmem>>, vector<1x1x64xf32>
    %114 = vector.shape_cast %113 : vector<1x1x64xf32> to vector<1x64xf32>
    %115 = arith.addf %112, %114 : vector<1x64xf32>
    %116 = math.tanh %115 : vector<1x64xf32>
    %c3_97 = arith.constant 3 : index
    %c0_98 = arith.constant 0 : index
    %c0_99 = arith.constant 0 : index
    %117 = vector.load %arg9[%c3_97, %c0_98, %c0_99] : memref<4x64x64xf32, #tpu.memory_space<vmem>>, vector<1x64x64xf32>
    %118 = vector.shape_cast %117 : vector<1x64x64xf32> to vector<64x64xf32>
    %cst_100 = arith.constant dense<0.000000e+00> : vector<1x64xf32>
    %119 = tpu.matmul %69, %118, %cst_100 {dimension_numbers = #tpu.dot_dimension_numbers<[1], [0], [0], [1], [0, 0, 1, 1], [], []>} : vector<1x64xf32>, vector<64x64xf32>, vector<1x64xf32> -> vector<1x64xf32>
    %c3_101 = arith.constant 3 : index
    %c0_102 = arith.constant 0 : index
    %c0_103 = arith.constant 0 : index
    %120 = vector.load %arg10[%c3_101, %c0_102, %c0_103] : memref<4x64x64xf32, #tpu.memory_space<vmem>>, vector<1x64x64xf32>
    %121 = vector.shape_cast %120 : vector<1x64x64xf32> to vector<64x64xf32>
    %cst_104 = arith.constant dense<0.000000e+00> : vector<1x64xf32>
    %122 = tpu.matmul %70, %121, %cst_104 {dimension_numbers = #tpu.dot_dimension_numbers<[1], [0], [0], [1], [0, 0, 1, 1], [], []>} : vector<1x64xf32>, vector<64x64xf32>, vector<1x64xf32> -> vector<1x64xf32>
    %123 = arith.addf %119, %122 : vector<1x64xf32>
    %c3_105 = arith.constant 3 : index
    %c0_106 = arith.constant 0 : index
    %c0_107 = arith.constant 0 : index
    %124 = vector.load %arg11[%c3_105, %c0_106, %c0_107] : memref<4x1x64xf32, #tpu.memory_space<vmem>>, vector<1x1x64xf32>
    %125 = vector.shape_cast %124 : vector<1x1x64xf32> to vector<1x64xf32>
    %126 = arith.addf %123, %125 : vector<1x64xf32>
    %cst_108 = arith.constant 0.000000e+00 : f32
    %127 = vector.broadcast %cst_108 : f32 to vector<1x64xf32>
    %128 = arith.subf %127, %126 : vector<1x64xf32>
    %129 = math.exp %128 : vector<1x64xf32>
    %cst_109 = arith.constant 1.000000e+00 : f32
    %130 = vector.broadcast %cst_109 : f32 to vector<1x64xf32>
    %131 = arith.addf %130, %129 : vector<1x64xf32>
    %cst_110 = arith.constant 1.000000e+00 : f32
    %132 = vector.broadcast %cst_110 : f32 to vector<1x64xf32>
    %133 = arith.divf %132, %131 : vector<1x64xf32>
    %134 = arith.mulf %105, %71 : vector<1x64xf32>
    %135 = arith.mulf %88, %116 : vector<1x64xf32>
    %136 = arith.addf %134, %135 : vector<1x64xf32>
    %137 = math.tanh %136 : vector<1x64xf32>
    %138 = arith.mulf %133, %137 : vector<1x64xf32>
    %c0_111 = arith.constant 0 : index
    %c0_112 = arith.constant 0 : index
    %139 = vector.load %arg20[%c0_111, %c0_112] : memref<1x64xf32, #tpu.memory_space<vmem>>, vector<1x64xf32>
    tpu.vector_store %arg20[%c0_111, %c0_112], %69 {strides = array<i32>} : memref<1x64xf32, #tpu.memory_space<vmem>>, vector<1x64xf32>,
    %c0_113 = arith.constant 0 : index
    %c0_114 = arith.constant 0 : index
    %140 = vector.load %arg21[%c0_113, %c0_114] : memref<1x64xf32, #tpu.memory_space<vmem>>, vector<1x64xf32>
    tpu.vector_store %arg21[%c0_113, %c0_114], %67 {strides = array<i32>} : memref<1x64xf32, #tpu.memory_space<vmem>>, vector<1x64xf32>,
    %c0_115 = arith.constant 0 : index
    %c0_116 = arith.constant 0 : index
    %141 = vector.load %arg22[%c0_115, %c0_116] : memref<1x64xf32, #tpu.memory_space<vmem>>, vector<1x64xf32>
    tpu.vector_store %arg22[%c0_115, %c0_116], %138 {strides = array<i32>} : memref<1x64xf32, #tpu.memory_space<vmem>>, vector<1x64xf32>,
    %c0_117 = arith.constant 0 : index
    %c0_118 = arith.constant 0 : index
    %142 = vector.load %arg23[%c0_117, %c0_118] : memref<1x64xf32, #tpu.memory_space<vmem>>, vector<1x64xf32>
    tpu.vector_store %arg23[%c0_117, %c0_118], %136 {strides = array<i32>} : memref<1x64xf32, #tpu.memory_space<vmem>>, vector<1x64xf32>,
    %c0_119 = arith.constant 0 : index
    %c0_120 = arith.constant 0 : index
    %143 = vector.load %arg12[%c0_119, %c0_120] : memref<64x6xf32, #tpu.memory_space<vmem>>, vector<64x6xf32>
    %cst_121 = arith.constant dense<0.000000e+00> : vector<1x6xf32>
    %144 = tpu.matmul %138, %143, %cst_121 {dimension_numbers = #tpu.dot_dimension_numbers<[1], [0], [0], [1], [0, 0, 1, 1], [], []>} : vector<1x64xf32>, vector<64x6xf32>, vector<1x6xf32> -> vector<1x6xf32>
    %c0_122 = arith.constant 0 : index
    %c0_123 = arith.constant 0 : index
    %145 = vector.load %arg13[%c0_122, %c0_123] : memref<1x6xf32, #tpu.memory_space<vmem>>, vector<1x6xf32>
    %146 = arith.addf %144, %145 : vector<1x6xf32>
    %c0_124 = arith.constant 0 : index
    %c0_125 = arith.constant 0 : index
    %147 = vector.load %arg5[%c0_124, %c0_125] : memref<1x6xf32, #tpu.memory_space<vmem>>, vector<1x6xf32>
    %148 = arith.mulf %146, %147 : vector<1x6xf32>
    %c0_126 = arith.constant 0 : index
    %c0_127 = arith.constant 0 : index
    %149 = vector.load %arg18[%c0_126, %c0_127] : memref<1x6xf32, #tpu.memory_space<vmem>>, vector<1x6xf32>
    tpu.vector_store %arg18[%c0_126, %c0_127], %148 {strides = array<i32>} : memref<1x6xf32, #tpu.memory_space<vmem>>, vector<1x6xf32>,
    %c0_128 = arith.constant 0 : index
    %c0_129 = arith.constant 0 : index
    %150 = vector.load %arg14[%c0_128, %c0_129] : memref<64x64xf32, #tpu.memory_space<vmem>>, vector<64x64xf32>
    %cst_130 = arith.constant dense<0.000000e+00> : vector<1x64xf32>
    %151 = tpu.matmul %138, %150, %cst_130 {dimension_numbers = #tpu.dot_dimension_numbers<[1], [0], [0], [1], [0, 0, 1, 1], [], []>} : vector<1x64xf32>, vector<64x64xf32>, vector<1x64xf32> -> vector<1x64xf32>
    %c0_131 = arith.constant 0 : index
    %c0_132 = arith.constant 0 : index
    %152 = vector.load %arg15[%c0_131, %c0_132] : memref<1x64xf32, #tpu.memory_space<vmem>>, vector<1x64xf32>
    %153 = arith.addf %151, %152 : vector<1x64xf32>
    %c0_133 = arith.constant 0 : index
    %c0_134 = arith.constant 0 : index
    %154 = vector.load %arg16[%c0_133, %c0_134] : memref<64x1xf32, #tpu.memory_space<vmem>>, vector<64x1xf32>
    %cst_135 = arith.constant dense<0.000000e+00> : vector<1x1xf32>
    %155 = tpu.matmul %153, %154, %cst_135 {dimension_numbers = #tpu.dot_dimension_numbers<[1], [0], [0], [1], [0, 0, 1, 1], [], []>} : vector<1x64xf32>, vector<64x1xf32>, vector<1x1xf32> -> vector<1x1xf32>
    %c0_136 = arith.constant 0 : index
    %c0_137 = arith.constant 0 : index
    %156 = vector.load %arg17[%c0_136, %c0_137] : memref<1x1xf32, #tpu.memory_space<vmem>>, vector<1x1xf32>
    %157 = arith.addf %155, %156 : vector<1x1xf32>
    %c0_138 = arith.constant 0 : index
    %c0_139 = arith.constant 0 : index
    %158 = vector.load %arg19[%c0_138, %c0_139] : memref<1x1xf32, #tpu.memory_space<vmem>>, vector<1x1xf32>
    tpu.vector_store %arg19[%c0_138, %c0_139], %157 {strides = array<i32>} : memref<1x1xf32, #tpu.memory_space<vmem>>, vector<1x1xf32>,
    return
  }
}

</mosaic_0001>

<bundles_post_ra>
// kernel: hoz_forward.4
= control target key start
LH: loop header
LB: loop body
LE: loop exit
PB: predicated region body
PF: predicated region fallthrough
CT: control target
= control target key end

     0   :  { %19 = vsyncpa [#allocation3], 0  ;;  %s960_s0 = inlined_call_operand.vmem [shape: f32[8,8], index: 0, kind: input, shape index: {}]   ;;  %s961_s1 = inlined_call_operand.vmem [shape: f32[8,22], index: 1, kind: input, shape index: {}]   ;;  %s962_s2 = inlined_call_operand.vmem [shape: f32[1,8], index: 2, kind: input, shape index: {}]   ;;  %s963_s3 = inlined_call_operand.vmem [shape: f32[49,64], index: 3, kind: input, shape index: {}]   ;;  %s964_s4 = inlined_call_operand.vmem [shape: f32[49,22], index: 4, kind: input, shape index: {}]   ;;  %s965_s5 = inlined_call_operand.vmem [shape: f32[1,10], index: 5, kind: input, shape index: {}]   ;;  %s966_s6 = inlined_call_operand.vmem [shape: f32[1,4], index: 6, kind: input, shape index: {}]   ;;  %s967_s7 = inlined_call_operand.hbm [shape: f32[22,22], index: 7, kind: input, shape index: {}]   ;;  %s968_s8 = inlined_call_operand.hbm [shape: f32[64,64], index: 8, kind: input, shape index: {}]   ;;  %s969_s9 = inlined_call_operand.hbm [shape: f32[22,64], index: 9, kind: input, shape index: {}]   ;;  %s970_s10 = inlined_call_operand.hbm [shape: f32[10,64], index: 10, kind: input, shape index: {}]   ;;  %s971_s11 = inlined_call_operand.hbm [shape: f32[4,64], index: 11, kind: input, shape index: {}]   ;;  %s972_s12 = inlined_call_operand.hbm [shape: f32[22,64], index: 12, kind: input, shape index: {}]   ;;  %s973_s13 = inlined_call_operand.hbm [shape: f32[1,64], index: 13, kind: input, shape index: {}]   ;;  %s974_s14 = inlined_call_operand.vmem [shape: f32[49,64], index: 14, kind: output, shape index: {}]  }
   0x1   :  { %20 = vsyncpa [#allocation5], 0 }
   0x2   :  { %21 = vsyncpa [#allocation8], 0 }
   0x3   :  { %22 = vsyncpa [#allocation11], 0  ;;  %s54_s15 = sshll.u32 %s968_s8, 4  ;;  %s726_s16 = smov [#allocation4]   ;;  %s55_s15 = int_to_ptr.hbm [resolvable:$true] %s54_s15 }
   0x4   :  { %s56_s17 = sshll.u32 %s726_s16, 4  ;;  %s80_s20 = sshll.u32 %s970_s10, 4  ;;  %s57_s17 = int_to_ptr.vmem [resolvable:$true] %s56_s17  ;;  %s81_s20 = int_to_ptr.hbm [resolvable:$true] %s80_s20 }
   0x5   :  { %s727_s21 = smov 128   ;;  %s728_s22 = smov 8  }
   0x6   :  { %62 = dma.hbm_to_vmem [thread:$0]  %s55_s15, 1024, %s57_s17, [#allocation5], %s727_s21, %s727_s21, %s728_s22  }
   0x7   :  { %s729_s23 = smov [#allocation7]   ;;  %s104_s8 = sshll.u32 %s972_s12, 4  ;;  %s105_s8 = int_to_ptr.hbm [resolvable:$true] %s104_s8 }
   0x8   :  { %s82_s24 = sshll.u32 %s729_s23, 4  ;;  %s41_s28 = sshll.u32 %s967_s7, 4  ;;  %s83_s24 = int_to_ptr.vmem [resolvable:$true] %s82_s24  ;;  %s42_s28 = int_to_ptr.hbm [resolvable:$true] %s41_s28 }
   0x9   :  { %88 = dma.hbm_to_vmem [thread:$0]  %s81_s20, 256, %s83_s24, [#allocation8], %s727_s21, %s727_s21, %s728_s22  }
   0xa   :  { %s730_s29 = smov [#allocation10]   ;;  %s731_s15 = smov [#allocation2]  }
   0xb   :  { %s106_s30 = sshll.u32 %s730_s29, 4  ;;  %s43_s12 = sshll.u32 %s731_s15, 4  ;;  %s107_s30 = int_to_ptr.vmem [resolvable:$true] %s106_s30  ;;  %s44_s12 = int_to_ptr.vmem [resolvable:$true] %s43_s12 }
   0xc   :  { %112 = dma.hbm_to_vmem [thread:$0]  %s105_s8, 384, %s107_s30, [#allocation11], %s727_s21, %s727_s21, %s728_s22  }
   0xd   :  { %s67_s18 = sshll.u32 %s969_s9, 4  ;;  %s94_s20 = sshll.u32 %s971_s11, 4  ;;  %s68_s18 = int_to_ptr.hbm [resolvable:$true] %s67_s18  ;;  %s95_s20 = int_to_ptr.hbm [resolvable:$true] %s94_s20 }
   0xe   :  { %49 = dma.hbm_to_vmem [thread:$0]  %s42_s28, 384, %s44_s12, [#allocation3], %s727_s21, %s727_s21, %s728_s22  }
   0xf   :  { %s732_s23 = smov [#allocation6]   ;;  %s733_s25 = smov [#allocation9]  }
  0x10   :  { %s69_s24 = sshll.u32 %s732_s23, 4  ;;  %s96_s9 = sshll.u32 %s733_s25, 4  ;;  %s70_s24 = int_to_ptr.vmem [resolvable:$true] %s69_s24  ;;  %s97_s9 = int_to_ptr.vmem [resolvable:$true] %s96_s9 }
  0x11   :  { %75 = dma.hbm_to_vmem [thread:$0]  %s68_s18, 384, %s70_s24, [#allocation5], %s727_s21, %s727_s21, %s728_s22  }
  0x12   :  { %s118_s10 = sshll.u32 %s973_s13, 4  ;;  %s734_s27 = smov [#allocation12]   ;;  %s119_s10 = int_to_ptr.hbm [resolvable:$true] %s118_s10 }
  0x13   :  { %99 = dma.hbm_to_vmem [thread:$0]  %s95_s20, 64, %s97_s9, [#allocation8]  }
  0x14   :  { %s120_s28 = sshll.u32 %s734_s27, 4  ;;  %s121_s28 = int_to_ptr.vmem [resolvable:$true] %s120_s28 }
  0x15   :  { %123 = dma.hbm_to_vmem [thread:$0]  %s119_s10, 16, %s121_s28, [#allocation11]  }
  0x16   :  { %718 = dma.done.wait [#allocation3], 384  }
  0x17   :  { %719 = vsyncadd [#allocation3], 4294966912 }
  0x18   :  { %720 = dma.done.wait [#allocation5], 1408  }
  0x19   :  { %721 = vsyncadd [#allocation5], 4294965888 }
  0x1a   :  { %722 = dma.done.wait [#allocation8], 320  }
  0x1b   :  { %723 = vsyncadd [#allocation8], 4294966976 }
  0x1c   :  { %724 = dma.done.wait [#allocation11], 400  }
  0x1d   :  { %725 = vsyncadd [#allocation11], 4294966896  ;;  %vm185_vm0 = vcmask 1045504   ;;  %vm154_vm1 = vcmask 64512   ;;  %v153_v0 = vld [vmem:[%s961_s1] sm:$0xff]  ;;  %v179_v3 = vld [vmem:[#allocation2 + $0x8] sm:$0xff] }
  0x1e   :  { %v152_v1 = vld [vmem:[%s960_s0] sm:$0xff]  ;;  %v180_v2 = vld [vmem:[#allocation2 + $0x10] sm:$0x3f]  ;;  %173 = vmatpush.msra.mxu0 %v153_v0  ;;  %vm181_vm2 = vcmask 179200   ;;  %vm243_vm3 = vcmask 1043456   ;;  %vm271_vm4 = vcmask 1041408  }
  0x1f   :  { %506 = vmatpush.msk.msra.mxu2 %vm185_vm0, %v180_v2  ;;  %505 = vmatmul.msk.f32.vlgmr.msra.gmra.mxu0 %vm154_vm1, %v152_v1  ;;  %v178_v4 = vld [vmem:[#allocation2] sm:$0xff]  ;;  %v236_v7 = vld [vmem:[#allocation7 + $0x8] sm:$0x3]  ;;  %vm239_vm5 = vcmask 31744   ;;  %v235_v9 = vld [vmem:[#allocation7] sm:$0xff]  ;;  %vm267_vm6 = vcmask 80896  }
  0x20   :  { %v238_v6 = vld [vmem:[#allocation9] sm:$0xf]  ;;  %511 = vmatpush.msk.msrb.mxu0 %vm271_vm4, %v236_v7  ;;  %v341_v10 = vld [vmem:[#allocation4 + $0x38] sm:$0xff]  ;;  %v858_v11 = vld [vmem:[#allocation6 + $0x10] sm:$0x3f]  ;;  %vm414_vm7 = vcmask 523264  }
  0x21   :  { %203 = vmatpush.msra.mxu2 %v179_v3  ;;  %509 = vmatpush.msk.msra.mxu3 %vm243_vm3, %v238_v6  ;;  %v237_v8 = vld [vmem:[%s966_s6] sm:$0x1]  ;;  %v340_v13 = vld [vmem:[#allocation4 + $0x30] sm:$0xff]  ;;  %v349_v14 = vld [vmem:[#allocation6] sm:$0xff]  ;;  %vm495_vm8 = vcmask 516096  }
  0x22   :  { %510 = vmatmul.msk.f32.vlgmr.msra.gmra.mxu3 %vm239_vm5, %v237_v8  ;;  %v860_v12 = vld [vmem:[#allocation6 + $0x8] sm:$0xff]  ;;  %533 = vmatpush.msra.mxu1 %v341_v10  ;;  %v344_v17 = vld [vmem:[%s964_s4 + $0x10] sm:$0xff]  ;;  %v338_v18 = vld [vmem:[#allocation4 + $0x20] sm:$0xff] }
  0x23   :  { %204 = vmatpush.msra.mxu2 %v178_v4  ;;  %290 = vmatpush.msrb.mxu0 %v235_v9  ;;  %v234_v15 = vld [vmem:[%s965_s5] sm:$0x1]  ;;  %v337_v19 = vld [vmem:[#allocation4 + $0x18] sm:$0xff]  ;;  %v336_v20 = vld [vmem:[#allocation4 + $0x10] sm:$0xff] }
  0x24   :  { %530 = vmatpush.msk.msrb.mxu3 %vm185_vm0, %v858_v11  ;;  %534 = vmatpush.msra.mxu1 %v340_v13  ;;  %v339_v16 = vld [vmem:[#allocation4 + $0x28] sm:$0xff]  ;;  %v345_v22 = vld [vmem:[%s964_s4 + $0x18] sm:$0xff]  ;;  %v328_v27 = vld [vmem:[%s963_s3 + $0x8] sm:$0xff] }
  0x25   :  { %444 = vmatpush.msra.mxu0 %v341_v10  ;;  %v335_v21 = vld [vmem:[#allocation4 + $0x8] sm:$0xff]  ;;  %v334_v23 = vld [vmem:[#allocation4] sm:$0xff]  ;;  %v347_v33 = vld [vmem:[%s964_s4 + $0x28] sm:$0xff] }
  0x26   :  { %531 = vmatpush.msrb.mxu3 %v860_v12  ;;  %535 = vmatpush.msra.mxu1 %v339_v16  ;;  %v327_v24 = vld [vmem:[%s963_s3] sm:$0xff]  ;;  %v330_v25 = vld [vmem:[%s963_s3 + $0x18] sm:$0xff]  ;;  %v296_v34 = vld [vmem:[#allocation10 + $0x8] sm:$0xff] }
  0x27   :  { %512 = vmatmul.msk.f32.vlgmr.msrb.gmra.mxu0 %vm267_vm6, %v234_v15  ;;  %v346_v26 = vld [vmem:[%s964_s4 + $0x20] sm:$0xff]  ;;  %v297_v32 = vld [vmem:[#allocation10 + $0x10] sm:$0x3f]  ;;  %v332_v37 = vld [vmem:[%s963_s3 + $0x28] sm:$0xff] }
  0x28   :  { %445 = vmatpush.msra.mxu0 %v340_v13  ;;  %532 = vmatpush.msrb.mxu3 %v349_v14  ;;  %v331_v28 = vld [vmem:[%s963_s3 + $0x20] sm:$0xff]  ;;  %v329_v35 = vld [vmem:[%s963_s3 + $0x10] sm:$0xff]  ;;  %v343_v42 = vld [vmem:[%s964_s4 + $0x8] sm:$0xff] }
  0x29   :  { %536 = vmatpush.msra.mxu1 %v338_v18  ;;  %v210_v31 = vld [vmem:[%s962_s2] sm:$0x1]  ;;  %v295_v36 = vld [vmem:[#allocation10] sm:$0xff]  ;;  %v348_v38 = vld [vmem:[%s964_s4 + $0x30] sm:$0x1] }
  0x2a   :  { %446 = vmatpush.msra.mxu0 %v339_v16  ;;  %518 = vmatmul.msk.f32.vlgmr.msrb.gmra.mxu3 %vm181_vm2, %v344_v17  ;;  %v333_v39 = vld [vmem:[%s963_s3 + $0x30] sm:$0x1]  ;;  %v342_v41 = vld [vmem:[%s964_s4] sm:$0xff]  ;;  %v325_v56 = vld [vmem:[#allocation12] sm:$0x1] }
  0x2b   :  { %537 = vmatpush.msra.mxu1 %v337_v19 }
  0x2c   :  { %447 = vmatpush.msra.mxu0 %v338_v18 }
  0x2d   :  { %538 = vmatpush.msra.mxu1 %v336_v20 }
  0x2e   :  { %448 = vmatpush.msra.mxu0 %v337_v19 }
  0x2f   :  { %539 = vmatpush.msra.mxu1 %v335_v21 }
  0x30   :  { %449 = vmatpush.msra.mxu0 %v336_v20 }
  0x31   :  { %540 = vmatpush.msra.mxu1 %v334_v23 }
  0x32   :  { %450 = vmatpush.msra.mxu0 %v335_v21  ;;  %519 = vmatmul.msk.f32.gmra.mxu3 %vm181_vm2, %v345_v22 }
  0x33   :  { %526 = vmatmul.msk.f32.vlgmr.msra.gmra.mxu1 %vm414_vm7, %v330_v25 }
  0x34   :  { %451 = vmatpush.msra.mxu0 %v334_v23 }
  0x35   :  { %523 = vmatmul.msk.f32.vlgmr.msra.gmra.mxu0 %vm414_vm7, %v327_v24 }
  0x3a   :  { %520 = vmatmul.msk.f32.gmra.mxu3 %vm181_vm2, %v346_v26 }
  0x3b   :  { %527 = vmatmul.msk.f32.gmra.mxu1 %vm414_vm7, %v331_v28 }
  0x3d   :  { %524 = vmatmul.msk.f32.gmra.mxu0 %vm414_vm7, %v328_v27 }
  0x42   :  { %521 = vmatmul.msk.f32.gmra.mxu3 %vm181_vm2, %v347_v33 }
  0x43   :  { %528 = vmatmul.msk.f32.gmra.mxu1 %vm414_vm7, %v332_v37 }
  0x45   :  { %525 = vmatmul.msk.f32.gmra.mxu0 %vm414_vm7, %v329_v35 }
  0x4a   :  { %522 = vmatmul.msk.f32.gmra.mxu3 %vm181_vm2, %v348_v38 }
  0x4b   :  { %529 = vmatmul.msk.f32.gmra.mxu1 %vm414_vm7, %v333_v39 }
  0x9c   :  { %v175_v5 = vpop.f32.mrf.mxu0 }
  0x9d   :  { %507 = vmatmul.msk.f32.vlgmr.msra.gmra.mxu2 %vm181_vm2, %v175_v5 }
  0xa4   :  { %v292_v47 = vpop.f32.mrf.mxu0 }
  0xa5   :  { %v264_v43 = vpop.f32.mrf.mxu3 }
  0xa6   :  { %v293_v54 = vadd.f32 %v292_v47, %v264_v43 }
  0xad   :  { %v399_v44 = vpop.f32.mrf.mxu3 }
  0xb0   :  { %v462_v46 = vpop.f32.mrf.mxu1 }
  0xb2   :  { %v453_v50 = vpop.f32.mrf.mxu0 }
  0xb5   :  { %v402_v45 = vpop.f32.mrf.mxu3 }
  0xb6   :  { %v463_v0 = vadd.f32 %v462_v46, %v402_v45 }
  0xb8   :  { %v465_v49 = vpop.f32.mrf.mxu1 }
  0xba   :  { %v456_v53 = vpop.f32.mrf.mxu0 }
  0xbd   :  { %v405_v48 = vpop.f32.mrf.mxu3 }
  0xbe   :  { %v466_v1 = vadd.f32 %v465_v49, %v405_v48 }
  0xc0   :  { %v468_v52 = vpop.f32.mrf.mxu1 }
  0xc2   :  { %v459_v60 = vpop.f32.mrf.mxu0 }
  0xc3   :  { %v460_v2 = vadd.f32 %v459_v60, %v399_v44 }
  0xc5   :  { %v408_v51 = vpop.f32.mrf.mxu3 }
  0xc6   :  { %v469_v61 = vadd.f32 %v468_v52, %v408_v51 }
  0xc8   :  { %v471_v59 = vpop.f32.mrf.mxu1 }
  0xcd   :  { %v411_v58 = vpop.f32.mrf.mxu3 }
  0xce   :  { %v472_v63 = vadd.f32 %v471_v59, %v411_v58 }
 0x120   :  { %v206_v29 = vpop.f32.mrf.mxu2 }
 0x121   :  { %v209_v30 = vmax.f32 %v206_v29, 0.0 }
 0x123   :  { %229 = vmatpush.msrb.mxu2 %v209_v30 }
 0x124   :  { %508 = vmatmul.msk.f32.vlgmr.msrb.gmra.mxu2 %vm154_vm1, %v210_v31 }
 0x125   :  { %513 = vmatpush.msk.msra.mxu2 %vm185_vm0, %v297_v32 }
 0x127   :  { %318 = vmatpush.msra.mxu2 %v296_v34 }
 0x129   :  { %319 = vmatpush.msra.mxu2 %v295_v36 }
 0x12b   :  { %515 = vmatpush.msk.msrb.mxu2 %vm185_vm0, %v858_v11 }
 0x12d   :  { %390 = vmatpush.msrb.mxu2 %v860_v12 }
 0x12f   :  { %391 = vmatpush.msrb.mxu2 %v349_v14 }
 0x1a7   :  { %v231_v40 = vpop.f32.mrf.mxu2 }
 0x1a8   :  { %514 = vmatmul.msk.f32.vlgmr.msra.gmra.mxu2 %vm181_vm2, %v231_v40 }
 0x1b0   :  { %516 = vmatmul.msk.f32.vlgmr.msrb.gmra.mxu2 %vm181_vm2, %v342_v41 }
 0x1b8   :  { %517 = vmatmul.msk.f32.gmra.mxu2 %vm181_vm2, %v343_v42 }
 0x22b   :  { %v321_v55 = vpop.f32.mrf.mxu2 }
 0x22c   :  { %v324_v57 = vadd.f32 %v321_v55, %v293_v54 }
 0x22e   :  { %v326_v62 = vadd.f32 %v325_v56, %v324_v57 }
 0x230   :  { %v474_v3 = vperm.slane %v326_v62, 0 }
 0x232   :  { %v477_v4 = vadd.f32 %v474_v3, %v460_v2  ;;  %v478_v5 = vadd.f32 %v474_v3, %v463_v0  ;;  %v479_v6 = vadd.f32 %v474_v3, %v466_v1  ;;  %v480_v7 = vadd.f32 %v474_v3, %v469_v61 }
 0x233   :  { %v481_v8 = vadd.f32 %v474_v3, %v472_v63  ;;  %v393_v9 = vpop.f32.mrf.mxu2 }
 0x234   :  { %v484_v10 = vmax.f32 %v477_v4, 0.0  ;;  %v485_v11 = vmax.f32 %v478_v5, 0.0  ;;  %v486_v12 = vmax.f32 %v479_v6, 0.0  ;;  %v487_v13 = vmax.f32 %v480_v7, 0.0 }
 0x235   :  { %v454_v14 = vadd.f32 %v453_v50, %v393_v9  ;;  %v488_v15 = vmax.f32 %v481_v8, 0.0 }
 0x236   :  { %491 = vst.msk [vmem:[%s974_s14 + $0x10] sm:$0xff] %vm414_vm7, %v484_v10 }
 0x237   :  { %492 = vst.msk [vmem:[%s974_s14 + $0x18] sm:$0xff] %vm414_vm7, %v485_v11  ;;  %v475_v16 = vadd.f32 %v474_v3, %v454_v14 }
 0x238   :  { %493 = vst.msk [vmem:[%s974_s14 + $0x20] sm:$0xff] %vm414_vm7, %v486_v12 }
 0x239   :  { %494 = vst.msk [vmem:[%s974_s14 + $0x28] sm:$0xff] %vm414_vm7, %v487_v13  ;;  %v482_v17 = vmax.f32 %v475_v16, 0.0 }
 0x23a   :  { %496 = vst.msk [vmem:[%s974_s14 + $0x30] sm:$0x1] %vm495_vm8, %v488_v15 }
 0x23b   :  { %489 = vst.msk [vmem:[%s974_s14] sm:$0xff] %vm414_vm7, %v482_v17  ;;  %v396_v18 = vpop.f32.mrf.mxu2 }
 0x23c   :  { %v457_v19 = vadd.f32 %v456_v53, %v396_v18 }
 0x23e   :  { %v476_v20 = vadd.f32 %v474_v3, %v457_v19 }
 0x240   :  { %v483_v21 = vmax.f32 %v476_v20, 0.0 }
 0x242   :  { %490 = vst.msk [vmem:[%s974_s14 + $0x8] sm:$0xff] %vm414_vm7, %v483_v21 }
 0x243   :  { %501 = vsyncpa [#allocation3], 1 }
 0x244   :  { %502 = vsyncpa [#allocation5], 1 }
 0x245   :  { %503 = vsyncpa [#allocation8], 1 }
 0x246   :  { %504 = vsyncpa [#allocation11], 1 }

// kernel: hoz_forward.3
= control target key start
LH: loop header
LB: loop body
LE: loop exit
PB: predicated region body
PF: predicated region fallthrough
CT: control target
= control target key end

     0   :  { %s2666_s6 = smov 1   ;;  %s2667_s10 = smov 2   ;;  %s3305_s0 = inlined_call_operand.smem [shape: u32[38], index: -1, kind: input, shape index: {}] }
   0x1   :  { %s2740_s5 = sld [smem:[%s3305_s0]]   ;;  %s2668_s14 = smov 3  }
   0x2   :  { %s2745_s9 = sld [smem:[%s3305_s0 + %s2666_s6]]   ;;  %s2669_s18 = smov 4  }
   0x3   :  { %s2750_s13 = sld [smem:[%s3305_s0 + %s2667_s10]]   ;;  %s2670_s22 = smov 5  }
   0x4   :  { %s2755_s17 = sld [smem:[%s3305_s0 + %s2668_s14]]   ;;  %s2671_s26 = smov 6  }
   0x5   :  { %s2760_s21 = sld [smem:[%s3305_s0 + %s2669_s18]]   ;;  %s2672_s30 = smov 7  }
   0x6   :  { %s2765_s25 = sld [smem:[%s3305_s0 + %s2670_s22]]   ;;  %s2673_s4 = smov 8  }
   0x7   :  { %3326 = sst [smem:[#allocation49_spill]] %s2740_s5  ;;  %s2674_s10 = smov 9  }
   0x8   :  { %s2770_s29 = sld [smem:[%s3305_s0 + %s2671_s26]]   ;;  %s2675_s15 = smov 10  }
   0x9   :  { %3327 = sst [smem:[#allocation50_spill]] %s2750_s13  ;;  %s2676_s20 = smov 11  }
   0xa   :  { %s2775_s3 = sld [smem:[%s3305_s0 + %s2672_s30]]   ;;  %s2677_s26 = smov 12  }
   0xb   :  { %s2780_s8 = sld [smem:[%s3305_s0 + %s2673_s4]]   ;;  %s2678_s1 = smov 13  }
   0xc   :  { %3328 = sst [smem:[#allocation51_spill]] %s2765_s25  ;;  %s2679_s7 = smov 14  }
   0xd   :  { %s2785_s14 = sld [smem:[%s3305_s0 + %s2674_s10]]   ;;  %s2681_s22 = smov 16  }
   0xe   :  { %3329 = sst [smem:[#allocation52_spill]] %s2770_s29  ;;  %s2682_s28 = smov 17  }
   0xf   :  { %s2790_s19 = sld [smem:[%s3305_s0 + %s2675_s15]]   ;;  %s2680_s15 = smov 15  }
  0x10   :  { %3330 = sst [smem:[#allocation53_spill]] %s2775_s3 }
  0x11   :  { %s2795_s24 = sld [smem:[%s3305_s0 + %s2676_s20]]  }
  0x12   :  { %s2800_s30 = sld [smem:[%s3305_s0 + %s2677_s26]]  }
  0x13   :  { %s2805_s6 = sld [smem:[%s3305_s0 + %s2678_s1]]  }
  0x14   :  { %s2810_s12 = sld [smem:[%s3305_s0 + %s2679_s7]]   ;;  %s2683_s7 = smov 18  }
  0x15   :  { %s2815_s20 = sld [smem:[%s3305_s0 + %s2680_s15]]   ;;  %s2684_s15 = smov 19  }
  0x16   :  { %s2820_s27 = sld [smem:[%s3305_s0 + %s2681_s22]]   ;;  %s2685_s22 = smov 20  }
  0x17   :  { %3331 = sst [smem:[#allocation54_spill]] %s2795_s24 }
  0x18   :  { %3332 = sst [smem:[#allocation55_spill]] %s2800_s30 }
  0x19   :  { %s2825_s4 = sld [smem:[%s3305_s0 + %s2682_s28]]   ;;  %s2686_s28 = smov 21  }
  0x1a   :  { %3333 = sst [smem:[#allocation56_spill]] %s2810_s12 }
  0x1b   :  { %3334 = sst [smem:[#allocation57_spill]] %s2815_s20 }
  0x1c   :  { %3335 = sst [smem:[#allocation58_spill]] %s2820_s27 }
  0x1d   :  { %s2830_s25 = sld [smem:[%s3305_s0 + %s2683_s7]]   ;;  %s2687_s7 = smov 22  }
  0x1e   :  { %s2835_s3 = sld [smem:[%s3305_s0 + %s2684_s15]]   ;;  %s2688_s15 = smov 23  }
  0x1f   :  { %s2840_s27 = sld [smem:[%s3305_s0 + %s2685_s22]]   ;;  %s2689_s22 = smov 24  }
  0x20   :  { %s2845_s12 = sld [smem:[%s3305_s0 + %s2686_s28]]   ;;  %s2690_s28 = smov 25  }
  0x21   :  { %s2855_s5 = sld [smem:[%s3305_s0 + %s2688_s15]]   ;;  %s2692_s15 = smov 27  }
  0x22   :  { %s2860_s30 = sld [smem:[%s3305_s0 + %s2689_s22]]   ;;  %s2693_s22 = smov 28  }
  0x23   :  { %3336 = sst [smem:[#allocation59_spill]] %s2830_s25 }
  0x24   :  { %3337 = sst [smem:[#allocation60_spill]] %s2835_s3 }
  0x25   :  { %s2850_s25 = sld [smem:[%s3305_s0 + %s2687_s7]]   ;;  %s2691_s7 = smov 26  }
  0x26   :  { %3338 = sst [smem:[#allocation61_spill]] %s2845_s12 }
  0x27   :  { %3339 = sst [smem:[#allocation62_spill]] %s2855_s5 }
  0x28   :  { %3340 = sst [smem:[#allocation63_spill]] %s2860_s30 }
  0x29   :  { %s2865_s29 = sld [smem:[%s3305_s0 + %s2690_s28]]   ;;  %s2694_s28 = smov 29  }
  0x2a   :  { %s2870_s13 = sld [smem:[%s3305_s0 + %s2691_s7]]   ;;  %s2695_s7 = smov 30  }
  0x2b   :  { %s2875_s5 = sld [smem:[%s3305_s0 + %s2692_s15]]   ;;  %s2696_s15 = smov 31  }
  0x2c   :  { %s2880_s30 = sld [smem:[%s3305_s0 + %s2693_s22]]   ;;  %s2697_s22 = smov 32  }
  0x2d   :  { %s2885_s12 = sld [smem:[%s3305_s0 + %s2694_s28]]   ;;  %s2698_s28 = smov 33  }
  0x2e   :  { %s2895_s3 = sld [smem:[%s3305_s0 + %s2696_s15]]   ;;  %s2700_s15 = smov 35  }
  0x2f   :  { %s2905_s20 = sld [smem:[%s3305_s0 + %s2698_s28]]   ;;  %s2702_s28 = smov 37  }
  0x30   :  { %3341 = sst [smem:[#allocation64_spill]] %s2870_s13 }
  0x31   :  { %s2890_s13 = sld [smem:[%s3305_s0 + %s2695_s7]]   ;;  %s2699_s7 = smov 34  }
  0x32   :  { %3342 = sst [smem:[#allocation65_spill]] %s2880_s30 }
  0x33   :  { %s2900_s30 = sld [smem:[%s3305_s0 + %s2697_s22]]   ;;  %s2701_s22 = smov 36  }
  0x34   :  { %s2915_s24 = sld [smem:[%s3305_s0 + %s2700_s15]]  }
  0x35   :  { %3345 = sst [smem:[#allocation68_spill]] %s2905_s20 }
  0x36   :  { %s2925_s20 = sld [smem:[%s3305_s0 + %s2702_s28]]  }
  0x37   :  { %3343 = sst [smem:[#allocation66_spill]] %s2890_s13 }
  0x38   :  { %s2910_s13 = sld [smem:[%s3305_s0 + %s2699_s7]]  }
  0x39   :  { %3344 = sst [smem:[#allocation67_spill]] %s2900_s30 }
  0x3a   :  { %s2920_s30 = sld [smem:[%s3305_s0 + %s2701_s22]]  }
  0x3b   :  { %81 = vsyncpa [#allocation3], 0 }
  0x3c   :  { %82 = vsyncpa [#allocation5], 0 }
  0x3d   :  { %83 = vsyncpa [#allocation8], 0 }
  0x3e   :  { %84 = vsyncpa [#allocation11], 0 }
  0x3f   :  { %85 = vsyncpa [#allocation14], 0 }
  0x40   :  { %86 = vsyncpa [#allocation17], 0 }
  0x41   :  { %87 = vsyncpa [#allocation20], 0 }
  0x42   :  { %88 = vsyncpa [#allocation23], 0 }
  0x43   :  { %89 = vsyncpa [#allocation26], 0 }
  0x44   :  { %90 = vsyncpa [#allocation29], 0 }
  0x45   :  { %91 = vsyncpa [#allocation32], 0  ;;  %s112_s7 = sshll.u32 %s2755_s17, 4  ;;  %s113_s7 = int_to_ptr.hbm [resolvable:$true] %s112_s7 }
  0x46   :  { %92 = vsyncpa [#allocation35], 0  ;;  %s2703_s0 = smov [#allocation4]   ;;  %s143_s11 = sshll.u32 %s2780_s8, 4  ;;  %s144_s11 = int_to_ptr.hbm [resolvable:$true] %s143_s11 }
  0x47   :  { %s114_s10 = sshll.u32 %s2703_s0, 4  ;;  %s2090_s15 = sshra.s32 %s113_s7, 4  ;;  %s115_s10 = int_to_ptr.vmem [resolvable:$true] %s114_s10  ;;  %s2091_s15 = int_to_ptr.hbm [resolvable:$true] %s2090_s15 }
  0x48   :  { %s2092_s16 = scalar_lea.hbm %s2091_s15, 96  ;;  %s2094_s18 = scalar_lea.hbm %s2755_s17, 96 }
  0x49   :  { %p2093_p0 = scmp.ne.s32.totalorder %s2091_s15, %s2092_s16  ;;  %p2095_p1 = scmp.lt.s32.totalorder %s2091_s15, %s2755_s17 }
  0x4a   :  { %p2096_p2 = scmp.lt.s32.totalorder %s2094_s18, %s2092_s16 }
  0x4c   :  { %p2097_p3 = por %p2096_p2, %p2095_p1 }
  0x4e   :  { %p2098_p4 = pnand %p2097_p3, %p2093_p0 }
  0x50   :  { %2101 = shalt.err (!%p2098_p4)
}
  0x51   :  { %s2704_s22 = smov 512   ;;  %s2705_s23 = smov 32  }
  0x52   :  { %120 = dma.hbm_to_vmem [thread:$0]  %s113_s7, 1536, %s115_s10, [#allocation5], %s2704_s22, %s2704_s22, %s2705_s23  }
  0x53   :  { %s2706_s26 = smov [#allocation7]   ;;  %s165_s1 = sshll.u32 %s2790_s19, 4  ;;  %s166_s1 = int_to_ptr.hbm [resolvable:$true] %s165_s1 }
  0x54   :  { %s145_s28 = sshll.u32 %s2706_s26, 4  ;;  %s2114_s2 = sshra.s32 %s144_s11, 4  ;;  %s146_s28 = int_to_ptr.vmem [resolvable:$true] %s145_s28  ;;  %s2115_s2 = int_to_ptr.hbm [resolvable:$true] %s2114_s2 }
  0x55   :  { %s2116_s0 = scalar_lea.hbm %s2115_s2, 8  ;;  %s2118_s17 = scalar_lea.hbm %s2780_s8, 8 }
  0x56   :  { %p2117_p5 = scmp.ne.s32.totalorder %s2115_s2, %s2116_s0  ;;  %p2119_p6 = scmp.lt.s32.totalorder %s2115_s2, %s2780_s8 }
  0x57   :  { %p2120_p7 = scmp.lt.s32.totalorder %s2118_s17, %s2116_s0 }
  0x59   :  { %p2121_p8 = por %p2120_p7, %p2119_p6 }
  0x5b   :  { %p2122_p9 = pnand %p2121_p8, %p2117_p5 }
  0x5d   :  { %2125 = shalt.err (!%p2122_p9)
}
  0x5e   :  { %148 = dma.hbm_to_vmem [thread:$0]  %s144_s11, 128, %s146_s28, [#allocation8]  }
  0x5f   :  { %s2707_s7 = smov [#allocation10]   ;;  %s190_s15 = sshll.u32 %s2805_s6, 4  ;;  %s191_s15 = int_to_ptr.hbm [resolvable:$true] %s190_s15 }
  0x60   :  { %s167_s10 = sshll.u32 %s2707_s7, 4  ;;  %s2138_s16 = sshra.s32 %s166_s1, 4  ;;  %s168_s10 = int_to_ptr.vmem [resolvable:$true] %s167_s10  ;;  %s2139_s16 = int_to_ptr.hbm [resolvable:$true] %s2138_s16 }
  0x61   :  { %s2140_s18 = scalar_lea.hbm %s2139_s16, 1  ;;  %s2142_s22 = scalar_lea.hbm %s2790_s19, 1 }
  0x62   :  { %p2141_p10 = scmp.ne.s32.totalorder %s2139_s16, %s2140_s18  ;;  %p2143_p11 = scmp.lt.s32.totalorder %s2139_s16, %s2790_s19 }
  0x63   :  { %p2144_p12 = scmp.lt.s32.totalorder %s2142_s22, %s2140_s18 }
  0x65   :  { %p2145_p13 = por %p2144_p12, %p2143_p11 }
  0x67   :  { %p2146_p0 = pnand %p2145_p13, %p2141_p10 }
  0x69   :  { %2149 = shalt.err (!%p2146_p0)
}
  0x6a   :  { %170 = dma.hbm_to_vmem [thread:$0]  %s166_s1, 16, %s168_s10, [#allocation11]  }
  0x6b   :  { %s2708_s8 = smov [#allocation13]   ;;  %s220_s23 = sshll.u32 %s2825_s4, 4  ;;  %s2938_s23 = int_to_ptr.hbm [resolvable:$true] %s220_s23 }
  0x6c   :  { %s192_s11 = sshll.u32 %s2708_s8, 4  ;;  %s2162_s26 = sshra.s32 %s191_s15, 4  ;;  %s193_s11 = int_to_ptr.vmem [resolvable:$true] %s192_s11  ;;  %s2163_s26 = int_to_ptr.hbm [resolvable:$true] %s2162_s26 }
  0x6d   :  { %s2164_s28 = scalar_lea.hbm %s2163_s26, 24  ;;  %s2166_s19 = scalar_lea.hbm %s2805_s6, 24 }
  0x6e   :  { %p2165_p1 = scmp.ne.s32.totalorder %s2163_s26, %s2164_s28  ;;  %p2167_p2 = scmp.lt.s32.totalorder %s2163_s26, %s2805_s6 }
  0x6f   :  { %p2168_p3 = scmp.lt.s32.totalorder %s2166_s19, %s2164_s28 }
  0x71   :  { %p2169_p4 = por %p2168_p3, %p2167_p2 }
  0x73   :  { %p2170_p5 = pnand %p2169_p4, %p2165_p1 }
  0x75   :  { %2173 = shalt.err (!%p2170_p5)
}
  0x76   :  { %s2709_s1 = smov 128   ;;  %s2710_s2 = smov 8  }
  0x77   :  { %198 = dma.hbm_to_vmem [thread:$0]  %s191_s15, 384, %s193_s11, [#allocation14], %s2709_s1, %s2709_s1, %s2710_s2  }
  0x78   :  { %s249_s0 = sshll.u32 %s2840_s27, 4  ;;  %s2711_s17 = smov [#allocation16]   ;;  %s250_s0 = int_to_ptr.hbm [resolvable:$true] %s249_s0 }
  0x79   :  { %s222_s7 = sshll.u32 %s2711_s17, 4  ;;  %s2186_s6 = sshra.s32 %s2938_s23, 4  ;;  %s223_s7 = int_to_ptr.vmem [resolvable:$true] %s222_s7  ;;  %s2187_s6 = int_to_ptr.hbm [resolvable:$true] %s2186_s6 }
  0x7a   :  { %s2188_s10 = scalar_lea.hbm %s2187_s6, 24  ;;  %s2190_s16 = scalar_lea.hbm %s2825_s4, 24 }
  0x7b   :  { %p2189_p6 = scmp.ne.s32.totalorder %s2187_s6, %s2188_s10  ;;  %p2191_p7 = scmp.lt.s32.totalorder %s2187_s6, %s2825_s4 }
  0x7c   :  { %p2192_p8 = scmp.lt.s32.totalorder %s2190_s16, %s2188_s10 }
  0x7e   :  { %p2193_p9 = por %p2192_p8, %p2191_p7 }
  0x80   :  { %p2194_p10 = pnand %p2193_p9, %p2189_p6 }
  0x82   :  { %2197 = shalt.err (!%p2194_p10)
}
  0x83   :  { %228 = dma.hbm_to_vmem [thread:$0]  %s2938_s23, 384, %s223_s7, [#allocation17], %s2709_s1, %s2709_s1, %s2710_s2  }
  0x84   :  { %s2712_s15 = smov [#allocation19]   ;;  %s271_s22 = sshll.u32 %s2850_s25, 4  ;;  %s272_s22 = int_to_ptr.hbm [resolvable:$true] %s271_s22 }
  0x85   :  { %s251_s18 = sshll.u32 %s2712_s15, 4  ;;  %s2210_s8 = sshra.s32 %s250_s0, 4  ;;  %s252_s18 = int_to_ptr.vmem [resolvable:$true] %s251_s18  ;;  %s2211_s8 = int_to_ptr.hbm [resolvable:$true] %s2210_s8 }
  0x86   :  { %s2212_s4 = scalar_lea.hbm %s2211_s8, 8  ;;  %s2214_s11 = scalar_lea.hbm %s2840_s27, 8 }
  0x87   :  { %p2213_p11 = scmp.ne.s32.totalorder %s2211_s8, %s2212_s4  ;;  %p2215_p12 = scmp.lt.s32.totalorder %s2211_s8, %s2840_s27 }
  0x88   :  { %p2216_p13 = scmp.lt.s32.totalorder %s2214_s11, %s2212_s4 }
  0x8a   :  { %p2217_p0 = por %p2216_p13, %p2215_p12 }
  0x8c   :  { %p2218_p1 = pnand %p2217_p0, %p2213_p11 }
  0x8e   :  { %2221 = shalt.err (!%p2218_p1)
}
  0x8f   :  { %254 = dma.hbm_to_vmem [thread:$0]  %s250_s0, 128, %s252_s18, [#allocation20]  }
  0x90   :  { %s295_s23 = sshll.u32 %s2865_s29, 4  ;;  %s2713_s26 = smov [#allocation22]   ;;  %s296_s23 = int_to_ptr.hbm [resolvable:$true] %s295_s23 }
  0x91   :  { %s273_s28 = sshll.u32 %s2713_s26, 4  ;;  %s2234_s19 = sshra.s32 %s272_s22, 4  ;;  %s274_s28 = int_to_ptr.vmem [resolvable:$true] %s273_s28  ;;  %s2235_s19 = int_to_ptr.hbm [resolvable:$true] %s2234_s19 }
  0x92   :  { %s2236_s17 = scalar_lea.hbm %s2235_s19, 1  ;;  %s2238_s7 = scalar_lea.hbm %s2850_s25, 1 }
  0x93   :  { %p2237_p2 = scmp.ne.s32.totalorder %s2235_s19, %s2236_s17  ;;  %p2239_p3 = scmp.lt.s32.totalorder %s2235_s19, %s2850_s25 }
  0x94   :  { %p2240_p4 = scmp.lt.s32.totalorder %s2238_s7, %s2236_s17 }
  0x96   :  { %p2241_p5 = por %p2240_p4, %p2239_p3 }
  0x98   :  { %p2242_p6 = pnand %p2241_p5, %p2237_p2 }
  0x9a   :  { %2245 = shalt.err (!%p2242_p6)
}
  0x9b   :  { %276 = dma.hbm_to_vmem [thread:$0]  %s272_s22, 16, %s274_s28, [#allocation23]  }
  0x9c   :  { %s2714_s27 = smov [#allocation25]   ;;  %s316_s6 = sshll.u32 %s2875_s5, 4  ;;  %s2960_s6 = int_to_ptr.hbm [resolvable:$true] %s316_s6 }
  0x9d   :  { %s297_s0 = sshll.u32 %s2714_s27, 4  ;;  %s2258_s10 = sshra.s32 %s296_s23, 4  ;;  %s298_s0 = int_to_ptr.vmem [resolvable:$true] %s297_s0  ;;  %s2259_s10 = int_to_ptr.hbm [resolvable:$true] %s2258_s10 }
  0x9e   :  { %s2260_s16 = scalar_lea.hbm %s2259_s10, 8  ;;  %s2262_s15 = scalar_lea.hbm %s2865_s29, 8 }
  0x9f   :  { %p2261_p7 = scmp.ne.s32.totalorder %s2259_s10, %s2260_s16  ;;  %p2263_p8 = scmp.lt.s32.totalorder %s2259_s10, %s2865_s29 }
  0xa0   :  { %p2264_p9 = scmp.lt.s32.totalorder %s2262_s15, %s2260_s16 }
  0xa2   :  { %p2265_p10 = por %p2264_p9, %p2263_p8 }
  0xa4   :  { %p2266_p11 = pnand %p2265_p10, %p2261_p7 }
  0xa6   :  { %2269 = shalt.err (!%p2266_p11)
}
  0xa7   :  { %300 = dma.hbm_to_vmem [thread:$0]  %s296_s23, 128, %s298_s0, [#allocation26]  }
  0xa8   :  { %s340_s25 = sshll.u32 %s2885_s12, 4  ;;  %s2715_s18 = smov [#allocation28]   ;;  %s2965_s25 = int_to_ptr.hbm [resolvable:$true] %s340_s25 }
  0xa9   :  { %s318_s22 = sshll.u32 %s2715_s18, 4  ;;  %s2282_s8 = sshra.s32 %s2960_s6, 4  ;;  %s319_s22 = int_to_ptr.vmem [resolvable:$true] %s318_s22  ;;  %s2283_s8 = int_to_ptr.hbm [resolvable:$true] %s2282_s8 }
  0xaa   :  { %s2284_s4 = scalar_lea.hbm %s2283_s8, 64  ;;  %s2286_s29 = scalar_lea.hbm %s2875_s5, 64 }
  0xab   :  { %p2285_p12 = scmp.ne.s32.totalorder %s2283_s8, %s2284_s4  ;;  %p2287_p13 = scmp.lt.s32.totalorder %s2283_s8, %s2875_s5 }
  0xac   :  { %p2288_p0 = scmp.lt.s32.totalorder %s2286_s29, %s2284_s4 }
  0xae   :  { %p2289_p1 = por %p2288_p0, %p2287_p13 }
  0xb0   :  { %p2290_p2 = pnand %p2289_p1, %p2285_p12 }
  0xb2   :  { %2293 = shalt.err (!%p2290_p2)
}
  0xb3   :  { %324 = dma.hbm_to_vmem [thread:$0]  %s2960_s6, 1024, %s319_s22, [#allocation29], %s2709_s1, %s2709_s1, %s2710_s2  }
  0xb4   :  { %s2716_s11 = smov [#allocation31]   ;;  %s367_s26 = sshll.u32 %s2895_s3, 4  ;;  %s368_s26 = int_to_ptr.hbm [resolvable:$true] %s367_s26 }
  0xb5   :  { %s342_s23 = sshll.u32 %s2716_s11, 4  ;;  %s2306_s28 = sshra.s32 %s2965_s25, 4  ;;  %s343_s23 = int_to_ptr.vmem [resolvable:$true] %s342_s23  ;;  %s2307_s28 = int_to_ptr.hbm [resolvable:$true] %s2306_s28 }
  0xb6   :  { %s2308_s5 = scalar_lea.hbm %s2307_s28, 24  ;;  %s2310_s19 = scalar_lea.hbm %s2885_s12, 24 }
  0xb7   :  { %p2309_p3 = scmp.ne.s32.totalorder %s2307_s28, %s2308_s5  ;;  %p2311_p4 = scmp.lt.s32.totalorder %s2307_s28, %s2885_s12 }
  0xb8   :  { %p2312_p5 = scmp.lt.s32.totalorder %s2310_s19, %s2308_s5 }
  0xba   :  { %p2313_p6 = por %p2312_p5, %p2311_p4 }
  0xbc   :  { %p2314_p7 = pnand %p2313_p6, %p2309_p3 }
  0xbe   :  { %2317 = shalt.err (!%p2314_p7)
}
  0xbf   :  { %348 = dma.hbm_to_vmem [thread:$0]  %s2965_s25, 384, %s343_s23, [#allocation32], %s2709_s1, %s2709_s1, %s2710_s2  }
  0xc0   :  { %s100_s17 = sshll.u32 %s2745_s9, 4  ;;  %s2717_s7 = smov [#allocation34]   ;;  %s101_s17 = int_to_ptr.hbm [resolvable:$true] %s100_s17 }
  0xc1   :  { %s369_s27 = sshll.u32 %s2717_s7, 4  ;;  %s2330_s0 = sshra.s32 %s368_s26, 4  ;;  %s370_s27 = int_to_ptr.vmem [resolvable:$true] %s369_s27  ;;  %s2331_s0 = int_to_ptr.hbm [resolvable:$true] %s2330_s0 }
  0xc2   :  { %s2332_s12 = scalar_lea.hbm %s2331_s0, 1  ;;  %s2334_s6 = scalar_lea.hbm %s2895_s3, 1 }
  0xc3   :  { %p2333_p8 = scmp.ne.s32.totalorder %s2331_s0, %s2332_s12  ;;  %p2335_p9 = scmp.lt.s32.totalorder %s2331_s0, %s2895_s3 }
  0xc4   :  { %p2336_p10 = scmp.lt.s32.totalorder %s2334_s6, %s2332_s12 }
  0xc6   :  { %p2337_p11 = por %p2336_p10, %p2335_p9 }
  0xc8   :  { %p2338_p12 = pnand %p2337_p11, %p2333_p8 }
  0xca   :  { %2341 = shalt.err (!%p2338_p12)
}
  0xcb   :  { %372 = dma.hbm_to_vmem [thread:$0]  %s368_s26, 16, %s370_s27, [#allocation35]  }
  0xcc   :  { %s2718_s10 = smov [#allocation2]   ;;  %s126_s15 = sshll.u32 %s2760_s21, 4  ;;  %s127_s15 = int_to_ptr.hbm [resolvable:$true] %s126_s15 }
  0xcd   :  { %s102_s16 = sshll.u32 %s2718_s10, 4  ;;  %s2354_s25 = sshra.s32 %s101_s17, 4  ;;  %s103_s16 = int_to_ptr.vmem [resolvable:$true] %s102_s16  ;;  %s2355_s25 = int_to_ptr.hbm [resolvable:$true] %s2354_s25 }
  0xce   :  { %s2356_s18 = scalar_lea.hbm %s2355_s25, 8  ;;  %s2358_s22 = scalar_lea.hbm %s2745_s9, 8 }
  0xcf   :  { %p2357_p13 = scmp.ne.s32.totalorder %s2355_s25, %s2356_s18  ;;  %p2359_p0 = scmp.lt.s32.totalorder %s2355_s25, %s2745_s9 }
  0xd0   :  { %p2360_p1 = scmp.lt.s32.totalorder %s2358_s22, %s2356_s18 }
  0xd2   :  { %p2361_p2 = por %p2360_p1, %p2359_p0 }
  0xd4   :  { %p2362_p3 = pnand %p2361_p2, %p2357_p13 }
  0xd6   :  { %2365 = shalt.err (!%p2362_p3)
}
  0xd7   :  { %105 = dma.hbm_to_vmem [thread:$0]  %s101_s17, 128, %s103_s16, [#allocation3]  }
  0xd8   :  { %s154_s3 = sshll.u32 %s2785_s14, 4  ;;  %s2719_s8 = smov [#allocation6]   ;;  %s155_s3 = int_to_ptr.hbm [resolvable:$true] %s154_s3 }
  0xd9   :  { %s128_s4 = sshll.u32 %s2719_s8, 4  ;;  %s2378_s29 = sshra.s32 %s127_s15, 4  ;;  %s129_s4 = int_to_ptr.vmem [resolvable:$true] %s128_s4  ;;  %s2379_s29 = int_to_ptr.hbm [resolvable:$true] %s2378_s29 }
  0xda   :  { %s2380_s11 = scalar_lea.hbm %s2379_s29, 1  ;;  %s2382_s23 = scalar_lea.hbm %s2760_s21, 1 }
  0xdb   :  { %p2381_p4 = scmp.ne.s32.totalorder %s2379_s29, %s2380_s11  ;;  %p2383_p5 = scmp.lt.s32.totalorder %s2379_s29, %s2760_s21 }
  0xdc   :  { %p2384_p6 = scmp.lt.s32.totalorder %s2382_s23, %s2380_s11 }
  0xde   :  { %p2385_p7 = por %p2384_p6, %p2383_p5 }
  0xe0   :  { %p2386_p8 = pnand %p2385_p7, %p2381_p4 }
  0xe2   :  { %2389 = shalt.err (!%p2386_p8)
}
  0xe3   :  { %131 = dma.hbm_to_vmem [thread:$0]  %s127_s15, 16, %s129_s4, [#allocation5]  }
  0xe4   :  { %s3346_s9 = sld [smem:[#allocation54_spill]]  ;;  %s2720_s26 = smov [#allocation9]  }
  0xe5   :  { %s156_s28 = sshll.u32 %s2720_s26, 4  ;;  %s2402_s19 = sshra.s32 %s155_s3, 4  ;;  %s157_s28 = int_to_ptr.vmem [resolvable:$true] %s156_s28  ;;  %s2403_s19 = int_to_ptr.hbm [resolvable:$true] %s2402_s19 }
  0xe6   :  { %s2404_s17 = scalar_lea.hbm %s2403_s19, 1  ;;  %s2406_s7 = scalar_lea.hbm %s2785_s14, 1 }
  0xe7   :  { %p2405_p9 = scmp.ne.s32.totalorder %s2403_s19, %s2404_s17  ;;  %p2407_p10 = scmp.lt.s32.totalorder %s2403_s19, %s2785_s14 }
  0xe8   :  { %p2408_p11 = scmp.lt.s32.totalorder %s2406_s7, %s2404_s17 }
  0xea   :  { %s175_s5 = sshll.u32 %s3346_s9, 4  ;;  %p2409_p12 = por %p2408_p11, %p2407_p10  ;;  %s2992_s5 = int_to_ptr.hbm [resolvable:$true] %s175_s5 }
  0xec   :  { %p2410_p13 = pnand %p2409_p12, %p2405_p9 }
  0xee   :  { %2413 = shalt.err (!%p2410_p13)
}
  0xef   :  { %159 = dma.hbm_to_vmem [thread:$0]  %s155_s3, 16, %s157_s28, [#allocation8]  }
  0xf0   :  { %s3347_s21 = sld [smem:[#allocation57_spill]]  ;;  %s2721_s0 = smov [#allocation12]  }
  0xf1   :  { %s177_s12 = sshll.u32 %s2721_s0, 4  ;;  %s2426_s6 = sshra.s32 %s2992_s5, 4  ;;  %s178_s12 = int_to_ptr.vmem [resolvable:$true] %s177_s12  ;;  %s2427_s6 = int_to_ptr.hbm [resolvable:$true] %s2426_s6 }
  0xf2   :  { %s2428_s10 = scalar_lea.hbm %s2427_s6, 24  ;;  %s2430_s14 = scalar_lea.hbm %s3346_s9, 24 }
  0xf3   :  { %p2429_p0 = scmp.ne.s32.totalorder %s2427_s6, %s2428_s10  ;;  %p2431_p1 = scmp.lt.s32.totalorder %s2427_s6, %s3346_s9 }
  0xf4   :  { %p2432_p2 = scmp.lt.s32.totalorder %s2430_s14, %s2428_s10 }
  0xf6   :  { %s205_s27 = sshll.u32 %s3347_s21, 4  ;;  %p2433_p3 = por %p2432_p2, %p2431_p1  ;;  %s2997_s27 = int_to_ptr.hbm [resolvable:$true] %s205_s27 }
  0xf8   :  { %p2434_p4 = pnand %p2433_p3, %p2429_p0 }
  0xfa   :  { %2437 = shalt.err (!%p2434_p4)
}
  0xfb   :  { %s3348_s16 = sld [smem:[#allocation60_spill]]  ;;  %s2722_s15 = smov [#allocation15]  }
  0xfc   :  { %183 = dma.hbm_to_vmem [thread:$0]  %s2992_s5, 384, %s178_s12, [#allocation11], %s2709_s1, %s2709_s1, %s2710_s2  }
  0xfd   :  { %s207_s25 = sshll.u32 %s2722_s15, 4  ;;  %s2450_s22 = sshra.s32 %s2997_s27, 4  ;;  %s208_s25 = int_to_ptr.vmem [resolvable:$true] %s207_s25  ;;  %s2451_s22 = int_to_ptr.hbm [resolvable:$true] %s2450_s22 }
  0xfe   :  { %s2452_s3 = scalar_lea.hbm %s2451_s22, 24  ;;  %s2454_s8 = scalar_lea.hbm %s3347_s21, 24 }
  0xff   :  { %p2453_p5 = scmp.ne.s32.totalorder %s2451_s22, %s2452_s3  ;;  %p2455_p6 = scmp.lt.s32.totalorder %s2451_s22, %s3347_s21 }
 0x100   :  { %p2456_p7 = scmp.lt.s32.totalorder %s2454_s8, %s2452_s3 }
 0x101   :  { %s235_s18 = sshll.u32 %s3348_s16, 4  ;;  %s3007_s18 = int_to_ptr.hbm [resolvable:$true] %s235_s18 }
 0x102   :  { %p2457_p8 = por %p2456_p7, %p2455_p6 }
 0x104   :  { %p2458_p9 = pnand %p2457_p8, %p2453_p5 }
 0x106   :  { %2461 = shalt.err (!%p2458_p9)
}
 0x107   :  { %s3349_s4 = sld [smem:[#allocation61_spill]]  ;;  %s2723_s11 = smov [#allocation18]  }
 0x108   :  { %213 = dma.hbm_to_vmem [thread:$0]  %s2997_s27, 384, %s208_s25, [#allocation14], %s2709_s1, %s2709_s1, %s2710_s2  }
 0x109   :  { %s237_s23 = sshll.u32 %s2723_s11, 4  ;;  %s2474_s9 = sshra.s32 %s3007_s18, 4  ;;  %s238_s23 = int_to_ptr.vmem [resolvable:$true] %s237_s23  ;;  %s2475_s9 = int_to_ptr.hbm [resolvable:$true] %s2474_s9 }
 0x10a   :  { %s2476_s26 = scalar_lea.hbm %s2475_s9, 512  ;;  %s2478_s28 = scalar_lea.hbm %s3348_s16, 512 }
 0x10b   :  { %p2477_p10 = scmp.ne.s32.totalorder %s2475_s9, %s2476_s26  ;;  %p2479_p11 = scmp.lt.s32.totalorder %s2475_s9, %s3348_s16 }
 0x10c   :  { %p2480_p12 = scmp.lt.s32.totalorder %s2478_s28, %s2476_s26 }
 0x10d   :  { %s260_s29 = sshll.u32 %s3349_s4, 4  ;;  %s261_s29 = int_to_ptr.hbm [resolvable:$true] %s260_s29 }
 0x10e   :  { %p2481_p13 = por %p2480_p12, %p2479_p11 }
 0x110   :  { %p2482_p0 = pnand %p2481_p13, %p2477_p10 }
 0x112   :  { %2485 = shalt.err (!%p2482_p0)
}
 0x113   :  { %s3350_s5 = sld [smem:[#allocation63_spill]]  ;;  %s2724_s19 = smov [#allocation21]  }
 0x114   :  { %243 = dma.hbm_to_vmem [thread:$0]  %s3007_s18, 8192, %s238_s23, [#allocation17], %s2709_s1, %s2709_s1, %s2710_s2  }
 0x115   :  { %s262_s17 = sshll.u32 %s2724_s19, 4  ;;  %s2498_s21 = sshra.s32 %s261_s29, 4  ;;  %s263_s17 = int_to_ptr.vmem [resolvable:$true] %s262_s17  ;;  %s2499_s21 = int_to_ptr.hbm [resolvable:$true] %s2498_s21 }
 0x116   :  { %s2500_s27 = scalar_lea.hbm %s2499_s21, 1  ;;  %s2502_s0 = scalar_lea.hbm %s3349_s4, 1 }
 0x117   :  { %p2501_p1 = scmp.ne.s32.totalorder %s2499_s21, %s2500_s27  ;;  %p2503_p2 = scmp.lt.s32.totalorder %s2499_s21, %s3349_s4 }
 0x118   :  { %p2504_p3 = scmp.lt.s32.totalorder %s2502_s0, %s2500_s27 }
 0x119   :  { %s284_s7 = sshll.u32 %s3350_s5, 4  ;;  %s285_s7 = int_to_ptr.hbm [resolvable:$true] %s284_s7 }
 0x11a   :  { %p2505_p4 = por %p2504_p3, %p2503_p2 }
 0x11c   :  { %p2506_p5 = pnand %p2505_p4, %p2501_p1 }
 0x11e   :  { %2509 = shalt.err (!%p2506_p5)
}
 0x11f   :  { %265 = dma.hbm_to_vmem [thread:$0]  %s261_s29, 16, %s263_s17, [#allocation20]  }
 0x120   :  { %s3351_s12 = sld [smem:[#allocation64_spill]]  ;;  %s2725_s10 = smov [#allocation24]  }
 0x121   :  { %s286_s14 = sshll.u32 %s2725_s10, 4  ;;  %s2522_s16 = sshra.s32 %s285_s7, 4  ;;  %s287_s14 = int_to_ptr.vmem [resolvable:$true] %s286_s14  ;;  %s2523_s16 = int_to_ptr.hbm [resolvable:$true] %s2522_s16 }
 0x122   :  { %s2524_s15 = scalar_lea.hbm %s2523_s16, 1  ;;  %s2526_s25 = scalar_lea.hbm %s3350_s5, 1 }
 0x123   :  { %p2525_p6 = scmp.ne.s32.totalorder %s2523_s16, %s2524_s15  ;;  %p2527_p7 = scmp.lt.s32.totalorder %s2523_s16, %s3350_s5 }
 0x124   :  { %p2528_p8 = scmp.lt.s32.totalorder %s2526_s25, %s2524_s15 }
 0x126   :  { %s306_s6 = sshll.u32 %s3351_s12, 4  ;;  %p2529_p9 = por %p2528_p8, %p2527_p7  ;;  %s307_s6 = int_to_ptr.hbm [resolvable:$true] %s306_s6 }
 0x128   :  { %p2530_p10 = pnand %p2529_p9, %p2525_p6 }
 0x12a   :  { %2533 = shalt.err (!%p2530_p10)
}
 0x12b   :  { %289 = dma.hbm_to_vmem [thread:$0]  %s285_s7, 16, %s287_s14, [#allocation23]  }
 0x12c   :  { %s3352_s18 = sld [smem:[#allocation65_spill]]  ;;  %s2726_s22 = smov [#allocation27]  }
 0x12d   :  { %s308_s3 = sshll.u32 %s2726_s22, 4  ;;  %s2546_s4 = sshra.s32 %s307_s6, 4  ;;  %s309_s3 = int_to_ptr.vmem [resolvable:$true] %s308_s3  ;;  %s2547_s4 = int_to_ptr.hbm [resolvable:$true] %s2546_s4 }
 0x12e   :  { %s2548_s29 = scalar_lea.hbm %s2547_s4, 1  ;;  %s2550_s11 = scalar_lea.hbm %s3351_s12, 1 }
 0x12f   :  { %p2549_p11 = scmp.ne.s32.totalorder %s2547_s4, %s2548_s29  ;;  %p2551_p12 = scmp.lt.s32.totalorder %s2547_s4, %s3351_s12 }
 0x130   :  { %p2552_p13 = scmp.lt.s32.totalorder %s2550_s11, %s2548_s29 }
 0x132   :  { %s330_s8 = sshll.u32 %s3352_s18, 4  ;;  %p2553_p0 = por %p2552_p13, %p2551_p12  ;;  %s331_s8 = int_to_ptr.hbm [resolvable:$true] %s330_s8 }
 0x134   :  { %p2554_p1 = pnand %p2553_p0, %p2549_p11 }
 0x136   :  { %2557 = shalt.err (!%p2554_p1)
}
 0x137   :  { %311 = dma.hbm_to_vmem [thread:$0]  %s307_s6, 16, %s309_s3, [#allocation26]  }
 0x138   :  { %s3353_s23 = sld [smem:[#allocation66_spill]]  ;;  %s2727_s26 = smov [#allocation30]  }
 0x139   :  { %s332_s28 = sshll.u32 %s2727_s26, 4  ;;  %s2570_s5 = sshra.s32 %s331_s8, 4  ;;  %s333_s28 = int_to_ptr.vmem [resolvable:$true] %s332_s28  ;;  %s2571_s5 = int_to_ptr.hbm [resolvable:$true] %s2570_s5 }
 0x13a   :  { %s2572_s19 = scalar_lea.hbm %s2571_s5, 1  ;;  %s2574_s17 = scalar_lea.hbm %s3352_s18, 1 }
 0x13b   :  { %p2573_p2 = scmp.ne.s32.totalorder %s2571_s5, %s2572_s19  ;;  %p2575_p3 = scmp.lt.s32.totalorder %s2571_s5, %s3352_s18 }
 0x13c   :  { %p2576_p4 = scmp.lt.s32.totalorder %s2574_s17, %s2572_s19 }
 0x13e   :  { %s353_s9 = sshll.u32 %s3353_s23, 4  ;;  %p2577_p5 = por %p2576_p4, %p2575_p3  ;;  %s3034_s9 = int_to_ptr.hbm [resolvable:$true] %s353_s9 }
 0x140   :  { %p2578_p6 = pnand %p2577_p5, %p2573_p2 }
 0x142   :  { %2581 = shalt.err (!%p2578_p6)
}
 0x143   :  { %335 = dma.hbm_to_vmem [thread:$0]  %s331_s8, 16, %s333_s28, [#allocation29]  }
 0x144   :  { %s3354_s7 = sld [smem:[#allocation68_spill]]  ;;  %s2728_s21 = smov [#allocation33]  }
 0x145   :  { %s355_s27 = sshll.u32 %s2728_s21, 4  ;;  %s2594_s12 = sshra.s32 %s3034_s9, 4  ;;  %s356_s27 = int_to_ptr.vmem [resolvable:$true] %s355_s27  ;;  %s2595_s12 = int_to_ptr.hbm [resolvable:$true] %s2594_s12 }
 0x146   :  { %s2596_s6 = scalar_lea.hbm %s2595_s12, 64  ;;  %s2598_s10 = scalar_lea.hbm %s3353_s23, 64 }
 0x147   :  { %p2597_p7 = scmp.ne.s32.totalorder %s2595_s12, %s2596_s6  ;;  %p2599_p8 = scmp.lt.s32.totalorder %s2595_s12, %s3353_s23 }
 0x148   :  { %p2600_p9 = scmp.lt.s32.totalorder %s2598_s10, %s2596_s6 }
 0x14a   :  { %s380_s0 = sshll.u32 %s3354_s7, 4  ;;  %p2601_p10 = por %p2600_p9, %p2599_p8  ;;  %s381_s0 = int_to_ptr.hbm [resolvable:$true] %s380_s0 }
 0x14c   :  { %p2602_p11 = pnand %p2601_p10, %p2597_p7 }
 0x14e   :  { %2605 = shalt.err (!%p2602_p11)
}
 0x14f   :  { %361 = dma.hbm_to_vmem [thread:$0]  %s3034_s9, 1024, %s356_s27, [#allocation32], %s2709_s1, %s2709_s1, %s2710_s2  }
 0x150   :  { %s2729_s14 = smov [#allocation36]   ;;  %s2618_s15 = sshra.s32 %s381_s0, 4  ;;  %s2619_s15 = int_to_ptr.hbm [resolvable:$true] %s2618_s15 }
 0x151   :  { %s382_s16 = sshll.u32 %s2729_s14, 4  ;;  %s2620_s25 = scalar_lea.hbm %s2619_s15, 1  ;;  %s383_s16 = int_to_ptr.vmem [resolvable:$true] %s382_s16 }
 0x152   :  { %p2621_p12 = scmp.ne.s32.totalorder %s2619_s15, %s2620_s25  ;;  %s2622_s18 = scalar_lea.hbm %s3354_s7, 1 }
 0x153   :  { %p2623_p13 = scmp.lt.s32.totalorder %s2619_s15, %s3354_s7  ;;  %p2624_p0 = scmp.lt.s32.totalorder %s2622_s18, %s2620_s25 }
 0x155   :  { %p2625_p1 = por %p2624_p0, %p2623_p13 }
 0x157   :  { %p2626_p2 = pnand %p2625_p1, %p2621_p12 }
 0x159   :  { %2629 = shalt.err (!%p2626_p2)
}
 0x15a   :  { %385 = dma.hbm_to_vmem [thread:$0]  %s381_s0, 16, %s383_s16, [#allocation35]  }
 0x15b   :  { %2642 = dma.done.wait [#allocation3], 128  }
 0x15c   :  { %2643 = vsyncadd [#allocation3], 4294967168 }
 0x15d   :  { %2644 = dma.done.wait [#allocation5], 1552  }
 0x15e   :  { %2645 = vsyncadd [#allocation5], 4294965744 }
 0x15f   :  { %2646 = dma.done.wait [#allocation8], 144  }
 0x160   :  { %2647 = vsyncadd [#allocation8], 4294967152 }
 0x161   :  { %2648 = dma.done.wait [#allocation11], 400  }
 0x162   :  { %2649 = vsyncadd [#allocation11], 4294966896 }
 0x163   :  { %2650 = dma.done.wait [#allocation14], 768  }
 0x164   :  { %2651 = vsyncadd [#allocation14], 4294966528 }
 0x165   :  { %2652 = dma.done.wait [#allocation17], 8576  }
 0x166   :  { %2653 = vsyncadd [#allocation17], 4294958720 }
 0x167   :  { %2654 = dma.done.wait [#allocation20], 144  }
 0x168   :  { %2655 = vsyncadd [#allocation20], 4294967152 }
 0x169   :  { %2656 = dma.done.wait [#allocation23], 32  }
 0x16a   :  { %2657 = vsyncadd [#allocation23], 4294967264 }
 0x16b   :  { %2658 = dma.done.wait [#allocation26], 144  }
 0x16c   :  { %2659 = vsyncadd [#allocation26], 4294967152 }
 0x16d   :  { %2660 = dma.done.wait [#allocation29], 1040  }
 0x16e   :  { %2661 = vsyncadd [#allocation29], 4294966256 }
 0x16f   :  { %2662 = dma.done.wait [#allocation32], 1408  }
 0x170   :  { %2663 = vsyncadd [#allocation32], 4294965888 }
 0x171   :  { %2664 = dma.done.wait [#allocation35], 32  }
 0x172   :  { %2665 = vsyncadd [#allocation35], 4294967264  ;;  %s3355_s1 = sld [smem:[#allocation50_spill]]  ;;  %v2730_v0 = vmov 0   ;;  %vm556_vm0 = vcmask 1044480   ;;  %vm534_vm1 = vcmask 39936  }
 0x173   :  { %s3356_s2 = sld [smem:[#allocation52_spill]]  ;;  %2077 = vset.pattern.permute.xlu1 %v2730_v0  ;;  %2076 = vset.pattern.permute.xlu0 %v2730_v0  ;;  %v491_v1 = vld [vmem:[#allocation2] sm:$0x1f]  ;;  %v605_v6 = vld [vmem:[#allocation7] sm:$0x1f]  ;;  %vm707_vm2 = vcmask 1045504  }
 0x174   :  { %2078 = vset.pattern.permute.xlu2 %v2730_v0  ;;  %s3357_s22 = sld [smem:[#allocation55_spill]]  ;;  %2006 = vmatpush.msk.msra.mxu1 %vm556_vm0, %v491_v1  ;;  %v2079_v36 = vld [vmem:[#allocation9] ss:$0 sm:$0xff]  ;;  %v2081_v46 = vld [vmem:[#allocation10] ss:$0 sm:$0xff]  ;;  %v676_v55 = vld [vmem:[#allocation12] sm:$0xff] }
 0x175   :  { %s3358_s3 = sld [smem:[#allocation49_spill]]  ;;  %1909 = vmatpush.msk.msra.mxu0 %vm556_vm0, %v491_v1  ;;  %vm697_vm3 = vcmask 179200   ;;  %v678_v56 = vld [vmem:[#allocation12 + $0x10] sm:$0x3f]  ;;  %v677_v58 = vld [vmem:[#allocation12 + $0x8] sm:$0xff]  ;;  %vm1338_vm4 = vcmask 48128  }
 0x176   :  { %s3359_s8 = sld [smem:[#allocation56_spill]]  ;;  %1917 = vmatpush.msk.msrb.mxu1 %vm556_vm0, %v605_v6  ;;  %vm1387_vm5 = vcmask 523264   ;;  %vm1366_vm6 = vcmask 73728   ;;  %vm1460_vm7 = vcmask 516096   ;;  %vm1330_vm8 = vcmask 400384  }
 0x177   :  { %s3360_s4 = sld [smem:[#allocation58_spill]]  ;;  %vm1333_vm9 = vcmask 398336   ;;  %vm1654_vm10 = vcmask 1040384   ;;  %vm1831_vm15 = vcmask 24576  }
 0x178   :  { %v483_v2 = vld [vmem:[%s3355_s1 + $0x10] sm:$0x3f]  ;;  %v481_v3 = vld [vmem:[%s3355_s1] sm:$0xff]  ;;  %v482_v7 = vld [vmem:[%s3355_s1 + $0x8] sm:$0xff]  ;;  %s3361_s29 = sld [smem:[#allocation59_spill]] }
 0x179   :  { %619 = vperm.xlu0 %2076, %v483_v2   ;;  %v490_v4 = vld [vmem:[%s3356_s2 + $0x30] sm:$0x1]  ;;  %v484_v5 = vld [vmem:[%s3356_s2] sm:$0xff]  ;;  %609 = vperm.xlu1 %2077, %v481_v3   ;;  %v485_v10 = vld [vmem:[%s3356_s2 + $0x8] sm:$0xff]  ;;  %s3362_s11 = sld [smem:[#allocation53_spill]] }
 0x17a   :  { %1916 = vmatmul.msk.f32.vlgmr.msra.gmra.mxu1 %vm534_vm1, %v490_v4  ;;  %1910 = vmatmul.msk.f32.vlgmr.msra.gmra.mxu0 %vm534_vm1, %v484_v5  ;;  %v681_v8 = vld [vmem:[%s3357_s22 + $0x10] sm:$0x3f]  ;;  %v487_v18 = vld [vmem:[%s3356_s2 + $0x18] sm:$0xff]  ;;  %v488_v21 = vld [vmem:[%s3356_s2 + $0x20] sm:$0xff]  ;;  %s3363_s23 = sld [smem:[#allocation51_spill]] }
 0x17b   :  { %v3060_v9 = vld [vmem:[%s3358_s3] sm:$0xff]  ;;  %v3069_v13 = vld [vmem:[%s3358_s3 + $0x8] sm:$0xff]  ;;  %v486_v14 = vld [vmem:[%s3356_s2 + $0x10] sm:$0xff]  ;;  %s3364_s9 = sld [smem:[#allocation62_spill]] }
 0x17c   :  { %v745_v11 = vld [vmem:[%s3359_s8 + $0x10] sm:$0x3f]  ;;  %v744_v12 = vld [vmem:[%s3359_s8 + $0x8] sm:$0xff]  ;;  %v679_v29 = vld [vmem:[%s3357_s22] sm:$0xff] }
 0x17d   :  { %v807_v15 = vld [vmem:[%s3360_s4 + $0x10] sm:$0x3f]  ;;  %v806_v16 = vld [vmem:[%s3360_s4 + $0x8] sm:$0xff]  ;;  %v743_v33 = vld [vmem:[%s3359_s8] sm:$0xff] }
 0x17e   :  { %v3078_v17 = vld [vmem:[%s3358_s3 + $0x10] sm:$0x3f]  ;;  %v867_v19 = vld [vmem:[%s3361_s29] sm:$0xff]  ;;  %v868_v20 = vld [vmem:[%s3361_s29 + $0x8] sm:$0xff] }
 0x17f   :  { %v492_v22 = vld [vmem:[%s3362_s11] sm:$0xff]  ;;  %v493_v23 = vld [vmem:[%s3362_s11 + $0x8] sm:$0xff]  ;;  %v495_v24 = vld [vmem:[%s3362_s11 + $0x18] sm:$0xff] }
 0x180   :  { %v496_v25 = vld [vmem:[%s3362_s11 + $0x20] sm:$0xff]  ;;  %v498_v26 = vld [vmem:[%s3362_s11 + $0x30] sm:$0x1]  ;;  %v680_v27 = vld [vmem:[%s3357_s22 + $0x8] sm:$0xff] }
 0x181   :  { %614 = vperm.xlu0 %2076, %v482_v7   ;;  %694 = vperm.xlu1 %2077, %v681_v8   ;;  %v489_v30 = vld [vmem:[%s3356_s2 + $0x28] sm:$0xff]  ;;  %v805_v34 = vld [vmem:[%s3360_s4] sm:$0xff]  ;;  %v869_v43 = vld [vmem:[%s3361_s29 + $0x10] sm:$0x3f] }
 0x182   :  { %1918 = vmatmul.msk.f32.vlgmr.msrb.gmra.mxu1 %vm534_vm1, %v3060_v9  ;;  %1911 = vmatmul.msk.f32.gmra.mxu0 %vm534_vm1, %v485_v10  ;;  %v494_v53 = vld [vmem:[%s3362_s11 + $0x10] sm:$0xff]  ;;  %v497_v57 = vld [vmem:[%s3362_s11 + $0x28] sm:$0xff]  ;;  %v742_v10 = vld [vmem:[#allocation13 + $0x10] sm:$0x3f] }
 0x183   :  { %689 = vperm.xlu2 %2078, %v680_v27   ;;  %v740_v7 = vld [vmem:[#allocation13] sm:$0xff]  ;;  %v741_v8 = vld [vmem:[#allocation13 + $0x8] sm:$0xff] }
 0x184   :  { %v804_v27 = vld [vmem:[#allocation15 + $0x10] sm:$0x3f] }
 0x189   :  { %758 = vperm.xlu0 %2076, %v745_v11   ;;  %753 = vperm.xlu1 %2077, %v744_v12  }
 0x18a   :  { %1919 = vmatmul.msk.f32.gmra.mxu1 %vm534_vm1, %v3069_v13  ;;  %1912 = vmatmul.msk.f32.gmra.mxu0 %vm534_vm1, %v486_v14 }
 0x18b   :  { %684 = vperm.xlu2 %2078, %v679_v29  }
 0x191   :  { %820 = vperm.xlu0 %2076, %v807_v15   ;;  %815 = vperm.xlu1 %2077, %v806_v16  }
 0x192   :  { %1920 = vmatmul.msk.f32.gmra.mxu1 %vm534_vm1, %v3078_v17  ;;  %1913 = vmatmul.msk.f32.gmra.mxu0 %vm534_vm1, %v487_v18 }
 0x193   :  { %748 = vperm.xlu2 %2078, %v743_v33  }
 0x199   :  { %872 = vperm.xlu0 %2076, %v867_v19   ;;  %877 = vperm.xlu1 %2077, %v868_v20  }
 0x19a   :  { %1914 = vmatmul.msk.f32.gmra.mxu0 %vm534_vm1, %v488_v21 }
 0x19b   :  { %810 = vperm.xlu2 %2078, %v805_v34  }
 0x1a1   :  { %501 = vperm.xlu0 %2076, %v492_v22   ;;  %506 = vperm.xlu1 %2077, %v493_v23  }
 0x1a2   :  { %1915 = vmatmul.msk.f32.gmra.mxu0 %vm534_vm1, %v489_v30 }
 0x1a3   :  { %882 = vperm.xlu2 %2078, %v869_v43  }
 0x1a9   :  { %516 = vperm.xlu0 %2076, %v495_v24   ;;  %521 = vperm.xlu1 %2077, %v496_v25   ;;  %v802_v25 = vld [vmem:[#allocation15] sm:$0xff] }
 0x1ab   :  { %511 = vperm.xlu2 %2078, %v494_v53   ;;  %v926_v53 = vld [vmem:[#allocation4] sm:$0xff] }
 0x1b1   :  { %531 = vperm.xlu0 %2076, %v498_v26   ;;  %v803_v26 = vld [vmem:[#allocation15 + $0x8] sm:$0xff] }
 0x1b3   :  { %526 = vperm.xlu2 %2078, %v497_v57   ;;  %v933_v57 = vld [vmem:[#allocation4 + $0x38] sm:$0xff] }
 0x1dd   :  { %v690_v59 = vpop.permute.xlu2 %689 }
 0x1e5   :  { %v685_v0 = vpop.permute.xlu2 %684 }
 0x1eb   :  { %v3099_v31 = vpop.permute.xlu0 %619  ;;  %v3106_v39 = vpop.permute.xlu1 %609 }
 0x1ec   :  { %v625_v40 = vmul.f32 %v2079_v36, %v3106_v39  ;;  %v627_v41 = vmul.f32 %v2079_v36, %v3099_v31 }
 0x1ed   :  { %v749_v20 = vpop.permute.xlu2 %748 }
 0x1f3   :  { %v3103_v37 = vpop.permute.xlu0 %614  ;;  %v695_v61 = vpop.permute.xlu1 %694 }
 0x1f4   :  { %v626_v38 = vmul.f32 %v2079_v36, %v3103_v37 }
 0x1f7   :  { %v3094_v28 = vpop.f32.mrf.mxu1 }
 0x1fb   :  { %v759_v14 = vpop.permute.xlu0 %758  ;;  %v754_v15 = vpop.permute.xlu1 %753 }
 0x1ff   :  { %v657_v32 = vpop.f32.mrf.mxu1 }
 0x200   :  { %v658_v45 = vadd.f32 %v657_v32, %v625_v40 }
 0x202   :  { %v670_v50 = vadd.f32 %v2081_v46, %v658_v45  ;;  %v865_v45 = vld [vmem:[#allocation16 + $0x8] sm:$0xff] }
 0x203   :  { %v821_v32 = vpop.permute.xlu0 %820  ;;  %v816_v33 = vpop.permute.xlu1 %815 }
 0x204   :  { %v673_v54 = vmax.f32 %v670_v50, 0.0  ;;  %v930_v50 = vld [vmem:[#allocation4 + $0x20] sm:$0xff] }
 0x207   :  { %v660_v35 = vpop.f32.mrf.mxu1 }
 0x208   :  { %v661_v42 = vadd.f32 %v660_v35, %v626_v38  ;;  %v811_v38 = vpop.permute.xlu2 %810 }
 0x20a   :  { %v671_v48 = vadd.f32 %v2081_v46, %v661_v42 }
 0x20c   :  { %v674_v52 = vmax.f32 %v671_v48, 0.0  ;;  %v935_v48 = vld [vmem:[#allocation4 + $0x48] sm:$0x3f] }
 0x20f   :  { %v663_v44 = vpop.f32.mrf.mxu1 }
 0x210   :  { %v664_v47 = vadd.f32 %v663_v44, %v627_v41  ;;  %v864_v44 = vld [vmem:[#allocation16] sm:$0xff] }
 0x212   :  { %v672_v49 = vadd.f32 %v2081_v46, %v664_v47  ;;  %v866_v46 = vld [vmem:[#allocation16 + $0x10] sm:$0x3f]  ;;  %v934_v47 = vld [vmem:[#allocation4 + $0x40] sm:$0x3f] }
 0x214   :  { %v675_v51 = vmax.f32 %v672_v49, 0.0  ;;  %v936_v49 = vld [vmem:[#allocation4 + $0x50] sm:$0x3f] }
 0x216   :  { %1921 = vmatpush.msk.msra.mxu1 %vm707_vm2, %v675_v51  ;;  %2007 = vmatpush.msk.msra.mxu2 %vm707_vm2, %v675_v51  ;;  %v931_v51 = vld [vmem:[#allocation4 + $0x28] sm:$0xff] }
 0x218   :  { %725 = vmatpush.msra.mxu1 %v674_v52  ;;  %2008 = vmatpush.msra.mxu2 %v674_v52  ;;  %v932_v52 = vld [vmem:[#allocation4 + $0x30] sm:$0xff] }
 0x21a   :  { %726 = vmatpush.msra.mxu1 %v673_v54  ;;  %2009 = vmatpush.msra.mxu2 %v673_v54  ;;  %v927_v54 = vld [vmem:[#allocation4 + $0x8] sm:$0xff] }
 0x21b   :  { %1922 = vmatmul.msk.f32.vlgmr.msra.gmra.mxu1 %vm697_vm3, %v676_v55  ;;  %1924 = vmatmul.msk.f32.vlgmr.msra.gmra.mxu2 %vm697_vm3, %v678_v56  ;;  %v928_v55 = vld [vmem:[#allocation4 + $0x10] sm:$0xff]  ;;  %v937_v56 = vld [vmem:[#allocation4 + $0x58] sm:$0x3f] }
 0x223   :  { %1923 = vmatmul.msk.f32.gmra.mxu1 %vm697_vm3, %v677_v58  ;;  %v929_v58 = vld [vmem:[#allocation4 + $0x18] sm:$0xff] }
 0x298   :  { %v728_v60 = vpop.f32.mrf.mxu1 }
 0x299   :  { %v729_v2 = vadd.f32 %v728_v60, %v685_v0 }
 0x29b   :  { %v737_v6 = vmax.f32 %v729_v2, 0.0 }
 0x29e   :  { %v734_v62 = vpop.f32.mrf.mxu2 }
 0x29f   :  { %v735_v63 = vadd.f32 %v734_v62, %v695_v61 }
 0x2a0   :  { %v731_v1 = vpop.f32.mrf.mxu1 }
 0x2a1   :  { %v739_v3 = vmax.f32 %v735_v63, 0.0  ;;  %v732_v4 = vadd.f32 %v731_v1, %v690_v59  ;;  %v873_v59 = vpop.permute.xlu0 %872  ;;  %v878_v63 = vpop.permute.xlu1 %877 }
 0x2a3   :  { %v738_v5 = vmax.f32 %v732_v4, 0.0  ;;  %1925 = vmatpush.msk.msra.mxu3 %vm707_vm2, %v739_v3  ;;  %v1094_v3 = vld [vmem:[#allocation18 + $0xf8] sm:$0xff]  ;;  %v1093_v4 = vld [vmem:[#allocation18 + $0xf0] sm:$0xff] }
 0x2a5   :  { %787 = vmatpush.msra.mxu3 %v738_v5  ;;  %v1078_v5 = vld [vmem:[#allocation18 + $0x78] sm:$0xff] }
 0x2a7   :  { %788 = vmatpush.msra.mxu3 %v737_v6  ;;  %v1110_v6 = vld [vmem:[#allocation18 + $0x178] sm:$0xff] }
 0x2a8   :  { %1926 = vmatmul.msk.f32.vlgmr.msra.gmra.mxu3 %vm697_vm3, %v740_v7  ;;  %v1077_v7 = vld [vmem:[#allocation18 + $0x70] sm:$0xff] }
 0x2a9   :  { %1937 = vmatpush.msk.msrb.mxu3 %vm707_vm2, %v934_v47  ;;  %v1100_v47 = vld [vmem:[#allocation18 + $0x128] sm:$0xff] }
 0x2ab   :  { %973 = vmatpush.msrb.mxu3 %v930_v50  ;;  %v1082_v50 = vld [vmem:[#allocation18 + $0x98] sm:$0xff] }
 0x2ad   :  { %974 = vmatpush.msrb.mxu3 %v926_v53  ;;  %v1066_v53 = vld [vmem:[#allocation18 + $0x18] sm:$0xff] }
 0x2af   :  { %1949 = vmatpush.msk.msra.mxu3 %vm707_vm2, %v937_v56  ;;  %v1126_v56 = vld [vmem:[#allocation18 + $0x1f8] sm:$0xff] }
 0x2b0   :  { %1927 = vmatmul.msk.f32.gmra.mxu3 %vm697_vm3, %v741_v8  ;;  %v1109_v8 = vld [vmem:[#allocation18 + $0x170] sm:$0xff] }
 0x2b1   :  { %1051 = vmatpush.msra.mxu3 %v933_v57  ;;  %v1065_v57 = vld [vmem:[#allocation18 + $0x10] sm:$0xff] }
 0x2b3   :  { %1052 = vmatpush.msra.mxu3 %v929_v58  ;;  %v1125_v58 = vld [vmem:[#allocation18 + $0x1f0] sm:$0xff] }
 0x2b8   :  { %1928 = vmatmul.msk.f32.gmra.mxu3 %vm697_vm3, %v742_v10  ;;  %v883_v10 = vpop.permute.xlu2 %882 }
 0x32b   :  { %v790_v11 = vpop.f32.mrf.mxu3 }
 0x32c   :  { %v791_v21 = vadd.f32 %v790_v11, %v749_v20  ;;  %v1091_v20 = vld [vmem:[#allocation18 + $0xe0] sm:$0xff] }
 0x32e   :  { %v799_v24 = vmax.f32 %v791_v21, 0.0  ;;  %v1107_v21 = vld [vmem:[#allocation18 + $0x160] sm:$0xff] }
 0x333   :  { %v793_v12 = vpop.f32.mrf.mxu3 }
 0x334   :  { %v794_v18 = vadd.f32 %v793_v12, %v754_v15  ;;  %v1092_v12 = vld [vmem:[#allocation18 + $0xe8] sm:$0xff] }
 0x336   :  { %v800_v23 = vmax.f32 %v794_v18, 0.0 }
 0x33b   :  { %v796_v16 = vpop.f32.mrf.mxu3 }
 0x33c   :  { %v797_v19 = vadd.f32 %v796_v16, %v759_v14  ;;  %v1076_v14 = vld [vmem:[#allocation18 + $0x68] sm:$0xff] }
 0x33d   :  { %v1108_v16 = vld [vmem:[#allocation18 + $0x168] sm:$0xff] }
 0x33e   :  { %v801_v22 = vmax.f32 %v797_v19, 0.0  ;;  %v1075_v19 = vld [vmem:[#allocation18 + $0x60] sm:$0xff] }
 0x340   :  { %1929 = vmatpush.msk.msrb.mxu1 %vm707_vm2, %v801_v22  ;;  %v1074_v22 = vld [vmem:[#allocation18 + $0x58] sm:$0xff] }
 0x342   :  { %849 = vmatpush.msrb.mxu1 %v800_v23  ;;  %v1090_v23 = vld [vmem:[#allocation18 + $0xd8] sm:$0xff] }
 0x344   :  { %850 = vmatpush.msrb.mxu1 %v799_v24  ;;  %v1106_v24 = vld [vmem:[#allocation18 + $0x158] sm:$0xff] }
 0x345   :  { %1930 = vmatmul.msk.f32.vlgmr.msrb.gmra.mxu1 %vm697_vm3, %v802_v25  ;;  %v1073_v25 = vld [vmem:[#allocation18 + $0x50] sm:$0xff] }
 0x346   :  { %1941 = vmatpush.msk.msra.mxu1 %vm707_vm2, %v935_v48  ;;  %v1067_v48 = vld [vmem:[#allocation18 + $0x20] sm:$0xff] }
 0x348   :  { %999 = vmatpush.msra.mxu1 %v931_v51  ;;  %v1081_v51 = vld [vmem:[#allocation18 + $0x90] sm:$0xff] }
 0x34a   :  { %1000 = vmatpush.msra.mxu1 %v927_v54  ;;  %v1079_v54 = vld [vmem:[#allocation18 + $0x80] sm:$0xff] }
 0x34c   :  { %1157 = vmatpush.msrb.mxu1 %v1078_v5  ;;  %v1382_v5 = vld [vmem:[#allocation28 + $0x38] sm:$0xff] }
 0x34d   :  { %1931 = vmatmul.msk.f32.gmra.mxu1 %vm697_vm3, %v803_v26  ;;  %v1089_v26 = vld [vmem:[#allocation18 + $0xd0] sm:$0xff] }
 0x34e   :  { %1158 = vmatpush.msrb.mxu1 %v1077_v7  ;;  %v1381_v7 = vld [vmem:[#allocation28 + $0x30] sm:$0xff] }
 0x350   :  { %1159 = vmatpush.msrb.mxu1 %v1076_v14  ;;  %v1114_v14 = vld [vmem:[#allocation18 + $0x198] sm:$0xff] }
 0x352   :  { %1160 = vmatpush.msrb.mxu1 %v1075_v19  ;;  %v1377_v19 = vld [vmem:[#allocation28 + $0x10] sm:$0xff] }
 0x354   :  { %1161 = vmatpush.msrb.mxu1 %v1074_v22  ;;  %v1111_v22 = vld [vmem:[#allocation18 + $0x180] sm:$0xff] }
 0x355   :  { %1932 = vmatmul.msk.f32.gmra.mxu1 %vm697_vm3, %v804_v27  ;;  %v1105_v27 = vld [vmem:[#allocation18 + $0x150] sm:$0xff] }
 0x356   :  { %1162 = vmatpush.msrb.mxu1 %v1073_v25 }
 0x3c2   :  { %v852_v29 = vpop.f32.mrf.mxu1 }
 0x3c3   :  { %v853_v40 = vadd.f32 %v852_v29, %v811_v38  ;;  %v1072_v29 = vld [vmem:[#allocation18 + $0x48] sm:$0xff]  ;;  %v1070_v38 = vld [vmem:[#allocation18 + $0x38] sm:$0xff] }
 0x3c4   :  { %1163 = vmatpush.msrb.mxu1 %v1072_v29 }
 0x3c5   :  { %v861_v43 = vmax.f32 %v853_v40, 0.0  ;;  %v1086_v40 = vld [vmem:[#allocation18 + $0xb8] sm:$0xff] }
 0x3ca   :  { %v855_v30 = vpop.f32.mrf.mxu1 }
 0x3cb   :  { %v856_v35 = vadd.f32 %v855_v30, %v816_v33  ;;  %v1088_v30 = vld [vmem:[#allocation18 + $0xc8] sm:$0xff] }
 0x3cc   :  { %v1104_v33 = vld [vmem:[#allocation18 + $0x148] sm:$0xff] }
 0x3cd   :  { %v862_v42 = vmax.f32 %v856_v35, 0.0  ;;  %v1087_v35 = vld [vmem:[#allocation18 + $0xc0] sm:$0xff] }
 0x3d2   :  { %v858_v34 = vpop.f32.mrf.mxu1 }
 0x3d3   :  { %v859_v36 = vadd.f32 %v858_v34, %v821_v32  ;;  %v1127_v32 = vld [vmem:[#allocation19] sm:$0x1f] }
 0x3d4   :  { %v1071_v34 = vld [vmem:[#allocation18 + $0x40] sm:$0xff]  ;;  %1953 = vmatpush.msk.msrb.mxu0 %vm556_vm0, %v1127_v32 }
 0x3d5   :  { %v863_v41 = vmax.f32 %v859_v36, 0.0  ;;  %v1103_v36 = vld [vmem:[#allocation18 + $0x140] sm:$0xff]  ;;  %1164 = vmatpush.msrb.mxu1 %v1071_v34  ;;  %1954 = vmatmul.msk.f32.vlgmr.msrb.gmra.mxu0 %vm534_vm1, %v3060_v9 }
 0x3d6   :  { %v1099_v9 = vld [vmem:[#allocation18 + $0x120] sm:$0xff]  ;;  %1235 = vmatpush.msra.mxu0 %v1126_v56 }
 0x3d7   :  { %1933 = vmatpush.msk.msrb.mxu2 %vm707_vm2, %v863_v41  ;;  %v1102_v41 = vld [vmem:[#allocation18 + $0x138] sm:$0xff]  ;;  %1165 = vmatpush.msrb.mxu1 %v1070_v38 }
 0x3d8   :  { %1236 = vmatpush.msra.mxu0 %v1125_v58 }
 0x3d9   :  { %911 = vmatpush.msrb.mxu2 %v862_v42  ;;  %v1069_v42 = vld [vmem:[#allocation18 + $0x30] sm:$0xff] }
 0x3da   :  { %1166 = vmatpush.msrb.mxu1 %v1069_v42  ;;  %v502_v42 = vpop.permute.xlu0 %501 }
 0x3db   :  { %912 = vmatpush.msrb.mxu2 %v861_v43  ;;  %v1085_v43 = vld [vmem:[#allocation18 + $0xb0] sm:$0xff] }
 0x3dc   :  { %1934 = vmatmul.msk.f32.vlgmr.msrb.gmra.mxu2 %vm697_vm3, %v864_v44  ;;  %v1101_v44 = vld [vmem:[#allocation18 + $0x130] sm:$0xff] }
 0x3dd   :  { %1945 = vmatpush.msk.msra.mxu2 %vm707_vm2, %v936_v49  ;;  %v1083_v49 = vld [vmem:[#allocation18 + $0xa0] sm:$0xff]  ;;  %1955 = vmatmul.msk.f32.gmra.mxu0 %vm534_vm1, %v3069_v13  ;;  %v1097_v13 = vld [vmem:[#allocation18 + $0x110] sm:$0xff] }
 0x3df   :  { %1025 = vmatpush.msra.mxu2 %v932_v52  ;;  %v1080_v52 = vld [vmem:[#allocation18 + $0x88] sm:$0xff] }
 0x3e1   :  { %1026 = vmatpush.msra.mxu2 %v928_v55  ;;  %v1098_v55 = vld [vmem:[#allocation18 + $0x118] sm:$0xff] }
 0x3e2   :  { %v517_v58 = vpop.permute.xlu0 %516 }
 0x3e3   :  { %1183 = vmatpush.msrb.mxu2 %v1094_v3  ;;  %v1119_v3 = vld [vmem:[#allocation18 + $0x1c0] sm:$0xff] }
 0x3e4   :  { %1935 = vmatmul.msk.f32.gmra.mxu2 %vm697_vm3, %v865_v45  ;;  %v1068_v45 = vld [vmem:[#allocation18 + $0x28] sm:$0xff] }
 0x3e5   :  { %1184 = vmatpush.msrb.mxu2 %v1093_v4  ;;  %1167 = vmatpush.msrb.mxu1 %v1068_v45  ;;  %v1118_v4 = vld [vmem:[#allocation18 + $0x1b8] sm:$0xff]  ;;  %v1368_v45 = vld [vmem:[%s3363_s23] sm:$0xff] }
 0x3e6   :  { %1956 = vmatmul.msk.f32.gmra.mxu0 %vm534_vm1, %v3078_v17  ;;  %v1063_v17 = vld [vmem:[#allocation18] sm:$0xff] }
 0x3e7   :  { %1185 = vmatpush.msrb.mxu2 %v1092_v12  ;;  %1168 = vmatpush.msrb.mxu1 %v1067_v48  ;;  %v1379_v12 = vld [vmem:[#allocation28 + $0x20] sm:$0xff]  ;;  %v507_v48 = vpop.permute.xlu1 %506 }
 0x3e9   :  { %1186 = vmatpush.msrb.mxu2 %v1091_v20  ;;  %1169 = vmatpush.msrb.mxu1 %v1066_v53  ;;  %v1376_v20 = vld [vmem:[#allocation28 + $0x8] sm:$0xff]  ;;  %v512_v53 = vpop.permute.xlu2 %511 }
 0x3eb   :  { %1187 = vmatpush.msrb.mxu2 %v1090_v23  ;;  %1170 = vmatpush.msrb.mxu1 %v1065_v57  ;;  %v1375_v23 = vld [vmem:[#allocation28] sm:$0xff] }
 0x3ec   :  { %1936 = vmatmul.msk.f32.gmra.mxu2 %vm697_vm3, %v866_v46  ;;  %v1084_v46 = vld [vmem:[#allocation18 + $0xa8] sm:$0xff] }
 0x3ed   :  { %1188 = vmatpush.msrb.mxu2 %v1089_v26  ;;  %v1463_v26 = vld [vmem:[#allocation31 + $0x8] sm:$0xff] }
 0x3ef   :  { %1189 = vmatpush.msrb.mxu2 %v1088_v30 }
 0x3f1   :  { %1190 = vmatpush.msrb.mxu2 %v1087_v35  ;;  %v577_v35 = vpop.f32.mrf.mxu0 }
 0x3f3   :  { %1191 = vmatpush.msrb.mxu2 %v1086_v40  ;;  %v1335_v40 = vld [vmem:[#allocation6] sm:$0x1] }
 0x3f5   :  { %1192 = vmatpush.msrb.mxu2 %v1085_v43 }
 0x3f7   :  { %1193 = vmatpush.msrb.mxu2 %v1084_v46 }
 0x3f9   :  { %1194 = vmatpush.msrb.mxu2 %v1083_v49  ;;  %v580_v43 = vpop.f32.mrf.mxu0 }
 0x3fa   :  { %v581_v49 = vadd.f32 %v580_v43, %v507_v48 }
 0x3fb   :  { %1195 = vmatpush.msrb.mxu2 %v1082_v50  ;;  %v1369_v50 = vld [vmem:[%s3363_s23 + $0x8] sm:$0xff] }
 0x3fd   :  { %1196 = vmatpush.msrb.mxu2 %v1081_v51 }
 0x3ff   :  { %1197 = vmatpush.msrb.mxu2 %v1080_v52  ;;  %v599_v52 = vmax.f32 %v581_v49, 0.0 }
 0x401   :  { %1198 = vmatpush.msrb.mxu2 %v1079_v54 }
 0x45f   :  { %v914_v60 = vpop.f32.mrf.mxu2 }
 0x460   :  { %v915_v61 = vadd.f32 %v914_v60, %v873_v59  ;;  %v1064_v59 = vld [vmem:[#allocation18 + $0x8] sm:$0xff] }
 0x461   :  { %v1096_v60 = vld [vmem:[#allocation18 + $0x108] sm:$0xff]  ;;  %1171 = vmatpush.msrb.mxu1 %v1064_v59 }
 0x462   :  { %v923_v62 = vmax.f32 %v915_v61, 0.0  ;;  %v1124_v61 = vld [vmem:[#allocation18 + $0x1e8] sm:$0xff] }
 0x463   :  { %1237 = vmatpush.msra.mxu0 %v1124_v61  ;;  %1172 = vmatpush.msrb.mxu1 %v1063_v17 }
 0x464   :  { %1938 = vmatmul.msk.f32.vlgmr.msrb.gmra.mxu3 %vm697_vm3, %v923_v62  ;;  %1942 = vmatmul.msk.f32.vlgmr.msra.gmra.mxu1 %vm697_vm3, %v923_v62 }
 0x465   :  { %1946 = vmatmul.msk.f32.vlgmr.msra.gmra.mxu2 %vm697_vm3, %v923_v62  ;;  %1209 = vmatpush.msrb.mxu3 %v1110_v6  ;;  %v1117_v6 = vld [vmem:[#allocation18 + $0x1b0] sm:$0xff] }
 0x467   :  { %v917_v0 = vpop.f32.mrf.mxu2  ;;  %1210 = vmatpush.msrb.mxu3 %v1109_v8  ;;  %v1380_v8 = vld [vmem:[#allocation28 + $0x28] sm:$0xff] }
 0x468   :  { %v918_v1 = vadd.f32 %v917_v0, %v878_v63  ;;  %v1123_v63 = vld [vmem:[#allocation18 + $0x1e0] sm:$0xff]  ;;  %v1122_v0 = vld [vmem:[#allocation18 + $0x1d8] sm:$0xff] }
 0x469   :  { %1211 = vmatpush.msrb.mxu3 %v1108_v16  ;;  %1238 = vmatpush.msra.mxu0 %v1123_v63  ;;  %v1378_v16 = vld [vmem:[#allocation28 + $0x18] sm:$0xff] }
 0x46a   :  { %v3137_v2 = vmax.f32 %v918_v1, 0.0  ;;  %v1121_v1 = vld [vmem:[#allocation18 + $0x1d0] sm:$0xff] }
 0x46b   :  { %1212 = vmatpush.msrb.mxu3 %v1107_v21  ;;  %1239 = vmatpush.msra.mxu0 %v1122_v0  ;;  %v1112_v21 = vld [vmem:[#allocation18 + $0x188] sm:$0xff] }
 0x46c   :  { %1939 = vmatmul.msk.f32.gmra.mxu3 %vm697_vm3, %v3137_v2  ;;  %1943 = vmatmul.msk.f32.gmra.mxu1 %vm697_vm3, %v3137_v2  ;;  %v1372_v0 = vld [vmem:[%s3363_s23 + $0x20] sm:$0xff] }
 0x46d   :  { %1947 = vmatmul.msk.f32.gmra.mxu2 %vm697_vm3, %v3137_v2  ;;  %1213 = vmatpush.msrb.mxu3 %v1106_v24  ;;  %v1464_v24 = vld [vmem:[#allocation31 + $0x10] sm:$0x3f] }
 0x46e   :  { %1240 = vmatpush.msra.mxu0 %v1121_v1 }
 0x46f   :  { %v920_v11 = vpop.f32.mrf.mxu2  ;;  %1214 = vmatpush.msrb.mxu3 %v1105_v27  ;;  %v1462_v27 = vld [vmem:[#allocation31] sm:$0xff] }
 0x470   :  { %v921_v15 = vadd.f32 %v920_v11, %v883_v10  ;;  %v1116_v10 = vld [vmem:[#allocation18 + $0x1a8] sm:$0xff]  ;;  %v1115_v11 = vld [vmem:[#allocation18 + $0x1a0] sm:$0xff] }
 0x471   :  { %1215 = vmatpush.msrb.mxu3 %v1104_v33 }
 0x472   :  { %v3145_v18 = vmax.f32 %v921_v15, 0.0  ;;  %v1336_v15 = vld [vmem:[#allocation25] sm:$0x3f] }
 0x473   :  { %1216 = vmatpush.msrb.mxu3 %v1103_v36  ;;  %1957 = vmatpush.msk.msra.mxu2 %vm707_vm2, %v1336_v15  ;;  %v1294_v15 = vld [vmem:[%s3364_s9 + $0x68] sm:$0xff] }
 0x474   :  { %1940 = vmatmul.msk.f32.gmra.mxu3 %vm697_vm3, %v3145_v18  ;;  %1944 = vmatmul.msk.f32.gmra.mxu1 %vm697_vm3, %v3145_v18 }
 0x475   :  { %1948 = vmatmul.msk.f32.gmra.mxu2 %vm697_vm3, %v3145_v18  ;;  %1217 = vmatpush.msrb.mxu3 %v1102_v41 }
 0x477   :  { %1218 = vmatpush.msrb.mxu3 %v1101_v44  ;;  %v578_v44 = vadd.f32 %v577_v35, %v502_v42  ;;  %v1282_v35 = vld [vmem:[%s3364_s9 + $0x8] sm:$0xff] }
 0x478   :  { %v1465_v42 = vld [vmem:[#allocation33] sm:$0xff] }
 0x479   :  { %1219 = vmatpush.msrb.mxu3 %v1100_v47  ;;  %v598_v47 = vmax.f32 %v578_v44, 0.0 }
 0x47b   :  { %1220 = vmatpush.msrb.mxu3 %v1099_v9  ;;  %v583_v9 = vpop.f32.mrf.mxu0 }
 0x47c   :  { %1950 = vmatmul.msk.f32.vlgmr.msra.gmra.mxu3 %vm697_vm3, %v923_v62  ;;  %v1095_v62 = vld [vmem:[#allocation18 + $0x100] sm:$0xff]  ;;  %v584_v54 = vadd.f32 %v583_v9, %v512_v53  ;;  %v2080_v53 = vld [vmem:[#allocation21] ss:$0 sm:$0xff] }
 0x47d   :  { %1221 = vmatpush.msrb.mxu3 %v1098_v55  ;;  %v1370_v55 = vld [vmem:[%s3363_s23 + $0x10] sm:$0xff] }
 0x47f   :  { %1222 = vmatpush.msrb.mxu3 %v1097_v13  ;;  %v600_v13 = vmax.f32 %v584_v54, 0.0 }
 0x481   :  { %1223 = vmatpush.msrb.mxu3 %v1096_v60  ;;  %v1371_v60 = vld [vmem:[%s3363_s23 + $0x18] sm:$0xff] }
 0x483   :  { %1224 = vmatpush.msrb.mxu3 %v1095_v62  ;;  %v586_v56 = vpop.f32.mrf.mxu0  ;;  %v522_v62 = vpop.permute.xlu1 %521 }
 0x484   :  { %1951 = vmatmul.msk.f32.gmra.mxu3 %vm697_vm3, %v3137_v2  ;;  %v1120_v2 = vld [vmem:[#allocation18 + $0x1c8] sm:$0xff]  ;;  %v587_v59 = vadd.f32 %v586_v56, %v517_v58 }
 0x485   :  { %1241 = vmatpush.msra.mxu0 %v1120_v2  ;;  %1417 = vmatpush.msra.mxu3 %v1382_v5  ;;  %v527_v2 = vpop.permute.xlu2 %526  ;;  %v1373_v5 = vld [vmem:[%s3363_s23 + $0x28] sm:$0xff] }
 0x486   :  { %v601_v61 = vmax.f32 %v587_v59, 0.0 }
 0x487   :  { %1242 = vmatpush.msra.mxu0 %v1119_v3  ;;  %1418 = vmatpush.msra.mxu3 %v1381_v7  ;;  %v532_v7 = vpop.permute.xlu0 %531 }
 0x489   :  { %1243 = vmatpush.msra.mxu0 %v1118_v4  ;;  %1419 = vmatpush.msra.mxu3 %v1380_v8  ;;  %v596_v8 = vadd.f32 %v3094_v28, %v532_v7  ;;  %v1292_v28 = vld [vmem:[%s3364_s9 + $0x58] sm:$0xff] }
 0x48b   :  { %1244 = vmatpush.msra.mxu0 %v1117_v6  ;;  %1420 = vmatpush.msra.mxu3 %v1379_v12  ;;  %v589_v17 = vpop.f32.mrf.mxu0  ;;  %v1296_v12 = vld [vmem:[%s3364_s9 + $0x78] sm:$0xff] }
 0x48c   :  { %1952 = vmatmul.msk.f32.gmra.mxu3 %vm697_vm3, %v3145_v18  ;;  %v1113_v18 = vld [vmem:[#allocation18 + $0x190] sm:$0xff]  ;;  %v590_v63 = vadd.f32 %v589_v17, %v522_v62  ;;  %1301 = vmatpush.msra.mxu1 %v1296_v12 }
 0x48d   :  { %1245 = vmatpush.msra.mxu0 %v1116_v10  ;;  %1421 = vmatpush.msra.mxu3 %v1378_v16  ;;  %v1374_v10 = vld [vmem:[%s3363_s23 + $0x30] sm:$0x1]  ;;  %v1293_v16 = vld [vmem:[%s3364_s9 + $0x60] sm:$0xff] }
 0x48e   :  { %v602_v1 = vmax.f32 %v590_v63, 0.0  ;;  %v2083_v63 = vld [vmem:[#allocation30] ss:$0 sm:$0xff] }
 0x48f   :  { %1246 = vmatpush.msra.mxu0 %v1115_v11  ;;  %1422 = vmatpush.msra.mxu3 %v1377_v19  ;;  %v604_v11 = vmax.f32 %v596_v8, 0.0  ;;  %v1290_v19 = vld [vmem:[%s3364_s9 + $0x48] sm:$0xff] }
 0x491   :  { %1247 = vmatpush.msra.mxu0 %v1114_v14  ;;  %1423 = vmatpush.msra.mxu3 %v1376_v20  ;;  %v1295_v14 = vld [vmem:[%s3364_s9 + $0x70] sm:$0xff]  ;;  %v1289_v20 = vld [vmem:[%s3364_s9 + $0x40] sm:$0xff] }
 0x492   :  { %1302 = vmatpush.msra.mxu1 %v1295_v14 }
 0x493   :  { %1248 = vmatpush.msra.mxu0 %v1113_v18  ;;  %1424 = vmatpush.msra.mxu3 %v1375_v23  ;;  %v592_v3 = vpop.f32.mrf.mxu0  ;;  %v1291_v18 = vld [vmem:[%s3364_s9 + $0x50] sm:$0xff]  ;;  %v1472_v23 = vld [vmem:[#allocation33 + $0x38] sm:$0xff] }
 0x494   :  { %v593_v4 = vadd.f32 %v592_v3, %v527_v2  ;;  %1303 = vmatpush.msra.mxu1 %v1294_v15 }
 0x495   :  { %1249 = vmatpush.msra.mxu0 %v1112_v21  ;;  %v1288_v21 = vld [vmem:[%s3364_s9 + $0x38] sm:$0xff] }
 0x496   :  { %v603_v6 = vmax.f32 %v593_v4, 0.0  ;;  %1304 = vmatpush.msra.mxu1 %v1293_v16 }
 0x497   :  { %1250 = vmatpush.msra.mxu0 %v1111_v22  ;;  %v1287_v22 = vld [vmem:[%s3364_s9 + $0x30] sm:$0xff] }
 0x498   :  { %1305 = vmatpush.msra.mxu1 %v1292_v28 }
 0x499   :  { %1502 = vmatpush.msrb.mxu0 %v1472_v23 }
 0x49a   :  { %1306 = vmatpush.msra.mxu1 %v1291_v18 }
 0x49c   :  { %1307 = vmatpush.msra.mxu1 %v1290_v19 }
 0x49e   :  { %1308 = vmatpush.msra.mxu1 %v1289_v20 }
 0x4a0   :  { %1309 = vmatpush.msra.mxu1 %v1288_v21 }
 0x4a2   :  { %1310 = vmatpush.msra.mxu1 %v1287_v22 }
 0x4e1   :  { %v1002_v25 = vpop.f32.mrf.mxu1 }
 0x4e2   :  { %1199 = vmatmul.f32.vlgmr.msrb.gmra.mxu2 %v1002_v25  ;;  %v1471_v25 = vld [vmem:[#allocation33 + $0x30] sm:$0xff] }
 0x4e3   :  { %1973 = vmatpush.msk.msrb.mxu2 %vm707_vm2, %v1464_v24  ;;  %v1286_v24 = vld [vmem:[%s3364_s9 + $0x28] sm:$0xff]  ;;  %1503 = vmatpush.msrb.mxu0 %v1471_v25 }
 0x4e4   :  { %1311 = vmatpush.msra.mxu1 %v1286_v24 }
 0x4e5   :  { %1570 = vmatpush.msrb.mxu2 %v1463_v26  ;;  %v1285_v26 = vld [vmem:[%s3364_s9 + $0x20] sm:$0xff] }
 0x4e6   :  { %1312 = vmatpush.msra.mxu1 %v1285_v26 }
 0x4e7   :  { %v976_v29 = vpop.f32.mrf.mxu3  ;;  %1571 = vmatpush.msrb.mxu2 %v1462_v27  ;;  %v1470_v27 = vld [vmem:[#allocation33 + $0x28] sm:$0xff] }
 0x4e8   :  { %v1028_v30 = vpop.f32.mrf.mxu2  ;;  %1173 = vmatmul.f32.vlgmr.msrb.gmra.mxu1 %v976_v29  ;;  %1504 = vmatpush.msrb.mxu0 %v1470_v27  ;;  %v1148_v29 = vpop.f32.mrf.mxu0 }
 0x4e9   :  { %1225 = vmatmul.f32.vlgmr.msrb.gmra.mxu3 %v1028_v30  ;;  %v1005_v32 = vpop.f32.mrf.mxu1  ;;  %v1284_v30 = vld [vmem:[%s3364_s9 + $0x18] sm:$0xff] }
 0x4ea   :  { %1202 = vmatmul.f32.gmra.mxu2 %v1005_v32  ;;  %v1469_v32 = vld [vmem:[#allocation33 + $0x20] sm:$0xff]  ;;  %1313 = vmatpush.msra.mxu1 %v1284_v30 }
 0x4eb   :  { %1505 = vmatpush.msrb.mxu0 %v1469_v32 }
 0x4ef   :  { %v979_v33 = vpop.f32.mrf.mxu3 }
 0x4f0   :  { %v1031_v34 = vpop.f32.mrf.mxu2  ;;  %1176 = vmatmul.f32.gmra.mxu1 %v979_v33  ;;  %v1283_v33 = vld [vmem:[%s3364_s9 + $0x10] sm:$0xff]  ;;  %v1151_v43 = vpop.f32.mrf.mxu0 }
 0x4f1   :  { %1228 = vmatmul.f32.gmra.mxu3 %v1031_v34  ;;  %v1008_v36 = vpop.f32.mrf.mxu1  ;;  %v1468_v34 = vld [vmem:[#allocation33 + $0x18] sm:$0xff]  ;;  %1314 = vmatpush.msra.mxu1 %v1283_v33 }
 0x4f2   :  { %1205 = vmatmul.f32.gmra.mxu2 %v1008_v36  ;;  %1506 = vmatpush.msrb.mxu0 %v1468_v34  ;;  %v1467_v36 = vld [vmem:[#allocation33 + $0x10] sm:$0xff] }
 0x4f3   :  { %1315 = vmatpush.msra.mxu1 %v1282_v35 }
 0x4f4   :  { %1507 = vmatpush.msrb.mxu0 %v1467_v36 }
 0x4f7   :  { %v982_v38 = vpop.f32.mrf.mxu3 }
 0x4f8   :  { %v1034_v41 = vpop.f32.mrf.mxu2  ;;  %1179 = vmatmul.f32.gmra.mxu1 %v982_v38 }
 0x4f9   :  { %1231 = vmatmul.f32.gmra.mxu3 %v1034_v41  ;;  %v1466_v41 = vld [vmem:[#allocation33 + $0x8] sm:$0xff] }
 0x4fa   :  { %1958 = vmatmul.msk.f32.vlgmr.msra.gmra.mxu2 %vm1338_vm4, %v1335_v40  ;;  %v1281_v40 = vld [vmem:[%s3364_s9] sm:$0xff]  ;;  %1508 = vmatpush.msrb.mxu0 %v1466_v41 }
 0x4fb   :  { %1316 = vmatpush.msra.mxu1 %v1281_v40 }
 0x4fc   :  { %1509 = vmatpush.msrb.mxu0 %v1465_v42 }
 0x4ff   :  { %v1054_v46 = vpop.f32.mrf.mxu3 }
 0x500   :  { %1251 = vmatmul.f32.vlgmr.msra.gmra.mxu0 %v1054_v46 }
 0x501   :  { %1959 = vmatmul.msk.f32.vlgmr.msra.gmra.mxu3 %vm1387_vm5, %v1368_v45 }
 0x502   :  { %1974 = vmatmul.msk.f32.vlgmr.msrb.gmra.mxu2 %vm697_vm3, %v598_v47  ;;  %v1154_v47 = vpop.f32.mrf.mxu0 }
 0x507   :  { %v1057_v51 = vpop.f32.mrf.mxu3 }
 0x508   :  { %1254 = vmatmul.f32.gmra.mxu0 %v1057_v51 }
 0x509   :  { %1960 = vmatmul.msk.f32.gmra.mxu3 %vm1387_vm5, %v1369_v50 }
 0x50a   :  { %1975 = vmatmul.msk.f32.gmra.mxu2 %vm697_vm3, %v599_v52  ;;  %v1337_v52 = vld [vmem:[#allocation27] sm:$0x1] }
 0x50f   :  { %v1060_v57 = vpop.f32.mrf.mxu3 }
 0x510   :  { %1257 = vmatmul.f32.gmra.mxu0 %v1060_v57 }
 0x511   :  { %1961 = vmatmul.msk.f32.gmra.mxu3 %vm1387_vm5, %v1370_v55 }
 0x512   :  { %1976 = vmatmul.msk.f32.gmra.mxu2 %vm697_vm3, %v600_v13  ;;  %v1265_v13 = vmul.f32 %v2080_v53, %v3106_v39  ;;  %v1266_v39 = vmul.f32 %v2080_v53, %v3103_v37  ;;  %v1267_v37 = vmul.f32 %v2080_v53, %v3099_v31 }
 0x519   :  { %1962 = vmatmul.msk.f32.gmra.mxu3 %vm1387_vm5, %v1371_v60  ;;  %v2082_v60 = vld [vmem:[#allocation22] ss:$0 sm:$0xff] }
 0x51a   :  { %1977 = vmatmul.msk.f32.gmra.mxu2 %vm697_vm3, %v601_v61 }
 0x521   :  { %1963 = vmatmul.msk.f32.gmra.mxu3 %vm1387_vm5, %v1372_v0 }
 0x522   :  { %1978 = vmatmul.msk.f32.gmra.mxu2 %vm697_vm3, %v602_v1 }
 0x529   :  { %1964 = vmatmul.msk.f32.gmra.mxu3 %vm1387_vm5, %v1373_v5 }
 0x52a   :  { %1979 = vmatmul.msk.f32.gmra.mxu2 %vm697_vm3, %v603_v6 }
 0x531   :  { %1965 = vmatmul.msk.f32.gmra.mxu3 %vm1387_vm5, %v1374_v10 }
 0x532   :  { %1980 = vmatmul.msk.f32.gmra.mxu2 %vm697_vm3, %v604_v11 }
 0x565   :  { %v1200_v38 = vpop.f32.mrf.mxu2  ;;  %v1174_v46 = vpop.f32.mrf.mxu1 }
 0x566   :  { %v1175_v9 = vadd.f32 %v1174_v46, %v1148_v29 }
 0x568   :  { %v1201_v51 = vadd.f32 %v1200_v38, %v1175_v9 }
 0x56c   :  { %v1226_v44 = vpop.f32.mrf.mxu3 }
 0x56d   :  { %v1203_v45 = vpop.f32.mrf.mxu2  ;;  %v1177_v50 = vpop.f32.mrf.mxu1  ;;  %v1227_v54 = vadd.f32 %v1226_v44, %v1201_v51 }
 0x56e   :  { %v1178_v58 = vadd.f32 %v1177_v50, %v1151_v43 }
 0x570   :  { %v1204_v0 = vadd.f32 %v1203_v45, %v1178_v58  ;;  %v2084_v45 = vld [vmem:[#allocation24] ss:$0 sm:$0xff] }
 0x574   :  { %v1229_v48 = vpop.f32.mrf.mxu3 }
 0x575   :  { %v1206_v49 = vpop.f32.mrf.mxu2  ;;  %v1180_v2 = vpop.f32.mrf.mxu1  ;;  %v1230_v3 = vadd.f32 %v1229_v48, %v1204_v0 }
 0x576   :  { %v1181_v8 = vadd.f32 %v1180_v2, %v1154_v47 }
 0x578   :  { %v1207_v14 = vadd.f32 %v1206_v49, %v1181_v8  ;;  %v3230_v49 = vld [vmem:[#allocation34] ss:$0 sm:$0xff] }
 0x57c   :  { %v1232_v55 = vpop.f32.mrf.mxu3 }
 0x57d   :  { %v1252_v56 = vpop.f32.mrf.mxu0  ;;  %v1362_v57 = vpop.f32.mrf.mxu2  ;;  %v1233_v16 = vadd.f32 %v1232_v55, %v1207_v14 }
 0x57e   :  { %v1253_v59 = vadd.f32 %v1252_v56, %v1227_v54  ;;  %v1363_v61 = vadd.f32 %v1362_v57, %v1337_v52 }
 0x580   :  { %v1268_v17 = vadd.f32 %v1265_v13, %v1253_v59  ;;  %v1365_v62 = vmax.f32 %v1363_v61, 0.0 }
 0x582   :  { %v1275_v1 = vadd.f32 %v2082_v60, %v1268_v17  ;;  %1367 = vst.msk [vmem:[%s2920_s30] sm:$0x1] %vm1366_vm6, %v1365_v62  ;;  %s3365_s30 = sld [smem:[#allocation67_spill]] }
 0x584   :  { %v1278_v4 = vmax.f32 %v1275_v1, 0.0  ;;  %v1426_v5 = vpop.f32.mrf.mxu3 }
 0x585   :  { %v1427_v6 = vadd.f32 %v2083_v63, %v1426_v5  ;;  %v1255_v7 = vpop.f32.mrf.mxu0  ;;  %v1573_v44 = vpop.f32.mrf.mxu2 }
 0x586   :  { %v1256_v10 = vadd.f32 %v1255_v7, %v1230_v3  ;;  %1317 = vmatmul.f32.vlgmr.msra.gmra.mxu1 %v1278_v4 }
 0x587   :  { %v1447_v11 = vmax.f32 %v1427_v6, 0.0 }
 0x588   :  { %v1269_v12 = vadd.f32 %v1266_v39, %v1256_v10  ;;  %v1998_v53 = vld [vmem:[%s3365_s30 + $0xa8] sm:$0xff]  ;;  %v1982_v54 = vld [vmem:[%s3365_s30 + $0x38] sm:$0xff]  ;;  %v1614_v55 = vld [vmem:[%s3365_s30] sm:$0xff] }
 0x589   :  { %1454 = vst.msk [vmem:[%s2910_s13] sm:$0xff] %vm1387_vm5, %v1447_v11  ;;  %1966 = vmatmul.msk.f32.vlgmr.msrb.gmra.mxu0 %vm1387_vm5, %v1447_v11  ;;  %v1990_v3 = vld [vmem:[%s3365_s30 + $0x70] sm:$0xff]  ;;  %v1991_v5 = vld [vmem:[%s3365_s30 + $0x78] sm:$0xff]  ;;  %v1615_v6 = vld [vmem:[%s3365_s30 + $0x8] sm:$0xff] }
 0x58a   :  { %v1276_v15 = vadd.f32 %v2082_v60, %v1269_v12 }
 0x58c   :  { %v1429_v28 = vpop.f32.mrf.mxu3  ;;  %v1279_v18 = vmax.f32 %v1276_v15, 0.0 }
 0x58d   :  { %v1430_v19 = vadd.f32 %v2083_v63, %v1429_v28  ;;  %v1258_v20 = vpop.f32.mrf.mxu0  ;;  %v1576_v47 = vpop.f32.mrf.mxu2 }
 0x58e   :  { %v1259_v21 = vadd.f32 %v1258_v20, %v1233_v16  ;;  %1320 = vmatmul.f32.gmra.mxu1 %v1279_v18 }
 0x58f   :  { %v1448_v22 = vmax.f32 %v1430_v19, 0.0 }
 0x590   :  { %v1270_v23 = vadd.f32 %v1267_v37, %v1259_v21  ;;  %v1999_v37 = vld [vmem:[%s3365_s30 + $0xb0] sm:$0xff]  ;;  %v1983_v21 = vld [vmem:[%s3365_s30 + $0x40] sm:$0xff] }
 0x591   :  { %1455 = vst.msk [vmem:[%s2910_s13 + $0x8] sm:$0xff] %vm1387_vm5, %v1448_v22  ;;  %1967 = vmatmul.msk.f32.gmra.mxu0 %vm1387_vm5, %v1448_v22 }
 0x592   :  { %v1277_v24 = vadd.f32 %v2082_v60, %v1270_v23  ;;  %v1616_v23 = vld [vmem:[%s3365_s30 + $0x10] sm:$0xff] }
 0x594   :  { %v1432_v25 = vpop.f32.mrf.mxu3  ;;  %v1280_v26 = vmax.f32 %v1277_v24, 0.0 }
 0x595   :  { %v1433_v27 = vadd.f32 %v2083_v63, %v1432_v25  ;;  %v1579_v61 = vpop.f32.mrf.mxu2 }
 0x596   :  { %1323 = vmatmul.f32.gmra.mxu1 %v1280_v26 }
 0x597   :  { %v1449_v29 = vmax.f32 %v1433_v27, 0.0 }
 0x599   :  { %1456 = vst.msk [vmem:[%s2910_s13 + $0x10] sm:$0xff] %vm1387_vm5, %v1449_v29  ;;  %1968 = vmatmul.msk.f32.gmra.mxu0 %vm1387_vm5, %v1449_v29 }
 0x59c   :  { %v1435_v31 = vpop.f32.mrf.mxu3 }
 0x59d   :  { %v1436_v30 = vadd.f32 %v2083_v63, %v1435_v31  ;;  %v1582_v20 = vpop.f32.mrf.mxu2 }
 0x59f   :  { %v1450_v32 = vmax.f32 %v1436_v30, 0.0 }
 0x5a1   :  { %1457 = vst.msk [vmem:[%s2910_s13 + $0x18] sm:$0xff] %vm1387_vm5, %v1450_v32  ;;  %1969 = vmatmul.msk.f32.gmra.mxu0 %vm1387_vm5, %v1450_v32 }
 0x5a4   :  { %v1438_v33 = vpop.f32.mrf.mxu3 }
 0x5a5   :  { %v1439_v34 = vadd.f32 %v2083_v63, %v1438_v33 }
 0x5a7   :  { %v1451_v35 = vmax.f32 %v1439_v34, 0.0  ;;  %v1984_v34 = vld [vmem:[%s3365_s30 + $0x48] sm:$0xff] }
 0x5a9   :  { %1458 = vst.msk [vmem:[%s2910_s13 + $0x20] sm:$0xff] %vm1387_vm5, %v1451_v35  ;;  %1970 = vmatmul.msk.f32.gmra.mxu0 %vm1387_vm5, %v1451_v35 }
 0x5ac   :  { %v1441_v36 = vpop.f32.mrf.mxu3 }
 0x5ad   :  { %v1442_v38 = vadd.f32 %v2083_v63, %v1441_v36  ;;  %v1992_v36 = vld [vmem:[%s3365_s30 + $0x80] sm:$0xff] }
 0x5af   :  { %v1452_v40 = vmax.f32 %v1442_v38, 0.0  ;;  %v1585_v38 = vpop.f32.mrf.mxu2 }
 0x5b1   :  { %1459 = vst.msk [vmem:[%s2910_s13 + $0x28] sm:$0xff] %vm1387_vm5, %v1452_v40  ;;  %1971 = vmatmul.msk.f32.gmra.mxu0 %vm1387_vm5, %v1452_v40  ;;  %v1985_v40 = vld [vmem:[%s3365_s30 + $0x50] sm:$0xff] }
 0x5b4   :  { %v1444_v41 = vpop.f32.mrf.mxu3 }
 0x5b5   :  { %v1445_v42 = vadd.f32 %v2083_v63, %v1444_v41 }
 0x5b7   :  { %v1453_v43 = vmax.f32 %v1445_v42, 0.0 }
 0x5b9   :  { %1461 = vst.msk [vmem:[%s2910_s13 + $0x30] sm:$0x1] %vm1460_vm7, %v1453_v43  ;;  %1972 = vmatmul.msk.f32.gmra.mxu0 %vm1387_vm5, %v1453_v43 }
 0x603   :  { %v1318_v46 = vpop.f32.mrf.mxu1 }
 0x604   :  { %v1319_v48 = vadd.f32 %v2084_v45, %v1318_v46 }
 0x606   :  { %v1327_v9 = vmax.f32 %v1319_v48, 0.0  ;;  %v1511_v50 = vpop.f32.mrf.mxu0 }
 0x607   :  { %v1574_v51 = vadd.f32 %v1573_v44, %v1511_v50  ;;  %v1993_v50 = vld [vmem:[%s3365_s30 + $0x88] sm:$0xff] }
 0x608   :  { %1331 = vst.msk [vmem:[%s2915_s24] sm:$0xff] %vm1330_vm8, %v1327_v9 }
 0x609   :  { %v1598_v52 = vadd.f32 %v3230_v49, %v1574_v51  ;;  %v1617_v51 = vld [vmem:[%s3365_s30 + $0x18] sm:$0xff] }
 0x60b   :  { %v1605_v56 = vmax.f32 %v1598_v52, 0.0  ;;  %v1321_v57 = vpop.f32.mrf.mxu1  ;;  %v2000_v52 = vld [vmem:[%s3365_s30 + $0xb8] sm:$0xff] }
 0x60c   :  { %v1322_v13 = vadd.f32 %v2084_v45, %v1321_v57 }
 0x60d   :  { %v1783_v58 = vmul.f32 %v1998_v53, %v1605_v56  ;;  %v1675_v59 = vmul.f32 %v1982_v54, %v1605_v56  ;;  %v1621_v60 = vmul.f32 %v1614_v55, %v1605_v56  ;;  %v1729_v8 = vmul.f32 %v1990_v3, %v1605_v56  ;;  %v1588_v56 = vpop.f32.mrf.mxu2 }
 0x60e   :  { %v1328_v17 = vmax.f32 %v1322_v13, 0.0  ;;  %v1514_v62 = vpop.f32.mrf.mxu0 }
 0x60f   :  { %v1577_v63 = vadd.f32 %v1576_v47, %v1514_v62  ;;  %v1790_v0 = vsel %vm1387_vm5, %v1783_v58, 0.0  ;;  %v1682_v1 = vsel %vm1387_vm5, %v1675_v59, 0.0  ;;  %v1628_v2 = vsel %vm1387_vm5, %v1621_v60, 0.0  ;;  %v2001_v62 = vld [vmem:[%s3365_s30 + $0xc0] sm:$0xff] }
 0x610   :  { %1332 = vst.msk [vmem:[%s2915_s24 + $0x8] sm:$0xff] %vm1330_vm8, %v1328_v17  ;;  %1791 = vadd.xlane.f32.xlu2 %v1790_v0  ;;  %1683 = vadd.xlane.f32.xlu0 %v1682_v1  ;;  %v1736_v28 = vsel %vm1387_vm5, %v1729_v8, 0.0  ;;  %v1618_v0 = vld [vmem:[%s3365_s30 + $0x20] sm:$0xff] }
 0x611   :  { %v1599_v4 = vadd.f32 %v3230_v49, %v1577_v63  ;;  %1629 = vadd.xlane.f32.xlu1 %v1628_v2  ;;  %v2002_v63 = vld [vmem:[%s3365_s30 + $0xc8] sm:$0xff] }
 0x613   :  { %v1606_v7 = vmax.f32 %v1599_v4, 0.0  ;;  %v1324_v39 = vpop.f32.mrf.mxu1 }
 0x614   :  { %v1325_v10 = vadd.f32 %v2084_v45, %v1324_v39 }
 0x615   :  { %v1730_v11 = vmul.f32 %v1991_v5, %v1606_v7  ;;  %v1622_v12 = vmul.f32 %v1615_v6, %v1606_v7  ;;  %v1784_v25 = vmul.f32 %v1999_v37, %v1606_v7  ;;  %v1676_v26 = vmul.f32 %v1983_v21, %v1606_v7  ;;  %v1591_v5 = vpop.f32.mrf.mxu2 }
 0x616   :  { %v1329_v14 = vmax.f32 %v1325_v10, 0.0  ;;  %v1517_v15 = vpop.f32.mrf.mxu0 }
 0x617   :  { %v1580_v16 = vadd.f32 %v1579_v61, %v1517_v15  ;;  %v1739_v18 = vsel %vm1387_vm5, %v1730_v11, 0.0  ;;  %v1631_v19 = vsel %vm1387_vm5, %v1622_v12, 0.0  ;;  %v1793_v30 = vsel %vm1387_vm5, %v1784_v25, 0.0  ;;  %v1986_v12 = vld [vmem:[%s3365_s30 + $0x58] sm:$0xff]  ;;  %v1994_v15 = vld [vmem:[%s3365_s30 + $0x90] sm:$0xff] }
 0x618   :  { %1334 = vst.msk [vmem:[%s2915_s24 + $0x10] sm:$0x3f] %vm1333_vm9, %v1329_v14  ;;  %1737 = vadd.xlane.f32.xlu0 %v1736_v28  ;;  %1632 = vadd.xlane.f32.xlu2 %v1631_v19  ;;  %v1685_v32 = vsel %vm1387_vm5, %v1676_v26, 0.0  ;;  %v1987_v14 = vld [vmem:[%s3365_s30 + $0x60] sm:$0xff]  ;;  %v1988_v25 = vld [vmem:[%s3365_s30 + $0x68] sm:$0x1] }
 0x619   :  { %v1600_v22 = vadd.f32 %v3230_v49, %v1580_v16  ;;  %1740 = vadd.xlane.f32.xlu1 %v1739_v18 }
 0x61b   :  { %v1607_v24 = vmax.f32 %v1600_v22, 0.0 }
 0x61d   :  { %v1623_v27 = vmul.f32 %v1616_v23, %v1607_v24  ;;  %v1677_v42 = vmul.f32 %v1984_v34, %v1607_v24  ;;  %v1731_v43 = vmul.f32 %v1992_v36, %v1607_v24  ;;  %v1785_v57 = vmul.f32 %v2000_v52, %v1607_v24  ;;  %v1619_v23 = vld [vmem:[%s3365_s30 + $0x28] sm:$0xff]  ;;  %v1620_v24 = vld [vmem:[%s3365_s30 + $0x30] sm:$0x1]  ;;  %v1996_v34 = vld [vmem:[%s3365_s30 + $0xa0] sm:$0x1] }
 0x61e   :  { %v1520_v29 = vpop.f32.mrf.mxu0 }
 0x61f   :  { %v1583_v31 = vadd.f32 %v1582_v20, %v1520_v29  ;;  %v1634_v33 = vsel %vm1387_vm5, %v1623_v27, 0.0  ;;  %v1688_v47 = vsel %vm1387_vm5, %v1677_v42, 0.0  ;;  %v1742_v9 = vsel %vm1387_vm5, %v1731_v43, 0.0  ;;  %v2003_v43 = vld [vmem:[%s3365_s30 + $0xd0] sm:$0xff] }
 0x620   :  { %1794 = vadd.xlane.f32.xlu0 %v1793_v30  ;;  %1686 = vadd.xlane.f32.xlu2 %v1685_v32  ;;  %v1796_v17 = vsel %vm1387_vm5, %v1785_v57, 0.0  ;;  %v1995_v32 = vld [vmem:[%s3365_s30 + $0x98] sm:$0xff] }
 0x621   :  { %v1601_v35 = vadd.f32 %v3230_v49, %v1583_v31  ;;  %1635 = vadd.xlane.f32.xlu1 %v1634_v33  ;;  %v2004_v33 = vld [vmem:[%s3365_s30 + $0xd8] sm:$0x1] }
 0x623   :  { %v1608_v41 = vmax.f32 %v1601_v35, 0.0 }
 0x625   :  { %v1678_v44 = vmul.f32 %v1985_v40, %v1608_v41  ;;  %v1732_v54 = vmul.f32 %v1993_v50, %v1608_v41  ;;  %v1624_v55 = vmul.f32 %v1617_v51, %v1608_v41  ;;  %v1786_v2 = vmul.f32 %v2001_v62, %v1608_v41 }
 0x626   :  { %v1523_v45 = vpop.f32.mrf.mxu0 }
 0x627   :  { %v1586_v46 = vadd.f32 %v1585_v38, %v1523_v45  ;;  %v1691_v48 = vsel %vm1387_vm5, %v1678_v44, 0.0  ;;  %v1745_v60 = vsel %vm1387_vm5, %v1732_v54, 0.0  ;;  %v1637_v61 = vsel %vm1387_vm5, %v1624_v55, 0.0 }
 0x628   :  { %1689 = vadd.xlane.f32.xlu2 %v1688_v47  ;;  %1692 = vadd.xlane.f32.xlu0 %v1691_v48  ;;  %v1799_v8 = vsel %vm1387_vm5, %v1786_v2, 0.0 }
 0x629   :  { %1743 = vadd.xlane.f32.xlu1 %v1742_v9  ;;  %v1602_v53 = vadd.f32 %v3230_v49, %v1586_v46 }
 0x62b   :  { %v1609_v58 = vmax.f32 %v1602_v53, 0.0 }
 0x62d   :  { %v1787_v3 = vmul.f32 %v2002_v63, %v1609_v58  ;;  %v1625_v4 = vmul.f32 %v1618_v0, %v1609_v58  ;;  %v1679_v28 = vmul.f32 %v1986_v12, %v1609_v58  ;;  %v1733_v19 = vmul.f32 %v1994_v15, %v1609_v58 }
 0x62e   :  { %v1526_v13 = vpop.f32.mrf.mxu0 }
 0x62f   :  { %v1589_v59 = vadd.f32 %v1588_v56, %v1526_v13  ;;  %v1802_v10 = vsel %vm1387_vm5, %v1787_v3, 0.0  ;;  %v1640_v11 = vsel %vm1387_vm5, %v1625_v4, 0.0  ;;  %v1694_v37 = vsel %vm1387_vm5, %v1679_v28, 0.0 }
 0x630   :  { %1746 = vadd.xlane.f32.xlu0 %v1745_v60  ;;  %1638 = vadd.xlane.f32.xlu2 %v1637_v61  ;;  %v1748_v22 = vsel %vm1387_vm5, %v1733_v19, 0.0 }
 0x631   :  { %1797 = vadd.xlane.f32.xlu1 %v1796_v17  ;;  %v1603_v1 = vadd.f32 %v3230_v49, %v1589_v59 }
 0x633   :  { %v1610_v7 = vmax.f32 %v1603_v1, 0.0 }
 0x635   :  { %v1680_v18 = vmul.f32 %v1987_v14, %v1610_v7  ;;  %v1734_v35 = vmul.f32 %v1995_v32, %v1610_v7  ;;  %v1788_v44 = vmul.f32 %v2003_v43, %v1610_v7 }
 0x636   :  { %v1529_v6 = vpop.f32.mrf.mxu0 }
 0x637   :  { %v1592_v39 = vadd.f32 %v1591_v5, %v1529_v6  ;;  %v1697_v21 = vsel %vm1387_vm5, %v1680_v18, 0.0  ;;  %v1751_v40 = vsel %vm1387_vm5, %v1734_v35, 0.0  ;;  %v1805_v45 = vsel %vm1387_vm5, %v1788_v44, 0.0 }
 0x638   :  { %1800 = vadd.xlane.f32.xlu2 %v1799_v8  ;;  %1803 = vadd.xlane.f32.xlu0 %v1802_v10 }
 0x639   :  { %1641 = vadd.xlane.f32.xlu1 %v1640_v11  ;;  %v1604_v16 = vadd.f32 %v3230_v49, %v1592_v39  ;;  %v1626_v49 = vmul.f32 %v1619_v23, %v1610_v7 }
 0x63b   :  { %v1611_v20 = vmax.f32 %v1604_v16, 0.0  ;;  %v1643_v29 = vsel %vm1387_vm5, %v1626_v49, 0.0 }
 0x63d   :  { %v1627_v26 = vmul.f32 %v1620_v24, %v1611_v20  ;;  %v1681_v27 = vmul.f32 %v1988_v25, %v1611_v20  ;;  %v1789_v36 = vmul.f32 %v2004_v33, %v1611_v20  ;;  %v1735_v38 = vmul.f32 %v1996_v34, %v1611_v20 }
 0x63f   :  { %v1646_v31 = vsel %vm1460_vm7, %v1627_v26, 0.0  ;;  %v1700_v30 = vsel %vm1460_vm7, %v1681_v27, 0.0  ;;  %v1808_v41 = vsel %vm1460_vm7, %v1789_v36, 0.0  ;;  %v1754_v42 = vsel %vm1460_vm7, %v1735_v38, 0.0 }
 0x640   :  { %1695 = vadd.xlane.f32.xlu2 %v1694_v37  ;;  %1698 = vadd.xlane.f32.xlu0 %v1697_v21  ;;  %v1612_v36 = vlaneseq }
 0x641   :  { %1749 = vadd.xlane.f32.xlu1 %v1748_v22 }
 0x648   :  { %1644 = vadd.xlane.f32.xlu2 %v1643_v29  ;;  %1647 = vadd.xlane.f32.xlu0 %v1646_v31 }
 0x649   :  { %1701 = vadd.xlane.f32.xlu1 %v1700_v30 }
 0x650   :  { %1752 = vadd.xlane.f32.xlu2 %v1751_v40  ;;  %1809 = vadd.xlane.f32.xlu0 %v1808_v41 }
 0x651   :  { %1755 = vadd.xlane.f32.xlu1 %v1754_v42 }
 0x658   :  { %1806 = vadd.xlane.f32.xlu2 %v1805_v45 }
 0x683   :  { %v1792_v46 = vpop.xlane.xlu2 %1791  ;;  %v1684_v47 = vpop.xlane.xlu0 %1683 }
 0x684   :  { %v1630_v48 = vpop.xlane.xlu1 %1629 }
 0x68b   :  { %v1738_v9 = vpop.xlane.xlu0 %1737  ;;  %v1633_v50 = vpop.xlane.xlu2 %1632 }
 0x68c   :  { %v1741_v51 = vpop.xlane.xlu1 %1740  ;;  %v1649_v2 = vadd.f32 %v1633_v50, %v1630_v48 }
 0x68d   :  { %v1757_v11 = vadd.f32 %v1741_v51, %v1738_v9 }
 0x693   :  { %v1795_v52 = vpop.xlane.xlu0 %1794  ;;  %v1687_v53 = vpop.xlane.xlu2 %1686 }
 0x694   :  { %v1636_v54 = vpop.xlane.xlu1 %1635  ;;  %v1703_v62 = vadd.f32 %v1687_v53, %v1684_v47  ;;  %v1811_v23 = vadd.f32 %v1795_v52, %v1792_v46  ;;  %v1613_v46 = vand.u32 127, %v1612_v36 }
 0x695   :  { %v1650_v4 = vadd.f32 %v1649_v2, %v1636_v54 }
 0x696   :  { %vm1716_vm11 = vcmp.eq.s32.totalorder %v1613_v46, 1  ;;  %vm1663_vm12 = vcmp.eq.s32.totalorder %v1613_v46, 0  ;;  %vm1770_vm13 = vcmp.eq.s32.totalorder %v1613_v46, 2  ;;  %vm1824_vm14 = vcmp.eq.s32.totalorder %v1613_v46, 3 }
 0x69b   :  { %v1690_v55 = vpop.xlane.xlu2 %1689  ;;  %v1693_v56 = vpop.xlane.xlu0 %1692 }
 0x69c   :  { %v1744_v57 = vpop.xlane.xlu1 %1743  ;;  %v1704_v63 = vadd.f32 %v1703_v62, %v1690_v55 }
 0x69d   :  { %v1758_v18 = vadd.f32 %v1757_v11, %v1744_v57 }
 0x69e   :  { %v1705_v5 = vadd.f32 %v1704_v63, %v1693_v56 }
 0x6a3   :  { %v1747_v13 = vpop.xlane.xlu0 %1746  ;;  %v1639_v58 = vpop.xlane.xlu2 %1638 }
 0x6a4   :  { %v1798_v59 = vpop.xlane.xlu1 %1797  ;;  %v1651_v6 = vadd.f32 %v1650_v4, %v1639_v58  ;;  %v1759_v37 = vadd.f32 %v1758_v18, %v1747_v13  ;;  %v2731_v58 = vmov 0.0  }
 0x6a5   :  { %v1812_v27 = vadd.f32 %v1811_v23, %v1798_v59  ;;  %v1989_v59 = vsel %vm1716_vm11, 1.0, %v2731_v58  ;;  %v1997_v62 = vsel %vm1770_vm13, 1.0, %v2731_v58  ;;  %v2005_v4 = vsel %vm1824_vm14, 1.0, %v2731_v58 }
 0x6ab   :  { %v1801_v60 = vpop.xlane.xlu2 %1800  ;;  %v1804_v61 = vpop.xlane.xlu0 %1803 }
 0x6ac   :  { %v1642_v17 = vpop.xlane.xlu1 %1641  ;;  %v1813_v32 = vadd.f32 %v1812_v27, %v1801_v60  ;;  %v1981_v60 = vsel %vm1663_vm12, 1.0, %v2731_v58 }
 0x6ad   :  { %v1652_v39 = vadd.f32 %v1651_v6, %v1642_v17 }
 0x6ae   :  { %v1814_v40 = vadd.f32 %v1813_v32, %v1804_v61 }
 0x6b3   :  { %v1696_v0 = vpop.xlane.xlu2 %1695  ;;  %v1699_v1 = vpop.xlane.xlu0 %1698 }
 0x6b4   :  { %v1750_v3 = vpop.xlane.xlu1 %1749  ;;  %v1706_v7 = vadd.f32 %v1705_v5, %v1696_v0 }
 0x6b5   :  { %v1760_v24 = vadd.f32 %v1759_v37, %v1750_v3 }
 0x6b6   :  { %v1707_v12 = vadd.f32 %v1706_v7, %v1699_v1 }
 0x6bb   :  { %v1645_v8 = vpop.xlane.xlu2 %1644  ;;  %v1648_v10 = vpop.xlane.xlu0 %1647 }
 0x6bc   :  { %v1653_v14 = vadd.f32 %v1652_v39, %v1645_v8  ;;  %v1702_v15 = vpop.xlane.xlu1 %1701  ;;  %v1655_v16 = vsel %vm1654_vm10, %v1648_v10, 0.0  ;;  %v1829_v8 = vld [vmem:[#allocation36] sm:$0x1] }
 0x6bd   :  { %v1708_v28 = vsel %vm1654_vm10, %v1702_v15, 0.0 }
 0x6be   :  { %v1709_v19 = vadd.f32 %v1708_v28, %v1707_v12  ;;  %v1656_v20 = vadd.f32 %v1655_v16, %v1653_v14 }
 0x6c0   :  { %v1710_v21 = vrot.slane %v1709_v19, 4  ;;  %v1657_v22 = vrot.slane %v1656_v20, 4 }
 0x6c2   :  { %v1711_v25 = vadd.f32 %v1710_v21, %v1709_v19  ;;  %v1658_v49 = vadd.f32 %v1657_v22, %v1656_v20 }
 0x6c3   :  { %v1753_v26 = vpop.xlane.xlu2 %1752  ;;  %v1810_v44 = vpop.xlane.xlu0 %1809 }
 0x6c4   :  { %v1761_v29 = vadd.f32 %v1760_v24, %v1753_v26  ;;  %v1756_v31 = vpop.xlane.xlu1 %1755  ;;  %v1712_v33 = vrot.slane %v1711_v25, 2  ;;  %v1659_v34 = vrot.slane %v1658_v49, 2  ;;  %v1816_v9 = vsel %vm1654_vm10, %v1810_v44, 0.0 }
 0x6c5   :  { %v1762_v30 = vsel %vm1654_vm10, %v1756_v31, 0.0 }
 0x6c6   :  { %v1763_v35 = vadd.f32 %v1762_v30, %v1761_v29  ;;  %v1713_v41 = vadd.f32 %v1712_v33, %v1711_v25  ;;  %v1660_v42 = vadd.f32 %v1659_v34, %v1658_v49 }
 0x6c8   :  { %v1764_v38 = vrot.slane %v1763_v35, 4  ;;  %v1714_v50 = vrot.slane %v1713_v41, 1  ;;  %v1661_v51 = vrot.slane %v1660_v42, 1 }
 0x6ca   :  { %v1765_v43 = vadd.f32 %v1764_v38, %v1763_v35  ;;  %v1715_v56 = vadd.f32 %v1714_v50, %v1713_v41  ;;  %v1662_v57 = vadd.f32 %v1661_v51, %v1660_v42 }
 0x6cb   :  { %v1807_v45 = vpop.xlane.xlu2 %1806 }
 0x6cc   :  { %v1766_v47 = vrot.slane %v1765_v43, 2  ;;  %v1815_v48 = vadd.f32 %v1814_v40, %v1807_v45  ;;  %v1719_v63 = vmul.f32 %v1989_v59, %v1715_v56  ;;  %v1666_v0 = vmul.f32 %v1981_v60, %v1662_v57 }
 0x6ce   :  { %v1767_v52 = vadd.f32 %v1766_v47, %v1765_v43  ;;  %v1817_v53 = vadd.f32 %v1816_v9, %v1815_v48  ;;  %v1720_v5 = vadd.f32 %v1719_v63, %v1666_v0 }
 0x6d0   :  { %v1768_v54 = vrot.slane %v1767_v52, 1  ;;  %v1818_v55 = vrot.slane %v1817_v53, 4 }
 0x6d2   :  { %v1819_v13 = vadd.f32 %v1818_v55, %v1817_v53  ;;  %v1769_v61 = vadd.f32 %v1768_v54, %v1767_v52 }
 0x6d4   :  { %v1820_v17 = vrot.slane %v1819_v13, 2  ;;  %v1773_v3 = vmul.f32 %v1997_v62, %v1769_v61 }
 0x6d6   :  { %v1821_v1 = vadd.f32 %v1820_v17, %v1819_v13  ;;  %v1774_v7 = vadd.f32 %v1773_v3, %v1720_v5 }
 0x6d8   :  { %v1822_v2 = vrot.slane %v1821_v1, 1 }
 0x6da   :  { %v1823_v6 = vadd.f32 %v1822_v2, %v1821_v1 }
 0x6dc   :  { %v1827_v39 = vmul.f32 %v2005_v4, %v1823_v6 }
 0x6de   :  { %v1828_v10 = vadd.f32 %v1827_v39, %v1774_v7 }
 0x6e0   :  { %v1830_v11 = vadd.f32 %v1829_v8, %v1828_v10 }
 0x6e2   :  { %v1832_v12 = vsel %vm1831_vm15, %v1830_v11, -inf }
 0x6e3   :  { %1833 = vmax.xlane.f32.xlu1 %v1832_v12 }
 0x756   :  { %v1834_v14 = vpop.xlane.xlu1 %1833 }
 0x757   :  { %v1835_v15 = vsub.f32 %v1830_v11, %v1834_v14 }
 0x759   :  { %v1836_v16 = vmul.f32 1.442695, %v1835_v15 }
 0x75b   :  { %2086 = vpow2.f32 %v1836_v16 }
 0x761   :  { %v2087_v28 = vpop.eup %2086 }
 0x762   :  { %v1838_v18 = vsel %vm1831_vm15, %v2087_v28, 0.0 }
 0x763   :  { %1839 = vadd.xlane.f32.xlu2 %v1838_v18 }
 0x7d6   :  { %v1840_v19 = vpop.xlane.xlu2 %1839 }
 0x7d7   :  { %2088 = vrcp.f32 %v1840_v19 }
 0x7dd   :  { %v2089_v20 = vpop.eup %2088 }
 0x7de   :  { %v1842_v37 = vmul.f32 %v2089_v20, %v2087_v28 }
 0x7e0   :  { %1843 = vst.msk [vmem:[%s2925_s20] sm:$0x1] %vm1831_vm15, %v1842_v37 }
 0x7e1   :  { %1860 = vsyncpa [#allocation3], 1 }
 0x7e2   :  { %1861 = vsyncpa [#allocation5], 1 }
 0x7e3   :  { %1862 = vsyncpa [#allocation8], 1 }
 0x7e4   :  { %1863 = vsyncpa [#allocation11], 1 }
 0x7e5   :  { %1864 = vsyncpa [#allocation14], 1 }
 0x7e6   :  { %1865 = vsyncpa [#allocation17], 1 }
 0x7e7   :  { %1866 = vsyncpa [#allocation20], 1 }
 0x7e8   :  { %1867 = vsyncpa [#allocation23], 1 }
 0x7e9   :  { %1868 = vsyncpa [#allocation26], 1 }
 0x7ea   :  { %1869 = vsyncpa [#allocation29], 1 }
 0x7eb   :  { %1870 = vsyncpa [#allocation32], 1 }
 0x7ec   :  { %1871 = vsyncpa [#allocation35], 1 }

// kernel: hoz_forward.5
= control target key start
LH: loop header
LB: loop body
LE: loop exit
PB: predicated region body
PF: predicated region fallthrough
CT: control target
= control target key end

     0   :  { %s11290_s0 = inlined_call_operand.vmem [shape: f32[1,3136], index: 0, kind: input, shape index: {}]   ;;  %s11291_s1 = inlined_call_operand.vmem [shape: f32[1,64], index: 1, kind: input, shape index: {}]   ;;  %s11292_s2 = inlined_call_operand.vmem [shape: f32[1,64], index: 2, kind: input, shape index: {}]   ;;  %s11293_s3 = inlined_call_operand.vmem [shape: f32[1,64], index: 3, kind: input, shape index: {}]   ;;  %s11294_s4 = inlined_call_operand.vmem [shape: f32[1,64], index: 4, kind: input, shape index: {}]   ;;  %s11295_s5 = inlined_call_operand.vmem [shape: f32[1,6], index: 5, kind: input, shape index: {}]   ;;  %s11296_s6 = inlined_call_operand.vmem [shape: f32[4,3136,64], index: 6, kind: input, shape index: {}]   ;;  %s11297_s7 = inlined_call_operand.vmem [shape: f32[4,64,64], index: 7, kind: input, shape index: {}]   ;;  %s11298_s8 = inlined_call_operand.vmem [shape: f32[4,1,64], index: 8, kind: input, shape index: {}]   ;;  %s11299_s9 = inlined_call_operand.vmem [shape: f32[4,64,64], index: 9, kind: input, shape index: {}]   ;;  %s11300_s10 = inlined_call_operand.vmem [shape: f32[4,64,64], index: 10, kind: input, shape index: {}]   ;;  %s11301_s11 = inlined_call_operand.vmem [shape: f32[4,1,64], index: 11, kind: input, shape index: {}]   ;;  %s11302_s12 = inlined_call_operand.vmem [shape: f32[64,6], index: 12, kind: input, shape index: {}]   ;;  %s11303_s13 = inlined_call_operand.vmem [shape: f32[1,6], index: 13, kind: input, shape index: {}]   ;;  %s11304_s14 = inlined_call_operand.vmem [shape: f32[64,64], index: 14, kind: input, shape index: {}]   ;;  %s11305_s15 = inlined_call_operand.vmem [shape: f32[1,64], index: 15, kind: input, shape index: {}]   ;;  %s11306_s16 = inlined_call_operand.vmem [shape: f32[64,1], index: 16, kind: input, shape index: {}]   ;;  %s11307_s17 = inlined_call_operand.<no memory space> [shape: f32[1,1], index: 17, kind: input, shape index: {}]   ;;  %s11308_s18 = inlined_call_operand.hbm [shape: f32[1,6], index: 18, kind: output, shape index: {0}]   ;;  %s11309_s19 = inlined_call_operand.hbm [shape: f32[1,1], index: 19, kind: output, shape index: {1}]   ;;  %s11310_s20 = inlined_call_operand.vmem [shape: f32[1,64], index: 20, kind: output, shape index: {2}]   ;;  %s11311_s21 = inlined_call_operand.vmem [shape: f32[1,64], index: 21, kind: output, shape index: {3}]   ;;  %s11312_s22 = inlined_call_operand.vmem [shape: f32[1,64], index: 22, kind: output, shape index: {4}]   ;;  %s11313_s23 = inlined_call_operand.vmem [shape: f32[1,64], index: 23, kind: output, shape index: {5}]  }
   0x1   :  { %11318 = sst [smem:[#allocation9_spill]] %s11290_s0  ;;  %v29_v0 = vstv %s11307_s17 }
   0x2   :  { %11319 = sst [smem:[#allocation10_spill]] %s11291_s1  ;;  %30 = vst [vmem:[#allocation2] sm:$0x1] %v29_v0 }
   0x3   :  { %11320 = sst [smem:[#allocation11_spill]] %s11292_s2 }
   0x4   :  { %11321 = sst [smem:[#allocation12_spill]] %s11293_s3 }
   0x5   :  { %11322 = sst [smem:[#allocation13_spill]] %s11294_s4 }
   0x6   :  { %11323 = sst [smem:[#allocation14_spill]] %s11295_s5 }
   0x7   :  { %11324 = sst [smem:[#allocation15_spill]] %s11296_s6 }
   0x8   :  { %11325 = sst [smem:[#allocation16_spill]] %s11297_s7 }
   0x9   :  { %31 = vsyncpa [#allocation4], 0  ;;  %s11326_s5 = sld [smem:[#allocation16_spill]]  ;;  %vm475_vm0 = vcmask 523264  }
   0xa   :  { %s11327_s2 = sld [smem:[#allocation15_spill]] }
   0xb   :  { %s11328_s7 = sld [smem:[#allocation9_spill]] }
   0xc   :  { %s11329_s1 = sld [smem:[#allocation10_spill]] }
   0xf   :  { %v474_v1 = vld [vmem:[%s11326_s5 + $0x38] sm:$0xff]  ;;  %v473_v5 = vld [vmem:[%s11326_s5 + $0x30] sm:$0xff]  ;;  %v472_v9 = vld [vmem:[%s11326_s5 + $0x28] sm:$0xff] }
  0x10   :  { %v90_v2 = vld [vmem:[%s11327_s2 + $0x78] sm:$0xff]  ;;  %487 = vmatpush.msra.mxu0 %v474_v1  ;;  %v89_v6 = vld [vmem:[%s11327_s2 + $0x70] sm:$0xff]  ;;  %v88_v10 = vld [vmem:[%s11327_s2 + $0x68] sm:$0xff] }
  0x11   :  { %v106_v3 = vld [vmem:[%s11327_s2 + $0xf8] sm:$0xff]  ;;  %554 = vmatpush.msra.mxu1 %v90_v2  ;;  %v105_v7 = vld [vmem:[%s11327_s2 + $0xf0] sm:$0xff]  ;;  %v104_v11 = vld [vmem:[%s11327_s2 + $0xe8] sm:$0xff] }
  0x12   :  { %v122_v4 = vld [vmem:[%s11327_s2 + $0x178] sm:$0xff]  ;;  %574 = vmatpush.msra.mxu2 %v106_v3  ;;  %v121_v8 = vld [vmem:[%s11327_s2 + $0x170] sm:$0xff]  ;;  %488 = vmatpush.msra.mxu0 %v473_v5  ;;  %v120_v12 = vld [vmem:[%s11327_s2 + $0x168] sm:$0xff] }
  0x13   :  { %594 = vmatpush.msra.mxu3 %v122_v4  ;;  %555 = vmatpush.msra.mxu1 %v89_v6  ;;  %v471_v13 = vld [vmem:[%s11326_s5 + $0x20] sm:$0xff]  ;;  %v470_v17 = vld [vmem:[%s11326_s5 + $0x18] sm:$0xff]  ;;  %v469_v21 = vld [vmem:[%s11326_s5 + $0x10] sm:$0xff] }
  0x14   :  { %575 = vmatpush.msra.mxu2 %v105_v7  ;;  %v87_v14 = vld [vmem:[%s11327_s2 + $0x60] sm:$0xff]  ;;  %489 = vmatpush.msra.mxu0 %v472_v9  ;;  %v86_v18 = vld [vmem:[%s11327_s2 + $0x58] sm:$0xff]  ;;  %v85_v22 = vld [vmem:[%s11327_s2 + $0x50] sm:$0xff] }
  0x15   :  { %595 = vmatpush.msra.mxu3 %v121_v8  ;;  %556 = vmatpush.msra.mxu1 %v88_v10  ;;  %v103_v15 = vld [vmem:[%s11327_s2 + $0xe0] sm:$0xff]  ;;  %v102_v19 = vld [vmem:[%s11327_s2 + $0xd8] sm:$0xff]  ;;  %v101_v23 = vld [vmem:[%s11327_s2 + $0xd0] sm:$0xff] }
  0x16   :  { %v119_v16 = vld [vmem:[%s11327_s2 + $0x160] sm:$0xff]  ;;  %576 = vmatpush.msra.mxu2 %v104_v11  ;;  %490 = vmatpush.msra.mxu0 %v471_v13  ;;  %v118_v20 = vld [vmem:[%s11327_s2 + $0x158] sm:$0xff]  ;;  %v117_v24 = vld [vmem:[%s11327_s2 + $0x150] sm:$0xff] }
  0x17   :  { %596 = vmatpush.msra.mxu3 %v120_v12  ;;  %557 = vmatpush.msra.mxu1 %v87_v14  ;;  %v468_v25 = vld [vmem:[%s11326_s5 + $0x8] sm:$0xff]  ;;  %v467_v29 = vld [vmem:[%s11326_s5] sm:$0xff]  ;;  %v138_v33 = vld [vmem:[%s11327_s2 + $0x1f8] sm:$0xff] }
  0x18   :  { %577 = vmatpush.msra.mxu2 %v103_v15  ;;  %491 = vmatpush.msra.mxu0 %v470_v17  ;;  %v84_v26 = vld [vmem:[%s11327_s2 + $0x48] sm:$0xff]  ;;  %v83_v30 = vld [vmem:[%s11327_s2 + $0x40] sm:$0xff]  ;;  %v82_v34 = vld [vmem:[%s11327_s2 + $0x38] sm:$0xff] }
  0x19   :  { %597 = vmatpush.msra.mxu3 %v119_v16  ;;  %558 = vmatpush.msra.mxu1 %v86_v18  ;;  %v100_v27 = vld [vmem:[%s11327_s2 + $0xc8] sm:$0xff]  ;;  %v99_v31 = vld [vmem:[%s11327_s2 + $0xc0] sm:$0xff]  ;;  %v98_v35 = vld [vmem:[%s11327_s2 + $0xb8] sm:$0xff] }
  0x1a   :  { %578 = vmatpush.msra.mxu2 %v102_v19  ;;  %492 = vmatpush.msra.mxu0 %v469_v21  ;;  %v116_v28 = vld [vmem:[%s11327_s2 + $0x148] sm:$0xff]  ;;  %v115_v32 = vld [vmem:[%s11327_s2 + $0x140] sm:$0xff]  ;;  %v114_v36 = vld [vmem:[%s11327_s2 + $0x138] sm:$0xff] }
  0x1b   :  { %598 = vmatpush.msra.mxu3 %v118_v20  ;;  %559 = vmatpush.msra.mxu1 %v85_v22  ;;  %v137_v37 = vld [vmem:[%s11327_s2 + $0x1f0] sm:$0xff]  ;;  %v136_v41 = vld [vmem:[%s11327_s2 + $0x1e8] sm:$0xff]  ;;  %v135_v45 = vld [vmem:[%s11327_s2 + $0x1e0] sm:$0xff] }
  0x1c   :  { %579 = vmatpush.msra.mxu2 %v101_v23  ;;  %493 = vmatpush.msra.mxu0 %v468_v25  ;;  %v81_v38 = vld [vmem:[%s11327_s2 + $0x30] sm:$0xff]  ;;  %v80_v42 = vld [vmem:[%s11327_s2 + $0x28] sm:$0xff]  ;;  %v79_v46 = vld [vmem:[%s11327_s2 + $0x20] sm:$0xff] }
  0x1d   :  { %599 = vmatpush.msra.mxu3 %v117_v24  ;;  %560 = vmatpush.msra.mxu1 %v84_v26  ;;  %v97_v39 = vld [vmem:[%s11327_s2 + $0xb0] sm:$0xff]  ;;  %v96_v43 = vld [vmem:[%s11327_s2 + $0xa8] sm:$0xff]  ;;  %v95_v47 = vld [vmem:[%s11327_s2 + $0xa0] sm:$0xff] }
  0x1e   :  { %580 = vmatpush.msra.mxu2 %v100_v27  ;;  %494 = vmatpush.msra.mxu0 %v467_v29  ;;  %v113_v40 = vld [vmem:[%s11327_s2 + $0x130] sm:$0xff]  ;;  %v112_v44 = vld [vmem:[%s11327_s2 + $0x128] sm:$0xff]  ;;  %v111_v48 = vld [vmem:[%s11327_s2 + $0x120] sm:$0xff] }
  0x1f   :  { %600 = vmatpush.msra.mxu3 %v116_v28  ;;  %561 = vmatpush.msra.mxu1 %v83_v30  ;;  %v134_v49 = vld [vmem:[%s11327_s2 + $0x1d8] sm:$0xff]  ;;  %v133_v53 = vld [vmem:[%s11327_s2 + $0x1d0] sm:$0xff]  ;;  %v132_v57 = vld [vmem:[%s11327_s2 + $0x1c8] sm:$0xff] }
  0x20   :  { %581 = vmatpush.msra.mxu2 %v99_v31  ;;  %614 = vmatpush.msrb.mxu0 %v138_v33  ;;  %v78_v50 = vld [vmem:[%s11327_s2 + $0x18] sm:$0xff]  ;;  %v77_v54 = vld [vmem:[%s11327_s2 + $0x10] sm:$0xff]  ;;  %v76_v58 = vld [vmem:[%s11327_s2 + $0x8] sm:$0xff] }
  0x21   :  { %601 = vmatpush.msra.mxu3 %v115_v32  ;;  %562 = vmatpush.msra.mxu1 %v82_v34  ;;  %v94_v51 = vld [vmem:[%s11327_s2 + $0x98] sm:$0xff]  ;;  %v93_v55 = vld [vmem:[%s11327_s2 + $0x90] sm:$0xff]  ;;  %v92_v59 = vld [vmem:[%s11327_s2 + $0x88] sm:$0xff] }
  0x22   :  { %582 = vmatpush.msra.mxu2 %v98_v35  ;;  %615 = vmatpush.msrb.mxu0 %v137_v37  ;;  %v110_v52 = vld [vmem:[%s11327_s2 + $0x118] sm:$0xff]  ;;  %v109_v56 = vld [vmem:[%s11327_s2 + $0x110] sm:$0xff]  ;;  %v108_v60 = vld [vmem:[%s11327_s2 + $0x108] sm:$0xff] }
  0x23   :  { %602 = vmatpush.msra.mxu3 %v114_v36  ;;  %563 = vmatpush.msra.mxu1 %v81_v38  ;;  %v131_v61 = vld [vmem:[%s11327_s2 + $0x1c0] sm:$0xff]  ;;  %v130_v1 = vld [vmem:[%s11327_s2 + $0x1b8] sm:$0xff]  ;;  %v129_v5 = vld [vmem:[%s11327_s2 + $0x1b0] sm:$0xff] }
  0x24   :  { %583 = vmatpush.msra.mxu2 %v97_v39  ;;  %616 = vmatpush.msrb.mxu0 %v136_v41  ;;  %v75_v62 = vld [vmem:[%s11327_s2] sm:$0xff]  ;;  %v154_v2 = vld [vmem:[%s11327_s2 + $0x278] sm:$0xff]  ;;  %v153_v6 = vld [vmem:[%s11327_s2 + $0x270] sm:$0xff] }
  0x25   :  { %603 = vmatpush.msra.mxu3 %v113_v40  ;;  %564 = vmatpush.msra.mxu1 %v80_v42  ;;  %v91_v63 = vld [vmem:[%s11327_s2 + $0x80] sm:$0xff]  ;;  %v170_v3 = vld [vmem:[%s11327_s2 + $0x2f8] sm:$0xff]  ;;  %v169_v7 = vld [vmem:[%s11327_s2 + $0x2f0] sm:$0xff] }
  0x26   :  { %584 = vmatpush.msra.mxu2 %v96_v43  ;;  %617 = vmatpush.msrb.mxu0 %v135_v45  ;;  %v107_v0 = vld [vmem:[%s11327_s2 + $0x100] sm:$0xff]  ;;  %v186_v4 = vld [vmem:[%s11327_s2 + $0x378] sm:$0xff]  ;;  %v185_v8 = vld [vmem:[%s11327_s2 + $0x370] sm:$0xff] }
  0x27   :  { %604 = vmatpush.msra.mxu3 %v112_v44  ;;  %565 = vmatpush.msra.mxu1 %v79_v46  ;;  %v128_v9 = vld [vmem:[%s11327_s2 + $0x1a8] sm:$0xff]  ;;  %v127_v13 = vld [vmem:[%s11327_s2 + $0x1a0] sm:$0xff]  ;;  %v126_v17 = vld [vmem:[%s11327_s2 + $0x198] sm:$0xff] }
  0x28   :  { %585 = vmatpush.msra.mxu2 %v95_v47  ;;  %618 = vmatpush.msrb.mxu0 %v134_v49  ;;  %v152_v10 = vld [vmem:[%s11327_s2 + $0x268] sm:$0xff]  ;;  %v151_v14 = vld [vmem:[%s11327_s2 + $0x260] sm:$0xff]  ;;  %v150_v18 = vld [vmem:[%s11327_s2 + $0x258] sm:$0xff] }
  0x29   :  { %605 = vmatpush.msra.mxu3 %v111_v48  ;;  %566 = vmatpush.msra.mxu1 %v78_v50  ;;  %v168_v11 = vld [vmem:[%s11327_s2 + $0x2e8] sm:$0xff]  ;;  %v167_v15 = vld [vmem:[%s11327_s2 + $0x2e0] sm:$0xff]  ;;  %v166_v19 = vld [vmem:[%s11327_s2 + $0x2d8] sm:$0xff] }
  0x2a   :  { %586 = vmatpush.msra.mxu2 %v94_v51  ;;  %619 = vmatpush.msrb.mxu0 %v133_v53  ;;  %v184_v12 = vld [vmem:[%s11327_s2 + $0x368] sm:$0xff]  ;;  %v183_v16 = vld [vmem:[%s11327_s2 + $0x360] sm:$0xff]  ;;  %v182_v20 = vld [vmem:[%s11327_s2 + $0x358] sm:$0xff] }
  0x2b   :  { %606 = vmatpush.msra.mxu3 %v110_v52  ;;  %567 = vmatpush.msra.mxu1 %v77_v54  ;;  %v125_v21 = vld [vmem:[%s11327_s2 + $0x190] sm:$0xff]  ;;  %v6110_v23 = vld [vmem:[%s11328_s7] sm:$0xff]  ;;  %v124_v26 = vld [vmem:[%s11327_s2 + $0x188] sm:$0xff] }
  0x2c   :  { %587 = vmatpush.msra.mxu2 %v93_v55  ;;  %620 = vmatpush.msrb.mxu0 %v132_v57  ;;  %v149_v22 = vld [vmem:[%s11327_s2 + $0x250] sm:$0xff]  ;;  %v148_v27 = vld [vmem:[%s11327_s2 + $0x248] sm:$0xff]  ;;  %v6131_v30 = vperm.slane %v6110_v23, 1  ;;  %v123_v31 = vld [vmem:[%s11327_s2 + $0x180] sm:$0xff]  ;;  %v6149_v36 = vperm.slane %v6110_v23, 2  ;;  %v6162_v40 = vperm.slane %v6110_v23, 0 }
  0x2d   :  { %607 = vmatpush.msra.mxu3 %v109_v56  ;;  %568 = vmatpush.msra.mxu1 %v76_v58  ;;  %v165_v24 = vld [vmem:[%s11327_s2 + $0x2d0] sm:$0xff]  ;;  %v164_v28 = vld [vmem:[%s11327_s2 + $0x2c8] sm:$0xff]  ;;  %v147_v32 = vld [vmem:[%s11327_s2 + $0x240] sm:$0xff]  ;;  %v6207_v54 = vperm.slane %v6110_v23, 3 }
  0x2e   :  { %588 = vmatpush.msra.mxu2 %v92_v59  ;;  %621 = vmatpush.msrb.mxu0 %v131_v61  ;;  %v181_v25 = vld [vmem:[%s11327_s2 + $0x350] sm:$0xff]  ;;  %v180_v29 = vld [vmem:[%s11327_s2 + $0x348] sm:$0xff]  ;;  %v163_v33 = vld [vmem:[%s11327_s2 + $0x2c0] sm:$0xff] }
  0x2f   :  { %608 = vmatpush.msra.mxu3 %v108_v60  ;;  %569 = vmatpush.msra.mxu1 %v75_v62  ;;  %v179_v34 = vld [vmem:[%s11327_s2 + $0x340] sm:$0xff]  ;;  %v202_v37 = vld [vmem:[%s11327_s2 + $0x3f8] sm:$0xff]  ;;  %v201_v42 = vld [vmem:[%s11327_s2 + $0x3f0] sm:$0xff] }
  0x30   :  { %589 = vmatpush.msra.mxu2 %v91_v63  ;;  %622 = vmatpush.msrb.mxu0 %v130_v1  ;;  %v73_v35 = vld [vmem:[%s11329_s1] sm:$0x1]  ;;  %v146_v38 = vld [vmem:[%s11327_s2 + $0x238] sm:$0xff]  ;;  %v145_v43 = vld [vmem:[%s11327_s2 + $0x230] sm:$0xff] }
  0x31   :  { %609 = vmatpush.msra.mxu3 %v107_v0  ;;  %634 = vmatpush.msrb.mxu1 %v154_v2  ;;  %v162_v39 = vld [vmem:[%s11327_s2 + $0x2b8] sm:$0xff]  ;;  %v161_v44 = vld [vmem:[%s11327_s2 + $0x2b0] sm:$0xff]  ;;  %v200_v46 = vld [vmem:[%s11327_s2 + $0x3e8] sm:$0xff] }
  0x32   :  { %654 = vmatpush.msrb.mxu2 %v170_v3  ;;  %623 = vmatpush.msrb.mxu0 %v129_v5  ;;  %v178_v41 = vld [vmem:[%s11327_s2 + $0x338] sm:$0xff]  ;;  %v177_v45 = vld [vmem:[%s11327_s2 + $0x330] sm:$0xff]  ;;  %v144_v47 = vld [vmem:[%s11327_s2 + $0x228] sm:$0xff] }
  0x33   :  { %674 = vmatpush.msrb.mxu3 %v186_v4  ;;  %635 = vmatpush.msrb.mxu1 %v153_v6  ;;  %v160_v48 = vld [vmem:[%s11327_s2 + $0x2a8] sm:$0xff]  ;;  %v199_v50 = vld [vmem:[%s11327_s2 + $0x3e0] sm:$0xff]  ;;  %v142_v55 = vld [vmem:[%s11327_s2 + $0x218] sm:$0xff] }
  0x34   :  { %655 = vmatpush.msrb.mxu2 %v169_v7  ;;  %624 = vmatpush.msrb.mxu0 %v128_v9  ;;  %v176_v49 = vld [vmem:[%s11327_s2 + $0x328] sm:$0xff]  ;;  %v143_v51 = vld [vmem:[%s11327_s2 + $0x220] sm:$0xff]  ;;  %v198_v56 = vld [vmem:[%s11327_s2 + $0x3d8] sm:$0xff] }
  0x35   :  { %675 = vmatpush.msrb.mxu3 %v185_v8  ;;  %636 = vmatpush.msrb.mxu1 %v152_v10  ;;  %v159_v52 = vld [vmem:[%s11327_s2 + $0x2a0] sm:$0xff]  ;;  %v158_v57 = vld [vmem:[%s11327_s2 + $0x298] sm:$0xff] }
  0x36   :  { %656 = vmatpush.msrb.mxu2 %v168_v11  ;;  %625 = vmatpush.msrb.mxu0 %v127_v13  ;;  %v175_v53 = vld [vmem:[%s11327_s2 + $0x320] sm:$0xff] }
  0x37   :  { %676 = vmatpush.msrb.mxu3 %v184_v12  ;;  %637 = vmatpush.msrb.mxu1 %v151_v14 }
  0x38   :  { %657 = vmatpush.msrb.mxu2 %v167_v15  ;;  %626 = vmatpush.msrb.mxu0 %v126_v17 }
  0x39   :  { %677 = vmatpush.msrb.mxu3 %v183_v16  ;;  %638 = vmatpush.msrb.mxu1 %v150_v18 }
  0x3a   :  { %658 = vmatpush.msrb.mxu2 %v166_v19  ;;  %627 = vmatpush.msrb.mxu0 %v125_v21 }
  0x3b   :  { %678 = vmatpush.msrb.mxu3 %v182_v20  ;;  %639 = vmatpush.msrb.mxu1 %v149_v22 }
  0x3c   :  { %659 = vmatpush.msrb.mxu2 %v165_v24  ;;  %628 = vmatpush.msrb.mxu0 %v124_v26 }
  0x3d   :  { %679 = vmatpush.msrb.mxu3 %v181_v25  ;;  %640 = vmatpush.msrb.mxu1 %v148_v27 }
  0x3e   :  { %660 = vmatpush.msrb.mxu2 %v164_v28  ;;  %629 = vmatpush.msrb.mxu0 %v123_v31 }
  0x3f   :  { %680 = vmatpush.msrb.mxu3 %v180_v29  ;;  %590 = vmatmul.f32.vlgmr.msra.gmra.mxu2 %v6131_v30 }
  0x40   :  { %641 = vmatpush.msrb.mxu1 %v147_v32  ;;  %661 = vmatpush.msrb.mxu2 %v163_v33 }
  0x41   :  { %681 = vmatpush.msrb.mxu3 %v179_v34  ;;  %4358 = vmatmul.msk.f32.vlgmr.msra.gmra.mxu0 %vm475_vm0, %v73_v35 }
  0x42   :  { %610 = vmatmul.f32.vlgmr.msra.gmra.mxu3 %v6149_v36  ;;  %694 = vmatpush.msra.mxu0 %v202_v37 }
  0x43   :  { %642 = vmatpush.msrb.mxu1 %v146_v38  ;;  %662 = vmatpush.msrb.mxu2 %v162_v39 }
  0x44   :  { %682 = vmatpush.msrb.mxu3 %v178_v41  ;;  %570 = vmatmul.f32.vlgmr.msra.gmra.mxu1 %v6162_v40 }
  0x45   :  { %695 = vmatpush.msra.mxu0 %v201_v42  ;;  %643 = vmatpush.msrb.mxu1 %v145_v43 }
  0x46   :  { %663 = vmatpush.msrb.mxu2 %v161_v44  ;;  %683 = vmatpush.msrb.mxu3 %v177_v45 }
  0x47   :  { %696 = vmatpush.msra.mxu0 %v200_v46  ;;  %644 = vmatpush.msrb.mxu1 %v144_v47 }
  0x48   :  { %664 = vmatpush.msrb.mxu2 %v160_v48  ;;  %684 = vmatpush.msrb.mxu3 %v176_v49 }
  0x49   :  { %697 = vmatpush.msra.mxu0 %v199_v50  ;;  %645 = vmatpush.msrb.mxu1 %v143_v51 }
  0x4a   :  { %32 = vsyncpa [#allocation6], 0  ;;  %665 = vmatpush.msrb.mxu2 %v159_v52  ;;  %685 = vmatpush.msrb.mxu3 %v175_v53  ;;  %v174_v58 = vld [vmem:[%s11327_s2 + $0x318] sm:$0xff]  ;;  %v141_v59 = vld [vmem:[%s11327_s2 + $0x210] sm:$0xff]  ;;  %v6256_v6 = vperm.slane %v6110_v23, 4  ;;  %v6262_v8 = vperm.slane %v6110_v23, 5 }
  0x4b   :  { %630 = vmatmul.f32.vlgmr.msrb.gmra.mxu0 %v6207_v54  ;;  %646 = vmatpush.msrb.mxu1 %v142_v55  ;;  %v197_v60 = vld [vmem:[%s11327_s2 + $0x3d0] sm:$0xff]  ;;  %v140_v63 = vld [vmem:[%s11327_s2 + $0x208] sm:$0xff]  ;;  %v139_v3 = vld [vmem:[%s11327_s2 + $0x200] sm:$0xff]  ;;  %v6278_v13 = vperm.slane %v6110_v23, 6  ;;  %v6367_v46 = vperm.slane %v6110_v23, 7  ;;  %s11334_s3 = sld [smem:[#allocation11_spill]] }
  0x4c   :  { %v157_v61 = vld [vmem:[%s11327_s2 + $0x290] sm:$0xff]  ;;  %698 = vmatpush.msra.mxu0 %v198_v56  ;;  %666 = vmatpush.msrb.mxu2 %v158_v57  ;;  %v196_v0 = vld [vmem:[%s11327_s2 + $0x3c8] sm:$0xff]  ;;  %v195_v4 = vld [vmem:[%s11327_s2 + $0x3c0] sm:$0xff]  ;;  %vm4206_vm9 = vcmask 516096   ;;  %s4317_s26 = sshll.u32 %s11308_s18, 4  ;;  %s4328_s27 = sshll.u32 %s11309_s19, 4  ;;  %s4318_s26 = int_to_ptr.hbm [resolvable:$true] %s4317_s26  ;;  %s4329_s27 = int_to_ptr.hbm [resolvable:$true] %s4328_s27 }
  0x4d   :  { %v173_v62 = vld [vmem:[%s11327_s2 + $0x310] sm:$0xff]  ;;  %686 = vmatpush.msrb.mxu3 %v174_v58  ;;  %647 = vmatpush.msrb.mxu1 %v141_v59  ;;  %v156_v1 = vld [vmem:[%s11327_s2 + $0x288] sm:$0xff]  ;;  %v155_v5 = vld [vmem:[%s11327_s2 + $0x280] sm:$0xff] }
  0x4e   :  { %699 = vmatpush.msra.mxu0 %v197_v60  ;;  %667 = vmatpush.msrb.mxu2 %v157_v61  ;;  %v172_v2 = vld [vmem:[%s11327_s2 + $0x308] sm:$0xff]  ;;  %v171_v7 = vld [vmem:[%s11327_s2 + $0x300] sm:$0xff]  ;;  %v194_v9 = vld [vmem:[%s11327_s2 + $0x3b8] sm:$0xff] }
  0x4f   :  { %687 = vmatpush.msrb.mxu3 %v173_v62  ;;  %648 = vmatpush.msrb.mxu1 %v140_v63  ;;  %v218_v10 = vld [vmem:[%s11327_s2 + $0x478] sm:$0xff]  ;;  %v193_v14 = vld [vmem:[%s11327_s2 + $0x3b0] sm:$0xff]  ;;  %v192_v18 = vld [vmem:[%s11327_s2 + $0x3a8] sm:$0xff] }
  0x50   :  { %700 = vmatpush.msra.mxu0 %v196_v0  ;;  %668 = vmatpush.msrb.mxu2 %v156_v1  ;;  %v234_v11 = vld [vmem:[%s11327_s2 + $0x4f8] sm:$0xff]  ;;  %v217_v15 = vld [vmem:[%s11327_s2 + $0x470] sm:$0xff]  ;;  %v216_v19 = vld [vmem:[%s11327_s2 + $0x468] sm:$0xff] }
  0x51   :  { %688 = vmatpush.msrb.mxu3 %v172_v2  ;;  %649 = vmatpush.msrb.mxu1 %v139_v3  ;;  %v250_v12 = vld [vmem:[%s11327_s2 + $0x578] sm:$0xff]  ;;  %v233_v16 = vld [vmem:[%s11327_s2 + $0x4f0] sm:$0xff]  ;;  %v232_v20 = vld [vmem:[%s11327_s2 + $0x4e8] sm:$0xff] }
  0x52   :  { %701 = vmatpush.msra.mxu0 %v195_v4  ;;  %669 = vmatpush.msrb.mxu2 %v155_v5  ;;  %v249_v17 = vld [vmem:[%s11327_s2 + $0x570] sm:$0xff]  ;;  %v248_v21 = vld [vmem:[%s11327_s2 + $0x568] sm:$0xff]  ;;  %v191_v22 = vld [vmem:[%s11327_s2 + $0x3a0] sm:$0xff] }
  0x53   :  { %689 = vmatpush.msrb.mxu3 %v171_v7  ;;  %650 = vmatmul.f32.vlgmr.msrb.gmra.mxu1 %v6256_v6  ;;  %v215_v24 = vld [vmem:[%s11327_s2 + $0x460] sm:$0xff]  ;;  %v190_v27 = vld [vmem:[%s11327_s2 + $0x398] sm:$0xff]  ;;  %v189_v32 = vld [vmem:[%s11327_s2 + $0x390] sm:$0xff] }
  0x54   :  { %670 = vmatmul.f32.vlgmr.msrb.gmra.mxu2 %v6262_v8  ;;  %702 = vmatpush.msra.mxu0 %v194_v9  ;;  %v231_v25 = vld [vmem:[%s11327_s2 + $0x4e0] sm:$0xff]  ;;  %v214_v28 = vld [vmem:[%s11327_s2 + $0x458] sm:$0xff]  ;;  %v213_v33 = vld [vmem:[%s11327_s2 + $0x450] sm:$0xff] }
  0x55   :  { %714 = vmatpush.msra.mxu1 %v218_v10  ;;  %734 = vmatpush.msra.mxu2 %v234_v11  ;;  %v247_v26 = vld [vmem:[%s11327_s2 + $0x560] sm:$0xff]  ;;  %v230_v29 = vld [vmem:[%s11327_s2 + $0x4d8] sm:$0xff]  ;;  %v229_v34 = vld [vmem:[%s11327_s2 + $0x4d0] sm:$0xff] }
  0x56   :  { %754 = vmatpush.msra.mxu3 %v250_v12  ;;  %703 = vmatpush.msra.mxu0 %v193_v14  ;;  %v246_v31 = vld [vmem:[%s11327_s2 + $0x558] sm:$0xff]  ;;  %v245_v35 = vld [vmem:[%s11327_s2 + $0x550] sm:$0xff]  ;;  %v188_v37 = vld [vmem:[%s11327_s2 + $0x388] sm:$0xff] }
  0x57   :  { %690 = vmatmul.f32.vlgmr.msrb.gmra.mxu3 %v6278_v13  ;;  %715 = vmatpush.msra.mxu1 %v217_v15  ;;  %v212_v38 = vld [vmem:[%s11327_s2 + $0x448] sm:$0xff]  ;;  %v187_v42 = vld [vmem:[%s11327_s2 + $0x380] sm:$0xff]  ;;  %v210_v47 = vld [vmem:[%s11327_s2 + $0x438] sm:$0xff] }
  0x58   :  { %735 = vmatpush.msra.mxu2 %v233_v16  ;;  %755 = vmatpush.msra.mxu3 %v249_v17  ;;  %v228_v39 = vld [vmem:[%s11327_s2 + $0x4c8] sm:$0xff]  ;;  %v211_v43 = vld [vmem:[%s11327_s2 + $0x440] sm:$0xff]  ;;  %v266_v48 = vld [vmem:[%s11327_s2 + $0x5f8] sm:$0xff] }
  0x59   :  { %704 = vmatpush.msra.mxu0 %v192_v18  ;;  %716 = vmatpush.msra.mxu1 %v216_v19  ;;  %v244_v41 = vld [vmem:[%s11327_s2 + $0x548] sm:$0xff]  ;;  %v227_v44 = vld [vmem:[%s11327_s2 + $0x4c0] sm:$0xff]  ;;  %v226_v49 = vld [vmem:[%s11327_s2 + $0x4b8] sm:$0xff] }
  0x5a   :  { %736 = vmatpush.msra.mxu2 %v232_v20  ;;  %756 = vmatpush.msra.mxu3 %v248_v21  ;;  %v243_v45 = vld [vmem:[%s11327_s2 + $0x540] sm:$0xff]  ;;  %v242_v23 = vld [vmem:[%s11327_s2 + $0x538] sm:$0xff]  ;;  %v209_v50 = vld [vmem:[%s11327_s2 + $0x430] sm:$0xff] }
  0x5b   :  { %705 = vmatpush.msra.mxu0 %v191_v22  ;;  %717 = vmatpush.msra.mxu1 %v215_v24  ;;  %v265_v51 = vld [vmem:[%s11327_s2 + $0x5f0] sm:$0xff]  ;;  %v208_v55 = vld [vmem:[%s11327_s2 + $0x428] sm:$0xff]  ;;  %v207_v59 = vld [vmem:[%s11327_s2 + $0x420] sm:$0xff] }
  0x5c   :  { %737 = vmatpush.msra.mxu2 %v231_v25  ;;  %757 = vmatpush.msra.mxu3 %v247_v26  ;;  %v225_v52 = vld [vmem:[%s11327_s2 + $0x4b0] sm:$0xff]  ;;  %v264_v56 = vld [vmem:[%s11327_s2 + $0x5e8] sm:$0xff]  ;;  %v263_v60 = vld [vmem:[%s11327_s2 + $0x5e0] sm:$0xff] }
  0x5d   :  { %706 = vmatpush.msra.mxu0 %v190_v27  ;;  %718 = vmatpush.msra.mxu1 %v214_v28  ;;  %v241_v53 = vld [vmem:[%s11327_s2 + $0x530] sm:$0xff]  ;;  %v224_v57 = vld [vmem:[%s11327_s2 + $0x4a8] sm:$0xff]  ;;  %v223_v61 = vld [vmem:[%s11327_s2 + $0x4a0] sm:$0xff] }
  0x5e   :  { %738 = vmatpush.msra.mxu2 %v230_v29  ;;  %758 = vmatpush.msra.mxu3 %v246_v31  ;;  %v240_v58 = vld [vmem:[%s11327_s2 + $0x528] sm:$0xff]  ;;  %v239_v62 = vld [vmem:[%s11327_s2 + $0x520] sm:$0xff]  ;;  %v206_v63 = vld [vmem:[%s11327_s2 + $0x418] sm:$0xff] }
  0x5f   :  { %707 = vmatpush.msra.mxu0 %v189_v32  ;;  %719 = vmatpush.msra.mxu1 %v213_v33  ;;  %v262_v0 = vld [vmem:[%s11327_s2 + $0x5d8] sm:$0xff]  ;;  %v205_v3 = vld [vmem:[%s11327_s2 + $0x410] sm:$0xff]  ;;  %v204_v9 = vld [vmem:[%s11327_s2 + $0x408] sm:$0xff] }
  0x60   :  { %739 = vmatpush.msra.mxu2 %v229_v34  ;;  %759 = vmatpush.msra.mxu3 %v245_v35  ;;  %v222_v1 = vld [vmem:[%s11327_s2 + $0x498] sm:$0xff]  ;;  %v261_v4 = vld [vmem:[%s11327_s2 + $0x5d0] sm:$0xff]  ;;  %v6448_v10 = vld [vmem:[%s11328_s7 + $0x8] sm:$0xff] }
  0x61   :  { %708 = vmatpush.msra.mxu0 %v188_v37  ;;  %720 = vmatpush.msra.mxu1 %v212_v38  ;;  %v238_v2 = vld [vmem:[%s11327_s2 + $0x518] sm:$0xff]  ;;  %v221_v5 = vld [vmem:[%s11327_s2 + $0x490] sm:$0xff]  ;;  %v260_v11 = vld [vmem:[%s11327_s2 + $0x5c8] sm:$0xff]  ;;  %v6469_v18 = vperm.slane %v6448_v10, 0  ;;  %v6475_v20 = vperm.slane %v6448_v10, 1  ;;  %v6491_v26 = vperm.slane %v6448_v10, 2 }
  0x62   :  { %740 = vmatpush.msra.mxu2 %v228_v39  ;;  %760 = vmatpush.msra.mxu3 %v244_v41  ;;  %v237_v7 = vld [vmem:[%s11327_s2 + $0x510] sm:$0xff]  ;;  %v220_v12 = vld [vmem:[%s11327_s2 + $0x488] sm:$0xff]  ;;  %v203_v15 = vld [vmem:[%s11327_s2 + $0x400] sm:$0xff] }
  0x63   :  { %709 = vmatpush.msra.mxu0 %v187_v42  ;;  %721 = vmatpush.msra.mxu1 %v211_v43  ;;  %v236_v14 = vld [vmem:[%s11327_s2 + $0x508] sm:$0xff]  ;;  %v259_v16 = vld [vmem:[%s11327_s2 + $0x5c0] sm:$0xff]  ;;  %v258_v21 = vld [vmem:[%s11327_s2 + $0x5b8] sm:$0xff] }
  0x64   :  { %741 = vmatpush.msra.mxu2 %v227_v44  ;;  %761 = vmatpush.msra.mxu3 %v243_v45  ;;  %v219_v17 = vld [vmem:[%s11327_s2 + $0x480] sm:$0xff]  ;;  %v282_v22 = vld [vmem:[%s11327_s2 + $0x678] sm:$0xff]  ;;  %v257_v27 = vld [vmem:[%s11327_s2 + $0x5b0] sm:$0xff] }
  0x65   :  { %710 = vmatmul.f32.vlgmr.msra.gmra.mxu0 %v6367_v46  ;;  %722 = vmatpush.msra.mxu1 %v210_v47  ;;  %v235_v19 = vld [vmem:[%s11327_s2 + $0x500] sm:$0xff]  ;;  %v298_v24 = vld [vmem:[%s11327_s2 + $0x6f8] sm:$0xff]  ;;  %v281_v28 = vld [vmem:[%s11327_s2 + $0x670] sm:$0xff] }
  0x66   :  { %774 = vmatpush.msrb.mxu0 %v266_v48  ;;  %742 = vmatpush.msra.mxu2 %v226_v49  ;;  %v314_v25 = vld [vmem:[%s11327_s2 + $0x778] sm:$0xff]  ;;  %v297_v29 = vld [vmem:[%s11327_s2 + $0x6f0] sm:$0xff]  ;;  %v256_v32 = vld [vmem:[%s11327_s2 + $0x5a8] sm:$0xff] }
  0x67   :  { %762 = vmatpush.msra.mxu3 %v242_v23  ;;  %723 = vmatpush.msra.mxu1 %v209_v50  ;;  %v313_v31 = vld [vmem:[%s11327_s2 + $0x770] sm:$0xff]  ;;  %v280_v33 = vld [vmem:[%s11327_s2 + $0x668] sm:$0xff]  ;;  %v255_v37 = vld [vmem:[%s11327_s2 + $0x5a0] sm:$0xff] }
  0x68   :  { %775 = vmatpush.msrb.mxu0 %v265_v51  ;;  %743 = vmatpush.msra.mxu2 %v225_v52  ;;  %v296_v34 = vld [vmem:[%s11327_s2 + $0x6e8] sm:$0xff]  ;;  %v279_v38 = vld [vmem:[%s11327_s2 + $0x660] sm:$0xff]  ;;  %v254_v42 = vld [vmem:[%s11327_s2 + $0x598] sm:$0xff] }
  0x69   :  { %763 = vmatpush.msra.mxu3 %v241_v53  ;;  %724 = vmatpush.msra.mxu1 %v208_v55  ;;  %v312_v35 = vld [vmem:[%s11327_s2 + $0x768] sm:$0xff]  ;;  %v295_v39 = vld [vmem:[%s11327_s2 + $0x6e0] sm:$0xff]  ;;  %v278_v43 = vld [vmem:[%s11327_s2 + $0x658] sm:$0xff] }
  0x6a   :  { %776 = vmatpush.msrb.mxu0 %v264_v56  ;;  %744 = vmatpush.msra.mxu2 %v224_v57  ;;  %v311_v41 = vld [vmem:[%s11327_s2 + $0x760] sm:$0xff]  ;;  %v294_v44 = vld [vmem:[%s11327_s2 + $0x6d8] sm:$0xff]  ;;  %v253_v47 = vld [vmem:[%s11327_s2 + $0x590] sm:$0xff] }
  0x6b   :  { %764 = vmatpush.msra.mxu3 %v240_v58  ;;  %725 = vmatpush.msra.mxu1 %v207_v59  ;;  %v310_v45 = vld [vmem:[%s11327_s2 + $0x758] sm:$0xff]  ;;  %v277_v48 = vld [vmem:[%s11327_s2 + $0x650] sm:$0xff]  ;;  %v252_v50 = vld [vmem:[%s11327_s2 + $0x588] sm:$0xff]  ;;  %v6580_v59 = vperm.slane %v6448_v10, 3 }
  0x6c   :  { %777 = vmatpush.msrb.mxu0 %v263_v60  ;;  %745 = vmatpush.msra.mxu2 %v223_v61  ;;  %v293_v49 = vld [vmem:[%s11327_s2 + $0x6d0] sm:$0xff]  ;;  %v276_v51 = vld [vmem:[%s11327_s2 + $0x648] sm:$0xff]  ;;  %v251_v55 = vld [vmem:[%s11327_s2 + $0x580] sm:$0xff] }
  0x6d   :  { %765 = vmatpush.msra.mxu3 %v239_v62  ;;  %726 = vmatpush.msra.mxu1 %v206_v63  ;;  %v309_v23 = vld [vmem:[%s11327_s2 + $0x750] sm:$0xff]  ;;  %v292_v52 = vld [vmem:[%s11327_s2 + $0x6c8] sm:$0xff]  ;;  %v275_v56 = vld [vmem:[%s11327_s2 + $0x640] sm:$0xff] }
  0x6e   :  { %778 = vmatpush.msrb.mxu0 %v262_v0  ;;  %746 = vmatpush.msra.mxu2 %v222_v1  ;;  %v308_v53 = vld [vmem:[%s11327_s2 + $0x748] sm:$0xff]  ;;  %v291_v57 = vld [vmem:[%s11327_s2 + $0x6c0] sm:$0xff]  ;;  %v274_v60 = vld [vmem:[%s11327_s2 + $0x638] sm:$0xff] }
  0x6f   :  { %766 = vmatpush.msra.mxu3 %v238_v2  ;;  %727 = vmatpush.msra.mxu1 %v205_v3  ;;  %v307_v58 = vld [vmem:[%s11327_s2 + $0x740] sm:$0xff]  ;;  %v330_v61 = vld [vmem:[%s11327_s2 + $0x7f8] sm:$0xff]  ;;  %v273_v0 = vld [vmem:[%s11327_s2 + $0x630] sm:$0xff] }
  0x70   :  { %779 = vmatpush.msrb.mxu0 %v261_v4  ;;  %747 = vmatpush.msra.mxu2 %v221_v5  ;;  %v290_v62 = vld [vmem:[%s11327_s2 + $0x6b8] sm:$0xff]  ;;  %v329_v1 = vld [vmem:[%s11327_s2 + $0x7f0] sm:$0xff]  ;;  %v272_v4 = vld [vmem:[%s11327_s2 + $0x628] sm:$0xff] }
  0x71   :  { %767 = vmatpush.msra.mxu3 %v237_v7  ;;  %728 = vmatpush.msra.mxu1 %v204_v9  ;;  %v306_v63 = vld [vmem:[%s11327_s2 + $0x738] sm:$0xff]  ;;  %v289_v2 = vld [vmem:[%s11327_s2 + $0x6b0] sm:$0xff]  ;;  %v328_v5 = vld [vmem:[%s11327_s2 + $0x7e8] sm:$0xff] }
  0x72   :  { %780 = vmatpush.msrb.mxu0 %v260_v11  ;;  %748 = vmatpush.msra.mxu2 %v220_v12  ;;  %v305_v3 = vld [vmem:[%s11327_s2 + $0x730] sm:$0xff]  ;;  %v288_v7 = vld [vmem:[%s11327_s2 + $0x6a8] sm:$0xff]  ;;  %v271_v11 = vld [vmem:[%s11327_s2 + $0x620] sm:$0xff] }
  0x73   :  { %768 = vmatpush.msra.mxu3 %v236_v14  ;;  %729 = vmatpush.msra.mxu1 %v203_v15  ;;  %v304_v9 = vld [vmem:[%s11327_s2 + $0x728] sm:$0xff]  ;;  %v327_v12 = vld [vmem:[%s11327_s2 + $0x7e0] sm:$0xff] }
  0x74   :  { %781 = vmatpush.msrb.mxu0 %v259_v16  ;;  %749 = vmatpush.msra.mxu2 %v219_v17  ;;  %v287_v14 = vld [vmem:[%s11327_s2 + $0x6a0] sm:$0xff]  ;;  %v270_v16 = vld [vmem:[%s11327_s2 + $0x618] sm:$0xff] }
  0x75   :  { %769 = vmatpush.msra.mxu3 %v235_v19  ;;  %730 = vmatmul.f32.vlgmr.msra.gmra.mxu1 %v6469_v18  ;;  %v303_v15 = vld [vmem:[%s11327_s2 + $0x720] sm:$0xff]  ;;  %v326_v17 = vld [vmem:[%s11327_s2 + $0x7d8] sm:$0xff] }
  0x76   :  { %750 = vmatmul.f32.vlgmr.msra.gmra.mxu2 %v6475_v20  ;;  %782 = vmatpush.msrb.mxu0 %v258_v21  ;;  %v286_v19 = vld [vmem:[%s11327_s2 + $0x698] sm:$0xff] }
  0x77   :  { %794 = vmatpush.msrb.mxu1 %v282_v22  ;;  %814 = vmatpush.msrb.mxu2 %v298_v24  ;;  %v302_v21 = vld [vmem:[%s11327_s2 + $0x718] sm:$0xff]  ;;  %v269_v22 = vld [vmem:[%s11327_s2 + $0x610] sm:$0xff] }
  0x78   :  { %834 = vmatpush.msrb.mxu3 %v314_v25  ;;  %783 = vmatpush.msrb.mxu0 %v257_v27  ;;  %v325_v24 = vld [vmem:[%s11327_s2 + $0x7d0] sm:$0xff] }
  0x79   :  { %770 = vmatmul.f32.vlgmr.msra.gmra.mxu3 %v6491_v26  ;;  %795 = vmatpush.msrb.mxu1 %v281_v28  ;;  %v285_v25 = vld [vmem:[%s11327_s2 + $0x690] sm:$0xff]  ;;  %v268_v28 = vld [vmem:[%s11327_s2 + $0x608] sm:$0xff] }
  0x7a   :  { %815 = vmatpush.msrb.mxu2 %v297_v29  ;;  %835 = vmatpush.msrb.mxu3 %v313_v31  ;;  %v301_v27 = vld [vmem:[%s11327_s2 + $0x710] sm:$0xff]  ;;  %v324_v29 = vld [vmem:[%s11327_s2 + $0x7c8] sm:$0xff] }
  0x7b   :  { %784 = vmatpush.msrb.mxu0 %v256_v32  ;;  %796 = vmatpush.msrb.mxu1 %v280_v33  ;;  %v284_v31 = vld [vmem:[%s11327_s2 + $0x688] sm:$0xff]  ;;  %v267_v33 = vld [vmem:[%s11327_s2 + $0x600] sm:$0xff] }
  0x7c   :  { %816 = vmatpush.msrb.mxu2 %v296_v34  ;;  %836 = vmatpush.msrb.mxu3 %v312_v35  ;;  %v300_v32 = vld [vmem:[%s11327_s2 + $0x708] sm:$0xff]  ;;  %v323_v34 = vld [vmem:[%s11327_s2 + $0x7c0] sm:$0xff] }
  0x7d   :  { %785 = vmatpush.msrb.mxu0 %v255_v37  ;;  %797 = vmatpush.msrb.mxu1 %v279_v38  ;;  %v283_v35 = vld [vmem:[%s11327_s2 + $0x680] sm:$0xff]  ;;  %v6677_v37 = vperm.slane %v6448_v10, 4 }
  0x7e   :  { %817 = vmatpush.msrb.mxu2 %v295_v39  ;;  %837 = vmatpush.msrb.mxu3 %v311_v41  ;;  %v299_v38 = vld [vmem:[%s11327_s2 + $0x700] sm:$0xff]  ;;  %v6683_v39 = vperm.slane %v6448_v10, 5  ;;  %v322_v41 = vld [vmem:[%s11327_s2 + $0x7b8] sm:$0xff] }
  0x7f   :  { %786 = vmatpush.msrb.mxu0 %v254_v42  ;;  %798 = vmatpush.msrb.mxu1 %v278_v43  ;;  %v346_v42 = vld [vmem:[%s11327_s2 + $0x878] sm:$0xff] }
  0x80   :  { %818 = vmatpush.msrb.mxu2 %v294_v44  ;;  %838 = vmatpush.msrb.mxu3 %v310_v45  ;;  %v362_v43 = vld [vmem:[%s11327_s2 + $0x8f8] sm:$0xff]  ;;  %v6699_v45 = vperm.slane %v6448_v10, 6 }
  0x81   :  { %787 = vmatpush.msrb.mxu0 %v253_v47  ;;  %799 = vmatpush.msrb.mxu1 %v277_v48  ;;  %v378_v44 = vld [vmem:[%s11327_s2 + $0x978] sm:$0xff]  ;;  %v321_v47 = vld [vmem:[%s11327_s2 + $0x7b0] sm:$0xff] }
  0x82   :  { %819 = vmatpush.msrb.mxu2 %v293_v49  ;;  %839 = vmatpush.msrb.mxu3 %v309_v23  ;;  %v345_v48 = vld [vmem:[%s11327_s2 + $0x870] sm:$0xff] }
  0x83   :  { %788 = vmatpush.msrb.mxu0 %v252_v50  ;;  %800 = vmatpush.msrb.mxu1 %v276_v51  ;;  %v361_v49 = vld [vmem:[%s11327_s2 + $0x8f0] sm:$0xff]  ;;  %v320_v50 = vld [vmem:[%s11327_s2 + $0x7a8] sm:$0xff] }
  0x84   :  { %820 = vmatpush.msrb.mxu2 %v292_v52  ;;  %840 = vmatpush.msrb.mxu3 %v308_v53  ;;  %v377_v23 = vld [vmem:[%s11327_s2 + $0x970] sm:$0xff]  ;;  %v344_v51 = vld [vmem:[%s11327_s2 + $0x868] sm:$0xff] }
  0x85   :  { %789 = vmatpush.msrb.mxu0 %v251_v55  ;;  %801 = vmatpush.msrb.mxu1 %v275_v56  ;;  %v360_v52 = vld [vmem:[%s11327_s2 + $0x8e8] sm:$0xff]  ;;  %v319_v55 = vld [vmem:[%s11327_s2 + $0x7a0] sm:$0xff] }
  0x86   :  { %821 = vmatpush.msrb.mxu2 %v291_v57  ;;  %841 = vmatpush.msrb.mxu3 %v307_v58  ;;  %v376_v53 = vld [vmem:[%s11327_s2 + $0x968] sm:$0xff]  ;;  %v343_v56 = vld [vmem:[%s11327_s2 + $0x860] sm:$0xff] }
  0x87   :  { %790 = vmatmul.f32.vlgmr.msrb.gmra.mxu0 %v6580_v59  ;;  %802 = vmatpush.msrb.mxu1 %v274_v60  ;;  %v359_v57 = vld [vmem:[%s11327_s2 + $0x8e0] sm:$0xff]  ;;  %v318_v60 = vld [vmem:[%s11327_s2 + $0x798] sm:$0xff] }
  0x88   :  { %854 = vmatpush.msra.mxu0 %v330_v61  ;;  %822 = vmatpush.msrb.mxu2 %v290_v62  ;;  %v375_v58 = vld [vmem:[%s11327_s2 + $0x960] sm:$0xff]  ;;  %v342_v61 = vld [vmem:[%s11327_s2 + $0x858] sm:$0xff] }
  0x89   :  { %842 = vmatpush.msrb.mxu3 %v306_v63  ;;  %803 = vmatpush.msrb.mxu1 %v273_v0  ;;  %v358_v62 = vld [vmem:[%s11327_s2 + $0x8d8] sm:$0xff]  ;;  %v317_v0 = vld [vmem:[%s11327_s2 + $0x790] sm:$0xff] }
  0x8a   :  { %855 = vmatpush.msra.mxu0 %v329_v1  ;;  %823 = vmatpush.msrb.mxu2 %v289_v2  ;;  %v374_v63 = vld [vmem:[%s11327_s2 + $0x958] sm:$0xff]  ;;  %v341_v1 = vld [vmem:[%s11327_s2 + $0x850] sm:$0xff] }
  0x8b   :  { %843 = vmatpush.msrb.mxu3 %v305_v3  ;;  %804 = vmatpush.msrb.mxu1 %v272_v4  ;;  %v357_v2 = vld [vmem:[%s11327_s2 + $0x8d0] sm:$0xff]  ;;  %v316_v4 = vld [vmem:[%s11327_s2 + $0x788] sm:$0xff] }
  0x8c   :  { %856 = vmatpush.msra.mxu0 %v328_v5  ;;  %824 = vmatpush.msrb.mxu2 %v288_v7  ;;  %v373_v3 = vld [vmem:[%s11327_s2 + $0x950] sm:$0xff]  ;;  %v340_v5 = vld [vmem:[%s11327_s2 + $0x848] sm:$0xff] }
  0x8d   :  { %844 = vmatpush.msrb.mxu3 %v304_v9  ;;  %805 = vmatpush.msrb.mxu1 %v271_v11  ;;  %v356_v7 = vld [vmem:[%s11327_s2 + $0x8c8] sm:$0xff]  ;;  %v315_v11 = vld [vmem:[%s11327_s2 + $0x780] sm:$0xff] }
  0x8e   :  { %857 = vmatpush.msra.mxu0 %v327_v12  ;;  %825 = vmatpush.msrb.mxu2 %v287_v14  ;;  %v372_v9 = vld [vmem:[%s11327_s2 + $0x948] sm:$0xff]  ;;  %v339_v12 = vld [vmem:[%s11327_s2 + $0x840] sm:$0xff] }
  0x8f   :  { %845 = vmatpush.msrb.mxu3 %v303_v15  ;;  %806 = vmatpush.msrb.mxu1 %v270_v16  ;;  %v355_v14 = vld [vmem:[%s11327_s2 + $0x8c0] sm:$0xff]  ;;  %v6788_v16 = vperm.slane %v6448_v10, 7  ;;  %v370_v10 = vld [vmem:[%s11327_s2 + $0x938] sm:$0xff] }
  0x90   :  { %858 = vmatpush.msra.mxu0 %v326_v17  ;;  %826 = vmatpush.msrb.mxu2 %v286_v19  ;;  %v371_v15 = vld [vmem:[%s11327_s2 + $0x940] sm:$0xff]  ;;  %v338_v17 = vld [vmem:[%s11327_s2 + $0x838] sm:$0xff] }
  0x91   :  { %846 = vmatpush.msrb.mxu3 %v302_v21  ;;  %807 = vmatpush.msrb.mxu1 %v269_v22  ;;  %v394_v19 = vld [vmem:[%s11327_s2 + $0x9f8] sm:$0xff]  ;;  %v337_v22 = vld [vmem:[%s11327_s2 + $0x830] sm:$0xff] }
  0x92   :  { %859 = vmatpush.msra.mxu0 %v325_v24  ;;  %827 = vmatpush.msrb.mxu2 %v285_v25  ;;  %v354_v21 = vld [vmem:[%s11327_s2 + $0x8b8] sm:$0xff]  ;;  %v393_v24 = vld [vmem:[%s11327_s2 + $0x9f0] sm:$0xff] }
  0x93   :  { %847 = vmatpush.msrb.mxu3 %v301_v27  ;;  %808 = vmatpush.msrb.mxu1 %v268_v28  ;;  %v353_v25 = vld [vmem:[%s11327_s2 + $0x8b0] sm:$0xff]  ;;  %v336_v28 = vld [vmem:[%s11327_s2 + $0x828] sm:$0xff] }
  0x94   :  { %860 = vmatpush.msra.mxu0 %v324_v29  ;;  %828 = vmatpush.msrb.mxu2 %v284_v31  ;;  %v369_v27 = vld [vmem:[%s11327_s2 + $0x930] sm:$0xff]  ;;  %v392_v29 = vld [vmem:[%s11327_s2 + $0x9e8] sm:$0xff] }
  0x95   :  { %848 = vmatpush.msrb.mxu3 %v300_v32  ;;  %809 = vmatpush.msrb.mxu1 %v267_v33  ;;  %v352_v31 = vld [vmem:[%s11327_s2 + $0x8a8] sm:$0xff]  ;;  %v335_v33 = vld [vmem:[%s11327_s2 + $0x820] sm:$0xff] }
  0x96   :  { %861 = vmatpush.msra.mxu0 %v323_v34  ;;  %829 = vmatpush.msrb.mxu2 %v283_v35  ;;  %v368_v32 = vld [vmem:[%s11327_s2 + $0x928] sm:$0xff]  ;;  %v391_v34 = vld [vmem:[%s11327_s2 + $0x9e0] sm:$0xff] }
  0x97   :  { %849 = vmatpush.msrb.mxu3 %v299_v38  ;;  %810 = vmatmul.f32.vlgmr.msrb.gmra.mxu1 %v6677_v37  ;;  %v351_v35 = vld [vmem:[%s11327_s2 + $0x8a0] sm:$0xff] }
  0x98   :  { %830 = vmatmul.f32.vlgmr.msrb.gmra.mxu2 %v6683_v39  ;;  %862 = vmatpush.msra.mxu0 %v322_v41  ;;  %v367_v38 = vld [vmem:[%s11327_s2 + $0x920] sm:$0xff]  ;;  %v334_v41 = vld [vmem:[%s11327_s2 + $0x818] sm:$0xff] }
  0x99   :  { %874 = vmatpush.msra.mxu1 %v346_v42  ;;  %894 = vmatpush.msra.mxu2 %v362_v43  ;;  %v390_v42 = vld [vmem:[%s11327_s2 + $0x9d8] sm:$0xff] }
  0x9a   :  { %914 = vmatpush.msra.mxu3 %v378_v44  ;;  %863 = vmatpush.msra.mxu0 %v321_v47  ;;  %v350_v43 = vld [vmem:[%s11327_s2 + $0x898] sm:$0xff]  ;;  %v333_v47 = vld [vmem:[%s11327_s2 + $0x810] sm:$0xff] }
  0x9b   :  { %850 = vmatmul.f32.vlgmr.msrb.gmra.mxu3 %v6699_v45  ;;  %875 = vmatpush.msra.mxu1 %v345_v48  ;;  %v366_v44 = vld [vmem:[%s11327_s2 + $0x918] sm:$0xff]  ;;  %v389_v48 = vld [vmem:[%s11327_s2 + $0x9d0] sm:$0xff] }
  0x9c   :  { %895 = vmatpush.msra.mxu2 %v361_v49  ;;  %915 = vmatpush.msra.mxu3 %v377_v23  ;;  %v349_v49 = vld [vmem:[%s11327_s2 + $0x890] sm:$0xff] }
  0x9d   :  { %864 = vmatpush.msra.mxu0 %v320_v50  ;;  %876 = vmatpush.msra.mxu1 %v344_v51  ;;  %v365_v23 = vld [vmem:[%s11327_s2 + $0x910] sm:$0xff]  ;;  %v332_v50 = vld [vmem:[%s11327_s2 + $0x808] sm:$0xff] }
  0x9e   :  { %896 = vmatpush.msra.mxu2 %v360_v52  ;;  %916 = vmatpush.msra.mxu3 %v376_v53  ;;  %v6869_v51 = vld [vmem:[%s11328_s7 + $0x10] sm:$0xff]  ;;  %v388_v52 = vld [vmem:[%s11327_s2 + $0x9c8] sm:$0xff] }
  0x9f   :  { %865 = vmatpush.msra.mxu0 %v319_v55  ;;  %877 = vmatpush.msra.mxu1 %v343_v56  ;;  %v348_v53 = vld [vmem:[%s11327_s2 + $0x888] sm:$0xff]  ;;  %v331_v56 = vld [vmem:[%s11327_s2 + $0x800] sm:$0xff] }
  0xa0   :  { %897 = vmatpush.msra.mxu2 %v359_v57  ;;  %917 = vmatpush.msra.mxu3 %v375_v58  ;;  %v364_v55 = vld [vmem:[%s11327_s2 + $0x908] sm:$0xff]  ;;  %v387_v57 = vld [vmem:[%s11327_s2 + $0x9c0] sm:$0xff] }
  0xa1   :  { %866 = vmatpush.msra.mxu0 %v318_v60  ;;  %878 = vmatpush.msra.mxu1 %v342_v61  ;;  %v347_v58 = vld [vmem:[%s11327_s2 + $0x880] sm:$0xff]  ;;  %v6890_v60 = vperm.slane %v6869_v51, 0 }
  0xa2   :  { %898 = vmatpush.msra.mxu2 %v358_v62  ;;  %918 = vmatpush.msra.mxu3 %v374_v63  ;;  %v363_v61 = vld [vmem:[%s11327_s2 + $0x900] sm:$0xff]  ;;  %v6896_v62 = vperm.slane %v6869_v51, 1  ;;  %v386_v63 = vld [vmem:[%s11327_s2 + $0x9b8] sm:$0xff] }
  0xa3   :  { %867 = vmatpush.msra.mxu0 %v317_v0  ;;  %879 = vmatpush.msra.mxu1 %v341_v1  ;;  %v410_v0 = vld [vmem:[%s11327_s2 + $0xa78] sm:$0xff] }
  0xa4   :  { %899 = vmatpush.msra.mxu2 %v357_v2  ;;  %919 = vmatpush.msra.mxu3 %v373_v3  ;;  %v426_v1 = vld [vmem:[%s11327_s2 + $0xaf8] sm:$0xff]  ;;  %v6912_v3 = vperm.slane %v6869_v51, 2 }
  0xa5   :  { %868 = vmatpush.msra.mxu0 %v316_v4  ;;  %880 = vmatpush.msra.mxu1 %v340_v5  ;;  %v442_v2 = vld [vmem:[%s11327_s2 + $0xb78] sm:$0xff]  ;;  %v385_v4 = vld [vmem:[%s11327_s2 + $0x9b0] sm:$0xff] }
  0xa6   :  { %900 = vmatpush.msra.mxu2 %v356_v7  ;;  %920 = vmatpush.msra.mxu3 %v372_v9  ;;  %v409_v5 = vld [vmem:[%s11327_s2 + $0xa70] sm:$0xff] }
  0xa7   :  { %869 = vmatpush.msra.mxu0 %v315_v11  ;;  %881 = vmatpush.msra.mxu1 %v339_v12  ;;  %v425_v7 = vld [vmem:[%s11327_s2 + $0xaf0] sm:$0xff]  ;;  %v384_v11 = vld [vmem:[%s11327_s2 + $0x9a8] sm:$0xff] }
  0xa8   :  { %901 = vmatpush.msra.mxu2 %v355_v14  ;;  %921 = vmatpush.msra.mxu3 %v371_v15  ;;  %v441_v9 = vld [vmem:[%s11327_s2 + $0xb70] sm:$0xff]  ;;  %v408_v12 = vld [vmem:[%s11327_s2 + $0xa68] sm:$0xff] }
  0xa9   :  { %870 = vmatmul.f32.vlgmr.msra.gmra.mxu0 %v6788_v16  ;;  %882 = vmatpush.msra.mxu1 %v338_v17  ;;  %v424_v14 = vld [vmem:[%s11327_s2 + $0xae8] sm:$0xff]  ;;  %v383_v17 = vld [vmem:[%s11327_s2 + $0x9a0] sm:$0xff] }
  0xaa   :  { %934 = vmatpush.msrb.mxu0 %v394_v19  ;;  %902 = vmatpush.msra.mxu2 %v354_v21  ;;  %v440_v15 = vld [vmem:[%s11327_s2 + $0xb68] sm:$0xff]  ;;  %v407_v19 = vld [vmem:[%s11327_s2 + $0xa60] sm:$0xff] }
  0xab   :  { %922 = vmatpush.msra.mxu3 %v370_v10  ;;  %883 = vmatpush.msra.mxu1 %v337_v22  ;;  %v423_v21 = vld [vmem:[%s11327_s2 + $0xae0] sm:$0xff]  ;;  %v382_v22 = vld [vmem:[%s11327_s2 + $0x998] sm:$0xff] }
  0xac   :  { %935 = vmatpush.msrb.mxu0 %v393_v24  ;;  %903 = vmatpush.msra.mxu2 %v353_v25  ;;  %v439_v10 = vld [vmem:[%s11327_s2 + $0xb60] sm:$0xff]  ;;  %v406_v24 = vld [vmem:[%s11327_s2 + $0xa58] sm:$0xff] }
  0xad   :  { %923 = vmatpush.msra.mxu3 %v369_v27  ;;  %884 = vmatpush.msra.mxu1 %v336_v28  ;;  %v422_v25 = vld [vmem:[%s11327_s2 + $0xad8] sm:$0xff]  ;;  %v381_v28 = vld [vmem:[%s11327_s2 + $0x990] sm:$0xff] }
  0xae   :  { %936 = vmatpush.msrb.mxu0 %v392_v29  ;;  %904 = vmatpush.msra.mxu2 %v352_v31  ;;  %v438_v27 = vld [vmem:[%s11327_s2 + $0xb58] sm:$0xff]  ;;  %v405_v29 = vld [vmem:[%s11327_s2 + $0xa50] sm:$0xff] }
  0xaf   :  { %924 = vmatpush.msra.mxu3 %v368_v32  ;;  %885 = vmatpush.msra.mxu1 %v335_v33  ;;  %v421_v31 = vld [vmem:[%s11327_s2 + $0xad0] sm:$0xff]  ;;  %v380_v33 = vld [vmem:[%s11327_s2 + $0x988] sm:$0xff] }
  0xb0   :  { %937 = vmatpush.msrb.mxu0 %v391_v34  ;;  %905 = vmatpush.msra.mxu2 %v351_v35  ;;  %v437_v32 = vld [vmem:[%s11327_s2 + $0xb50] sm:$0xff]  ;;  %v404_v34 = vld [vmem:[%s11327_s2 + $0xa48] sm:$0xff] }
  0xb1   :  { %925 = vmatpush.msra.mxu3 %v367_v38  ;;  %886 = vmatpush.msra.mxu1 %v334_v41  ;;  %v420_v35 = vld [vmem:[%s11327_s2 + $0xac8] sm:$0xff]  ;;  %v379_v41 = vld [vmem:[%s11327_s2 + $0x980] sm:$0xff] }
  0xb2   :  { %938 = vmatpush.msrb.mxu0 %v390_v42  ;;  %906 = vmatpush.msra.mxu2 %v350_v43  ;;  %v436_v38 = vld [vmem:[%s11327_s2 + $0xb48] sm:$0xff]  ;;  %v403_v42 = vld [vmem:[%s11327_s2 + $0xa40] sm:$0xff] }
  0xb3   :  { %926 = vmatpush.msra.mxu3 %v366_v44  ;;  %887 = vmatpush.msra.mxu1 %v333_v47  ;;  %v419_v43 = vld [vmem:[%s11327_s2 + $0xac0] sm:$0xff]  ;;  %v7001_v47 = vperm.slane %v6869_v51, 3 }
  0xb4   :  { %939 = vmatpush.msrb.mxu0 %v389_v48  ;;  %907 = vmatpush.msra.mxu2 %v349_v49  ;;  %v435_v44 = vld [vmem:[%s11327_s2 + $0xb40] sm:$0xff]  ;;  %v402_v48 = vld [vmem:[%s11327_s2 + $0xa38] sm:$0xff] }
  0xb5   :  { %927 = vmatpush.msra.mxu3 %v365_v23  ;;  %888 = vmatpush.msra.mxu1 %v332_v50  ;;  %v458_v49 = vld [vmem:[%s11327_s2 + $0xbf8] sm:$0xff] }
  0xb6   :  { %940 = vmatpush.msrb.mxu0 %v388_v52  ;;  %908 = vmatpush.msra.mxu2 %v348_v53  ;;  %v418_v23 = vld [vmem:[%s11327_s2 + $0xab8] sm:$0xff]  ;;  %v401_v52 = vld [vmem:[%s11327_s2 + $0xa30] sm:$0xff] }
  0xb7   :  { %928 = vmatpush.msra.mxu3 %v364_v55  ;;  %889 = vmatpush.msra.mxu1 %v331_v56  ;;  %v434_v50 = vld [vmem:[%s11327_s2 + $0xb38] sm:$0xff]  ;;  %v457_v53 = vld [vmem:[%s11327_s2 + $0xbf0] sm:$0xff] }
  0xb8   :  { %941 = vmatpush.msrb.mxu0 %v387_v57  ;;  %909 = vmatpush.msra.mxu2 %v347_v58  ;;  %v417_v55 = vld [vmem:[%s11327_s2 + $0xab0] sm:$0xff]  ;;  %v400_v57 = vld [vmem:[%s11327_s2 + $0xa28] sm:$0xff] }
  0xb9   :  { %929 = vmatpush.msra.mxu3 %v363_v61  ;;  %890 = vmatmul.f32.vlgmr.msra.gmra.mxu1 %v6890_v60  ;;  %v433_v56 = vld [vmem:[%s11327_s2 + $0xb30] sm:$0xff]  ;;  %v456_v58 = vld [vmem:[%s11327_s2 + $0xbe8] sm:$0xff] }
  0xba   :  { %910 = vmatmul.f32.vlgmr.msra.gmra.mxu2 %v6896_v62  ;;  %942 = vmatpush.msrb.mxu0 %v386_v63  ;;  %v416_v61 = vld [vmem:[%s11327_s2 + $0xaa8] sm:$0xff] }
  0xbb   :  { %954 = vmatpush.msrb.mxu1 %v410_v0  ;;  %974 = vmatpush.msrb.mxu2 %v426_v1  ;;  %v432_v63 = vld [vmem:[%s11327_s2 + $0xb28] sm:$0xff]  ;;  %v399_v0 = vld [vmem:[%s11327_s2 + $0xa20] sm:$0xff] }
  0xbc   :  { %994 = vmatpush.msrb.mxu3 %v442_v2  ;;  %943 = vmatpush.msrb.mxu0 %v385_v4  ;;  %v455_v1 = vld [vmem:[%s11327_s2 + $0xbe0] sm:$0xff] }
  0xbd   :  { %930 = vmatmul.f32.vlgmr.msra.gmra.mxu3 %v6912_v3  ;;  %955 = vmatpush.msrb.mxu1 %v409_v5  ;;  %v415_v2 = vld [vmem:[%s11327_s2 + $0xaa0] sm:$0xff]  ;;  %v398_v5 = vld [vmem:[%s11327_s2 + $0xa18] sm:$0xff] }
  0xbe   :  { %975 = vmatpush.msrb.mxu2 %v425_v7  ;;  %995 = vmatpush.msrb.mxu3 %v441_v9  ;;  %v431_v4 = vld [vmem:[%s11327_s2 + $0xb20] sm:$0xff]  ;;  %v454_v7 = vld [vmem:[%s11327_s2 + $0xbd8] sm:$0xff] }
  0xbf   :  { %944 = vmatpush.msrb.mxu0 %v384_v11  ;;  %956 = vmatpush.msrb.mxu1 %v408_v12  ;;  %v414_v9 = vld [vmem:[%s11327_s2 + $0xa98] sm:$0xff]  ;;  %v397_v12 = vld [vmem:[%s11327_s2 + $0xa10] sm:$0xff] }
  0xc0   :  { %976 = vmatpush.msrb.mxu2 %v424_v14  ;;  %996 = vmatpush.msrb.mxu3 %v440_v15  ;;  %v430_v11 = vld [vmem:[%s11327_s2 + $0xb18] sm:$0xff]  ;;  %v453_v14 = vld [vmem:[%s11327_s2 + $0xbd0] sm:$0xff] }
  0xc1   :  { %945 = vmatpush.msrb.mxu0 %v383_v17  ;;  %957 = vmatpush.msrb.mxu1 %v407_v19  ;;  %v413_v15 = vld [vmem:[%s11327_s2 + $0xa90] sm:$0xff]  ;;  %v396_v19 = vld [vmem:[%s11327_s2 + $0xa08] sm:$0xff] }
  0xc2   :  { %977 = vmatpush.msrb.mxu2 %v423_v21  ;;  %997 = vmatpush.msrb.mxu3 %v439_v10  ;;  %v429_v17 = vld [vmem:[%s11327_s2 + $0xb10] sm:$0xff]  ;;  %v452_v21 = vld [vmem:[%s11327_s2 + $0xbc8] sm:$0xff] }
  0xc3   :  { %946 = vmatpush.msrb.mxu0 %v382_v22  ;;  %958 = vmatpush.msrb.mxu1 %v406_v24  ;;  %v412_v10 = vld [vmem:[%s11327_s2 + $0xa88] sm:$0xff]  ;;  %v395_v24 = vld [vmem:[%s11327_s2 + $0xa00] sm:$0xff] }
  0xc4   :  { %978 = vmatpush.msrb.mxu2 %v422_v25  ;;  %998 = vmatpush.msrb.mxu3 %v438_v27  ;;  %v428_v22 = vld [vmem:[%s11327_s2 + $0xb08] sm:$0xff]  ;;  %v451_v25 = vld [vmem:[%s11327_s2 + $0xbc0] sm:$0xff] }
  0xc5   :  { %947 = vmatpush.msrb.mxu0 %v381_v28  ;;  %959 = vmatpush.msrb.mxu1 %v405_v29  ;;  %v411_v27 = vld [vmem:[%s11327_s2 + $0xa80] sm:$0xff]  ;;  %v7098_v28 = vperm.slane %v6869_v51, 4 }
  0xc6   :  { %979 = vmatpush.msrb.mxu2 %v421_v31  ;;  %999 = vmatpush.msrb.mxu3 %v437_v32  ;;  %v427_v29 = vld [vmem:[%s11327_s2 + $0xb00] sm:$0xff]  ;;  %v7104_v31 = vperm.slane %v6869_v51, 5  ;;  %v450_v32 = vld [vmem:[%s11327_s2 + $0xbb8] sm:$0xff] }
  0xc7   :  { %948 = vmatpush.msrb.mxu0 %v380_v33  ;;  %960 = vmatpush.msrb.mxu1 %v404_v34  ;;  %v466_v33 = vld [vmem:[%s11327_s2 + $0xc38] sm:$0xff] }
  0xc8   :  { %980 = vmatpush.msrb.mxu2 %v420_v35  ;;  %1000 = vmatpush.msrb.mxu3 %v436_v38  ;;  %v4759_v34 = vld [vmem:[%s11326_s5 + $0x78] sm:$0xff]  ;;  %v7120_v38 = vperm.slane %v6869_v51, 6 }
  0xc9   :  { %949 = vmatpush.msrb.mxu0 %v379_v41  ;;  %961 = vmatpush.msrb.mxu1 %v403_v42  ;;  %v4375_v35 = vld [vmem:[%s11327_s2 + $0xcb8] sm:$0xff]  ;;  %v449_v41 = vld [vmem:[%s11327_s2 + $0xbb0] sm:$0xff] }
  0xca   :  { %981 = vmatpush.msrb.mxu2 %v419_v43  ;;  %1001 = vmatpush.msrb.mxu3 %v435_v44  ;;  %v465_v42 = vld [vmem:[%s11327_s2 + $0xc30] sm:$0xff] }
  0xcb   :  { %950 = vmatmul.f32.vlgmr.msrb.gmra.mxu0 %v7001_v47  ;;  %962 = vmatpush.msrb.mxu1 %v402_v48  ;;  %v4758_v43 = vld [vmem:[%s11326_s5 + $0x70] sm:$0xff]  ;;  %v448_v48 = vld [vmem:[%s11327_s2 + $0xba8] sm:$0xff] }
  0xcc   :  { %1014 = vmatpush.msra.mxu0 %v458_v49  ;;  %982 = vmatpush.msrb.mxu2 %v418_v23  ;;  %v4374_v44 = vld [vmem:[%s11327_s2 + $0xcb0] sm:$0xff]  ;;  %v464_v49 = vld [vmem:[%s11327_s2 + $0xc28] sm:$0xff] }
  0xcd   :  { %1002 = vmatpush.msrb.mxu3 %v434_v50  ;;  %963 = vmatpush.msrb.mxu1 %v401_v52  ;;  %v4757_v23 = vld [vmem:[%s11326_s5 + $0x68] sm:$0xff]  ;;  %v447_v52 = vld [vmem:[%s11327_s2 + $0xba0] sm:$0xff] }
  0xce   :  { %1015 = vmatpush.msra.mxu0 %v457_v53  ;;  %983 = vmatpush.msrb.mxu2 %v417_v55  ;;  %v4373_v50 = vld [vmem:[%s11327_s2 + $0xca8] sm:$0xff]  ;;  %v463_v53 = vld [vmem:[%s11327_s2 + $0xc20] sm:$0xff] }
  0xcf   :  { %1003 = vmatpush.msrb.mxu3 %v433_v56  ;;  %964 = vmatpush.msrb.mxu1 %v400_v57  ;;  %v4756_v55 = vld [vmem:[%s11326_s5 + $0x60] sm:$0xff]  ;;  %v446_v57 = vld [vmem:[%s11327_s2 + $0xb98] sm:$0xff] }
  0xd0   :  { %1016 = vmatpush.msra.mxu0 %v456_v58  ;;  %984 = vmatpush.msrb.mxu2 %v416_v61  ;;  %v4372_v56 = vld [vmem:[%s11327_s2 + $0xca0] sm:$0xff]  ;;  %v462_v58 = vld [vmem:[%s11327_s2 + $0xc18] sm:$0xff] }
  0xd1   :  { %1004 = vmatpush.msrb.mxu3 %v432_v63  ;;  %965 = vmatpush.msrb.mxu1 %v399_v0  ;;  %v4755_v61 = vld [vmem:[%s11326_s5 + $0x58] sm:$0xff]  ;;  %v445_v0 = vld [vmem:[%s11327_s2 + $0xb90] sm:$0xff] }
  0xd2   :  { %1017 = vmatpush.msra.mxu0 %v455_v1  ;;  %985 = vmatpush.msrb.mxu2 %v415_v2  ;;  %v4371_v63 = vld [vmem:[%s11327_s2 + $0xc98] sm:$0xff]  ;;  %v461_v1 = vld [vmem:[%s11327_s2 + $0xc10] sm:$0xff] }
  0xd3   :  { %1005 = vmatpush.msrb.mxu3 %v431_v4  ;;  %966 = vmatpush.msrb.mxu1 %v398_v5  ;;  %v4754_v2 = vld [vmem:[%s11326_s5 + $0x50] sm:$0xff]  ;;  %v444_v5 = vld [vmem:[%s11327_s2 + $0xb88] sm:$0xff] }
  0xd4   :  { %1018 = vmatpush.msra.mxu0 %v454_v7  ;;  %986 = vmatpush.msrb.mxu2 %v414_v9  ;;  %v4370_v4 = vld [vmem:[%s11327_s2 + $0xc90] sm:$0xff]  ;;  %v460_v7 = vld [vmem:[%s11327_s2 + $0xc08] sm:$0xff] }
  0xd5   :  { %1006 = vmatpush.msrb.mxu3 %v430_v11  ;;  %967 = vmatpush.msrb.mxu1 %v397_v12  ;;  %v4753_v9 = vld [vmem:[%s11326_s5 + $0x48] sm:$0xff]  ;;  %v443_v12 = vld [vmem:[%s11327_s2 + $0xb80] sm:$0xff] }
  0xd6   :  { %1019 = vmatpush.msra.mxu0 %v453_v14  ;;  %987 = vmatpush.msrb.mxu2 %v413_v15  ;;  %v4369_v11 = vld [vmem:[%s11327_s2 + $0xc88] sm:$0xff]  ;;  %v459_v14 = vld [vmem:[%s11327_s2 + $0xc00] sm:$0xff] }
  0xd7   :  { %1007 = vmatpush.msrb.mxu3 %v429_v17  ;;  %968 = vmatpush.msrb.mxu1 %v396_v19  ;;  %v4752_v15 = vld [vmem:[%s11326_s5 + $0x40] sm:$0xff]  ;;  %v7209_v19 = vperm.slane %v6869_v51, 7  ;;  %v5633_v51 = vld [vmem:[%s11328_s7 + $0x18] ss:$0 sm:$0xff] }
  0xd8   :  { %1020 = vmatpush.msra.mxu0 %v452_v21  ;;  %988 = vmatpush.msrb.mxu2 %v412_v10  ;;  %v4368_v17 = vld [vmem:[%s11327_s2 + $0xc80] sm:$0xff]  ;;  %v4407_v21 = vld [vmem:[%s11327_s2 + $0xdb8] sm:$0xff] }
  0xd9   :  { %1008 = vmatpush.msrb.mxu3 %v428_v22  ;;  %969 = vmatpush.msrb.mxu1 %v395_v24  ;;  %v4391_v10 = vld [vmem:[%s11327_s2 + $0xd38] sm:$0xff] }
  0xda   :  { %1021 = vmatpush.msra.mxu0 %v451_v25  ;;  %989 = vmatpush.msrb.mxu2 %v411_v27  ;;  %v4423_v22 = vld [vmem:[%s11327_s2 + $0xe38] sm:$0xff]  ;;  %v4390_v25 = vld [vmem:[%s11327_s2 + $0xd30] sm:$0xff] }
  0xdb   :  { %1009 = vmatpush.msrb.mxu3 %v427_v29  ;;  %970 = vmatmul.f32.vlgmr.msrb.gmra.mxu1 %v7098_v28  ;;  %v4367_v24 = vld [vmem:[%s11327_s2 + $0xc78] sm:$0xff]  ;;  %v4406_v27 = vld [vmem:[%s11327_s2 + $0xdb0] sm:$0xff] }
  0xdc   :  { %990 = vmatmul.f32.vlgmr.msrb.gmra.mxu2 %v7104_v31  ;;  %1022 = vmatpush.msra.mxu0 %v450_v32  ;;  %v4422_v29 = vld [vmem:[%s11327_s2 + $0xe30] sm:$0xff] }
  0xdd   :  { %1042 = vmatpush.msra.mxu1 %v466_v33  ;;  %1485 = vmatpush.msra.mxu2 %v4759_v34  ;;  %v4366_v32 = vld [vmem:[%s11327_s2 + $0xc70] sm:$0xff]  ;;  %v4389_v33 = vld [vmem:[%s11327_s2 + $0xd28] sm:$0xff] }
  0xde   :  { %1497 = vmatpush.msra.mxu3 %v4375_v35  ;;  %1023 = vmatpush.msra.mxu0 %v449_v41  ;;  %v4405_v34 = vld [vmem:[%s11327_s2 + $0xda8] sm:$0xff] }
  0xdf   :  { %1010 = vmatmul.f32.vlgmr.msrb.gmra.mxu3 %v7120_v38  ;;  %1043 = vmatpush.msra.mxu1 %v465_v42  ;;  %v4421_v35 = vld [vmem:[%s11327_s2 + $0xe28] sm:$0xff]  ;;  %v4388_v42 = vld [vmem:[%s11327_s2 + $0xd20] sm:$0xff] }
  0xe0   :  { %1486 = vmatpush.msra.mxu2 %v4758_v43  ;;  %1498 = vmatpush.msra.mxu3 %v4374_v44  ;;  %v4365_v41 = vld [vmem:[%s11327_s2 + $0xc68] sm:$0xff]  ;;  %v4404_v43 = vld [vmem:[%s11327_s2 + $0xda0] sm:$0xff] }
  0xe1   :  { %1024 = vmatpush.msra.mxu0 %v448_v48  ;;  %1044 = vmatpush.msra.mxu1 %v464_v49  ;;  %v4420_v44 = vld [vmem:[%s11327_s2 + $0xe20] sm:$0xff]  ;;  %v4387_v49 = vld [vmem:[%s11327_s2 + $0xd18] sm:$0xff] }
  0xe2   :  { %1487 = vmatpush.msra.mxu2 %v4757_v23  ;;  %1499 = vmatpush.msra.mxu3 %v4373_v50  ;;  %v4364_v48 = vld [vmem:[%s11327_s2 + $0xc60] sm:$0xff]  ;;  %v4403_v23 = vld [vmem:[%s11327_s2 + $0xd98] sm:$0xff] }
  0xe3   :  { %1025 = vmatpush.msra.mxu0 %v447_v52  ;;  %1045 = vmatpush.msra.mxu1 %v463_v53  ;;  %v4419_v50 = vld [vmem:[%s11327_s2 + $0xe18] sm:$0xff]  ;;  %v4386_v53 = vld [vmem:[%s11327_s2 + $0xd10] sm:$0xff] }
  0xe4   :  { %1488 = vmatpush.msra.mxu2 %v4756_v55  ;;  %1500 = vmatpush.msra.mxu3 %v4372_v56  ;;  %v4363_v52 = vld [vmem:[%s11327_s2 + $0xc58] sm:$0xff]  ;;  %v4402_v55 = vld [vmem:[%s11327_s2 + $0xd90] sm:$0xff] }
  0xe5   :  { %1026 = vmatpush.msra.mxu0 %v446_v57  ;;  %1046 = vmatpush.msra.mxu1 %v462_v58  ;;  %v4418_v56 = vld [vmem:[%s11327_s2 + $0xe10] sm:$0xff]  ;;  %v4385_v58 = vld [vmem:[%s11327_s2 + $0xd08] sm:$0xff] }
  0xe6   :  { %1489 = vmatpush.msra.mxu2 %v4755_v61  ;;  %1501 = vmatpush.msra.mxu3 %v4371_v63  ;;  %v4362_v57 = vld [vmem:[%s11327_s2 + $0xc50] sm:$0xff]  ;;  %v4401_v61 = vld [vmem:[%s11327_s2 + $0xd88] sm:$0xff] }
  0xe7   :  { %1027 = vmatpush.msra.mxu0 %v445_v0  ;;  %1047 = vmatpush.msra.mxu1 %v461_v1  ;;  %v4417_v63 = vld [vmem:[%s11327_s2 + $0xe08] sm:$0xff]  ;;  %v4384_v1 = vld [vmem:[%s11327_s2 + $0xd00] sm:$0xff] }
  0xe8   :  { %1490 = vmatpush.msra.mxu2 %v4754_v2  ;;  %1502 = vmatpush.msra.mxu3 %v4370_v4  ;;  %v4361_v0 = vld [vmem:[%s11327_s2 + $0xc48] sm:$0xff]  ;;  %v4400_v2 = vld [vmem:[%s11327_s2 + $0xd80] sm:$0xff] }
  0xe9   :  { %1028 = vmatpush.msra.mxu0 %v444_v5  ;;  %1048 = vmatpush.msra.mxu1 %v460_v7  ;;  %v4416_v4 = vld [vmem:[%s11327_s2 + $0xe00] sm:$0xff]  ;;  %v4383_v7 = vld [vmem:[%s11327_s2 + $0xcf8] sm:$0xff] }
  0xea   :  { %1491 = vmatpush.msra.mxu2 %v4753_v9  ;;  %1503 = vmatpush.msra.mxu3 %v4369_v11  ;;  %v4360_v5 = vld [vmem:[%s11327_s2 + $0xc40] sm:$0xff]  ;;  %v4399_v9 = vld [vmem:[%s11327_s2 + $0xd78] sm:$0xff] }
  0xeb   :  { %1029 = vmatpush.msra.mxu0 %v443_v12  ;;  %1049 = vmatpush.msra.mxu1 %v459_v14  ;;  %v4415_v11 = vld [vmem:[%s11327_s2 + $0xdf8] sm:$0xff]  ;;  %v4382_v14 = vld [vmem:[%s11327_s2 + $0xcf0] sm:$0xff] }
  0xec   :  { %1492 = vmatpush.msra.mxu2 %v4752_v15  ;;  %1504 = vmatpush.msra.mxu3 %v4368_v17  ;;  %v4439_v12 = vld [vmem:[%s11327_s2 + $0xeb8] sm:$0xff]  ;;  %v4398_v15 = vld [vmem:[%s11327_s2 + $0xd70] sm:$0xff] }
  0xed   :  { %1030 = vmatmul.f32.vlgmr.msra.gmra.mxu0 %v7209_v19  ;;  %1537 = vmatpush.msrb.mxu1 %v4407_v21  ;;  %v4414_v17 = vld [vmem:[%s11327_s2 + $0xdf0] sm:$0xff] }
  0xee   :  { %1517 = vmatpush.msrb.mxu0 %v4391_v10  ;;  %1557 = vmatpush.msrb.mxu2 %v4423_v22  ;;  %v4438_v21 = vld [vmem:[%s11327_s2 + $0xeb0] sm:$0xff]  ;;  %v4381_v10 = vld [vmem:[%s11327_s2 + $0xce8] sm:$0xff] }
  0xef   :  { %1505 = vmatpush.msra.mxu3 %v4367_v24  ;;  %4359 = vmatmul.msk.f32.vlgmr.msra.gmra.mxu1 %vm475_vm0, %v5633_v51  ;;  %v4397_v22 = vld [vmem:[%s11327_s2 + $0xd68] sm:$0xff] }
  0xf0   :  { %1518 = vmatpush.msrb.mxu0 %v4390_v25  ;;  %1538 = vmatpush.msrb.mxu1 %v4406_v27  ;;  %v4413_v51 = vld [vmem:[%s11327_s2 + $0xde8] sm:$0xff]  ;;  %v4380_v25 = vld [vmem:[%s11327_s2 + $0xce0] sm:$0xff] }
  0xf1   :  { %1558 = vmatpush.msrb.mxu2 %v4422_v29  ;;  %1506 = vmatpush.msra.mxu3 %v4366_v32  ;;  %v4437_v24 = vld [vmem:[%s11327_s2 + $0xea8] sm:$0xff]  ;;  %v4396_v27 = vld [vmem:[%s11327_s2 + $0xd60] sm:$0xff] }
  0xf2   :  { %1519 = vmatpush.msrb.mxu0 %v4389_v33  ;;  %1539 = vmatpush.msrb.mxu1 %v4405_v34  ;;  %v4412_v29 = vld [vmem:[%s11327_s2 + $0xde0] sm:$0xff]  ;;  %v4379_v33 = vld [vmem:[%s11327_s2 + $0xcd8] sm:$0xff] }
  0xf3   :  { %1559 = vmatpush.msrb.mxu2 %v4421_v35  ;;  %1507 = vmatpush.msra.mxu3 %v4365_v41  ;;  %v4436_v32 = vld [vmem:[%s11327_s2 + $0xea0] sm:$0xff]  ;;  %v4395_v34 = vld [vmem:[%s11327_s2 + $0xd58] sm:$0xff] }
  0xf4   :  { %1520 = vmatpush.msrb.mxu0 %v4388_v42  ;;  %1540 = vmatpush.msrb.mxu1 %v4404_v43  ;;  %v4411_v35 = vld [vmem:[%s11327_s2 + $0xdd8] sm:$0xff]  ;;  %v4378_v42 = vld [vmem:[%s11327_s2 + $0xcd0] sm:$0xff] }
  0xf5   :  { %1560 = vmatpush.msrb.mxu2 %v4420_v44  ;;  %1508 = vmatpush.msra.mxu3 %v4364_v48  ;;  %v4435_v41 = vld [vmem:[%s11327_s2 + $0xe98] sm:$0xff]  ;;  %v4394_v43 = vld [vmem:[%s11327_s2 + $0xd50] sm:$0xff] }
  0xf6   :  { %1521 = vmatpush.msrb.mxu0 %v4387_v49  ;;  %1541 = vmatpush.msrb.mxu1 %v4403_v23  ;;  %v4410_v44 = vld [vmem:[%s11327_s2 + $0xdd0] sm:$0xff]  ;;  %v4377_v49 = vld [vmem:[%s11327_s2 + $0xcc8] sm:$0xff] }
  0xf7   :  { %1561 = vmatpush.msrb.mxu2 %v4419_v50  ;;  %1509 = vmatpush.msra.mxu3 %v4363_v52  ;;  %v4434_v48 = vld [vmem:[%s11327_s2 + $0xe90] sm:$0xff]  ;;  %v4393_v23 = vld [vmem:[%s11327_s2 + $0xd48] sm:$0xff] }
  0xf8   :  { %1522 = vmatpush.msrb.mxu0 %v4386_v53  ;;  %1542 = vmatpush.msrb.mxu1 %v4402_v55  ;;  %v4409_v50 = vld [vmem:[%s11327_s2 + $0xdc8] sm:$0xff]  ;;  %v4376_v53 = vld [vmem:[%s11327_s2 + $0xcc0] sm:$0xff] }
  0xf9   :  { %1562 = vmatpush.msrb.mxu2 %v4418_v56  ;;  %1510 = vmatpush.msra.mxu3 %v4362_v57  ;;  %v4433_v52 = vld [vmem:[%s11327_s2 + $0xe88] sm:$0xff]  ;;  %v4392_v55 = vld [vmem:[%s11327_s2 + $0xd40] sm:$0xff] }
  0xfa   :  { %1523 = vmatpush.msrb.mxu0 %v4385_v58  ;;  %1543 = vmatpush.msrb.mxu1 %v4401_v61  ;;  %v4408_v56 = vld [vmem:[%s11327_s2 + $0xdc0] sm:$0xff]  ;;  %v4455_v58 = vld [vmem:[%s11327_s2 + $0xf38] sm:$0xff] }
  0xfb   :  { %1563 = vmatpush.msrb.mxu2 %v4417_v63  ;;  %1511 = vmatpush.msra.mxu3 %v4361_v0  ;;  %v4432_v57 = vld [vmem:[%s11327_s2 + $0xe80] sm:$0xff]  ;;  %v4471_v63 = vld [vmem:[%s11327_s2 + $0xfb8] sm:$0xff] }
  0xfc   :  { %1524 = vmatpush.msrb.mxu0 %v4384_v1  ;;  %1544 = vmatpush.msrb.mxu1 %v4400_v2  ;;  %v5666_v61 = vld [vmem:[%s11329_s1] sm:$0x1]  ;;  %v4487_v0 = vld [vmem:[%s11327_s2 + $0x1038] sm:$0xff]  ;;  %v4454_v2 = vld [vmem:[%s11327_s2 + $0xf30] sm:$0xff] }
  0xfd   :  { %1564 = vmatpush.msrb.mxu2 %v4416_v4  ;;  %1512 = vmatpush.msra.mxu3 %v4360_v5  ;;  %v4431_v1 = vld [vmem:[%s11327_s2 + $0xe78] sm:$0xff]  ;;  %v4470_v4 = vld [vmem:[%s11327_s2 + $0xfb0] sm:$0xff] }
  0xfe   :  { %1525 = vmatpush.msrb.mxu0 %v4383_v7  ;;  %1545 = vmatpush.msrb.mxu1 %v4399_v9  ;;  %v4486_v5 = vld [vmem:[%s11327_s2 + $0x1030] sm:$0xff]  ;;  %v4453_v9 = vld [vmem:[%s11327_s2 + $0xf28] sm:$0xff] }
  0xff   :  { %1565 = vmatpush.msrb.mxu2 %v4415_v11  ;;  %1577 = vmatpush.msrb.mxu3 %v4439_v12  ;;  %v4430_v7 = vld [vmem:[%s11327_s2 + $0xe70] sm:$0xff]  ;;  %v4469_v11 = vld [vmem:[%s11327_s2 + $0xfa8] sm:$0xff] }
 0x100   :  { %1526 = vmatpush.msrb.mxu0 %v4382_v14  ;;  %1546 = vmatpush.msrb.mxu1 %v4398_v15  ;;  %v4485_v12 = vld [vmem:[%s11327_s2 + $0x1028] sm:$0xff]  ;;  %v571_v15 = vpop.f32.mrf.mxu1 }
 0x101   :  { %1566 = vmatpush.msrb.mxu2 %v4414_v17  ;;  %1578 = vmatpush.msrb.mxu3 %v4438_v21  ;;  %v4429_v14 = vld [vmem:[%s11327_s2 + $0xe68] sm:$0xff]  ;;  %v4452_v17 = vld [vmem:[%s11327_s2 + $0xf20] sm:$0xff] }
 0x102   :  { %1527 = vmatpush.msrb.mxu0 %v4381_v10  ;;  %1547 = vmatpush.msrb.mxu1 %v4397_v22  ;;  %v4468_v21 = vld [vmem:[%s11327_s2 + $0xfa0] sm:$0xff]  ;;  %v496_v22 = vpop.f32.mrf.mxu0 }
 0x103   :  { %1567 = vmatpush.msrb.mxu2 %v4413_v51  ;;  %1579 = vmatpush.msrb.mxu3 %v4437_v24  ;;  %v4484_v10 = vld [vmem:[%s11327_s2 + $0x1020] sm:$0xff]  ;;  %v572_v24 = vadd.f32 %v571_v15, %v496_v22  ;;  %v4461_v15 = vld [vmem:[%s11327_s2 + $0xf68] sm:$0xff] }
 0x104   :  { %1528 = vmatpush.msrb.mxu0 %v4380_v25  ;;  %1548 = vmatpush.msrb.mxu1 %v4396_v27  ;;  %v4428_v51 = vld [vmem:[%s11327_s2 + $0xe60] sm:$0xff]  ;;  %v4451_v25 = vld [vmem:[%s11327_s2 + $0xf18] sm:$0xff] }
 0x105   :  { %1568 = vmatpush.msrb.mxu2 %v4412_v29  ;;  %1580 = vmatpush.msrb.mxu3 %v4436_v32  ;;  %v4467_v27 = vld [vmem:[%s11327_s2 + $0xf98] sm:$0xff]  ;;  %v591_v29 = vpop.f32.mrf.mxu2  ;;  %v4444_v22 = vld [vmem:[%s11327_s2 + $0xee0] sm:$0xff] }
 0x106   :  { %1529 = vmatpush.msrb.mxu0 %v4379_v33  ;;  %1549 = vmatpush.msrb.mxu1 %v4395_v34  ;;  %v4483_v32 = vld [vmem:[%s11327_s2 + $0x1018] sm:$0xff]  ;;  %v4450_v34 = vld [vmem:[%s11327_s2 + $0xf10] sm:$0xff] }
 0x107   :  { %1569 = vmatpush.msrb.mxu2 %v4411_v35  ;;  %1581 = vmatpush.msrb.mxu3 %v4435_v41  ;;  %v4427_v33 = vld [vmem:[%s11327_s2 + $0xe58] sm:$0xff]  ;;  %v4466_v35 = vld [vmem:[%s11327_s2 + $0xf90] sm:$0xff] }
 0x108   :  { %1530 = vmatpush.msrb.mxu0 %v4378_v42  ;;  %1550 = vmatpush.msrb.mxu1 %v4394_v43  ;;  %v4482_v41 = vld [vmem:[%s11327_s2 + $0x1010] sm:$0xff]  ;;  %v592_v42 = vadd.f32 %v591_v29, %v572_v24 }
 0x109   :  { %1570 = vmatpush.msrb.mxu2 %v4410_v44  ;;  %1582 = vmatpush.msrb.mxu3 %v4434_v48  ;;  %v4426_v43 = vld [vmem:[%s11327_s2 + $0xe50] sm:$0xff]  ;;  %v4449_v44 = vld [vmem:[%s11327_s2 + $0xf08] sm:$0xff]  ;;  %v611_v48 = vpop.f32.mrf.mxu3 }
 0x10a   :  { %1531 = vmatpush.msrb.mxu0 %v4377_v49  ;;  %1551 = vmatpush.msrb.mxu1 %v4393_v23  ;;  %v4465_v49 = vld [vmem:[%s11327_s2 + $0xf88] sm:$0xff] }
 0x10b   :  { %1571 = vmatpush.msrb.mxu2 %v4409_v50  ;;  %1583 = vmatpush.msrb.mxu3 %v4433_v52  ;;  %v4481_v23 = vld [vmem:[%s11327_s2 + $0x1008] sm:$0xff]  ;;  %v4448_v52 = vld [vmem:[%s11327_s2 + $0xf00] sm:$0xff] }
 0x10c   :  { %4760 = vmatmul.msk.f32.vlgmr.msra.gmra.mxu2 %vm475_vm0, %v5666_v61  ;;  %1532 = vmatpush.msrb.mxu0 %v4376_v53  ;;  %v4425_v50 = vld [vmem:[%s11327_s2 + $0xe48] sm:$0xff]  ;;  %v4464_v53 = vld [vmem:[%s11327_s2 + $0xf80] sm:$0xff]  ;;  %v631_v61 = vpop.f32.mrf.mxu0 }
 0x10d   :  { %1552 = vmatpush.msrb.mxu1 %v4392_v55  ;;  %1572 = vmatpush.msrb.mxu2 %v4408_v56  ;;  %v4480_v55 = vld [vmem:[%s11327_s2 + $0x1000] sm:$0xff]  ;;  %v612_v56 = vadd.f32 %v611_v48, %v592_v42  ;;  %v4442_v42 = vld [vmem:[%s11327_s2 + $0xed0] sm:$0xff] }
 0x10e   :  { %1584 = vmatpush.msrb.mxu3 %v4432_v57  ;;  %1597 = vmatpush.msra.mxu0 %v4455_v58  ;;  %v4424_v57 = vld [vmem:[%s11327_s2 + $0xe40] sm:$0xff]  ;;  %v4447_v58 = vld [vmem:[%s11327_s2 + $0xef8] sm:$0xff]  ;;  %v4474_v48 = vld [vmem:[%s11327_s2 + $0xfd0] sm:$0xff] }
 0x10f   :  { %1513 = vmatmul.f32.vlgmr.msra.gmra.mxu3 %v6162_v40  ;;  %1617 = vmatpush.msra.mxu1 %v4471_v63  ;;  %v4463_v63 = vld [vmem:[%s11327_s2 + $0xf78] sm:$0xff] }
 0x110   :  { %1637 = vmatpush.msra.mxu2 %v4487_v0  ;;  %1585 = vmatpush.msrb.mxu3 %v4431_v1  ;;  %v4479_v0 = vld [vmem:[%s11327_s2 + $0xff8] sm:$0xff] }
 0x111   :  { %1598 = vmatpush.msra.mxu0 %v4454_v2  ;;  %1618 = vmatpush.msra.mxu1 %v4470_v4  ;;  %v4503_v1 = vld [vmem:[%s11327_s2 + $0x10b8] sm:$0xff]  ;;  %v651_v2 = vpop.f32.mrf.mxu1  ;;  %v4446_v4 = vld [vmem:[%s11327_s2 + $0xef0] sm:$0xff]  ;;  %v691_v29 = vpop.f32.mrf.mxu3 }
 0x112   :  { %1638 = vmatpush.msra.mxu2 %v4486_v5  ;;  %1586 = vmatpush.msrb.mxu3 %v4430_v7  ;;  %v4462_v5 = vld [vmem:[%s11327_s2 + $0xf70] sm:$0xff]  ;;  %v632_v7 = vadd.f32 %v631_v61, %v612_v56  ;;  %v4497_v56 = vld [vmem:[%s11327_s2 + $0x1088] sm:$0xff]  ;;  %v4456_v61 = vld [vmem:[%s11327_s2 + $0xf40] sm:$0xff] }
 0x113   :  { %1599 = vmatpush.msra.mxu0 %v4453_v9  ;;  %1619 = vmatpush.msra.mxu1 %v4469_v11  ;;  %v4478_v9 = vld [vmem:[%s11327_s2 + $0xff0] sm:$0xff] }
 0x114   :  { %1639 = vmatpush.msra.mxu2 %v4485_v12  ;;  %1587 = vmatpush.msrb.mxu3 %v4429_v14  ;;  %v4502_v11 = vld [vmem:[%s11327_s2 + $0x10b0] sm:$0xff]  ;;  %v671_v12 = vpop.f32.mrf.mxu2  ;;  %v4445_v14 = vld [vmem:[%s11327_s2 + $0xee8] sm:$0xff] }
 0x115   :  { %1573 = vmatmul.f32.vlgmr.msrb.gmra.mxu2 %v6207_v54  ;;  %1600 = vmatpush.msra.mxu0 %v4452_v17  ;;  %v652_v17 = vadd.f32 %v651_v2, %v632_v7 }
 0x116   :  { %1620 = vmatpush.msra.mxu1 %v4468_v21  ;;  %1640 = vmatpush.msra.mxu2 %v4484_v10  ;;  %v4477_v21 = vld [vmem:[%s11327_s2 + $0xfe8] sm:$0xff] }
 0x117   :  { %1588 = vmatpush.msrb.mxu3 %v4428_v51  ;;  %1533 = vmatmul.f32.vlgmr.msrb.gmra.mxu0 %v6131_v30  ;;  %v4501_v10 = vld [vmem:[%s11327_s2 + $0x10a8] sm:$0xff]  ;;  %v4460_v51 = vld [vmem:[%s11327_s2 + $0xf60] sm:$0xff]  ;;  %v672_v24 = vadd.f32 %v671_v12, %v652_v17  ;;  %v4518_v12 = vld [vmem:[%s11327_s2 + $0x1130] sm:$0xff] }
 0x118   :  { %1601 = vmatpush.msra.mxu0 %v4451_v25  ;;  %1621 = vmatpush.msra.mxu1 %v4467_v27  ;;  %v4476_v25 = vld [vmem:[%s11327_s2 + $0xfe0] sm:$0xff]  ;;  %v4550_v17 = vld [vmem:[%s11327_s2 + $0x1230] sm:$0xff] }
 0x119   :  { %1641 = vmatpush.msra.mxu2 %v4483_v32  ;;  %1589 = vmatpush.msrb.mxu3 %v4427_v33  ;;  %v4500_v27 = vld [vmem:[%s11327_s2 + $0x10a0] sm:$0xff]  ;;  %v4443_v32 = vld [vmem:[%s11327_s2 + $0xed8] sm:$0xff]  ;;  %v771_v7 = vpop.f32.mrf.mxu3 }
 0x11a   :  { %1553 = vmatmul.f32.vlgmr.msrb.gmra.mxu1 %v6149_v36  ;;  %1602 = vmatpush.msra.mxu0 %v4450_v34  ;;  %v4459_v33 = vld [vmem:[%s11327_s2 + $0xf58] sm:$0xff] }
 0x11b   :  { %1622 = vmatpush.msra.mxu1 %v4466_v35  ;;  %1642 = vmatpush.msra.mxu2 %v4482_v41  ;;  %v4475_v34 = vld [vmem:[%s11327_s2 + $0xfd8] sm:$0xff]  ;;  %v711_v41 = vpop.f32.mrf.mxu0 }
 0x11c   :  { %1590 = vmatpush.msrb.mxu3 %v4426_v43  ;;  %1603 = vmatpush.msra.mxu0 %v4449_v44  ;;  %v4499_v35 = vld [vmem:[%s11327_s2 + $0x1098] sm:$0xff]  ;;  %v4458_v43 = vld [vmem:[%s11327_s2 + $0xf50] sm:$0xff]  ;;  %v692_v44 = vadd.f32 %v691_v29, %v672_v24  ;;  %v4533_v24 = vld [vmem:[%s11327_s2 + $0x11a8] sm:$0xff] }
 0x11d   :  { %1623 = vmatpush.msra.mxu1 %v4465_v49  ;;  %1643 = vmatpush.msra.mxu2 %v4481_v23  ;;  %v4498_v49 = vld [vmem:[%s11327_s2 + $0x1090] sm:$0xff]  ;;  %v731_v23 = vpop.f32.mrf.mxu1  ;;  %v4493_v29 = vld [vmem:[%s11327_s2 + $0x1068] sm:$0xff] }
 0x11e   :  { %1591 = vmatpush.msrb.mxu3 %v4425_v50  ;;  %1604 = vmatpush.msra.mxu0 %v4448_v52  ;;  %v4441_v50 = vld [vmem:[%s11327_s2 + $0xec8] sm:$0xff] }
 0x11f   :  { %1624 = vmatpush.msra.mxu1 %v4464_v53  ;;  %1644 = vmatpush.msra.mxu2 %v4480_v55  ;;  %v4457_v52 = vld [vmem:[%s11327_s2 + $0xf48] sm:$0xff]  ;;  %v712_v53 = vadd.f32 %v711_v41, %v692_v44  ;;  %v4531_v44 = vld [vmem:[%s11327_s2 + $0x1198] sm:$0xff] }
 0x120   :  { %1592 = vmatpush.msrb.mxu3 %v4424_v57  ;;  %1605 = vmatpush.msra.mxu0 %v4447_v58  ;;  %v4473_v55 = vld [vmem:[%s11327_s2 + $0xfc8] sm:$0xff]  ;;  %v751_v57 = vpop.f32.mrf.mxu2  ;;  %v4440_v58 = vld [vmem:[%s11327_s2 + $0xec0] sm:$0xff] }
 0x121   :  { %1593 = vmatmul.f32.vlgmr.msrb.gmra.mxu3 %v6256_v6  ;;  %1625 = vmatpush.msra.mxu1 %v4463_v63  ;;  %v732_v63 = vadd.f32 %v731_v23, %v712_v53  ;;  %v4491_v23 = vld [vmem:[%s11327_s2 + $0x1058] sm:$0xff]  ;;  %v4530_v53 = vld [vmem:[%s11327_s2 + $0x1190] sm:$0xff] }
 0x122   :  { %1645 = vmatpush.msra.mxu2 %v4479_v0  ;;  %1657 = vmatpush.msra.mxu3 %v4503_v1  ;;  %v4472_v0 = vld [vmem:[%s11327_s2 + $0xfc0] sm:$0xff] }
 0x123   :  { %1606 = vmatpush.msra.mxu0 %v4446_v4  ;;  %1626 = vmatpush.msra.mxu1 %v4462_v5  ;;  %v4496_v1 = vld [vmem:[%s11327_s2 + $0x1080] sm:$0xff]  ;;  %v752_v2 = vadd.f32 %v751_v57, %v732_v63  ;;  %v4519_v4 = vld [vmem:[%s11327_s2 + $0x1138] sm:$0xff]  ;;  %v4513_v57 = vld [vmem:[%s11327_s2 + $0x1108] sm:$0xff] }
 0x124   :  { %1646 = vmatpush.msra.mxu2 %v4478_v9  ;;  %1658 = vmatpush.msra.mxu3 %v4502_v11  ;;  %v4535_v5 = vld [vmem:[%s11327_s2 + $0x11b8] sm:$0xff]  ;;  %v4545_v63 = vld [vmem:[%s11327_s2 + $0x1208] sm:$0xff] }
 0x125   :  { %1607 = vmatpush.msra.mxu0 %v4445_v14  ;;  %1627 = vmatpush.msra.mxu1 %v4461_v15  ;;  %v4551_v9 = vld [vmem:[%s11327_s2 + $0x1238] sm:$0xff]  ;;  %v791_v14 = vpop.f32.mrf.mxu0  ;;  %v4534_v15 = vld [vmem:[%s11327_s2 + $0x11b0] sm:$0xff] }
 0x126   :  { %1647 = vmatpush.msra.mxu2 %v4477_v21  ;;  %1659 = vmatpush.msra.mxu3 %v4501_v10  ;;  %v4495_v11 = vld [vmem:[%s11327_s2 + $0x1078] sm:$0xff]  ;;  %v772_v21 = vadd.f32 %v771_v7, %v752_v2  ;;  %v4494_v10 = vld [vmem:[%s11327_s2 + $0x1070] sm:$0xff]  ;;  %v4512_v2 = vld [vmem:[%s11327_s2 + $0x1100] sm:$0xff] }
 0x127   :  { %1608 = vmatpush.msra.mxu0 %v4444_v22  ;;  %1628 = vmatpush.msra.mxu1 %v4460_v51  ;;  %v4517_v22 = vld [vmem:[%s11327_s2 + $0x1128] sm:$0xff]  ;;  %v811_v51 = vpop.f32.mrf.mxu1 }
 0x128   :  { %1648 = vmatpush.msra.mxu2 %v4476_v25  ;;  %1660 = vmatpush.msra.mxu3 %v4500_v27  ;;  %v4549_v25 = vld [vmem:[%s11327_s2 + $0x1228] sm:$0xff]  ;;  %v792_v27 = vadd.f32 %v791_v14, %v772_v21  ;;  %v4527_v14 = vld [vmem:[%s11327_s2 + $0x1178] sm:$0xff] }
 0x129   :  { %1609 = vmatpush.msra.mxu0 %v4443_v32  ;;  %1629 = vmatpush.msra.mxu1 %v4459_v33  ;;  %v4516_v32 = vld [vmem:[%s11327_s2 + $0x1120] sm:$0xff]  ;;  %v831_v33 = vpop.f32.mrf.mxu2  ;;  %v4567_v21 = vld [vmem:[%s11327_s2 + $0x12b8] sm:$0xff] }
 0x12a   :  { %1649 = vmatpush.msra.mxu2 %v4475_v34  ;;  %1661 = vmatpush.msra.mxu3 %v4499_v35  ;;  %v4532_v34 = vld [vmem:[%s11327_s2 + $0x11a0] sm:$0xff]  ;;  %v812_v41 = vadd.f32 %v811_v51, %v792_v27  ;;  %v4526_v51 = vld [vmem:[%s11327_s2 + $0x1170] sm:$0xff] }
 0x12b   :  { %1610 = vmatpush.msra.mxu0 %v4442_v42  ;;  %1630 = vmatpush.msra.mxu1 %v4458_v43  ;;  %v4548_v35 = vld [vmem:[%s11327_s2 + $0x1220] sm:$0xff]  ;;  %v4515_v43 = vld [vmem:[%s11327_s2 + $0x1118] sm:$0xff] }
 0x12c   :  { %1650 = vmatpush.msra.mxu2 %v4474_v48  ;;  %1662 = vmatpush.msra.mxu3 %v4498_v49  ;;  %v4492_v42 = vld [vmem:[%s11327_s2 + $0x1060] sm:$0xff]  ;;  %v4547_v48 = vld [vmem:[%s11327_s2 + $0x1218] sm:$0xff]  ;;  %v832_v49 = vadd.f32 %v831_v33, %v812_v41 }
 0x12d   :  { %1611 = vmatpush.msra.mxu0 %v4441_v50  ;;  %1631 = vmatpush.msra.mxu1 %v4457_v52  ;;  %v4514_v50 = vld [vmem:[%s11327_s2 + $0x1110] sm:$0xff]  ;;  %v851_v52 = vpop.f32.mrf.mxu3  ;;  %v4508_v41 = vld [vmem:[%s11327_s2 + $0x10e0] sm:$0xff] }
 0x12e   :  { %1651 = vmatpush.msra.mxu2 %v4473_v55  ;;  %1663 = vmatpush.msra.mxu3 %v4497_v56  ;;  %v4546_v55 = vld [vmem:[%s11327_s2 + $0x1210] sm:$0xff] }
 0x12f   :  { %1612 = vmatpush.msra.mxu0 %v4440_v58  ;;  %1632 = vmatpush.msra.mxu1 %v4456_v61  ;;  %v4490_v56 = vld [vmem:[%s11327_s2 + $0x1050] sm:$0xff]  ;;  %v871_v58 = vpop.f32.mrf.mxu0  ;;  %v4529_v61 = vld [vmem:[%s11327_s2 + $0x1188] sm:$0xff] }
 0x130   :  { %1652 = vmatpush.msra.mxu2 %v4472_v0  ;;  %1664 = vmatpush.msra.mxu3 %v4496_v1  ;;  %v852_v0 = vadd.f32 %v851_v52, %v832_v49  ;;  %v4489_v1 = vld [vmem:[%s11327_s2 + $0x1048] sm:$0xff]  ;;  %v4507_v49 = vld [vmem:[%s11327_s2 + $0x10d8] sm:$0xff] }
 0x131   :  { %1613 = vmatmul.f32.vlgmr.msra.gmra.mxu0 %v6262_v8  ;;  %1653 = vmatmul.f32.vlgmr.msra.gmra.mxu2 %v6367_v46  ;;  %v4539_v52 = vld [vmem:[%s11327_s2 + $0x11d8] sm:$0xff] }
 0x132   :  { %1677 = vmatpush.msrb.mxu0 %v4519_v4  ;;  %1697 = vmatpush.msrb.mxu1 %v4535_v5  ;;  %v4528_v4 = vld [vmem:[%s11327_s2 + $0x1180] sm:$0xff] }
 0x133   :  { %1717 = vmatpush.msrb.mxu2 %v4551_v9  ;;  %1665 = vmatpush.msra.mxu3 %v4495_v11  ;;  %v4544_v5 = vld [vmem:[%s11327_s2 + $0x1200] sm:$0xff]  ;;  %v872_v9 = vadd.f32 %v871_v58, %v852_v0  ;;  %v4538_v58 = vld [vmem:[%s11327_s2 + $0x11d0] sm:$0xff]  ;;  %v4521_v0 = vld [vmem:[%s11327_s2 + $0x1148] sm:$0xff] }
 0x134   :  { %1633 = vmatmul.f32.vlgmr.msra.gmra.mxu1 %v6278_v13  ;;  %1678 = vmatpush.msrb.mxu0 %v4518_v12  ;;  %v4488_v11 = vld [vmem:[%s11327_s2 + $0x1040] sm:$0xff]  ;;  %v4511_v12 = vld [vmem:[%s11327_s2 + $0x10f8] sm:$0xff] }
 0x135   :  { %1698 = vmatpush.msrb.mxu1 %v4534_v15  ;;  %1718 = vmatpush.msrb.mxu2 %v4550_v17  ;;  %v4543_v17 = vld [vmem:[%s11327_s2 + $0x11f8] sm:$0xff] }
 0x136   :  { %1666 = vmatpush.msra.mxu3 %v4494_v10  ;;  %1679 = vmatpush.msrb.mxu0 %v4517_v22  ;;  %v891_v7 = vpop.f32.mrf.mxu1  ;;  %v4510_v22 = vld [vmem:[%s11327_s2 + $0x10f0] sm:$0xff] }
 0x137   :  { %1699 = vmatpush.msrb.mxu1 %v4533_v24  ;;  %1719 = vmatpush.msrb.mxu2 %v4549_v25  ;;  %v892_v10 = vadd.f32 %v891_v7, %v872_v9  ;;  %v4542_v24 = vld [vmem:[%s11327_s2 + $0x11f0] sm:$0xff]  ;;  %v4536_v7 = vld [vmem:[%s11327_s2 + $0x11c0] sm:$0xff] }
 0x138   :  { %1667 = vmatpush.msra.mxu3 %v4493_v29  ;;  %1680 = vmatpush.msrb.mxu0 %v4516_v32  ;;  %v4566_v25 = vld [vmem:[%s11327_s2 + $0x12b0] sm:$0xff]  ;;  %v4509_v29 = vld [vmem:[%s11327_s2 + $0x10e8] sm:$0xff]  ;;  %v4560_v9 = vld [vmem:[%s11327_s2 + $0x1280] sm:$0xff] }
 0x139   :  { %1700 = vmatpush.msrb.mxu1 %v4532_v34  ;;  %1720 = vmatpush.msrb.mxu2 %v4548_v35  ;;  %v4525_v32 = vld [vmem:[%s11327_s2 + $0x1168] sm:$0xff] }
 0x13a   :  { %1668 = vmatpush.msra.mxu3 %v4492_v42  ;;  %1681 = vmatpush.msrb.mxu0 %v4515_v43  ;;  %v4541_v34 = vld [vmem:[%s11327_s2 + $0x11e8] sm:$0xff]  ;;  %v4524_v42 = vld [vmem:[%s11327_s2 + $0x1160] sm:$0xff] }
 0x13b   :  { %1701 = vmatpush.msrb.mxu1 %v4531_v44  ;;  %1721 = vmatpush.msrb.mxu2 %v4547_v48  ;;  %v4565_v35 = vld [vmem:[%s11327_s2 + $0x12a8] sm:$0xff]  ;;  %v4540_v43 = vld [vmem:[%s11327_s2 + $0x11e0] sm:$0xff] }
 0x13c   :  { %1669 = vmatpush.msra.mxu3 %v4491_v23  ;;  %1682 = vmatpush.msrb.mxu0 %v4514_v50  ;;  %v4564_v44 = vld [vmem:[%s11327_s2 + $0x12a0] sm:$0xff]  ;;  %v4523_v23 = vld [vmem:[%s11327_s2 + $0x1158] sm:$0xff] }
 0x13d   :  { %1702 = vmatpush.msrb.mxu1 %v4530_v53  ;;  %1722 = vmatpush.msrb.mxu2 %v4546_v55  ;;  %v911_v15 = vpop.f32.mrf.mxu2  ;;  %v4563_v53 = vld [vmem:[%s11327_s2 + $0x1298] sm:$0xff] }
 0x13e   :  { %1670 = vmatpush.msra.mxu3 %v4490_v56  ;;  %1683 = vmatpush.msrb.mxu0 %v4513_v57  ;;  %v912_v27 = vadd.f32 %v911_v15, %v892_v10  ;;  %v4506_v56 = vld [vmem:[%s11327_s2 + $0x10d0] sm:$0xff]  ;;  %v4559_v15 = vld [vmem:[%s11327_s2 + $0x1278] sm:$0xff] }
 0x13f   :  { %1703 = vmatpush.msrb.mxu1 %v4529_v61  ;;  %1723 = vmatpush.msrb.mxu2 %v4545_v63  ;;  %v4522_v57 = vld [vmem:[%s11327_s2 + $0x1150] sm:$0xff]  ;;  %v4505_v63 = vld [vmem:[%s11327_s2 + $0x10c8] sm:$0xff] }
 0x140   :  { %1671 = vmatpush.msra.mxu3 %v4489_v1  ;;  %1684 = vmatpush.msrb.mxu0 %v4512_v2  ;;  %v931_v33 = vpop.f32.mrf.mxu3  ;;  %v4562_v61 = vld [vmem:[%s11327_s2 + $0x1290] sm:$0xff]  ;;  %v4537_v1 = vld [vmem:[%s11327_s2 + $0x11c8] sm:$0xff] }
 0x141   :  { %1704 = vmatpush.msrb.mxu1 %v4528_v4  ;;  %1724 = vmatpush.msrb.mxu2 %v4544_v5  ;;  %v932_v48 = vadd.f32 %v931_v33, %v912_v27  ;;  %v4561_v2 = vld [vmem:[%s11327_s2 + $0x1288] sm:$0xff]  ;;  %v4504_v4 = vld [vmem:[%s11327_s2 + $0x10c0] sm:$0xff]  ;;  %v4614_v10 = vld [vmem:[%s11327_s2 + $0x1430] sm:$0xff] }
 0x142   :  { %1672 = vmatpush.msra.mxu3 %v4488_v11  ;;  %1685 = vmatpush.msrb.mxu0 %v4511_v12  ;;  %v4520_v5 = vld [vmem:[%s11327_s2 + $0x1140] sm:$0xff]  ;;  %v4583_v11 = vld [vmem:[%s11327_s2 + $0x1338] sm:$0xff]  ;;  %v4557_v27 = vld [vmem:[%s11327_s2 + $0x1268] sm:$0xff] }
 0x143   :  { %1673 = vmatmul.f32.vlgmr.msra.gmra.mxu3 %v6469_v18  ;;  %1705 = vmatpush.msrb.mxu1 %v4527_v14  ;;  %v4599_v12 = vld [vmem:[%s11327_s2 + $0x13b8] sm:$0xff]  ;;  %v4612_v33 = vld [vmem:[%s11327_s2 + $0x1420] sm:$0xff] }
 0x144   :  { %1725 = vmatpush.msrb.mxu2 %v4543_v17  ;;  %1737 = vmatpush.msrb.mxu3 %v4567_v21  ;;  %v4615_v14 = vld [vmem:[%s11327_s2 + $0x1438] sm:$0xff]  ;;  %v4582_v17 = vld [vmem:[%s11327_s2 + $0x1330] sm:$0xff] }
 0x145   :  { %1686 = vmatpush.msrb.mxu0 %v4510_v22  ;;  %1706 = vmatpush.msrb.mxu1 %v4526_v51  ;;  %v4598_v21 = vld [vmem:[%s11327_s2 + $0x13b0] sm:$0xff]  ;;  %v4581_v51 = vld [vmem:[%s11327_s2 + $0x1328] sm:$0xff] }
 0x146   :  { %1726 = vmatpush.msrb.mxu2 %v4542_v24  ;;  %1738 = vmatpush.msrb.mxu3 %v4566_v25  ;;  %v4558_v22 = vld [vmem:[%s11327_s2 + $0x1270] sm:$0xff]  ;;  %v4597_v24 = vld [vmem:[%s11327_s2 + $0x13a8] sm:$0xff] }
 0x147   :  { %1687 = vmatpush.msrb.mxu0 %v4509_v29  ;;  %1707 = vmatpush.msrb.mxu1 %v4525_v32  ;;  %v4613_v25 = vld [vmem:[%s11327_s2 + $0x1428] sm:$0xff]  ;;  %v4580_v29 = vld [vmem:[%s11327_s2 + $0x1320] sm:$0xff] }
 0x148   :  { %1727 = vmatpush.msrb.mxu2 %v4541_v34  ;;  %1739 = vmatpush.msrb.mxu3 %v4565_v35  ;;  %v951_v50 = vpop.f32.mrf.mxu0  ;;  %v4596_v32 = vld [vmem:[%s11327_s2 + $0x13a0] sm:$0xff] }
 0x149   :  { %1688 = vmatpush.msrb.mxu0 %v4508_v41  ;;  %1708 = vmatpush.msrb.mxu1 %v4524_v42  ;;  %v7769_v55 = vadd.f32 %v951_v50, %v932_v48  ;;  %v4556_v35 = vld [vmem:[%s11327_s2 + $0x1260] sm:$0xff]  ;;  %v4579_v41 = vld [vmem:[%s11327_s2 + $0x1318] sm:$0xff]  ;;  %v4610_v50 = vld [vmem:[%s11327_s2 + $0x1410] sm:$0xff] }
 0x14a   :  { %1728 = vmatpush.msrb.mxu2 %v4540_v43  ;;  %1740 = vmatpush.msrb.mxu3 %v4564_v44  ;;  %v4595_v43 = vld [vmem:[%s11327_s2 + $0x1398] sm:$0xff] }
 0x14b   :  { %1689 = vmatpush.msrb.mxu0 %v4507_v49  ;;  %1709 = vmatpush.msrb.mxu1 %v4523_v23  ;;  %v4611_v44 = vld [vmem:[%s11327_s2 + $0x1418] sm:$0xff]  ;;  %v4578_v49 = vld [vmem:[%s11327_s2 + $0x1310] sm:$0xff] }
 0x14c   :  { %1729 = vmatpush.msrb.mxu2 %v4539_v52  ;;  %1741 = vmatpush.msrb.mxu3 %v4563_v53  ;;  %v4555_v48 = vld [vmem:[%s11327_s2 + $0x1258] sm:$0xff]  ;;  %v4594_v23 = vld [vmem:[%s11327_s2 + $0x1390] sm:$0xff]  ;;  %v4577_v53 = vld [vmem:[%s11327_s2 + $0x1308] sm:$0xff] }
 0x14d   :  { %1690 = vmatpush.msrb.mxu0 %v4506_v56  ;;  %1710 = vmatpush.msrb.mxu1 %v4522_v57  ;;  %v4554_v52 = vld [vmem:[%s11327_s2 + $0x1250] sm:$0xff]  ;;  %v4609_v56 = vld [vmem:[%s11327_s2 + $0x1408] sm:$0xff] }
 0x14e   :  { %1730 = vmatpush.msrb.mxu2 %v4538_v58  ;;  %1742 = vmatpush.msrb.mxu3 %v4562_v61  ;;  %v4553_v57 = vld [vmem:[%s11327_s2 + $0x1248] sm:$0xff]  ;;  %v4576_v58 = vld [vmem:[%s11327_s2 + $0x1300] sm:$0xff] }
 0x14f   :  { %1691 = vmatpush.msrb.mxu0 %v4505_v63  ;;  %1711 = vmatpush.msrb.mxu1 %v4521_v0  ;;  %v4592_v63 = vld [vmem:[%s11327_s2 + $0x1380] sm:$0xff] }
 0x150   :  { %1731 = vmatpush.msrb.mxu2 %v4537_v1  ;;  %1743 = vmatpush.msrb.mxu3 %v4561_v2  ;;  %v4608_v0 = vld [vmem:[%s11327_s2 + $0x1400] sm:$0xff] }
 0x151   :  { %1692 = vmatpush.msrb.mxu0 %v4504_v4  ;;  %1712 = vmatpush.msrb.mxu1 %v4520_v5  ;;  %v4552_v2 = vld [vmem:[%s11327_s2 + $0x1240] sm:$0xff]  ;;  %v4575_v4 = vld [vmem:[%s11327_s2 + $0x12f8] sm:$0xff] }
 0x152   :  { %1732 = vmatpush.msrb.mxu2 %v4536_v7  ;;  %1744 = vmatpush.msrb.mxu3 %v4560_v9  ;;  %v4591_v5 = vld [vmem:[%s11327_s2 + $0x1378] sm:$0xff] }
 0x153   :  { %1693 = vmatmul.f32.vlgmr.msrb.gmra.mxu0 %v6475_v20  ;;  %1733 = vmatmul.f32.vlgmr.msrb.gmra.mxu2 %v6580_v59  ;;  %v4607_v9 = vld [vmem:[%s11327_s2 + $0x13f8] sm:$0xff] }
 0x154   :  { %1757 = vmatpush.msra.mxu0 %v4583_v11  ;;  %1777 = vmatpush.msra.mxu1 %v4599_v12  ;;  %v4631_v11 = vld [vmem:[%s11327_s2 + $0x14b8] sm:$0xff] }
 0x155   :  { %1797 = vmatpush.msra.mxu2 %v4615_v14  ;;  %1745 = vmatpush.msrb.mxu3 %v4559_v15  ;;  %v4574_v14 = vld [vmem:[%s11327_s2 + $0x12f0] sm:$0xff] }
 0x156   :  { %1713 = vmatmul.f32.vlgmr.msrb.gmra.mxu1 %v6491_v26  ;;  %1758 = vmatpush.msra.mxu0 %v4582_v17  ;;  %v4590_v15 = vld [vmem:[%s11327_s2 + $0x1370] sm:$0xff] }
 0x157   :  { %1778 = vmatpush.msra.mxu1 %v4598_v21  ;;  %1798 = vmatpush.msra.mxu2 %v4614_v10  ;;  %v4606_v17 = vld [vmem:[%s11327_s2 + $0x13f0] sm:$0xff]  ;;  %v4573_v10 = vld [vmem:[%s11327_s2 + $0x12e8] sm:$0xff] }
 0x158   :  { %1746 = vmatpush.msrb.mxu3 %v4558_v22  ;;  %1759 = vmatpush.msra.mxu0 %v4581_v51  ;;  %v971_v34 = vpop.f32.mrf.mxu1  ;;  %v4630_v21 = vld [vmem:[%s11327_s2 + $0x14b0] sm:$0xff]  ;;  %v4589_v22 = vld [vmem:[%s11327_s2 + $0x1368] sm:$0xff] }
 0x159   :  { %1779 = vmatpush.msra.mxu1 %v4597_v24  ;;  %1799 = vmatpush.msra.mxu2 %v4613_v25  ;;  %v972_v42 = vadd.f32 %v971_v34, %v7769_v55  ;;  %v4593_v55 = vld [vmem:[%s11327_s2 + $0x1388] sm:$0xff]  ;;  %v4572_v25 = vld [vmem:[%s11327_s2 + $0x12e0] sm:$0xff]  ;;  %v4587_v34 = vld [vmem:[%s11327_s2 + $0x1358] sm:$0xff] }
 0x15a   :  { %1747 = vmatpush.msrb.mxu3 %v4557_v27  ;;  %1760 = vmatpush.msra.mxu0 %v4580_v29  ;;  %v4605_v51 = vld [vmem:[%s11327_s2 + $0x13e8] sm:$0xff]  ;;  %v4588_v27 = vld [vmem:[%s11327_s2 + $0x1360] sm:$0xff] }
 0x15b   :  { %1780 = vmatpush.msra.mxu1 %v4596_v32  ;;  %1800 = vmatpush.msra.mxu2 %v4612_v33  ;;  %v4629_v24 = vld [vmem:[%s11327_s2 + $0x14a8] sm:$0xff]  ;;  %v4604_v29 = vld [vmem:[%s11327_s2 + $0x13e0] sm:$0xff]  ;;  %v4571_v33 = vld [vmem:[%s11327_s2 + $0x12d8] sm:$0xff] }
 0x15c   :  { %1748 = vmatpush.msrb.mxu3 %v4556_v35  ;;  %1761 = vmatpush.msra.mxu0 %v4579_v41  ;;  %v4628_v32 = vld [vmem:[%s11327_s2 + $0x14a0] sm:$0xff]  ;;  %v4603_v41 = vld [vmem:[%s11327_s2 + $0x13d8] sm:$0xff] }
 0x15d   :  { %1781 = vmatpush.msra.mxu1 %v4595_v43  ;;  %1801 = vmatpush.msra.mxu2 %v4611_v44  ;;  %v4570_v44 = vld [vmem:[%s11327_s2 + $0x12d0] sm:$0xff] }
 0x15e   :  { %1749 = vmatpush.msrb.mxu3 %v4555_v48  ;;  %1762 = vmatpush.msra.mxu0 %v4578_v49  ;;  %v4586_v48 = vld [vmem:[%s11327_s2 + $0x1350] sm:$0xff] }
 0x15f   :  { %1782 = vmatpush.msra.mxu1 %v4594_v23  ;;  %1802 = vmatpush.msra.mxu2 %v4610_v50  ;;  %v991_v61 = vpop.f32.mrf.mxu2  ;;  %v4602_v23 = vld [vmem:[%s11327_s2 + $0x13d0] sm:$0xff] }
 0x160   :  { %1750 = vmatpush.msrb.mxu3 %v4554_v52  ;;  %1763 = vmatpush.msra.mxu0 %v4577_v53  ;;  %v992_v1 = vadd.f32 %v991_v61, %v972_v42  ;;  %v4627_v42 = vld [vmem:[%s11327_s2 + $0x1498] sm:$0xff]  ;;  %v4626_v50 = vld [vmem:[%s11327_s2 + $0x1490] sm:$0xff]  ;;  %v4569_v53 = vld [vmem:[%s11327_s2 + $0x12c8] sm:$0xff] }
 0x161   :  { %1783 = vmatpush.msra.mxu1 %v4593_v55  ;;  %1803 = vmatpush.msra.mxu2 %v4609_v56  ;;  %v4585_v55 = vld [vmem:[%s11327_s2 + $0x1348] sm:$0xff]  ;;  %v4584_v61 = vld [vmem:[%s11327_s2 + $0x1340] sm:$0xff] }
 0x162   :  { %1751 = vmatpush.msrb.mxu3 %v4553_v57  ;;  %1764 = vmatpush.msra.mxu0 %v4576_v58  ;;  %v1011_v7 = vpop.f32.mrf.mxu3  ;;  %v4601_v56 = vld [vmem:[%s11327_s2 + $0x13c8] sm:$0xff]  ;;  %v4568_v58 = vld [vmem:[%s11327_s2 + $0x12c0] sm:$0xff] }
 0x163   :  { %1784 = vmatpush.msra.mxu1 %v4592_v63  ;;  %1804 = vmatpush.msra.mxu2 %v4608_v0  ;;  %v1012_v12 = vadd.f32 %v1011_v7, %v992_v1  ;;  %v4625_v57 = vld [vmem:[%s11327_s2 + $0x1488] sm:$0xff]  ;;  %v4600_v63 = vld [vmem:[%s11327_s2 + $0x13c0] sm:$0xff]  ;;  %v4647_v1 = vld [vmem:[%s11327_s2 + $0x1538] sm:$0xff] }
 0x164   :  { %1752 = vmatpush.msrb.mxu3 %v4552_v2  ;;  %1765 = vmatpush.msra.mxu0 %v4575_v4  ;;  %v4624_v0 = vld [vmem:[%s11327_s2 + $0x1480] sm:$0xff]  ;;  %v4663_v2 = vld [vmem:[%s11327_s2 + $0x15b8] sm:$0xff]  ;;  %v4646_v7 = vld [vmem:[%s11327_s2 + $0x1530] sm:$0xff] }
 0x165   :  { %1753 = vmatmul.f32.vlgmr.msrb.gmra.mxu3 %v6677_v37  ;;  %1785 = vmatpush.msra.mxu1 %v4591_v5  ;;  %v4679_v4 = vld [vmem:[%s11327_s2 + $0x1638] sm:$0xff] }
 0x166   :  { %1805 = vmatpush.msra.mxu2 %v4607_v9  ;;  %1817 = vmatpush.msra.mxu3 %v4631_v11  ;;  %v4623_v5 = vld [vmem:[%s11327_s2 + $0x1478] sm:$0xff]  ;;  %v4662_v9 = vld [vmem:[%s11327_s2 + $0x15b0] sm:$0xff] }
 0x167   :  { %1766 = vmatpush.msra.mxu0 %v4574_v14  ;;  %1786 = vmatpush.msra.mxu1 %v4590_v15  ;;  %v4678_v11 = vld [vmem:[%s11327_s2 + $0x1630] sm:$0xff]  ;;  %v4645_v14 = vld [vmem:[%s11327_s2 + $0x1528] sm:$0xff] }
 0x168   :  { %1806 = vmatpush.msra.mxu2 %v4606_v17  ;;  %1818 = vmatpush.msra.mxu3 %v4630_v21  ;;  %v4661_v15 = vld [vmem:[%s11327_s2 + $0x15a8] sm:$0xff] }
 0x169   :  { %1767 = vmatpush.msra.mxu0 %v4573_v10  ;;  %1787 = vmatpush.msra.mxu1 %v4589_v22  ;;  %v4677_v17 = vld [vmem:[%s11327_s2 + $0x1628] sm:$0xff]  ;;  %v4644_v10 = vld [vmem:[%s11327_s2 + $0x1520] sm:$0xff] }
 0x16a   :  { %1807 = vmatpush.msra.mxu2 %v4605_v51  ;;  %1819 = vmatpush.msra.mxu3 %v4629_v24  ;;  %v1031_v35 = vpop.f32.mrf.mxu0  ;;  %v4621_v21 = vld [vmem:[%s11327_s2 + $0x1468] sm:$0xff]  ;;  %v4660_v22 = vld [vmem:[%s11327_s2 + $0x15a0] sm:$0xff] }
 0x16b   :  { %1768 = vmatpush.msra.mxu0 %v4572_v25  ;;  %1788 = vmatpush.msra.mxu1 %v4588_v27  ;;  %v1032_v43 = vadd.f32 %v1031_v35, %v1012_v12  ;;  %v4622_v12 = vld [vmem:[%s11327_s2 + $0x1470] sm:$0xff]  ;;  %v4676_v51 = vld [vmem:[%s11327_s2 + $0x1620] sm:$0xff]  ;;  %v4643_v25 = vld [vmem:[%s11327_s2 + $0x1518] sm:$0xff] }
 0x16c   :  { %1808 = vmatpush.msra.mxu2 %v4604_v29  ;;  %1820 = vmatpush.msra.mxu3 %v4628_v32  ;;  %v1051_v49 = vpop.f32.mrf.mxu1  ;;  %v4620_v24 = vld [vmem:[%s11327_s2 + $0x1460] sm:$0xff]  ;;  %v4659_v27 = vld [vmem:[%s11327_s2 + $0x1598] sm:$0xff]  ;;  %v4674_v35 = vld [vmem:[%s11327_s2 + $0x1610] sm:$0xff] }
 0x16d   :  { %1769 = vmatpush.msra.mxu0 %v4571_v33  ;;  %1789 = vmatpush.msra.mxu1 %v4587_v34  ;;  %v7980_v52 = vadd.f32 %v1051_v49, %v1032_v43  ;;  %v4675_v29 = vld [vmem:[%s11327_s2 + $0x1618] sm:$0xff]  ;;  %v4642_v33 = vld [vmem:[%s11327_s2 + $0x1510] sm:$0xff]  ;;  %v4657_v43 = vld [vmem:[%s11327_s2 + $0x1588] sm:$0xff] }
 0x16e   :  { %1809 = vmatpush.msra.mxu2 %v4603_v41  ;;  %1821 = vmatpush.msra.mxu3 %v4627_v42  ;;  %v4619_v32 = vld [vmem:[%s11327_s2 + $0x1458] sm:$0xff]  ;;  %v4658_v34 = vld [vmem:[%s11327_s2 + $0x1590] sm:$0xff]  ;;  %v4641_v42 = vld [vmem:[%s11327_s2 + $0x1508] sm:$0xff] }
 0x16f   :  { %1770 = vmatpush.msra.mxu0 %v4570_v44  ;;  %1790 = vmatpush.msra.mxu1 %v4586_v48  ;;  %v4618_v41 = vld [vmem:[%s11327_s2 + $0x1450] sm:$0xff]  ;;  %v4673_v44 = vld [vmem:[%s11327_s2 + $0x1608] sm:$0xff]  ;;  %v4640_v49 = vld [vmem:[%s11327_s2 + $0x1500] sm:$0xff] }
 0x170   :  { %1810 = vmatpush.msra.mxu2 %v4602_v23  ;;  %1822 = vmatpush.msra.mxu3 %v4626_v50  ;;  %v4617_v48 = vld [vmem:[%s11327_s2 + $0x1448] sm:$0xff]  ;;  %v4656_v23 = vld [vmem:[%s11327_s2 + $0x1580] sm:$0xff] }
 0x171   :  { %1771 = vmatpush.msra.mxu0 %v4569_v53  ;;  %1791 = vmatpush.msra.mxu1 %v4585_v55  ;;  %v4672_v50 = vld [vmem:[%s11327_s2 + $0x1600] sm:$0xff]  ;;  %v4639_v55 = vld [vmem:[%s11327_s2 + $0x14f8] sm:$0xff] }
 0x172   :  { %1811 = vmatpush.msra.mxu2 %v4601_v56  ;;  %1823 = vmatpush.msra.mxu3 %v4625_v57  ;;  %v4616_v53 = vld [vmem:[%s11327_s2 + $0x1440] sm:$0xff]  ;;  %v4655_v56 = vld [vmem:[%s11327_s2 + $0x1578] sm:$0xff] }
 0x173   :  { %1772 = vmatpush.msra.mxu0 %v4568_v58  ;;  %1792 = vmatpush.msra.mxu1 %v4584_v61  ;;  %v4671_v57 = vld [vmem:[%s11327_s2 + $0x15f8] sm:$0xff]  ;;  %v4638_v61 = vld [vmem:[%s11327_s2 + $0x14f0] sm:$0xff] }
 0x174   :  { %1812 = vmatpush.msra.mxu2 %v4600_v63  ;;  %1824 = vmatpush.msra.mxu3 %v4624_v0  ;;  %v4695_v58 = vld [vmem:[%s11327_s2 + $0x16b8] sm:$0xff]  ;;  %v4654_v63 = vld [vmem:[%s11327_s2 + $0x1570] sm:$0xff] }
 0x175   :  { %1773 = vmatmul.f32.vlgmr.msra.gmra.mxu0 %v6683_v39  ;;  %1813 = vmatmul.f32.vlgmr.msra.gmra.mxu2 %v6788_v16  ;;  %v4670_v0 = vld [vmem:[%s11327_s2 + $0x15f0] sm:$0xff] }
 0x176   :  { %1837 = vmatpush.msrb.mxu0 %v4647_v1  ;;  %1857 = vmatpush.msrb.mxu1 %v4663_v2  ;;  %v4694_v1 = vld [vmem:[%s11327_s2 + $0x16b0] sm:$0xff]  ;;  %v4637_v2 = vld [vmem:[%s11327_s2 + $0x14e8] sm:$0xff] }
 0x177   :  { %1877 = vmatpush.msrb.mxu2 %v4679_v4  ;;  %1825 = vmatpush.msra.mxu3 %v4623_v5  ;;  %v4653_v4 = vld [vmem:[%s11327_s2 + $0x1568] sm:$0xff] }
 0x178   :  { %1793 = vmatmul.f32.vlgmr.msra.gmra.mxu1 %v6699_v45  ;;  %1838 = vmatpush.msrb.mxu0 %v4646_v7  ;;  %v4669_v5 = vld [vmem:[%s11327_s2 + $0x15e8] sm:$0xff] }
 0x179   :  { %1858 = vmatpush.msrb.mxu1 %v4662_v9  ;;  %1878 = vmatpush.msrb.mxu2 %v4678_v11  ;;  %v4693_v7 = vld [vmem:[%s11327_s2 + $0x16a8] sm:$0xff]  ;;  %v4636_v9 = vld [vmem:[%s11327_s2 + $0x14e0] sm:$0xff] }
 0x17a   :  { %1826 = vmatpush.msra.mxu3 %v4622_v12  ;;  %1839 = vmatpush.msrb.mxu0 %v4645_v14  ;;  %v4652_v11 = vld [vmem:[%s11327_s2 + $0x1560] sm:$0xff] }
 0x17b   :  { %1859 = vmatpush.msrb.mxu1 %v4661_v15  ;;  %1879 = vmatpush.msrb.mxu2 %v4677_v17  ;;  %v4668_v12 = vld [vmem:[%s11327_s2 + $0x15e0] sm:$0xff]  ;;  %v4635_v15 = vld [vmem:[%s11327_s2 + $0x14d8] sm:$0xff] }
 0x17c   :  { %1827 = vmatpush.msra.mxu3 %v4621_v21  ;;  %1840 = vmatpush.msrb.mxu0 %v4644_v10  ;;  %v4692_v14 = vld [vmem:[%s11327_s2 + $0x16a0] sm:$0xff]  ;;  %v4651_v17 = vld [vmem:[%s11327_s2 + $0x1558] sm:$0xff] }
 0x17d   :  { %1860 = vmatpush.msrb.mxu1 %v4660_v22  ;;  %1880 = vmatpush.msrb.mxu2 %v4676_v51  ;;  %v4667_v21 = vld [vmem:[%s11327_s2 + $0x15d8] sm:$0xff]  ;;  %v4634_v22 = vld [vmem:[%s11327_s2 + $0x14d0] sm:$0xff] }
 0x17e   :  { %1828 = vmatpush.msra.mxu3 %v4620_v24  ;;  %1841 = vmatpush.msrb.mxu0 %v4643_v25  ;;  %v4691_v10 = vld [vmem:[%s11327_s2 + $0x1698] sm:$0xff]  ;;  %v4650_v51 = vld [vmem:[%s11327_s2 + $0x1550] sm:$0xff] }
 0x17f   :  { %1861 = vmatpush.msrb.mxu1 %v4659_v27  ;;  %1881 = vmatpush.msrb.mxu2 %v4675_v29  ;;  %v4666_v24 = vld [vmem:[%s11327_s2 + $0x15d0] sm:$0xff]  ;;  %v4633_v27 = vld [vmem:[%s11327_s2 + $0x14c8] sm:$0xff] }
 0x180   :  { %1829 = vmatpush.msra.mxu3 %v4619_v32  ;;  %1842 = vmatpush.msrb.mxu0 %v4642_v33  ;;  %v4690_v25 = vld [vmem:[%s11327_s2 + $0x1690] sm:$0xff]  ;;  %v4649_v29 = vld [vmem:[%s11327_s2 + $0x1548] sm:$0xff] }
 0x181   :  { %1862 = vmatpush.msrb.mxu1 %v4658_v34  ;;  %1882 = vmatpush.msrb.mxu2 %v4674_v35  ;;  %v4665_v32 = vld [vmem:[%s11327_s2 + $0x15c8] sm:$0xff]  ;;  %v4632_v34 = vld [vmem:[%s11327_s2 + $0x14c0] sm:$0xff] }
 0x182   :  { %1830 = vmatpush.msra.mxu3 %v4618_v41  ;;  %1843 = vmatpush.msrb.mxu0 %v4641_v42  ;;  %v4689_v33 = vld [vmem:[%s11327_s2 + $0x1688] sm:$0xff]  ;;  %v4648_v35 = vld [vmem:[%s11327_s2 + $0x1540] sm:$0xff] }
 0x183   :  { %1863 = vmatpush.msrb.mxu1 %v4657_v43  ;;  %1883 = vmatpush.msrb.mxu2 %v4673_v44  ;;  %v4664_v41 = vld [vmem:[%s11327_s2 + $0x15c0] sm:$0xff]  ;;  %v4711_v43 = vld [vmem:[%s11327_s2 + $0x1738] sm:$0xff] }
 0x184   :  { %1831 = vmatpush.msra.mxu3 %v4617_v48  ;;  %1844 = vmatpush.msrb.mxu0 %v4640_v49  ;;  %v4688_v42 = vld [vmem:[%s11327_s2 + $0x1680] sm:$0xff]  ;;  %v4727_v44 = vld [vmem:[%s11327_s2 + $0x17b8] sm:$0xff] }
 0x185   :  { %1864 = vmatpush.msrb.mxu1 %v4656_v23  ;;  %1884 = vmatpush.msrb.mxu2 %v4672_v50  ;;  %v4743_v48 = vld [vmem:[%s11327_s2 + $0x1838] sm:$0xff]  ;;  %v4710_v23 = vld [vmem:[%s11327_s2 + $0x1730] sm:$0xff] }
 0x186   :  { %1832 = vmatpush.msra.mxu3 %v4616_v53  ;;  %1845 = vmatpush.msrb.mxu0 %v4639_v55  ;;  %v4687_v49 = vld [vmem:[%s11327_s2 + $0x1678] sm:$0xff]  ;;  %v4726_v50 = vld [vmem:[%s11327_s2 + $0x17b0] sm:$0xff] }
 0x187   :  { %1833 = vmatmul.f32.vlgmr.msra.gmra.mxu3 %v6890_v60  ;;  %1865 = vmatpush.msrb.mxu1 %v4655_v56  ;;  %v4742_v53 = vld [vmem:[%s11327_s2 + $0x1830] sm:$0xff]  ;;  %v4709_v56 = vld [vmem:[%s11327_s2 + $0x1728] sm:$0xff] }
 0x188   :  { %1885 = vmatpush.msrb.mxu2 %v4671_v57  ;;  %1897 = vmatpush.msrb.mxu3 %v4695_v58  ;;  %v4686_v55 = vld [vmem:[%s11327_s2 + $0x1670] sm:$0xff]  ;;  %v4725_v57 = vld [vmem:[%s11327_s2 + $0x17a8] sm:$0xff] }
 0x189   :  { %1846 = vmatpush.msrb.mxu0 %v4638_v61  ;;  %1866 = vmatpush.msrb.mxu1 %v4654_v63  ;;  %v4741_v58 = vld [vmem:[%s11327_s2 + $0x1828] sm:$0xff]  ;;  %v4708_v63 = vld [vmem:[%s11327_s2 + $0x1720] sm:$0xff] }
 0x18a   :  { %1886 = vmatpush.msrb.mxu2 %v4670_v0  ;;  %1898 = vmatpush.msrb.mxu3 %v4694_v1  ;;  %v4685_v61 = vld [vmem:[%s11327_s2 + $0x1668] sm:$0xff]  ;;  %v4724_v0 = vld [vmem:[%s11327_s2 + $0x17a0] sm:$0xff] }
 0x18b   :  { %1847 = vmatpush.msrb.mxu0 %v4637_v2  ;;  %1867 = vmatpush.msrb.mxu1 %v4653_v4  ;;  %v4740_v1 = vld [vmem:[%s11327_s2 + $0x1820] sm:$0xff]  ;;  %v4707_v4 = vld [vmem:[%s11327_s2 + $0x1718] sm:$0xff] }
 0x18c   :  { %1887 = vmatpush.msrb.mxu2 %v4669_v5  ;;  %1899 = vmatpush.msrb.mxu3 %v4693_v7  ;;  %v4684_v2 = vld [vmem:[%s11327_s2 + $0x1660] sm:$0xff]  ;;  %v4723_v5 = vld [vmem:[%s11327_s2 + $0x1798] sm:$0xff] }
 0x18d   :  { %1848 = vmatpush.msrb.mxu0 %v4636_v9  ;;  %1868 = vmatpush.msrb.mxu1 %v4652_v11  ;;  %v4739_v7 = vld [vmem:[%s11327_s2 + $0x1818] sm:$0xff]  ;;  %v4706_v11 = vld [vmem:[%s11327_s2 + $0x1710] sm:$0xff] }
 0x18e   :  { %1888 = vmatpush.msrb.mxu2 %v4668_v12  ;;  %1900 = vmatpush.msrb.mxu3 %v4692_v14  ;;  %v4683_v9 = vld [vmem:[%s11327_s2 + $0x1658] sm:$0xff]  ;;  %v4722_v12 = vld [vmem:[%s11327_s2 + $0x1790] sm:$0xff] }
 0x18f   :  { %1849 = vmatpush.msrb.mxu0 %v4635_v15  ;;  %1869 = vmatpush.msrb.mxu1 %v4651_v17  ;;  %v4738_v14 = vld [vmem:[%s11327_s2 + $0x1810] sm:$0xff]  ;;  %v4705_v17 = vld [vmem:[%s11327_s2 + $0x1708] sm:$0xff] }
 0x190   :  { %1889 = vmatpush.msrb.mxu2 %v4667_v21  ;;  %1901 = vmatpush.msrb.mxu3 %v4691_v10  ;;  %v4682_v15 = vld [vmem:[%s11327_s2 + $0x1650] sm:$0xff]  ;;  %v4721_v21 = vld [vmem:[%s11327_s2 + $0x1788] sm:$0xff] }
 0x191   :  { %1850 = vmatpush.msrb.mxu0 %v4634_v22  ;;  %1870 = vmatpush.msrb.mxu1 %v4650_v51  ;;  %v4737_v10 = vld [vmem:[%s11327_s2 + $0x1808] sm:$0xff]  ;;  %v4704_v51 = vld [vmem:[%s11327_s2 + $0x1700] sm:$0xff] }
 0x192   :  { %1890 = vmatpush.msrb.mxu2 %v4666_v24  ;;  %1902 = vmatpush.msrb.mxu3 %v4690_v25  ;;  %v4681_v22 = vld [vmem:[%s11327_s2 + $0x1648] sm:$0xff]  ;;  %v4720_v24 = vld [vmem:[%s11327_s2 + $0x1780] sm:$0xff] }
 0x193   :  { %1851 = vmatpush.msrb.mxu0 %v4633_v27  ;;  %1871 = vmatpush.msrb.mxu1 %v4649_v29  ;;  %v4736_v25 = vld [vmem:[%s11327_s2 + $0x1800] sm:$0xff]  ;;  %v4703_v29 = vld [vmem:[%s11327_s2 + $0x16f8] sm:$0xff] }
 0x194   :  { %1891 = vmatpush.msrb.mxu2 %v4665_v32  ;;  %1903 = vmatpush.msrb.mxu3 %v4689_v33  ;;  %v4680_v27 = vld [vmem:[%s11327_s2 + $0x1640] sm:$0xff]  ;;  %v4719_v32 = vld [vmem:[%s11327_s2 + $0x1778] sm:$0xff] }
 0x195   :  { %1852 = vmatpush.msrb.mxu0 %v4632_v34  ;;  %1872 = vmatpush.msrb.mxu1 %v4648_v35  ;;  %v4735_v33 = vld [vmem:[%s11327_s2 + $0x17f8] sm:$0xff]  ;;  %v4702_v35 = vld [vmem:[%s11327_s2 + $0x16f0] sm:$0xff] }
 0x196   :  { %1892 = vmatpush.msrb.mxu2 %v4664_v41  ;;  %1904 = vmatpush.msrb.mxu3 %v4688_v42  ;;  %v4751_v34 = vld [vmem:[%s11327_s2 + $0x1878] sm:$0xff]  ;;  %v4718_v41 = vld [vmem:[%s11327_s2 + $0x1770] sm:$0xff] }
 0x197   :  { %1853 = vmatmul.f32.vlgmr.msrb.gmra.mxu0 %v6896_v62  ;;  %1893 = vmatmul.f32.vlgmr.msrb.gmra.mxu2 %v7001_v47  ;;  %v4734_v42 = vld [vmem:[%s11327_s2 + $0x17f0] sm:$0xff] }
 0x198   :  { %1917 = vmatpush.msra.mxu0 %v4711_v43  ;;  %1937 = vmatpush.msra.mxu1 %v4727_v44  ;;  %v4750_v43 = vld [vmem:[%s11327_s2 + $0x1870] sm:$0xff]  ;;  %v4701_v44 = vld [vmem:[%s11327_s2 + $0x16e8] sm:$0xff] }
 0x199   :  { %1957 = vmatpush.msra.mxu2 %v4743_v48  ;;  %1905 = vmatpush.msrb.mxu3 %v4687_v49  ;;  %v4717_v48 = vld [vmem:[%s11327_s2 + $0x1768] sm:$0xff] }
 0x19a   :  { %1873 = vmatmul.f32.vlgmr.msrb.gmra.mxu1 %v6912_v3  ;;  %1918 = vmatpush.msra.mxu0 %v4710_v23  ;;  %v4733_v49 = vld [vmem:[%s11327_s2 + $0x17e8] sm:$0xff] }
 0x19b   :  { %1938 = vmatpush.msra.mxu1 %v4726_v50  ;;  %1958 = vmatpush.msra.mxu2 %v4742_v53  ;;  %v4749_v23 = vld [vmem:[%s11327_s2 + $0x1868] sm:$0xff]  ;;  %v4700_v50 = vld [vmem:[%s11327_s2 + $0x16e0] sm:$0xff] }
 0x19c   :  { %1906 = vmatpush.msrb.mxu3 %v4686_v55  ;;  %1919 = vmatpush.msra.mxu0 %v4709_v56  ;;  %v4716_v53 = vld [vmem:[%s11327_s2 + $0x1760] sm:$0xff] }
 0x19d   :  { %1939 = vmatpush.msra.mxu1 %v4725_v57  ;;  %1959 = vmatpush.msra.mxu2 %v4741_v58  ;;  %v4732_v55 = vld [vmem:[%s11327_s2 + $0x17e0] sm:$0xff]  ;;  %v4699_v57 = vld [vmem:[%s11327_s2 + $0x16d8] sm:$0xff] }
 0x19e   :  { %1907 = vmatpush.msrb.mxu3 %v4685_v61  ;;  %1920 = vmatpush.msra.mxu0 %v4708_v63  ;;  %v4748_v56 = vld [vmem:[%s11327_s2 + $0x1860] sm:$0xff]  ;;  %v4715_v58 = vld [vmem:[%s11327_s2 + $0x1758] sm:$0xff] }
 0x19f   :  { %1940 = vmatpush.msra.mxu1 %v4724_v0  ;;  %1960 = vmatpush.msra.mxu2 %v4740_v1  ;;  %v4731_v61 = vld [vmem:[%s11327_s2 + $0x17d8] sm:$0xff]  ;;  %v4698_v0 = vld [vmem:[%s11327_s2 + $0x16d0] sm:$0xff] }
 0x1a0   :  { %1908 = vmatpush.msrb.mxu3 %v4684_v2  ;;  %1921 = vmatpush.msra.mxu0 %v4707_v4  ;;  %v4747_v63 = vld [vmem:[%s11327_s2 + $0x1858] sm:$0xff]  ;;  %v4714_v1 = vld [vmem:[%s11327_s2 + $0x1750] sm:$0xff] }
 0x1a1   :  { %1941 = vmatpush.msra.mxu1 %v4723_v5  ;;  %1961 = vmatpush.msra.mxu2 %v4739_v7  ;;  %v4730_v2 = vld [vmem:[%s11327_s2 + $0x17d0] sm:$0xff]  ;;  %v4697_v5 = vld [vmem:[%s11327_s2 + $0x16c8] sm:$0xff] }
 0x1a2   :  { %1909 = vmatpush.msrb.mxu3 %v4683_v9  ;;  %1922 = vmatpush.msra.mxu0 %v4706_v11  ;;  %v4746_v4 = vld [vmem:[%s11327_s2 + $0x1850] sm:$0xff]  ;;  %v4713_v7 = vld [vmem:[%s11327_s2 + $0x1748] sm:$0xff] }
 0x1a3   :  { %1942 = vmatpush.msra.mxu1 %v4722_v12  ;;  %1962 = vmatpush.msra.mxu2 %v4738_v14  ;;  %v4729_v9 = vld [vmem:[%s11327_s2 + $0x17c8] sm:$0xff]  ;;  %v4696_v12 = vld [vmem:[%s11327_s2 + $0x16c0] sm:$0xff] }
 0x1a4   :  { %1910 = vmatpush.msrb.mxu3 %v4682_v15  ;;  %1923 = vmatpush.msra.mxu0 %v4705_v17  ;;  %v4745_v11 = vld [vmem:[%s11327_s2 + $0x1848] sm:$0xff]  ;;  %v4712_v14 = vld [vmem:[%s11327_s2 + $0x1740] sm:$0xff] }
 0x1a5   :  { %1943 = vmatpush.msra.mxu1 %v4721_v21  ;;  %1963 = vmatpush.msra.mxu2 %v4737_v10  ;;  %v4728_v15 = vld [vmem:[%s11327_s2 + $0x17c0] sm:$0xff]  ;;  %v5162_v21 = vld [vmem:[%s11326_s5 + $0xb8] sm:$0xff] }
 0x1a6   :  { %1911 = vmatpush.msrb.mxu3 %v4681_v22  ;;  %1924 = vmatpush.msra.mxu0 %v4704_v51  ;;  %v4744_v17 = vld [vmem:[%s11327_s2 + $0x1840] sm:$0xff]  ;;  %v4778_v10 = vld [vmem:[%s11327_s2 + $0x18f8] sm:$0xff] }
 0x1a7   :  { %1944 = vmatpush.msra.mxu1 %v4720_v24  ;;  %1964 = vmatpush.msra.mxu2 %v4736_v25  ;;  %v4794_v22 = vld [vmem:[%s11327_s2 + $0x1978] sm:$0xff]  ;;  %v5161_v24 = vld [vmem:[%s11326_s5 + $0xb0] sm:$0xff] }
 0x1a8   :  { %1912 = vmatpush.msrb.mxu3 %v4680_v27  ;;  %1925 = vmatpush.msra.mxu0 %v4703_v29  ;;  %v4810_v51 = vld [vmem:[%s11327_s2 + $0x19f8] sm:$0xff]  ;;  %v4777_v25 = vld [vmem:[%s11327_s2 + $0x18f0] sm:$0xff] }
 0x1a9   :  { %1913 = vmatmul.f32.vlgmr.msrb.gmra.mxu3 %v7098_v28  ;;  %1945 = vmatpush.msra.mxu1 %v4719_v32  ;;  %v4793_v27 = vld [vmem:[%s11327_s2 + $0x1970] sm:$0xff]  ;;  %v5667_v32 = vld [vmem:[%s11328_s7 + $0x18] ss:$0 sm:$0xff] }
 0x1aa   :  { %1965 = vmatpush.msra.mxu2 %v4735_v33  ;;  %1985 = vmatpush.msra.mxu3 %v4751_v34  ;;  %v4809_v29 = vld [vmem:[%s11327_s2 + $0x19f0] sm:$0xff]  ;;  %v5160_v33 = vld [vmem:[%s11326_s5 + $0xa8] sm:$0xff] }
 0x1ab   :  { %1926 = vmatpush.msra.mxu0 %v4702_v35  ;;  %1946 = vmatpush.msra.mxu1 %v4718_v41  ;;  %v4776_v34 = vld [vmem:[%s11327_s2 + $0x18e8] sm:$0xff] }
 0x1ac   :  { %1966 = vmatpush.msra.mxu2 %v4734_v42  ;;  %1986 = vmatpush.msra.mxu3 %v4750_v43  ;;  %v4792_v35 = vld [vmem:[%s11327_s2 + $0x1968] sm:$0xff]  ;;  %v5159_v42 = vld [vmem:[%s11326_s5 + $0xa0] sm:$0xff] }
 0x1ad   :  { %1927 = vmatpush.msra.mxu0 %v4701_v44  ;;  %1947 = vmatpush.msra.mxu1 %v4717_v48  ;;  %v4808_v41 = vld [vmem:[%s11327_s2 + $0x19e8] sm:$0xff]  ;;  %v4775_v43 = vld [vmem:[%s11327_s2 + $0x18e0] sm:$0xff] }
 0x1ae   :  { %1967 = vmatpush.msra.mxu2 %v4733_v49  ;;  %1987 = vmatpush.msra.mxu3 %v4749_v23  ;;  %v4791_v44 = vld [vmem:[%s11327_s2 + $0x1960] sm:$0xff]  ;;  %v5158_v49 = vld [vmem:[%s11326_s5 + $0x98] sm:$0xff] }
 0x1af   :  { %1928 = vmatpush.msra.mxu0 %v4700_v50  ;;  %1948 = vmatpush.msra.mxu1 %v4716_v53  ;;  %v4807_v48 = vld [vmem:[%s11327_s2 + $0x19e0] sm:$0xff]  ;;  %v4774_v23 = vld [vmem:[%s11327_s2 + $0x18d8] sm:$0xff] }
 0x1b0   :  { %1968 = vmatpush.msra.mxu2 %v4732_v55  ;;  %1988 = vmatpush.msra.mxu3 %v4748_v56  ;;  %v4790_v50 = vld [vmem:[%s11327_s2 + $0x1958] sm:$0xff]  ;;  %v5157_v55 = vld [vmem:[%s11326_s5 + $0x90] sm:$0xff] }
 0x1b1   :  { %1929 = vmatpush.msra.mxu0 %v4699_v57  ;;  %1949 = vmatpush.msra.mxu1 %v4715_v58  ;;  %v4806_v53 = vld [vmem:[%s11327_s2 + $0x19d8] sm:$0xff]  ;;  %v4773_v56 = vld [vmem:[%s11327_s2 + $0x18d0] sm:$0xff] }
 0x1b2   :  { %1969 = vmatpush.msra.mxu2 %v4731_v61  ;;  %1989 = vmatpush.msra.mxu3 %v4747_v63  ;;  %v4789_v57 = vld [vmem:[%s11327_s2 + $0x1950] sm:$0xff]  ;;  %v5156_v61 = vld [vmem:[%s11326_s5 + $0x88] sm:$0xff] }
 0x1b3   :  { %1930 = vmatpush.msra.mxu0 %v4698_v0  ;;  %1950 = vmatpush.msra.mxu1 %v4714_v1  ;;  %v4805_v58 = vld [vmem:[%s11327_s2 + $0x19d0] sm:$0xff]  ;;  %v4772_v63 = vld [vmem:[%s11327_s2 + $0x18c8] sm:$0xff] }
 0x1b4   :  { %1970 = vmatpush.msra.mxu2 %v4730_v2  ;;  %1990 = vmatpush.msra.mxu3 %v4746_v4  ;;  %v4788_v0 = vld [vmem:[%s11327_s2 + $0x1948] sm:$0xff]  ;;  %v5155_v2 = vld [vmem:[%s11326_s5 + $0x80] sm:$0xff] }
 0x1b5   :  { %1931 = vmatpush.msra.mxu0 %v4697_v5  ;;  %1951 = vmatpush.msra.mxu1 %v4713_v7  ;;  %v4804_v1 = vld [vmem:[%s11327_s2 + $0x19c8] sm:$0xff]  ;;  %v4771_v4 = vld [vmem:[%s11327_s2 + $0x18c0] sm:$0xff] }
 0x1b6   :  { %1971 = vmatpush.msra.mxu2 %v4729_v9  ;;  %1991 = vmatpush.msra.mxu3 %v4745_v11  ;;  %v4787_v5 = vld [vmem:[%s11327_s2 + $0x1940] sm:$0xff]  ;;  %v4826_v9 = vld [vmem:[%s11327_s2 + $0x1a78] sm:$0xff] }
 0x1b7   :  { %1932 = vmatpush.msra.mxu0 %v4696_v12  ;;  %1952 = vmatpush.msra.mxu1 %v4712_v14  ;;  %v4803_v7 = vld [vmem:[%s11327_s2 + $0x19c0] sm:$0xff]  ;;  %v4770_v11 = vld [vmem:[%s11327_s2 + $0x18b8] sm:$0xff] }
 0x1b8   :  { %1972 = vmatpush.msra.mxu2 %v4728_v15  ;;  %1992 = vmatpush.msra.mxu3 %v4744_v17  ;;  %v4786_v12 = vld [vmem:[%s11327_s2 + $0x1938] sm:$0xff]  ;;  %v4825_v15 = vld [vmem:[%s11327_s2 + $0x1a70] sm:$0xff] }
 0x1b9   :  { %1933 = vmatmul.f32.vlgmr.msra.gmra.mxu0 %v7104_v31  ;;  %1973 = vmatmul.f32.vlgmr.msra.gmra.mxu2 %v7209_v19  ;;  %v4802_v14 = vld [vmem:[%s11327_s2 + $0x19b8] sm:$0xff]  ;;  %v4769_v17 = vld [vmem:[%s11327_s2 + $0x18b0] sm:$0xff] }
 0x1ba   :  { %2429 = vmatpush.msrb.mxu0 %v5162_v21  ;;  %2441 = vmatpush.msrb.mxu1 %v4778_v10  ;;  %v4785_v21 = vld [vmem:[%s11327_s2 + $0x1930] sm:$0xff] }
 0x1bb   :  { %2461 = vmatpush.msrb.mxu2 %v4794_v22  ;;  %2481 = vmatpush.msrb.mxu3 %v4810_v51  ;;  %v4801_v10 = vld [vmem:[%s11327_s2 + $0x19b0] sm:$0xff]  ;;  %v4824_v22 = vld [vmem:[%s11327_s2 + $0x1a68] sm:$0xff] }
 0x1bc   :  { %1953 = vmatmul.f32.vlgmr.msra.gmra.mxu1 %v7120_v38  ;;  %4761 = vmatmul.msk.f32.vlgmr.msra.gmra.mxu3 %vm475_vm0, %v5667_v32  ;;  %v4768_v51 = vld [vmem:[%s11327_s2 + $0x18a8] sm:$0xff]  ;;  %v4783_v32 = vld [vmem:[%s11327_s2 + $0x1920] sm:$0xff] }
 0x1bd   :  { %2430 = vmatpush.msrb.mxu0 %v5161_v24  ;;  %2442 = vmatpush.msrb.mxu1 %v4777_v25  ;;  %v4784_v24 = vld [vmem:[%s11327_s2 + $0x1928] sm:$0xff] }
 0x1be   :  { %2462 = vmatpush.msrb.mxu2 %v4793_v27  ;;  %2482 = vmatpush.msrb.mxu3 %v4809_v29  ;;  %v4800_v25 = vld [vmem:[%s11327_s2 + $0x19a8] sm:$0xff]  ;;  %v4823_v27 = vld [vmem:[%s11327_s2 + $0x1a60] sm:$0xff] }
 0x1bf   :  { %2431 = vmatpush.msrb.mxu0 %v5160_v33  ;;  %2443 = vmatpush.msrb.mxu1 %v4776_v34  ;;  %v4767_v29 = vld [vmem:[%s11327_s2 + $0x18a0] sm:$0xff]  ;;  %v4822_v34 = vld [vmem:[%s11327_s2 + $0x1a58] sm:$0xff] }
 0x1c0   :  { %2463 = vmatpush.msrb.mxu2 %v4792_v35  ;;  %2483 = vmatpush.msrb.mxu3 %v4808_v41  ;;  %v4799_v33 = vld [vmem:[%s11327_s2 + $0x19a0] sm:$0xff]  ;;  %v4766_v35 = vld [vmem:[%s11327_s2 + $0x1898] sm:$0xff] }
 0x1c1   :  { %2432 = vmatpush.msrb.mxu0 %v5159_v42  ;;  %2444 = vmatpush.msrb.mxu1 %v4775_v43  ;;  %v4782_v41 = vld [vmem:[%s11327_s2 + $0x1918] sm:$0xff]  ;;  %v4821_v43 = vld [vmem:[%s11327_s2 + $0x1a50] sm:$0xff] }
 0x1c2   :  { %2464 = vmatpush.msrb.mxu2 %v4791_v44  ;;  %2484 = vmatpush.msrb.mxu3 %v4807_v48  ;;  %v4798_v42 = vld [vmem:[%s11327_s2 + $0x1998] sm:$0xff]  ;;  %v4765_v44 = vld [vmem:[%s11327_s2 + $0x1890] sm:$0xff] }
 0x1c3   :  { %2433 = vmatpush.msrb.mxu0 %v5158_v49  ;;  %2445 = vmatpush.msrb.mxu1 %v4774_v23  ;;  %v4781_v48 = vld [vmem:[%s11327_s2 + $0x1910] sm:$0xff]  ;;  %v4820_v23 = vld [vmem:[%s11327_s2 + $0x1a48] sm:$0xff] }
 0x1c4   :  { %2465 = vmatpush.msrb.mxu2 %v4790_v50  ;;  %2485 = vmatpush.msrb.mxu3 %v4806_v53  ;;  %v4797_v49 = vld [vmem:[%s11327_s2 + $0x1990] sm:$0xff]  ;;  %v4764_v50 = vld [vmem:[%s11327_s2 + $0x1888] sm:$0xff] }
 0x1c5   :  { %2434 = vmatpush.msrb.mxu0 %v5157_v55  ;;  %2446 = vmatpush.msrb.mxu1 %v4773_v56  ;;  %v4780_v53 = vld [vmem:[%s11327_s2 + $0x1908] sm:$0xff]  ;;  %v4819_v56 = vld [vmem:[%s11327_s2 + $0x1a40] sm:$0xff] }
 0x1c6   :  { %2466 = vmatpush.msrb.mxu2 %v4789_v57  ;;  %2486 = vmatpush.msrb.mxu3 %v4805_v58  ;;  %v4796_v55 = vld [vmem:[%s11327_s2 + $0x1988] sm:$0xff]  ;;  %v4763_v57 = vld [vmem:[%s11327_s2 + $0x1880] sm:$0xff] }
 0x1c7   :  { %2435 = vmatpush.msrb.mxu0 %v5156_v61  ;;  %2447 = vmatpush.msrb.mxu1 %v4772_v63  ;;  %v4779_v58 = vld [vmem:[%s11327_s2 + $0x1900] sm:$0xff]  ;;  %v4818_v63 = vld [vmem:[%s11327_s2 + $0x1a38] sm:$0xff] }
 0x1c8   :  { %2467 = vmatpush.msrb.mxu2 %v4788_v0  ;;  %2487 = vmatpush.msrb.mxu3 %v4804_v1  ;;  %v4795_v61 = vld [vmem:[%s11327_s2 + $0x1980] sm:$0xff]  ;;  %v4842_v0 = vld [vmem:[%s11327_s2 + $0x1af8] sm:$0xff] }
 0x1c9   :  { %2436 = vmatpush.msrb.mxu0 %v5155_v2  ;;  %2448 = vmatpush.msrb.mxu1 %v4771_v4  ;;  %v4858_v1 = vld [vmem:[%s11327_s2 + $0x1b78] sm:$0xff]  ;;  %v4817_v4 = vld [vmem:[%s11327_s2 + $0x1a30] sm:$0xff] }
 0x1ca   :  { %2468 = vmatpush.msrb.mxu2 %v4787_v5  ;;  %2488 = vmatpush.msrb.mxu3 %v4803_v7  ;;  %v4874_v2 = vld [vmem:[%s11327_s2 + $0x1bf8] sm:$0xff]  ;;  %v4841_v5 = vld [vmem:[%s11327_s2 + $0x1af0] sm:$0xff] }
 0x1cb   :  { %2501 = vmatpush.msra.mxu0 %v4826_v9  ;;  %2449 = vmatpush.msrb.mxu1 %v4770_v11  ;;  %v4857_v7 = vld [vmem:[%s11327_s2 + $0x1b70] sm:$0xff]  ;;  %v4816_v11 = vld [vmem:[%s11327_s2 + $0x1a28] sm:$0xff] }
 0x1cc   :  { %2469 = vmatpush.msrb.mxu2 %v4786_v12  ;;  %2489 = vmatpush.msrb.mxu3 %v4802_v14  ;;  %v4873_v9 = vld [vmem:[%s11327_s2 + $0x1bf0] sm:$0xff]  ;;  %v4840_v12 = vld [vmem:[%s11327_s2 + $0x1ae8] sm:$0xff] }
 0x1cd   :  { %2502 = vmatpush.msra.mxu0 %v4825_v15  ;;  %2450 = vmatpush.msrb.mxu1 %v4769_v17  ;;  %v4856_v14 = vld [vmem:[%s11327_s2 + $0x1b68] sm:$0xff]  ;;  %v4815_v17 = vld [vmem:[%s11327_s2 + $0x1a20] sm:$0xff] }
 0x1ce   :  { %2470 = vmatpush.msrb.mxu2 %v4785_v21  ;;  %2490 = vmatpush.msrb.mxu3 %v4801_v10  ;;  %v4872_v15 = vld [vmem:[%s11327_s2 + $0x1be8] sm:$0xff]  ;;  %v4839_v21 = vld [vmem:[%s11327_s2 + $0x1ae0] sm:$0xff] }
 0x1cf   :  { %2503 = vmatpush.msra.mxu0 %v4824_v22  ;;  %2451 = vmatpush.msrb.mxu1 %v4768_v51  ;;  %v4855_v10 = vld [vmem:[%s11327_s2 + $0x1b60] sm:$0xff]  ;;  %v4814_v51 = vld [vmem:[%s11327_s2 + $0x1a18] sm:$0xff] }
 0x1d0   :  { %2471 = vmatpush.msrb.mxu2 %v4784_v24  ;;  %2491 = vmatpush.msrb.mxu3 %v4800_v25  ;;  %v4871_v22 = vld [vmem:[%s11327_s2 + $0x1be0] sm:$0xff]  ;;  %v4838_v24 = vld [vmem:[%s11327_s2 + $0x1ad8] sm:$0xff] }
 0x1d1   :  { %2504 = vmatpush.msra.mxu0 %v4823_v27  ;;  %2452 = vmatpush.msrb.mxu1 %v4767_v29  ;;  %v4854_v25 = vld [vmem:[%s11327_s2 + $0x1b58] sm:$0xff]  ;;  %v4813_v29 = vld [vmem:[%s11327_s2 + $0x1a10] sm:$0xff] }
 0x1d2   :  { %2472 = vmatpush.msrb.mxu2 %v4783_v32  ;;  %2492 = vmatpush.msrb.mxu3 %v4799_v33  ;;  %v4870_v27 = vld [vmem:[%s11327_s2 + $0x1bd8] sm:$0xff]  ;;  %v4837_v32 = vld [vmem:[%s11327_s2 + $0x1ad0] sm:$0xff] }
 0x1d3   :  { %2505 = vmatpush.msra.mxu0 %v4822_v34  ;;  %2453 = vmatpush.msrb.mxu1 %v4766_v35  ;;  %v4853_v33 = vld [vmem:[%s11327_s2 + $0x1b50] sm:$0xff]  ;;  %v4812_v35 = vld [vmem:[%s11327_s2 + $0x1a08] sm:$0xff] }
 0x1d4   :  { %2473 = vmatpush.msrb.mxu2 %v4782_v41  ;;  %2493 = vmatpush.msrb.mxu3 %v4798_v42  ;;  %v4869_v34 = vld [vmem:[%s11327_s2 + $0x1bd0] sm:$0xff]  ;;  %v4836_v41 = vld [vmem:[%s11327_s2 + $0x1ac8] sm:$0xff] }
 0x1d5   :  { %2506 = vmatpush.msra.mxu0 %v4821_v43  ;;  %2454 = vmatpush.msrb.mxu1 %v4765_v44  ;;  %v4852_v42 = vld [vmem:[%s11327_s2 + $0x1b48] sm:$0xff]  ;;  %v4811_v44 = vld [vmem:[%s11327_s2 + $0x1a00] sm:$0xff] }
 0x1d6   :  { %2474 = vmatpush.msrb.mxu2 %v4781_v48  ;;  %2494 = vmatpush.msrb.mxu3 %v4797_v49  ;;  %v4868_v43 = vld [vmem:[%s11327_s2 + $0x1bc8] sm:$0xff]  ;;  %v4835_v48 = vld [vmem:[%s11327_s2 + $0x1ac0] sm:$0xff] }
 0x1d7   :  { %2507 = vmatpush.msra.mxu0 %v4820_v23  ;;  %2455 = vmatpush.msrb.mxu1 %v4764_v50  ;;  %v4851_v49 = vld [vmem:[%s11327_s2 + $0x1b40] sm:$0xff]  ;;  %v4890_v50 = vld [vmem:[%s11327_s2 + $0x1c78] sm:$0xff] }
 0x1d8   :  { %2475 = vmatpush.msrb.mxu2 %v4780_v53  ;;  %2495 = vmatpush.msrb.mxu3 %v4796_v55  ;;  %v4867_v23 = vld [vmem:[%s11327_s2 + $0x1bc0] sm:$0xff]  ;;  %v4834_v53 = vld [vmem:[%s11327_s2 + $0x1ab8] sm:$0xff] }
 0x1d9   :  { %2508 = vmatpush.msra.mxu0 %v4819_v56  ;;  %2456 = vmatpush.msrb.mxu1 %v4763_v57  ;;  %v4850_v55 = vld [vmem:[%s11327_s2 + $0x1b38] sm:$0xff]  ;;  %v5668_v56 = vld [vmem:[%s11329_s1] sm:$0x1] }
 0x1da   :  { %2476 = vmatpush.msrb.mxu2 %v4779_v58  ;;  %2496 = vmatpush.msrb.mxu3 %v4795_v61  ;;  %v4866_v57 = vld [vmem:[%s11327_s2 + $0x1bb8] sm:$0xff]  ;;  %v4889_v58 = vld [vmem:[%s11327_s2 + $0x1c70] sm:$0xff] }
 0x1db   :  { %2509 = vmatpush.msra.mxu0 %v4818_v63  ;;  %2521 = vmatpush.msra.mxu1 %v4842_v0  ;;  %v4833_v61 = vld [vmem:[%s11327_s2 + $0x1ab0] sm:$0xff] }
 0x1dc   :  { %2541 = vmatpush.msra.mxu2 %v4858_v1  ;;  %2561 = vmatpush.msra.mxu3 %v4874_v2  ;;  %v4849_v63 = vld [vmem:[%s11327_s2 + $0x1b30] sm:$0xff]  ;;  %v4888_v1 = vld [vmem:[%s11327_s2 + $0x1c68] sm:$0xff] }
 0x1dd   :  { %2510 = vmatpush.msra.mxu0 %v4817_v4  ;;  %2522 = vmatpush.msra.mxu1 %v4841_v5  ;;  %v4865_v0 = vld [vmem:[%s11327_s2 + $0x1bb0] sm:$0xff]  ;;  %v4832_v2 = vld [vmem:[%s11327_s2 + $0x1aa8] sm:$0xff] }
 0x1de   :  { %2542 = vmatpush.msra.mxu2 %v4857_v7  ;;  %2562 = vmatpush.msra.mxu3 %v4873_v9  ;;  %v4848_v4 = vld [vmem:[%s11327_s2 + $0x1b28] sm:$0xff]  ;;  %v4887_v7 = vld [vmem:[%s11327_s2 + $0x1c60] sm:$0xff] }
 0x1df   :  { %2511 = vmatpush.msra.mxu0 %v4816_v11  ;;  %2523 = vmatpush.msra.mxu1 %v4840_v12  ;;  %v4864_v5 = vld [vmem:[%s11327_s2 + $0x1ba8] sm:$0xff]  ;;  %v4831_v9 = vld [vmem:[%s11327_s2 + $0x1aa0] sm:$0xff] }
 0x1e0   :  { %2543 = vmatpush.msra.mxu2 %v4856_v14  ;;  %2563 = vmatpush.msra.mxu3 %v4872_v15  ;;  %v4847_v11 = vld [vmem:[%s11327_s2 + $0x1b20] sm:$0xff]  ;;  %v4830_v14 = vld [vmem:[%s11327_s2 + $0x1a98] sm:$0xff] }
 0x1e1   :  { %2512 = vmatpush.msra.mxu0 %v4815_v17  ;;  %2524 = vmatpush.msra.mxu1 %v4839_v21  ;;  %v4863_v12 = vld [vmem:[%s11327_s2 + $0x1ba0] sm:$0xff]  ;;  %v4886_v15 = vld [vmem:[%s11327_s2 + $0x1c58] sm:$0xff] }
 0x1e2   :  { %2544 = vmatpush.msra.mxu2 %v4855_v10  ;;  %2564 = vmatpush.msra.mxu3 %v4871_v22  ;;  %v4846_v17 = vld [vmem:[%s11327_s2 + $0x1b18] sm:$0xff]  ;;  %v4829_v10 = vld [vmem:[%s11327_s2 + $0x1a90] sm:$0xff] }
 0x1e3   :  { %2513 = vmatpush.msra.mxu0 %v4814_v51  ;;  %2525 = vmatpush.msra.mxu1 %v4838_v24  ;;  %v4862_v21 = vld [vmem:[%s11327_s2 + $0x1b98] sm:$0xff]  ;;  %v4885_v22 = vld [vmem:[%s11327_s2 + $0x1c50] sm:$0xff] }
 0x1e4   :  { %2545 = vmatpush.msra.mxu2 %v4854_v25  ;;  %2565 = vmatpush.msra.mxu3 %v4870_v27  ;;  %v4845_v51 = vld [vmem:[%s11327_s2 + $0x1b10] sm:$0xff]  ;;  %v4828_v25 = vld [vmem:[%s11327_s2 + $0x1a88] sm:$0xff] }
 0x1e5   :  { %2514 = vmatpush.msra.mxu0 %v4813_v29  ;;  %2526 = vmatpush.msra.mxu1 %v4837_v32  ;;  %v4861_v24 = vld [vmem:[%s11327_s2 + $0x1b90] sm:$0xff]  ;;  %v4884_v27 = vld [vmem:[%s11327_s2 + $0x1c48] sm:$0xff] }
 0x1e6   :  { %2546 = vmatpush.msra.mxu2 %v4853_v33  ;;  %2566 = vmatpush.msra.mxu3 %v4869_v34  ;;  %v4844_v29 = vld [vmem:[%s11327_s2 + $0x1b08] sm:$0xff]  ;;  %v4827_v33 = vld [vmem:[%s11327_s2 + $0x1a80] sm:$0xff] }
 0x1e7   :  { %2515 = vmatpush.msra.mxu0 %v4812_v35  ;;  %2527 = vmatpush.msra.mxu1 %v4836_v41  ;;  %v4860_v32 = vld [vmem:[%s11327_s2 + $0x1b88] sm:$0xff]  ;;  %v4883_v34 = vld [vmem:[%s11327_s2 + $0x1c40] sm:$0xff] }
 0x1e8   :  { %2547 = vmatpush.msra.mxu2 %v4852_v42  ;;  %2567 = vmatpush.msra.mxu3 %v4868_v43  ;;  %v4843_v35 = vld [vmem:[%s11327_s2 + $0x1b00] sm:$0xff]  ;;  %v4882_v42 = vld [vmem:[%s11327_s2 + $0x1c38] sm:$0xff] }
 0x1e9   :  { %2477 = vmatmul.f32.vlgmr.msrb.gmra.mxu2 %v6131_v30  ;;  %2516 = vmatpush.msra.mxu0 %v4811_v44  ;;  %v4859_v41 = vld [vmem:[%s11327_s2 + $0x1b80] sm:$0xff]  ;;  %v4906_v43 = vld [vmem:[%s11327_s2 + $0x1cf8] sm:$0xff] }
 0x1ea   :  { %2528 = vmatpush.msra.mxu1 %v4835_v48  ;;  %2548 = vmatpush.msra.mxu2 %v4851_v49  ;;  %v4922_v44 = vld [vmem:[%s11327_s2 + $0x1d78] sm:$0xff]  ;;  %v4881_v49 = vld [vmem:[%s11327_s2 + $0x1c30] sm:$0xff] }
 0x1eb   :  { %2568 = vmatpush.msra.mxu3 %v4867_v23  ;;  %5163 = vmatmul.msk.f32.vlgmr.msrb.gmra.mxu0 %vm475_vm0, %v5668_v56  ;;  %v4938_v48 = vld [vmem:[%s11327_s2 + $0x1df8] sm:$0xff]  ;;  %v4905_v23 = vld [vmem:[%s11327_s2 + $0x1cf0] sm:$0xff]  ;;  %v4904_v56 = vld [vmem:[%s11327_s2 + $0x1ce8] sm:$0xff] }
 0x1ec   :  { %2497 = vmatmul.f32.vlgmr.msrb.gmra.mxu3 %v6149_v36  ;;  %2581 = vmatpush.msrb.mxu0 %v4890_v50  ;;  %v4921_v50 = vld [vmem:[%s11327_s2 + $0x1d70] sm:$0xff] }
 0x1ed   :  { %2529 = vmatpush.msra.mxu1 %v4834_v53  ;;  %2549 = vmatpush.msra.mxu2 %v4850_v55  ;;  %v4937_v53 = vld [vmem:[%s11327_s2 + $0x1df0] sm:$0xff]  ;;  %v4880_v55 = vld [vmem:[%s11327_s2 + $0x1c28] sm:$0xff] }
 0x1ee   :  { %2569 = vmatpush.msra.mxu3 %v4866_v57  ;;  %2457 = vmatmul.f32.vlgmr.msrb.gmra.mxu1 %v6162_v40  ;;  %v4920_v57 = vld [vmem:[%s11327_s2 + $0x1d68] sm:$0xff] }
 0x1ef   :  { %2582 = vmatpush.msrb.mxu0 %v4889_v58  ;;  %2530 = vmatpush.msra.mxu1 %v4833_v61  ;;  %v4936_v58 = vld [vmem:[%s11327_s2 + $0x1de8] sm:$0xff]  ;;  %v4879_v61 = vld [vmem:[%s11327_s2 + $0x1c20] sm:$0xff] }
 0x1f0   :  { %2550 = vmatpush.msra.mxu2 %v4849_v63  ;;  %2570 = vmatpush.msra.mxu3 %v4865_v0  ;;  %v4903_v63 = vld [vmem:[%s11327_s2 + $0x1ce0] sm:$0xff] }
 0x1f1   :  { %2583 = vmatpush.msrb.mxu0 %v4888_v1  ;;  %2531 = vmatpush.msra.mxu1 %v4832_v2  ;;  %v4919_v0 = vld [vmem:[%s11327_s2 + $0x1d60] sm:$0xff]  ;;  %v4878_v2 = vld [vmem:[%s11327_s2 + $0x1c18] sm:$0xff] }
 0x1f2   :  { %2551 = vmatpush.msra.mxu2 %v4848_v4  ;;  %2571 = vmatpush.msra.mxu3 %v4864_v5  ;;  %v4935_v1 = vld [vmem:[%s11327_s2 + $0x1de0] sm:$0xff]  ;;  %v4902_v4 = vld [vmem:[%s11327_s2 + $0x1cd8] sm:$0xff] }
 0x1f3   :  { %2584 = vmatpush.msrb.mxu0 %v4887_v7  ;;  %2532 = vmatpush.msra.mxu1 %v4831_v9  ;;  %v4918_v5 = vld [vmem:[%s11327_s2 + $0x1d58] sm:$0xff]  ;;  %v4877_v9 = vld [vmem:[%s11327_s2 + $0x1c10] sm:$0xff] }
 0x1f4   :  { %2552 = vmatpush.msra.mxu2 %v4847_v11  ;;  %2572 = vmatpush.msra.mxu3 %v4863_v12  ;;  %v4934_v7 = vld [vmem:[%s11327_s2 + $0x1dd8] sm:$0xff]  ;;  %v4901_v11 = vld [vmem:[%s11327_s2 + $0x1cd0] sm:$0xff] }
 0x1f5   :  { %2517 = vmatmul.f32.vlgmr.msra.gmra.mxu0 %v6207_v54  ;;  %2533 = vmatpush.msra.mxu1 %v4830_v14  ;;  %v4917_v12 = vld [vmem:[%s11327_s2 + $0x1d50] sm:$0xff] }
 0x1f6   :  { %2585 = vmatpush.msrb.mxu0 %v4886_v15  ;;  %2553 = vmatpush.msra.mxu2 %v4846_v17  ;;  %v4933_v14 = vld [vmem:[%s11327_s2 + $0x1dd0] sm:$0xff]  ;;  %v4876_v15 = vld [vmem:[%s11327_s2 + $0x1c08] sm:$0xff] }
 0x1f7   :  { %2573 = vmatpush.msra.mxu3 %v4862_v21  ;;  %2534 = vmatpush.msra.mxu1 %v4829_v10  ;;  %v4900_v17 = vld [vmem:[%s11327_s2 + $0x1cc8] sm:$0xff] }
 0x1f8   :  { %2586 = vmatpush.msrb.mxu0 %v4885_v22  ;;  %2554 = vmatpush.msra.mxu2 %v4845_v51  ;;  %v4916_v21 = vld [vmem:[%s11327_s2 + $0x1d48] sm:$0xff]  ;;  %v4875_v22 = vld [vmem:[%s11327_s2 + $0x1c00] sm:$0xff] }
 0x1f9   :  { %2574 = vmatpush.msra.mxu3 %v4861_v24  ;;  %2535 = vmatpush.msra.mxu1 %v4828_v25  ;;  %v4932_v10 = vld [vmem:[%s11327_s2 + $0x1dc8] sm:$0xff]  ;;  %v4899_v51 = vld [vmem:[%s11327_s2 + $0x1cc0] sm:$0xff] }
 0x1fa   :  { %2587 = vmatpush.msrb.mxu0 %v4884_v27  ;;  %2555 = vmatpush.msra.mxu2 %v4844_v29  ;;  %v4915_v24 = vld [vmem:[%s11327_s2 + $0x1d40] sm:$0xff]  ;;  %v4898_v27 = vld [vmem:[%s11327_s2 + $0x1cb8] sm:$0xff] }
 0x1fb   :  { %2575 = vmatpush.msra.mxu3 %v4860_v32  ;;  %2536 = vmatpush.msra.mxu1 %v4827_v33  ;;  %v4931_v25 = vld [vmem:[%s11327_s2 + $0x1dc0] sm:$0xff]  ;;  %v4954_v29 = vld [vmem:[%s11327_s2 + $0x1e78] sm:$0xff] }
 0x1fc   :  { %2588 = vmatpush.msrb.mxu0 %v4883_v34  ;;  %2556 = vmatpush.msra.mxu2 %v4843_v35  ;;  %v4914_v32 = vld [vmem:[%s11327_s2 + $0x1d38] sm:$0xff]  ;;  %v4897_v34 = vld [vmem:[%s11327_s2 + $0x1cb0] sm:$0xff] }
 0x1fd   :  { %2576 = vmatpush.msra.mxu3 %v4859_v41  ;;  %2537 = vmatmul.f32.vlgmr.msra.gmra.mxu1 %v6256_v6  ;;  %v4930_v33 = vld [vmem:[%s11327_s2 + $0x1db8] sm:$0xff]  ;;  %v4953_v35 = vld [vmem:[%s11327_s2 + $0x1e70] sm:$0xff] }
 0x1fe   :  { %2557 = vmatmul.f32.vlgmr.msra.gmra.mxu2 %v6262_v8  ;;  %2589 = vmatpush.msrb.mxu0 %v4882_v42  ;;  %v4913_v41 = vld [vmem:[%s11327_s2 + $0x1d30] sm:$0xff] }
 0x1ff   :  { %2601 = vmatpush.msrb.mxu1 %v4906_v43  ;;  %2621 = vmatpush.msrb.mxu2 %v4922_v44  ;;  %v4929_v42 = vld [vmem:[%s11327_s2 + $0x1db0] sm:$0xff]  ;;  %v4896_v43 = vld [vmem:[%s11327_s2 + $0x1ca8] sm:$0xff] }
 0x200   :  { %2641 = vmatpush.msrb.mxu3 %v4938_v48  ;;  %2590 = vmatpush.msrb.mxu0 %v4881_v49  ;;  %v4952_v44 = vld [vmem:[%s11327_s2 + $0x1e68] sm:$0xff] }
 0x201   :  { %2577 = vmatmul.f32.vlgmr.msra.gmra.mxu3 %v6278_v13  ;;  %2602 = vmatpush.msrb.mxu1 %v4905_v23  ;;  %v4912_v48 = vld [vmem:[%s11327_s2 + $0x1d28] sm:$0xff]  ;;  %v4895_v23 = vld [vmem:[%s11327_s2 + $0x1ca0] sm:$0xff] }
 0x202   :  { %2622 = vmatpush.msrb.mxu2 %v4921_v50  ;;  %2642 = vmatpush.msrb.mxu3 %v4937_v53  ;;  %v4928_v49 = vld [vmem:[%s11327_s2 + $0x1da8] sm:$0xff]  ;;  %v4951_v50 = vld [vmem:[%s11327_s2 + $0x1e60] sm:$0xff] }
 0x203   :  { %2591 = vmatpush.msrb.mxu0 %v4880_v55  ;;  %2603 = vmatpush.msrb.mxu1 %v4904_v56  ;;  %v4911_v53 = vld [vmem:[%s11327_s2 + $0x1d20] sm:$0xff]  ;;  %v4894_v56 = vld [vmem:[%s11327_s2 + $0x1c98] sm:$0xff] }
 0x204   :  { %2623 = vmatpush.msrb.mxu2 %v4920_v57  ;;  %2643 = vmatpush.msrb.mxu3 %v4936_v58  ;;  %v4927_v55 = vld [vmem:[%s11327_s2 + $0x1da0] sm:$0xff]  ;;  %v4950_v57 = vld [vmem:[%s11327_s2 + $0x1e58] sm:$0xff] }
 0x205   :  { %2592 = vmatpush.msrb.mxu0 %v4879_v61  ;;  %2604 = vmatpush.msrb.mxu1 %v4903_v63  ;;  %v4910_v58 = vld [vmem:[%s11327_s2 + $0x1d18] sm:$0xff]  ;;  %v4893_v63 = vld [vmem:[%s11327_s2 + $0x1c90] sm:$0xff] }
 0x206   :  { %2624 = vmatpush.msrb.mxu2 %v4919_v0  ;;  %2644 = vmatpush.msrb.mxu3 %v4935_v1  ;;  %v4926_v61 = vld [vmem:[%s11327_s2 + $0x1d98] sm:$0xff]  ;;  %v4949_v0 = vld [vmem:[%s11327_s2 + $0x1e50] sm:$0xff] }
 0x207   :  { %2593 = vmatpush.msrb.mxu0 %v4878_v2  ;;  %2605 = vmatpush.msrb.mxu1 %v4902_v4  ;;  %v4909_v1 = vld [vmem:[%s11327_s2 + $0x1d10] sm:$0xff]  ;;  %v4892_v4 = vld [vmem:[%s11327_s2 + $0x1c88] sm:$0xff] }
 0x208   :  { %2625 = vmatpush.msrb.mxu2 %v4918_v5  ;;  %2645 = vmatpush.msrb.mxu3 %v4934_v7  ;;  %v4925_v2 = vld [vmem:[%s11327_s2 + $0x1d90] sm:$0xff]  ;;  %v4948_v5 = vld [vmem:[%s11327_s2 + $0x1e48] sm:$0xff] }
 0x209   :  { %2594 = vmatpush.msrb.mxu0 %v4877_v9  ;;  %2606 = vmatpush.msrb.mxu1 %v4901_v11  ;;  %v4908_v7 = vld [vmem:[%s11327_s2 + $0x1d08] sm:$0xff]  ;;  %v4891_v11 = vld [vmem:[%s11327_s2 + $0x1c80] sm:$0xff] }
 0x20a   :  { %2626 = vmatpush.msrb.mxu2 %v4917_v12  ;;  %2646 = vmatpush.msrb.mxu3 %v4933_v14  ;;  %v4924_v9 = vld [vmem:[%s11327_s2 + $0x1d88] sm:$0xff]  ;;  %v4947_v12 = vld [vmem:[%s11327_s2 + $0x1e40] sm:$0xff] }
 0x20b   :  { %2595 = vmatpush.msrb.mxu0 %v4876_v15  ;;  %2607 = vmatpush.msrb.mxu1 %v4900_v17  ;;  %v4907_v14 = vld [vmem:[%s11327_s2 + $0x1d00] sm:$0xff]  ;;  %v4946_v17 = vld [vmem:[%s11327_s2 + $0x1e38] sm:$0xff] }
 0x20c   :  { %2627 = vmatpush.msrb.mxu2 %v4916_v21  ;;  %2647 = vmatpush.msrb.mxu3 %v4932_v10  ;;  %v4923_v15 = vld [vmem:[%s11327_s2 + $0x1d80] sm:$0xff]  ;;  %v4970_v21 = vld [vmem:[%s11327_s2 + $0x1ef8] sm:$0xff] }
 0x20d   :  { %2596 = vmatpush.msrb.mxu0 %v4875_v22  ;;  %2608 = vmatpush.msrb.mxu1 %v4899_v51  ;;  %v4986_v10 = vld [vmem:[%s11327_s2 + $0x1f78] sm:$0xff]  ;;  %v4945_v51 = vld [vmem:[%s11327_s2 + $0x1e30] sm:$0xff] }
 0x20e   :  { %2628 = vmatpush.msrb.mxu2 %v4915_v24  ;;  %2648 = vmatpush.msrb.mxu3 %v4931_v25  ;;  %v5002_v22 = vld [vmem:[%s11327_s2 + $0x1ff8] sm:$0xff]  ;;  %v4969_v24 = vld [vmem:[%s11327_s2 + $0x1ef0] sm:$0xff] }
 0x20f   :  { %2597 = vmatmul.f32.vlgmr.msrb.gmra.mxu0 %v6367_v46  ;;  %2609 = vmatpush.msrb.mxu1 %v4898_v27  ;;  %v4985_v25 = vld [vmem:[%s11327_s2 + $0x1f70] sm:$0xff] }
 0x210   :  { %2661 = vmatpush.msra.mxu0 %v4954_v29  ;;  %2629 = vmatpush.msrb.mxu2 %v4914_v32  ;;  %v5001_v27 = vld [vmem:[%s11327_s2 + $0x1ff0] sm:$0xff]  ;;  %v4944_v29 = vld [vmem:[%s11327_s2 + $0x1e28] sm:$0xff] }
 0x211   :  { %2649 = vmatpush.msrb.mxu3 %v4930_v33  ;;  %2610 = vmatpush.msrb.mxu1 %v4897_v34  ;;  %v4968_v32 = vld [vmem:[%s11327_s2 + $0x1ee8] sm:$0xff] }
 0x212   :  { %2662 = vmatpush.msra.mxu0 %v4953_v35  ;;  %2630 = vmatpush.msrb.mxu2 %v4913_v41  ;;  %v4984_v33 = vld [vmem:[%s11327_s2 + $0x1f68] sm:$0xff]  ;;  %v4943_v35 = vld [vmem:[%s11327_s2 + $0x1e20] sm:$0xff] }
 0x213   :  { %2650 = vmatpush.msrb.mxu3 %v4929_v42  ;;  %2611 = vmatpush.msrb.mxu1 %v4896_v43  ;;  %v5000_v34 = vld [vmem:[%s11327_s2 + $0x1fe8] sm:$0xff]  ;;  %v4967_v41 = vld [vmem:[%s11327_s2 + $0x1ee0] sm:$0xff] }
 0x214   :  { %2663 = vmatpush.msra.mxu0 %v4952_v44  ;;  %2631 = vmatpush.msrb.mxu2 %v4912_v48  ;;  %v4983_v42 = vld [vmem:[%s11327_s2 + $0x1f60] sm:$0xff]  ;;  %v4942_v44 = vld [vmem:[%s11327_s2 + $0x1e18] sm:$0xff] }
 0x215   :  { %2651 = vmatpush.msrb.mxu3 %v4928_v49  ;;  %2612 = vmatpush.msrb.mxu1 %v4895_v23  ;;  %v4999_v43 = vld [vmem:[%s11327_s2 + $0x1fe0] sm:$0xff]  ;;  %v4966_v48 = vld [vmem:[%s11327_s2 + $0x1ed8] sm:$0xff] }
 0x216   :  { %2664 = vmatpush.msra.mxu0 %v4951_v50  ;;  %2632 = vmatpush.msrb.mxu2 %v4911_v53  ;;  %v4982_v49 = vld [vmem:[%s11327_s2 + $0x1f58] sm:$0xff]  ;;  %v4941_v50 = vld [vmem:[%s11327_s2 + $0x1e10] sm:$0xff] }
 0x217   :  { %2652 = vmatpush.msrb.mxu3 %v4927_v55  ;;  %2613 = vmatpush.msrb.mxu1 %v4894_v56  ;;  %v4998_v23 = vld [vmem:[%s11327_s2 + $0x1fd8] sm:$0xff]  ;;  %v4965_v53 = vld [vmem:[%s11327_s2 + $0x1ed0] sm:$0xff] }
 0x218   :  { %2665 = vmatpush.msra.mxu0 %v4950_v57  ;;  %2633 = vmatpush.msrb.mxu2 %v4910_v58  ;;  %v4981_v55 = vld [vmem:[%s11327_s2 + $0x1f50] sm:$0xff]  ;;  %v4940_v57 = vld [vmem:[%s11327_s2 + $0x1e08] sm:$0xff] }
 0x219   :  { %2653 = vmatpush.msrb.mxu3 %v4926_v61  ;;  %2614 = vmatpush.msrb.mxu1 %v4893_v63  ;;  %v4997_v56 = vld [vmem:[%s11327_s2 + $0x1fd0] sm:$0xff]  ;;  %v4964_v58 = vld [vmem:[%s11327_s2 + $0x1ec8] sm:$0xff] }
 0x21a   :  { %2666 = vmatpush.msra.mxu0 %v4949_v0  ;;  %2634 = vmatpush.msrb.mxu2 %v4909_v1  ;;  %v4980_v61 = vld [vmem:[%s11327_s2 + $0x1f48] sm:$0xff]  ;;  %v4939_v0 = vld [vmem:[%s11327_s2 + $0x1e00] sm:$0xff] }
 0x21b   :  { %2654 = vmatpush.msrb.mxu3 %v4925_v2  ;;  %2615 = vmatpush.msrb.mxu1 %v4892_v4  ;;  %v4996_v63 = vld [vmem:[%s11327_s2 + $0x1fc8] sm:$0xff]  ;;  %v4963_v1 = vld [vmem:[%s11327_s2 + $0x1ec0] sm:$0xff] }
 0x21c   :  { %2667 = vmatpush.msra.mxu0 %v4948_v5  ;;  %2635 = vmatpush.msrb.mxu2 %v4908_v7  ;;  %v4979_v2 = vld [vmem:[%s11327_s2 + $0x1f40] sm:$0xff]  ;;  %v4962_v5 = vld [vmem:[%s11327_s2 + $0x1eb8] sm:$0xff] }
 0x21d   :  { %2655 = vmatpush.msrb.mxu3 %v4924_v9  ;;  %2616 = vmatpush.msrb.mxu1 %v4891_v11  ;;  %v4995_v4 = vld [vmem:[%s11327_s2 + $0x1fc0] sm:$0xff]  ;;  %v5018_v7 = vld [vmem:[%s11327_s2 + $0x2078] sm:$0xff] }
 0x21e   :  { %2668 = vmatpush.msra.mxu0 %v4947_v12  ;;  %2636 = vmatpush.msrb.mxu2 %v4907_v14  ;;  %v4978_v9 = vld [vmem:[%s11327_s2 + $0x1f38] sm:$0xff]  ;;  %v4961_v12 = vld [vmem:[%s11327_s2 + $0x1eb0] sm:$0xff] }
 0x21f   :  { %2656 = vmatpush.msrb.mxu3 %v4923_v15  ;;  %2617 = vmatmul.f32.vlgmr.msrb.gmra.mxu1 %v6469_v18  ;;  %v4994_v11 = vld [vmem:[%s11327_s2 + $0x1fb8] sm:$0xff]  ;;  %v5017_v14 = vld [vmem:[%s11327_s2 + $0x2070] sm:$0xff] }
 0x220   :  { %2637 = vmatmul.f32.vlgmr.msrb.gmra.mxu2 %v6475_v20  ;;  %2669 = vmatpush.msra.mxu0 %v4946_v17  ;;  %v4977_v15 = vld [vmem:[%s11327_s2 + $0x1f30] sm:$0xff] }
 0x221   :  { %2681 = vmatpush.msra.mxu1 %v4970_v21  ;;  %2701 = vmatpush.msra.mxu2 %v4986_v10  ;;  %v4993_v17 = vld [vmem:[%s11327_s2 + $0x1fb0] sm:$0xff]  ;;  %v4960_v21 = vld [vmem:[%s11327_s2 + $0x1ea8] sm:$0xff] }
 0x222   :  { %2721 = vmatpush.msra.mxu3 %v5002_v22  ;;  %2670 = vmatpush.msra.mxu0 %v4945_v51  ;;  %v5016_v10 = vld [vmem:[%s11327_s2 + $0x2068] sm:$0xff] }
 0x223   :  { %2657 = vmatmul.f32.vlgmr.msrb.gmra.mxu3 %v6491_v26  ;;  %2682 = vmatpush.msra.mxu1 %v4969_v24  ;;  %v4976_v22 = vld [vmem:[%s11327_s2 + $0x1f28] sm:$0xff]  ;;  %v4959_v24 = vld [vmem:[%s11327_s2 + $0x1ea0] sm:$0xff] }
 0x224   :  { %2702 = vmatpush.msra.mxu2 %v4985_v25  ;;  %2722 = vmatpush.msra.mxu3 %v5001_v27  ;;  %v4992_v51 = vld [vmem:[%s11327_s2 + $0x1fa8] sm:$0xff]  ;;  %v5015_v25 = vld [vmem:[%s11327_s2 + $0x2060] sm:$0xff] }
 0x225   :  { %2671 = vmatpush.msra.mxu0 %v4944_v29  ;;  %2683 = vmatpush.msra.mxu1 %v4968_v32  ;;  %v4975_v27 = vld [vmem:[%s11327_s2 + $0x1f20] sm:$0xff]  ;;  %v4958_v32 = vld [vmem:[%s11327_s2 + $0x1e98] sm:$0xff] }
 0x226   :  { %2703 = vmatpush.msra.mxu2 %v4984_v33  ;;  %2723 = vmatpush.msra.mxu3 %v5000_v34  ;;  %v4991_v29 = vld [vmem:[%s11327_s2 + $0x1fa0] sm:$0xff]  ;;  %v5014_v33 = vld [vmem:[%s11327_s2 + $0x2058] sm:$0xff] }
 0x227   :  { %2672 = vmatpush.msra.mxu0 %v4943_v35  ;;  %2684 = vmatpush.msra.mxu1 %v4967_v41  ;;  %v4974_v34 = vld [vmem:[%s11327_s2 + $0x1f18] sm:$0xff]  ;;  %v4957_v41 = vld [vmem:[%s11327_s2 + $0x1e90] sm:$0xff] }
 0x228   :  { %2704 = vmatpush.msra.mxu2 %v4983_v42  ;;  %2724 = vmatpush.msra.mxu3 %v4999_v43  ;;  %v4990_v35 = vld [vmem:[%s11327_s2 + $0x1f98] sm:$0xff]  ;;  %v5013_v42 = vld [vmem:[%s11327_s2 + $0x2050] sm:$0xff] }
 0x229   :  { %2673 = vmatpush.msra.mxu0 %v4942_v44  ;;  %2685 = vmatpush.msra.mxu1 %v4966_v48  ;;  %v4973_v43 = vld [vmem:[%s11327_s2 + $0x1f10] sm:$0xff]  ;;  %v4956_v48 = vld [vmem:[%s11327_s2 + $0x1e88] sm:$0xff] }
 0x22a   :  { %2705 = vmatpush.msra.mxu2 %v4982_v49  ;;  %2725 = vmatpush.msra.mxu3 %v4998_v23  ;;  %v4989_v44 = vld [vmem:[%s11327_s2 + $0x1f90] sm:$0xff]  ;;  %v5012_v49 = vld [vmem:[%s11327_s2 + $0x2048] sm:$0xff] }
 0x22b   :  { %2674 = vmatpush.msra.mxu0 %v4941_v50  ;;  %2686 = vmatpush.msra.mxu1 %v4965_v53  ;;  %v4972_v23 = vld [vmem:[%s11327_s2 + $0x1f08] sm:$0xff]  ;;  %v4955_v53 = vld [vmem:[%s11327_s2 + $0x1e80] sm:$0xff] }
 0x22c   :  { %2706 = vmatpush.msra.mxu2 %v4981_v55  ;;  %2726 = vmatpush.msra.mxu3 %v4997_v56  ;;  %v4988_v50 = vld [vmem:[%s11327_s2 + $0x1f88] sm:$0xff]  ;;  %v5011_v55 = vld [vmem:[%s11327_s2 + $0x2040] sm:$0xff] }
 0x22d   :  { %2675 = vmatpush.msra.mxu0 %v4940_v57  ;;  %2687 = vmatpush.msra.mxu1 %v4964_v58  ;;  %v4971_v56 = vld [vmem:[%s11327_s2 + $0x1f00] sm:$0xff]  ;;  %v5010_v58 = vld [vmem:[%s11327_s2 + $0x2038] sm:$0xff] }
 0x22e   :  { %2707 = vmatpush.msra.mxu2 %v4980_v61  ;;  %2727 = vmatpush.msra.mxu3 %v4996_v63  ;;  %v4987_v57 = vld [vmem:[%s11327_s2 + $0x1f80] sm:$0xff]  ;;  %v5034_v61 = vld [vmem:[%s11327_s2 + $0x20f8] sm:$0xff] }
 0x22f   :  { %2676 = vmatpush.msra.mxu0 %v4939_v0  ;;  %2688 = vmatpush.msra.mxu1 %v4963_v1  ;;  %v5050_v63 = vld [vmem:[%s11327_s2 + $0x2178] sm:$0xff]  ;;  %v5009_v1 = vld [vmem:[%s11327_s2 + $0x2030] sm:$0xff] }
 0x230   :  { %2708 = vmatpush.msra.mxu2 %v4979_v2  ;;  %2728 = vmatpush.msra.mxu3 %v4995_v4  ;;  %v5066_v0 = vld [vmem:[%s11327_s2 + $0x21f8] sm:$0xff]  ;;  %v5033_v2 = vld [vmem:[%s11327_s2 + $0x20f0] sm:$0xff] }
 0x231   :  { %2677 = vmatmul.f32.vlgmr.msra.gmra.mxu0 %v6580_v59  ;;  %2689 = vmatpush.msra.mxu1 %v4962_v5  ;;  %v5049_v4 = vld [vmem:[%s11327_s2 + $0x2170] sm:$0xff] }
 0x232   :  { %2741 = vmatpush.msrb.mxu0 %v5018_v7  ;;  %2709 = vmatpush.msra.mxu2 %v4978_v9  ;;  %v5065_v5 = vld [vmem:[%s11327_s2 + $0x21f0] sm:$0xff]  ;;  %v5008_v7 = vld [vmem:[%s11327_s2 + $0x2028] sm:$0xff] }
 0x233   :  { %2729 = vmatpush.msra.mxu3 %v4994_v11  ;;  %2690 = vmatpush.msra.mxu1 %v4961_v12  ;;  %v5032_v9 = vld [vmem:[%s11327_s2 + $0x20e8] sm:$0xff] }
 0x234   :  { %2742 = vmatpush.msrb.mxu0 %v5017_v14  ;;  %2710 = vmatpush.msra.mxu2 %v4977_v15  ;;  %v5048_v11 = vld [vmem:[%s11327_s2 + $0x2168] sm:$0xff]  ;;  %v5007_v14 = vld [vmem:[%s11327_s2 + $0x2020] sm:$0xff] }
 0x235   :  { %2730 = vmatpush.msra.mxu3 %v4993_v17  ;;  %2691 = vmatpush.msra.mxu1 %v4960_v21  ;;  %v5064_v12 = vld [vmem:[%s11327_s2 + $0x21e8] sm:$0xff]  ;;  %v5031_v15 = vld [vmem:[%s11327_s2 + $0x20e0] sm:$0xff] }
 0x236   :  { %2743 = vmatpush.msrb.mxu0 %v5016_v10  ;;  %2711 = vmatpush.msra.mxu2 %v4976_v22  ;;  %v5047_v17 = vld [vmem:[%s11327_s2 + $0x2160] sm:$0xff]  ;;  %v5006_v10 = vld [vmem:[%s11327_s2 + $0x2018] sm:$0xff] }
 0x237   :  { %2731 = vmatpush.msra.mxu3 %v4992_v51  ;;  %2692 = vmatpush.msra.mxu1 %v4959_v24  ;;  %v5063_v21 = vld [vmem:[%s11327_s2 + $0x21e0] sm:$0xff]  ;;  %v5030_v22 = vld [vmem:[%s11327_s2 + $0x20d8] sm:$0xff] }
 0x238   :  { %2744 = vmatpush.msrb.mxu0 %v5015_v25  ;;  %2712 = vmatpush.msra.mxu2 %v4975_v27  ;;  %v5046_v51 = vld [vmem:[%s11327_s2 + $0x2158] sm:$0xff]  ;;  %v5005_v25 = vld [vmem:[%s11327_s2 + $0x2010] sm:$0xff] }
 0x239   :  { %2732 = vmatpush.msra.mxu3 %v4991_v29  ;;  %2693 = vmatpush.msra.mxu1 %v4958_v32  ;;  %v5062_v24 = vld [vmem:[%s11327_s2 + $0x21d8] sm:$0xff]  ;;  %v5029_v27 = vld [vmem:[%s11327_s2 + $0x20d0] sm:$0xff] }
 0x23a   :  { %2745 = vmatpush.msrb.mxu0 %v5014_v33  ;;  %2713 = vmatpush.msra.mxu2 %v4974_v34  ;;  %v5045_v29 = vld [vmem:[%s11327_s2 + $0x2150] sm:$0xff]  ;;  %v5004_v33 = vld [vmem:[%s11327_s2 + $0x2008] sm:$0xff] }
 0x23b   :  { %2733 = vmatpush.msra.mxu3 %v4990_v35  ;;  %2694 = vmatpush.msra.mxu1 %v4957_v41  ;;  %v5061_v32 = vld [vmem:[%s11327_s2 + $0x21d0] sm:$0xff]  ;;  %v5028_v34 = vld [vmem:[%s11327_s2 + $0x20c8] sm:$0xff] }
 0x23c   :  { %2746 = vmatpush.msrb.mxu0 %v5013_v42  ;;  %2714 = vmatpush.msra.mxu2 %v4973_v43  ;;  %v5044_v35 = vld [vmem:[%s11327_s2 + $0x2148] sm:$0xff]  ;;  %v5003_v42 = vld [vmem:[%s11327_s2 + $0x2000] sm:$0xff] }
 0x23d   :  { %2734 = vmatpush.msra.mxu3 %v4989_v44  ;;  %2695 = vmatpush.msra.mxu1 %v4956_v48  ;;  %v5060_v41 = vld [vmem:[%s11327_s2 + $0x21c8] sm:$0xff]  ;;  %v5027_v43 = vld [vmem:[%s11327_s2 + $0x20c0] sm:$0xff] }
 0x23e   :  { %2747 = vmatpush.msrb.mxu0 %v5012_v49  ;;  %2715 = vmatpush.msra.mxu2 %v4972_v23  ;;  %v5043_v44 = vld [vmem:[%s11327_s2 + $0x2140] sm:$0xff]  ;;  %v5026_v49 = vld [vmem:[%s11327_s2 + $0x20b8] sm:$0xff] }
 0x23f   :  { %2735 = vmatpush.msra.mxu3 %v4988_v50  ;;  %2696 = vmatpush.msra.mxu1 %v4955_v53  ;;  %v5059_v48 = vld [vmem:[%s11327_s2 + $0x21c0] sm:$0xff]  ;;  %v5082_v23 = vld [vmem:[%s11327_s2 + $0x2278] sm:$0xff] }
 0x240   :  { %2748 = vmatpush.msrb.mxu0 %v5011_v55  ;;  %2716 = vmatpush.msra.mxu2 %v4971_v56  ;;  %v5042_v50 = vld [vmem:[%s11327_s2 + $0x2138] sm:$0xff]  ;;  %v5025_v55 = vld [vmem:[%s11327_s2 + $0x20b0] sm:$0xff] }
 0x241   :  { %2736 = vmatpush.msra.mxu3 %v4987_v57  ;;  %2697 = vmatmul.f32.vlgmr.msra.gmra.mxu1 %v6677_v37  ;;  %v5058_v53 = vld [vmem:[%s11327_s2 + $0x21b8] sm:$0xff]  ;;  %v5081_v56 = vld [vmem:[%s11327_s2 + $0x2270] sm:$0xff] }
 0x242   :  { %2717 = vmatmul.f32.vlgmr.msra.gmra.mxu2 %v6683_v39  ;;  %2749 = vmatpush.msrb.mxu0 %v5010_v58  ;;  %v5041_v57 = vld [vmem:[%s11327_s2 + $0x2130] sm:$0xff] }
 0x243   :  { %2761 = vmatpush.msrb.mxu1 %v5034_v61  ;;  %2781 = vmatpush.msrb.mxu2 %v5050_v63  ;;  %v5057_v58 = vld [vmem:[%s11327_s2 + $0x21b0] sm:$0xff]  ;;  %v5024_v61 = vld [vmem:[%s11327_s2 + $0x20a8] sm:$0xff] }
 0x244   :  { %2801 = vmatpush.msrb.mxu3 %v5066_v0  ;;  %2750 = vmatpush.msrb.mxu0 %v5009_v1  ;;  %v5080_v63 = vld [vmem:[%s11327_s2 + $0x2268] sm:$0xff] }
 0x245   :  { %2737 = vmatmul.f32.vlgmr.msra.gmra.mxu3 %v6699_v45  ;;  %2762 = vmatpush.msrb.mxu1 %v5033_v2  ;;  %v5040_v0 = vld [vmem:[%s11327_s2 + $0x2128] sm:$0xff]  ;;  %v5023_v2 = vld [vmem:[%s11327_s2 + $0x20a0] sm:$0xff] }
 0x246   :  { %2782 = vmatpush.msrb.mxu2 %v5049_v4  ;;  %2802 = vmatpush.msrb.mxu3 %v5065_v5  ;;  %v5056_v1 = vld [vmem:[%s11327_s2 + $0x21a8] sm:$0xff]  ;;  %v5079_v4 = vld [vmem:[%s11327_s2 + $0x2260] sm:$0xff] }
 0x247   :  { %2751 = vmatpush.msrb.mxu0 %v5008_v7  ;;  %2763 = vmatpush.msrb.mxu1 %v5032_v9  ;;  %v5039_v5 = vld [vmem:[%s11327_s2 + $0x2120] sm:$0xff]  ;;  %v5022_v9 = vld [vmem:[%s11327_s2 + $0x2098] sm:$0xff] }
 0x248   :  { %2783 = vmatpush.msrb.mxu2 %v5048_v11  ;;  %2803 = vmatpush.msrb.mxu3 %v5064_v12  ;;  %v5055_v7 = vld [vmem:[%s11327_s2 + $0x21a0] sm:$0xff]  ;;  %v5078_v11 = vld [vmem:[%s11327_s2 + $0x2258] sm:$0xff] }
 0x249   :  { %2752 = vmatpush.msrb.mxu0 %v5007_v14  ;;  %2764 = vmatpush.msrb.mxu1 %v5031_v15  ;;  %v5038_v12 = vld [vmem:[%s11327_s2 + $0x2118] sm:$0xff]  ;;  %v5021_v15 = vld [vmem:[%s11327_s2 + $0x2090] sm:$0xff] }
 0x24a   :  { %2784 = vmatpush.msrb.mxu2 %v5047_v17  ;;  %2804 = vmatpush.msrb.mxu3 %v5063_v21  ;;  %v5054_v14 = vld [vmem:[%s11327_s2 + $0x2198] sm:$0xff]  ;;  %v5077_v17 = vld [vmem:[%s11327_s2 + $0x2250] sm:$0xff] }
 0x24b   :  { %2753 = vmatpush.msrb.mxu0 %v5006_v10  ;;  %2765 = vmatpush.msrb.mxu1 %v5030_v22  ;;  %v5037_v21 = vld [vmem:[%s11327_s2 + $0x2110] sm:$0xff]  ;;  %v5020_v22 = vld [vmem:[%s11327_s2 + $0x2088] sm:$0xff] }
 0x24c   :  { %2785 = vmatpush.msrb.mxu2 %v5046_v51  ;;  %2805 = vmatpush.msrb.mxu3 %v5062_v24  ;;  %v5053_v10 = vld [vmem:[%s11327_s2 + $0x2190] sm:$0xff]  ;;  %v5076_v51 = vld [vmem:[%s11327_s2 + $0x2248] sm:$0xff] }
 0x24d   :  { %2754 = vmatpush.msrb.mxu0 %v5005_v25  ;;  %2766 = vmatpush.msrb.mxu1 %v5029_v27  ;;  %v5036_v24 = vld [vmem:[%s11327_s2 + $0x2108] sm:$0xff]  ;;  %v5019_v27 = vld [vmem:[%s11327_s2 + $0x2080] sm:$0xff] }
 0x24e   :  { %2786 = vmatpush.msrb.mxu2 %v5045_v29  ;;  %2806 = vmatpush.msrb.mxu3 %v5061_v32  ;;  %v5052_v25 = vld [vmem:[%s11327_s2 + $0x2188] sm:$0xff]  ;;  %v5075_v29 = vld [vmem:[%s11327_s2 + $0x2240] sm:$0xff] }
 0x24f   :  { %2755 = vmatpush.msrb.mxu0 %v5004_v33  ;;  %2767 = vmatpush.msrb.mxu1 %v5028_v34  ;;  %v5035_v32 = vld [vmem:[%s11327_s2 + $0x2100] sm:$0xff]  ;;  %v5074_v34 = vld [vmem:[%s11327_s2 + $0x2238] sm:$0xff] }
 0x250   :  { %2787 = vmatpush.msrb.mxu2 %v5044_v35  ;;  %2807 = vmatpush.msrb.mxu3 %v5060_v41  ;;  %v5051_v33 = vld [vmem:[%s11327_s2 + $0x2180] sm:$0xff]  ;;  %v5098_v35 = vld [vmem:[%s11327_s2 + $0x22f8] sm:$0xff] }
 0x251   :  { %2756 = vmatpush.msrb.mxu0 %v5003_v42  ;;  %2768 = vmatpush.msrb.mxu1 %v5027_v43  ;;  %v5114_v41 = vld [vmem:[%s11327_s2 + $0x2378] sm:$0xff]  ;;  %v5073_v43 = vld [vmem:[%s11327_s2 + $0x2230] sm:$0xff] }
 0x252   :  { %2788 = vmatpush.msrb.mxu2 %v5043_v44  ;;  %2808 = vmatpush.msrb.mxu3 %v5059_v48  ;;  %v5130_v42 = vld [vmem:[%s11327_s2 + $0x23f8] sm:$0xff]  ;;  %v5097_v44 = vld [vmem:[%s11327_s2 + $0x22f0] sm:$0xff] }
 0x253   :  { %2757 = vmatmul.f32.vlgmr.msrb.gmra.mxu0 %v6788_v16  ;;  %2769 = vmatpush.msrb.mxu1 %v5026_v49  ;;  %v5113_v48 = vld [vmem:[%s11327_s2 + $0x2370] sm:$0xff] }
 0x254   :  { %2821 = vmatpush.msra.mxu0 %v5082_v23  ;;  %2789 = vmatpush.msrb.mxu2 %v5042_v50  ;;  %v5129_v49 = vld [vmem:[%s11327_s2 + $0x23f0] sm:$0xff]  ;;  %v5072_v23 = vld [vmem:[%s11327_s2 + $0x2228] sm:$0xff] }
 0x255   :  { %2809 = vmatpush.msrb.mxu3 %v5058_v53  ;;  %2770 = vmatpush.msrb.mxu1 %v5025_v55  ;;  %v5096_v50 = vld [vmem:[%s11327_s2 + $0x22e8] sm:$0xff] }
 0x256   :  { %2822 = vmatpush.msra.mxu0 %v5081_v56  ;;  %2790 = vmatpush.msrb.mxu2 %v5041_v57  ;;  %v5112_v53 = vld [vmem:[%s11327_s2 + $0x2368] sm:$0xff]  ;;  %v5071_v56 = vld [vmem:[%s11327_s2 + $0x2220] sm:$0xff] }
 0x257   :  { %2810 = vmatpush.msrb.mxu3 %v5057_v58  ;;  %2771 = vmatpush.msrb.mxu1 %v5024_v61  ;;  %v5128_v55 = vld [vmem:[%s11327_s2 + $0x23e8] sm:$0xff]  ;;  %v5095_v57 = vld [vmem:[%s11327_s2 + $0x22e0] sm:$0xff] }
 0x258   :  { %2823 = vmatpush.msra.mxu0 %v5080_v63  ;;  %2791 = vmatpush.msrb.mxu2 %v5040_v0  ;;  %v5111_v58 = vld [vmem:[%s11327_s2 + $0x2360] sm:$0xff]  ;;  %v5070_v63 = vld [vmem:[%s11327_s2 + $0x2218] sm:$0xff] }
 0x259   :  { %2811 = vmatpush.msrb.mxu3 %v5056_v1  ;;  %2772 = vmatpush.msrb.mxu1 %v5023_v2  ;;  %v5127_v61 = vld [vmem:[%s11327_s2 + $0x23e0] sm:$0xff]  ;;  %v5094_v0 = vld [vmem:[%s11327_s2 + $0x22d8] sm:$0xff] }
 0x25a   :  { %2824 = vmatpush.msra.mxu0 %v5079_v4  ;;  %2792 = vmatpush.msrb.mxu2 %v5039_v5  ;;  %v5110_v1 = vld [vmem:[%s11327_s2 + $0x2358] sm:$0xff]  ;;  %v5069_v4 = vld [vmem:[%s11327_s2 + $0x2210] sm:$0xff] }
 0x25b   :  { %2812 = vmatpush.msrb.mxu3 %v5055_v7  ;;  %2773 = vmatpush.msrb.mxu1 %v5022_v9  ;;  %v5126_v2 = vld [vmem:[%s11327_s2 + $0x23d8] sm:$0xff]  ;;  %v5093_v5 = vld [vmem:[%s11327_s2 + $0x22d0] sm:$0xff] }
 0x25c   :  { %2825 = vmatpush.msra.mxu0 %v5078_v11  ;;  %2793 = vmatpush.msrb.mxu2 %v5038_v12  ;;  %v5109_v7 = vld [vmem:[%s11327_s2 + $0x2350] sm:$0xff]  ;;  %v5068_v11 = vld [vmem:[%s11327_s2 + $0x2208] sm:$0xff] }
 0x25d   :  { %2813 = vmatpush.msrb.mxu3 %v5054_v14  ;;  %2774 = vmatpush.msrb.mxu1 %v5021_v15  ;;  %v5125_v9 = vld [vmem:[%s11327_s2 + $0x23d0] sm:$0xff]  ;;  %v5092_v12 = vld [vmem:[%s11327_s2 + $0x22c8] sm:$0xff] }
 0x25e   :  { %2826 = vmatpush.msra.mxu0 %v5077_v17  ;;  %2794 = vmatpush.msrb.mxu2 %v5037_v21  ;;  %v5108_v14 = vld [vmem:[%s11327_s2 + $0x2348] sm:$0xff]  ;;  %v5067_v17 = vld [vmem:[%s11327_s2 + $0x2200] sm:$0xff] }
 0x25f   :  { %2814 = vmatpush.msrb.mxu3 %v5053_v10  ;;  %2775 = vmatpush.msrb.mxu1 %v5020_v22  ;;  %v5124_v15 = vld [vmem:[%s11327_s2 + $0x23c8] sm:$0xff]  ;;  %v5091_v21 = vld [vmem:[%s11327_s2 + $0x22c0] sm:$0xff] }
 0x260   :  { %2827 = vmatpush.msra.mxu0 %v5076_v51  ;;  %2795 = vmatpush.msrb.mxu2 %v5036_v24  ;;  %v5107_v10 = vld [vmem:[%s11327_s2 + $0x2340] sm:$0xff]  ;;  %v5090_v51 = vld [vmem:[%s11327_s2 + $0x22b8] sm:$0xff] }
 0x261   :  { %2815 = vmatpush.msrb.mxu3 %v5052_v25  ;;  %2776 = vmatpush.msrb.mxu1 %v5019_v27  ;;  %v5123_v22 = vld [vmem:[%s11327_s2 + $0x23c0] sm:$0xff]  ;;  %v5146_v24 = vld [vmem:[%s11327_s2 + $0x2478] sm:$0xff] }
 0x262   :  { %2828 = vmatpush.msra.mxu0 %v5075_v29  ;;  %2796 = vmatpush.msrb.mxu2 %v5035_v32  ;;  %v5106_v25 = vld [vmem:[%s11327_s2 + $0x2338] sm:$0xff]  ;;  %v5089_v29 = vld [vmem:[%s11327_s2 + $0x22b0] sm:$0xff] }
 0x263   :  { %2816 = vmatpush.msrb.mxu3 %v5051_v33  ;;  %2777 = vmatmul.f32.vlgmr.msrb.gmra.mxu1 %v6890_v60  ;;  %v5122_v27 = vld [vmem:[%s11327_s2 + $0x23b8] sm:$0xff]  ;;  %v5145_v32 = vld [vmem:[%s11327_s2 + $0x2470] sm:$0xff] }
 0x264   :  { %2797 = vmatmul.f32.vlgmr.msrb.gmra.mxu2 %v6896_v62  ;;  %2829 = vmatpush.msra.mxu0 %v5074_v34  ;;  %v5105_v33 = vld [vmem:[%s11327_s2 + $0x2330] sm:$0xff] }
 0x265   :  { %2841 = vmatpush.msra.mxu1 %v5098_v35  ;;  %2861 = vmatpush.msra.mxu2 %v5114_v41  ;;  %v5121_v34 = vld [vmem:[%s11327_s2 + $0x23b0] sm:$0xff]  ;;  %v5088_v35 = vld [vmem:[%s11327_s2 + $0x22a8] sm:$0xff] }
 0x266   :  { %2881 = vmatpush.msra.mxu3 %v5130_v42  ;;  %2830 = vmatpush.msra.mxu0 %v5073_v43  ;;  %v5144_v41 = vld [vmem:[%s11327_s2 + $0x2468] sm:$0xff] }
 0x267   :  { %2817 = vmatmul.f32.vlgmr.msrb.gmra.mxu3 %v6912_v3  ;;  %2842 = vmatpush.msra.mxu1 %v5097_v44  ;;  %v5104_v42 = vld [vmem:[%s11327_s2 + $0x2328] sm:$0xff]  ;;  %v5087_v44 = vld [vmem:[%s11327_s2 + $0x22a0] sm:$0xff] }
 0x268   :  { %2862 = vmatpush.msra.mxu2 %v5113_v48  ;;  %2882 = vmatpush.msra.mxu3 %v5129_v49  ;;  %v5120_v43 = vld [vmem:[%s11327_s2 + $0x23a8] sm:$0xff]  ;;  %v5143_v48 = vld [vmem:[%s11327_s2 + $0x2460] sm:$0xff] }
 0x269   :  { %2831 = vmatpush.msra.mxu0 %v5072_v23  ;;  %2843 = vmatpush.msra.mxu1 %v5096_v50  ;;  %v5103_v49 = vld [vmem:[%s11327_s2 + $0x2320] sm:$0xff]  ;;  %v5086_v50 = vld [vmem:[%s11327_s2 + $0x2298] sm:$0xff] }
 0x26a   :  { %2863 = vmatpush.msra.mxu2 %v5112_v53  ;;  %2883 = vmatpush.msra.mxu3 %v5128_v55  ;;  %v5119_v23 = vld [vmem:[%s11327_s2 + $0x23a0] sm:$0xff]  ;;  %v5142_v53 = vld [vmem:[%s11327_s2 + $0x2458] sm:$0xff] }
 0x26b   :  { %2832 = vmatpush.msra.mxu0 %v5071_v56  ;;  %2844 = vmatpush.msra.mxu1 %v5095_v57  ;;  %v5102_v55 = vld [vmem:[%s11327_s2 + $0x2318] sm:$0xff]  ;;  %v5085_v57 = vld [vmem:[%s11327_s2 + $0x2290] sm:$0xff] }
 0x26c   :  { %2864 = vmatpush.msra.mxu2 %v5111_v58  ;;  %2884 = vmatpush.msra.mxu3 %v5127_v61  ;;  %v5118_v56 = vld [vmem:[%s11327_s2 + $0x2398] sm:$0xff]  ;;  %v5141_v58 = vld [vmem:[%s11327_s2 + $0x2450] sm:$0xff] }
 0x26d   :  { %2833 = vmatpush.msra.mxu0 %v5070_v63  ;;  %2845 = vmatpush.msra.mxu1 %v5094_v0  ;;  %v5101_v61 = vld [vmem:[%s11327_s2 + $0x2310] sm:$0xff]  ;;  %v5084_v0 = vld [vmem:[%s11327_s2 + $0x2288] sm:$0xff] }
 0x26e   :  { %2865 = vmatpush.msra.mxu2 %v5110_v1  ;;  %2885 = vmatpush.msra.mxu3 %v5126_v2  ;;  %v5117_v63 = vld [vmem:[%s11327_s2 + $0x2390] sm:$0xff]  ;;  %v5140_v1 = vld [vmem:[%s11327_s2 + $0x2448] sm:$0xff] }
 0x26f   :  { %2834 = vmatpush.msra.mxu0 %v5069_v4  ;;  %2846 = vmatpush.msra.mxu1 %v5093_v5  ;;  %v5100_v2 = vld [vmem:[%s11327_s2 + $0x2308] sm:$0xff]  ;;  %v5083_v5 = vld [vmem:[%s11327_s2 + $0x2280] sm:$0xff] }
 0x270   :  { %2866 = vmatpush.msra.mxu2 %v5109_v7  ;;  %2886 = vmatpush.msra.mxu3 %v5125_v9  ;;  %v5116_v4 = vld [vmem:[%s11327_s2 + $0x2388] sm:$0xff]  ;;  %v5139_v7 = vld [vmem:[%s11327_s2 + $0x2440] sm:$0xff] }
 0x271   :  { %2835 = vmatpush.msra.mxu0 %v5068_v11  ;;  %2847 = vmatpush.msra.mxu1 %v5092_v12  ;;  %v5099_v9 = vld [vmem:[%s11327_s2 + $0x2300] sm:$0xff]  ;;  %v5138_v12 = vld [vmem:[%s11327_s2 + $0x2438] sm:$0xff] }
 0x272   :  { %2867 = vmatpush.msra.mxu2 %v5108_v14  ;;  %2887 = vmatpush.msra.mxu3 %v5124_v15  ;;  %v5115_v11 = vld [vmem:[%s11327_s2 + $0x2380] sm:$0xff]  ;;  %v5565_v14 = vld [vmem:[%s11326_s5 + $0xf8] sm:$0xff] }
 0x273   :  { %2836 = vmatpush.msra.mxu0 %v5067_v17  ;;  %2848 = vmatpush.msra.mxu1 %v5091_v21  ;;  %v5181_v15 = vld [vmem:[%s11327_s2 + $0x2538] sm:$0xff]  ;;  %v5137_v17 = vld [vmem:[%s11327_s2 + $0x2430] sm:$0xff] }
 0x274   :  { %2868 = vmatpush.msra.mxu2 %v5107_v10  ;;  %2888 = vmatpush.msra.mxu3 %v5123_v22  ;;  %v5154_v21 = vld [vmem:[%s11327_s2 + $0x24b8] sm:$0xff]  ;;  %v5564_v10 = vld [vmem:[%s11326_s5 + $0xf0] sm:$0xff] }
 0x275   :  { %2837 = vmatmul.f32.vlgmr.msra.gmra.mxu0 %v7001_v47  ;;  %2849 = vmatpush.msra.mxu1 %v5090_v51  ;;  %v5180_v22 = vld [vmem:[%s11327_s2 + $0x2530] sm:$0xff]  ;;  %v5136_v51 = vld [vmem:[%s11327_s2 + $0x2428] sm:$0xff] }
 0x276   :  { %2901 = vmatpush.msrb.mxu0 %v5146_v24  ;;  %2869 = vmatpush.msra.mxu2 %v5106_v25  ;;  %v5153_v24 = vld [vmem:[%s11327_s2 + $0x24b0] sm:$0xff]  ;;  %v5563_v25 = vld [vmem:[%s11326_s5 + $0xe8] sm:$0xff] }
 0x277   :  { %2889 = vmatpush.msra.mxu3 %v5122_v27  ;;  %2850 = vmatpush.msra.mxu1 %v5089_v29  ;;  %v5179_v27 = vld [vmem:[%s11327_s2 + $0x2528] sm:$0xff]  ;;  %v5135_v29 = vld [vmem:[%s11327_s2 + $0x2420] sm:$0xff] }
 0x278   :  { %2902 = vmatpush.msrb.mxu0 %v5145_v32  ;;  %2870 = vmatpush.msra.mxu2 %v5105_v33  ;;  %v5152_v32 = vld [vmem:[%s11327_s2 + $0x24a8] sm:$0xff]  ;;  %v5562_v33 = vld [vmem:[%s11326_s5 + $0xe0] sm:$0xff] }
 0x279   :  { %2890 = vmatpush.msra.mxu3 %v5121_v34  ;;  %2851 = vmatpush.msra.mxu1 %v5088_v35  ;;  %v5178_v34 = vld [vmem:[%s11327_s2 + $0x2520] sm:$0xff]  ;;  %v5134_v35 = vld [vmem:[%s11327_s2 + $0x2418] sm:$0xff] }
 0x27a   :  { %2903 = vmatpush.msrb.mxu0 %v5144_v41  ;;  %2871 = vmatpush.msra.mxu2 %v5104_v42  ;;  %v5151_v41 = vld [vmem:[%s11327_s2 + $0x24a0] sm:$0xff]  ;;  %v5561_v42 = vld [vmem:[%s11326_s5 + $0xd8] sm:$0xff] }
 0x27b   :  { %2891 = vmatpush.msra.mxu3 %v5120_v43  ;;  %2852 = vmatpush.msra.mxu1 %v5087_v44  ;;  %v5177_v43 = vld [vmem:[%s11327_s2 + $0x2518] sm:$0xff]  ;;  %v5133_v44 = vld [vmem:[%s11327_s2 + $0x2410] sm:$0xff] }
 0x27c   :  { %2904 = vmatpush.msrb.mxu0 %v5143_v48  ;;  %2872 = vmatpush.msra.mxu2 %v5103_v49  ;;  %v5150_v48 = vld [vmem:[%s11327_s2 + $0x2498] sm:$0xff]  ;;  %v5560_v49 = vld [vmem:[%s11326_s5 + $0xd0] sm:$0xff] }
 0x27d   :  { %2892 = vmatpush.msra.mxu3 %v5119_v23  ;;  %2853 = vmatpush.msra.mxu1 %v5086_v50  ;;  %v5176_v23 = vld [vmem:[%s11327_s2 + $0x2510] sm:$0xff]  ;;  %v5132_v50 = vld [vmem:[%s11327_s2 + $0x2408] sm:$0xff] }
 0x27e   :  { %2905 = vmatpush.msrb.mxu0 %v5142_v53  ;;  %2873 = vmatpush.msra.mxu2 %v5102_v55  ;;  %v5149_v53 = vld [vmem:[%s11327_s2 + $0x2490] sm:$0xff]  ;;  %v5559_v55 = vld [vmem:[%s11326_s5 + $0xc8] sm:$0xff] }
 0x27f   :  { %2893 = vmatpush.msra.mxu3 %v5118_v56  ;;  %2854 = vmatpush.msra.mxu1 %v5085_v57  ;;  %v5175_v56 = vld [vmem:[%s11327_s2 + $0x2508] sm:$0xff]  ;;  %v5131_v57 = vld [vmem:[%s11327_s2 + $0x2400] sm:$0xff] }
 0x280   :  { %2906 = vmatpush.msrb.mxu0 %v5141_v58  ;;  %2874 = vmatpush.msra.mxu2 %v5101_v61  ;;  %v5148_v58 = vld [vmem:[%s11327_s2 + $0x2488] sm:$0xff]  ;;  %v5558_v61 = vld [vmem:[%s11326_s5 + $0xc0] sm:$0xff] }
 0x281   :  { %2894 = vmatpush.msra.mxu3 %v5117_v63  ;;  %2855 = vmatpush.msra.mxu1 %v5084_v0  ;;  %v5174_v63 = vld [vmem:[%s11327_s2 + $0x2500] sm:$0xff]  ;;  %v5197_v0 = vld [vmem:[%s11327_s2 + $0x25b8] sm:$0xff] }
 0x282   :  { %2907 = vmatpush.msrb.mxu0 %v5140_v1  ;;  %2875 = vmatpush.msra.mxu2 %v5100_v2  ;;  %v5229_v1 = vld [vmem:[%s11327_s2 + $0x26b8] sm:$0xff]  ;;  %v5147_v2 = vld [vmem:[%s11327_s2 + $0x2480] sm:$0xff] }
 0x283   :  { %2895 = vmatpush.msra.mxu3 %v5116_v4  ;;  %2856 = vmatpush.msra.mxu1 %v5083_v5  ;;  %v5173_v4 = vld [vmem:[%s11327_s2 + $0x24f8] sm:$0xff]  ;;  %v5196_v5 = vld [vmem:[%s11327_s2 + $0x25b0] sm:$0xff] }
 0x284   :  { %2908 = vmatpush.msrb.mxu0 %v5139_v7  ;;  %2876 = vmatpush.msra.mxu2 %v5099_v9  ;;  %v5213_v7 = vld [vmem:[%s11327_s2 + $0x2638] sm:$0xff]  ;;  %v5228_v9 = vld [vmem:[%s11327_s2 + $0x26b0] sm:$0xff] }
 0x285   :  { %2896 = vmatpush.msra.mxu3 %v5115_v11  ;;  %2857 = vmatmul.f32.vlgmr.msra.gmra.mxu1 %v7098_v28  ;;  %v5172_v11 = vld [vmem:[%s11327_s2 + $0x24f0] sm:$0xff] }
 0x286   :  { %2877 = vmatmul.f32.vlgmr.msra.gmra.mxu2 %v7104_v31  ;;  %2909 = vmatpush.msrb.mxu0 %v5138_v12  ;;  %v5195_v12 = vld [vmem:[%s11327_s2 + $0x25a8] sm:$0xff] }
 0x287   :  { %3355 = vmatpush.msrb.mxu2 %v5565_v14  ;;  %3367 = vmatpush.msrb.mxu3 %v5181_v15  ;;  %v5669_v14 = vld [vmem:[%s11328_s7 + $0x18] ss:$0 sm:$0xff]  ;;  %v5212_v15 = vld [vmem:[%s11327_s2 + $0x2630] sm:$0xff] }
 0x288   :  { %2897 = vmatmul.f32.vlgmr.msra.gmra.mxu3 %v7120_v38  ;;  %2910 = vmatpush.msrb.mxu0 %v5137_v17  ;;  %v5227_v17 = vld [vmem:[%s11327_s2 + $0x26a8] sm:$0xff] }
 0x289   :  { %2929 = vmatpush.msrb.mxu1 %v5154_v21  ;;  %3356 = vmatpush.msrb.mxu2 %v5564_v10  ;;  %v5171_v21 = vld [vmem:[%s11327_s2 + $0x24e8] sm:$0xff]  ;;  %v5194_v10 = vld [vmem:[%s11327_s2 + $0x25a0] sm:$0xff] }
 0x28a   :  { %3368 = vmatpush.msrb.mxu3 %v5180_v22  ;;  %2911 = vmatpush.msrb.mxu0 %v5136_v51  ;;  %v5211_v22 = vld [vmem:[%s11327_s2 + $0x2628] sm:$0xff]  ;;  %v5226_v51 = vld [vmem:[%s11327_s2 + $0x26a0] sm:$0xff] }
 0x28b   :  { %2930 = vmatpush.msrb.mxu1 %v5153_v24  ;;  %3357 = vmatpush.msrb.mxu2 %v5563_v25  ;;  %v5170_v24 = vld [vmem:[%s11327_s2 + $0x24e0] sm:$0xff]  ;;  %v5193_v25 = vld [vmem:[%s11327_s2 + $0x2598] sm:$0xff] }
 0x28c   :  { %3369 = vmatpush.msrb.mxu3 %v5179_v27  ;;  %2912 = vmatpush.msrb.mxu0 %v5135_v29  ;;  %v1494_v27 = vpop.f32.mrf.mxu2  ;;  %v5210_v29 = vld [vmem:[%s11327_s2 + $0x2620] sm:$0xff] }
 0x28d   :  { %2931 = vmatpush.msrb.mxu1 %v5152_v32  ;;  %3358 = vmatpush.msrb.mxu2 %v5562_v33  ;;  %v5225_v32 = vld [vmem:[%s11327_s2 + $0x2698] sm:$0xff] }
 0x28e   :  { %3370 = vmatpush.msrb.mxu3 %v5178_v34  ;;  %2913 = vmatpush.msrb.mxu0 %v5134_v35  ;;  %v5169_v33 = vld [vmem:[%s11327_s2 + $0x24d8] sm:$0xff]  ;;  %v5192_v34 = vld [vmem:[%s11327_s2 + $0x2590] sm:$0xff] }
 0x28f   :  { %2932 = vmatpush.msrb.mxu1 %v5151_v41  ;;  %3359 = vmatpush.msrb.mxu2 %v5561_v42  ;;  %v5209_v35 = vld [vmem:[%s11327_s2 + $0x2618] sm:$0xff]  ;;  %v5224_v41 = vld [vmem:[%s11327_s2 + $0x2690] sm:$0xff] }
 0x290   :  { %3371 = vmatpush.msrb.mxu3 %v5177_v43  ;;  %2914 = vmatpush.msrb.mxu0 %v5133_v44  ;;  %v5168_v42 = vld [vmem:[%s11327_s2 + $0x24d0] sm:$0xff]  ;;  %v5191_v43 = vld [vmem:[%s11327_s2 + $0x2588] sm:$0xff]  ;;  %v1514_v44 = vpop.f32.mrf.mxu3 }
 0x291   :  { %2933 = vmatpush.msrb.mxu1 %v5150_v48  ;;  %3360 = vmatpush.msrb.mxu2 %v5560_v49  ;;  %v5208_v48 = vld [vmem:[%s11327_s2 + $0x2610] sm:$0xff]  ;;  %v5223_v49 = vld [vmem:[%s11327_s2 + $0x2688] sm:$0xff] }
 0x292   :  { %3372 = vmatpush.msrb.mxu3 %v5176_v23  ;;  %2915 = vmatpush.msrb.mxu0 %v5132_v50  ;;  %v5167_v23 = vld [vmem:[%s11327_s2 + $0x24c8] sm:$0xff]  ;;  %v5190_v50 = vld [vmem:[%s11327_s2 + $0x2580] sm:$0xff] }
 0x293   :  { %2934 = vmatpush.msrb.mxu1 %v5149_v53  ;;  %3361 = vmatpush.msrb.mxu2 %v5559_v55  ;;  %v1554_v53 = vpop.f32.mrf.mxu1  ;;  %v5207_v55 = vld [vmem:[%s11327_s2 + $0x2608] sm:$0xff] }
 0x294   :  { %3373 = vmatpush.msrb.mxu3 %v5175_v56  ;;  %2916 = vmatpush.msrb.mxu0 %v5131_v57  ;;  %v5222_v56 = vld [vmem:[%s11327_s2 + $0x2680] sm:$0xff]  ;;  %v1515_v57 = vadd.f32 %v1514_v44, %v1494_v27  ;;  %v5201_v44 = vld [vmem:[%s11327_s2 + $0x25d8] sm:$0xff] }
 0x295   :  { %2935 = vmatpush.msrb.mxu1 %v5148_v58  ;;  %3362 = vmatpush.msrb.mxu2 %v5558_v61  ;;  %v5166_v58 = vld [vmem:[%s11327_s2 + $0x24c0] sm:$0xff]  ;;  %v5189_v61 = vld [vmem:[%s11327_s2 + $0x2578] sm:$0xff] }
 0x296   :  { %3374 = vmatpush.msrb.mxu3 %v5174_v63  ;;  %2917 = vmatmul.f32.vlgmr.msrb.gmra.mxu0 %v7209_v19  ;;  %v1534_v63 = vpop.f32.mrf.mxu0 }
 0x297   :  { %3387 = vmatpush.msra.mxu0 %v5197_v0  ;;  %3427 = vmatpush.msra.mxu2 %v5229_v1  ;;  %v5206_v0 = vld [vmem:[%s11327_s2 + $0x2600] sm:$0xff]  ;;  %v5221_v1 = vld [vmem:[%s11327_s2 + $0x2678] sm:$0xff] }
 0x298   :  { %2936 = vmatpush.msrb.mxu1 %v5147_v2  ;;  %3375 = vmatpush.msrb.mxu3 %v5173_v4  ;;  %v5245_v2 = vld [vmem:[%s11327_s2 + $0x2738] sm:$0xff]  ;;  %v5188_v4 = vld [vmem:[%s11327_s2 + $0x2570] sm:$0xff] }
 0x299   :  { %5164 = vmatmul.msk.f32.vlgmr.msrb.gmra.mxu1 %vm475_vm0, %v5669_v14  ;;  %3388 = vmatpush.msra.mxu0 %v5196_v5  ;;  %v1574_v5 = vpop.f32.mrf.mxu2  ;;  %v5187_v14 = vld [vmem:[%s11327_s2 + $0x2568] sm:$0xff] }
 0x29a   :  { %3407 = vmatpush.msra.mxu1 %v5213_v7  ;;  %3428 = vmatpush.msra.mxu2 %v5228_v9  ;;  %v5205_v7 = vld [vmem:[%s11327_s2 + $0x25f8] sm:$0xff]  ;;  %v5220_v9 = vld [vmem:[%s11327_s2 + $0x2670] sm:$0xff] }
 0x29b   :  { %3376 = vmatpush.msrb.mxu3 %v5172_v11  ;;  %3389 = vmatpush.msra.mxu0 %v5195_v12  ;;  %v1535_v11 = vadd.f32 %v1534_v63, %v1515_v57  ;;  %v5244_v12 = vld [vmem:[%s11327_s2 + $0x2730] sm:$0xff]  ;;  %v5239_v57 = vld [vmem:[%s11327_s2 + $0x2708] sm:$0xff]  ;;  %v5182_v63 = vld [vmem:[%s11327_s2 + $0x2540] sm:$0xff] }
 0x29c   :  { %3408 = vmatpush.msra.mxu1 %v5212_v15  ;;  %3429 = vmatpush.msra.mxu2 %v5227_v17  ;;  %v5204_v15 = vld [vmem:[%s11327_s2 + $0x25f0] sm:$0xff]  ;;  %v5219_v17 = vld [vmem:[%s11327_s2 + $0x2668] sm:$0xff] }
 0x29d   :  { %3377 = vmatpush.msrb.mxu3 %v5171_v21  ;;  %3390 = vmatpush.msra.mxu0 %v5194_v10  ;;  %v5243_v21 = vld [vmem:[%s11327_s2 + $0x2728] sm:$0xff]  ;;  %v5186_v10 = vld [vmem:[%s11327_s2 + $0x2560] sm:$0xff]  ;;  %v1555_v27 = vadd.f32 %v1554_v53, %v1535_v11  ;;  %v5200_v53 = vld [vmem:[%s11327_s2 + $0x25d0] sm:$0xff] }
 0x29e   :  { %3409 = vmatpush.msra.mxu1 %v5211_v22  ;;  %3430 = vmatpush.msra.mxu2 %v5226_v51  ;;  %v1594_v22 = vpop.f32.mrf.mxu3  ;;  %v1634_v51 = vpop.f32.mrf.mxu1  ;;  %v5293_v11 = vld [vmem:[%s11327_s2 + $0x28b8] sm:$0xff] }
 0x29f   :  { %3378 = vmatpush.msrb.mxu3 %v5170_v24  ;;  %3391 = vmatpush.msra.mxu0 %v5193_v25  ;;  %v5203_v24 = vld [vmem:[%s11327_s2 + $0x25e8] sm:$0xff]  ;;  %v5218_v25 = vld [vmem:[%s11327_s2 + $0x2660] sm:$0xff] }
 0x2a0   :  { %3410 = vmatpush.msra.mxu1 %v5210_v29  ;;  %3431 = vmatpush.msra.mxu2 %v5225_v32  ;;  %v5242_v29 = vld [vmem:[%s11327_s2 + $0x2720] sm:$0xff]  ;;  %v5185_v32 = vld [vmem:[%s11327_s2 + $0x2558] sm:$0xff] }
 0x2a1   :  { %3379 = vmatpush.msrb.mxu3 %v5169_v33  ;;  %3392 = vmatpush.msra.mxu0 %v5192_v34  ;;  %v1614_v33 = vpop.f32.mrf.mxu0  ;;  %v5202_v34 = vld [vmem:[%s11327_s2 + $0x25e0] sm:$0xff] }
 0x2a2   :  { %3411 = vmatpush.msra.mxu1 %v5209_v35  ;;  %3432 = vmatpush.msra.mxu2 %v5224_v41  ;;  %v5217_v35 = vld [vmem:[%s11327_s2 + $0x2658] sm:$0xff] }
 0x2a3   :  { %3380 = vmatpush.msrb.mxu3 %v5168_v42  ;;  %3393 = vmatpush.msra.mxu0 %v5191_v43  ;;  %v5241_v41 = vld [vmem:[%s11327_s2 + $0x2718] sm:$0xff]  ;;  %v5184_v42 = vld [vmem:[%s11327_s2 + $0x2550] sm:$0xff]  ;;  %v1654_v43 = vpop.f32.mrf.mxu2 }
 0x2a4   :  { %3412 = vmatpush.msra.mxu1 %v5208_v48  ;;  %3433 = vmatpush.msra.mxu2 %v5223_v49  ;;  %v5216_v48 = vld [vmem:[%s11327_s2 + $0x2650] sm:$0xff]  ;;  %v1575_v49 = vadd.f32 %v1574_v5, %v1555_v27  ;;  %v5291_v27 = vld [vmem:[%s11327_s2 + $0x28a8] sm:$0xff] }
 0x2a5   :  { %3381 = vmatpush.msrb.mxu3 %v5167_v23  ;;  %3394 = vmatpush.msra.mxu0 %v5190_v50  ;;  %v5240_v23 = vld [vmem:[%s11327_s2 + $0x2710] sm:$0xff]  ;;  %v5183_v50 = vld [vmem:[%s11327_s2 + $0x2548] sm:$0xff] }
 0x2a6   :  { %3413 = vmatpush.msra.mxu1 %v5207_v55  ;;  %3434 = vmatpush.msra.mxu2 %v5222_v56  ;;  %v5215_v55 = vld [vmem:[%s11327_s2 + $0x2648] sm:$0xff]  ;;  %v1595_v56 = vadd.f32 %v1594_v22, %v1575_v49  ;;  %v5292_v22 = vld [vmem:[%s11327_s2 + $0x28b0] sm:$0xff]  ;;  %v5274_v49 = vld [vmem:[%s11327_s2 + $0x2820] sm:$0xff] }
 0x2a7   :  { %3382 = vmatpush.msrb.mxu3 %v5166_v58  ;;  %3395 = vmatpush.msra.mxu0 %v5189_v61  ;;  %v1674_v58 = vpop.f32.mrf.mxu3  ;;  %v9862_v61 = vpop.f32.mrf.mxu1 }
 0x2a8   :  { %3414 = vmatpush.msra.mxu1 %v5206_v0  ;;  %3435 = vmatpush.msra.mxu2 %v5221_v1  ;;  %v5199_v0 = vld [vmem:[%s11327_s2 + $0x25c8] sm:$0xff]  ;;  %v1615_v1 = vadd.f32 %v1614_v33, %v1595_v56  ;;  %v5273_v56 = vld [vmem:[%s11327_s2 + $0x2818] sm:$0xff] }
 0x2a9   :  { %3447 = vmatpush.msra.mxu3 %v5245_v2  ;;  %3396 = vmatpush.msra.mxu0 %v5188_v4  ;;  %v5214_v2 = vld [vmem:[%s11327_s2 + $0x2640] sm:$0xff]  ;;  %v1694_v5 = vpop.f32.mrf.mxu0  ;;  %v5235_v33 = vld [vmem:[%s11327_s2 + $0x26e8] sm:$0xff] }
 0x2aa   :  { %3415 = vmatpush.msra.mxu1 %v5205_v7  ;;  %3436 = vmatpush.msra.mxu2 %v5220_v9  ;;  %v5238_v4 = vld [vmem:[%s11327_s2 + $0x2700] sm:$0xff]  ;;  %v5261_v9 = vld [vmem:[%s11327_s2 + $0x27b8] sm:$0xff] }
 0x2ab   :  { %3448 = vmatpush.msra.mxu3 %v5244_v12  ;;  %3397 = vmatpush.msra.mxu0 %v5187_v14  ;;  %v5670_v7 = vld [vmem:[%s11329_s1] sm:$0x1]  ;;  %v1734_v14 = vpop.f32.mrf.mxu2  ;;  %s11335_s1 = sld [smem:[#allocation12_spill]] }
 0x2ac   :  { %3416 = vmatpush.msra.mxu1 %v5204_v15  ;;  %3437 = vmatpush.msra.mxu2 %v5219_v17  ;;  %v5198_v12 = vld [vmem:[%s11327_s2 + $0x25c0] sm:$0xff]  ;;  %v5237_v15 = vld [vmem:[%s11327_s2 + $0x26f8] sm:$0xff]  ;;  %v5260_v17 = vld [vmem:[%s11327_s2 + $0x27b0] sm:$0xff] }
 0x2ad   :  { %3449 = vmatpush.msra.mxu3 %v5243_v21  ;;  %3398 = vmatpush.msra.mxu0 %v5186_v10  ;;  %v1635_v21 = vadd.f32 %v1634_v51, %v1615_v1  ;;  %v5277_v10 = vld [vmem:[%s11327_s2 + $0x2838] sm:$0xff]  ;;  %v5259_v51 = vld [vmem:[%s11327_s2 + $0x27a8] sm:$0xff]  ;;  %v5272_v1 = vld [vmem:[%s11327_s2 + $0x2810] sm:$0xff] }
 0x2ae   :  { %3417 = vmatpush.msra.mxu1 %v5203_v24  ;;  %3438 = vmatpush.msra.mxu2 %v5218_v25  ;;  %v5236_v24 = vld [vmem:[%s11327_s2 + $0x26f0] sm:$0xff] }
 0x2af   :  { %3450 = vmatpush.msra.mxu3 %v5242_v29  ;;  %3399 = vmatpush.msra.mxu0 %v5185_v32  ;;  %v5276_v25 = vld [vmem:[%s11327_s2 + $0x2830] sm:$0xff]  ;;  %v1754_v29 = vpop.f32.mrf.mxu3  ;;  %v9914_v32 = vpop.f32.mrf.mxu1 }
 0x2b0   :  { %3418 = vmatpush.msra.mxu1 %v5202_v34  ;;  %3439 = vmatpush.msra.mxu2 %v5217_v35  ;;  %v5258_v35 = vld [vmem:[%s11327_s2 + $0x27a0] sm:$0xff] }
 0x2b1   :  { %3451 = vmatpush.msra.mxu3 %v5241_v41  ;;  %3400 = vmatpush.msra.mxu0 %v5184_v42  ;;  %v5275_v41 = vld [vmem:[%s11327_s2 + $0x2828] sm:$0xff]  ;;  %v1774_v42 = vpop.f32.mrf.mxu0 }
 0x2b2   :  { %3419 = vmatpush.msra.mxu1 %v5201_v44  ;;  %3440 = vmatpush.msra.mxu2 %v5216_v48  ;;  %v5234_v44 = vld [vmem:[%s11327_s2 + $0x26e0] sm:$0xff] }
 0x2b3   :  { %3452 = vmatpush.msra.mxu3 %v5240_v23  ;;  %3401 = vmatpush.msra.mxu0 %v5183_v50  ;;  %v9935_v23 = vpop.f32.mrf.mxu2  ;;  %v5257_v50 = vld [vmem:[%s11327_s2 + $0x2798] sm:$0xff] }
 0x2b4   :  { %3420 = vmatpush.msra.mxu1 %v5200_v53  ;;  %3441 = vmatpush.msra.mxu2 %v5215_v55  ;;  %v5289_v53 = vld [vmem:[%s11327_s2 + $0x2898] sm:$0xff]  ;;  %v5256_v55 = vld [vmem:[%s11327_s2 + $0x2790] sm:$0xff] }
 0x2b5   :  { %3453 = vmatpush.msra.mxu3 %v5239_v57  ;;  %5566 = vmatmul.msk.f32.vlgmr.msrb.gmra.mxu2 %vm475_vm0, %v5670_v7  ;;  %v5254_v7 = vld [vmem:[%s11327_s2 + $0x2780] sm:$0xff] }
 0x2b6   :  { %3402 = vmatpush.msra.mxu0 %v5182_v63  ;;  %3421 = vmatpush.msra.mxu1 %v5199_v0 }
 0x2b7   :  { %3442 = vmatpush.msra.mxu2 %v5214_v2  ;;  %3454 = vmatpush.msra.mxu3 %v5238_v4  ;;  %v9960_v63 = vpop.f32.mrf.mxu3  ;;  %v9962_v0 = vpop.f32.mrf.mxu1  ;;  %v5287_v4 = vld [vmem:[%s11327_s2 + $0x2888] sm:$0xff] }
 0x2b8   :  { %3383 = vmatmul.f32.vlgmr.msrb.gmra.mxu3 %v6162_v40  ;;  %3467 = vmatpush.msrb.mxu0 %v5261_v9  ;;  %v1655_v40 = vadd.f32 %v1654_v43, %v1635_v21  ;;  %v5290_v43 = vld [vmem:[%s11327_s2 + $0x28a0] sm:$0xff]  ;;  %v5271_v9 = vld [vmem:[%s11327_s2 + $0x2808] sm:$0xff] }
 0x2b9   :  { %3507 = vmatpush.msrb.mxu2 %v5293_v11  ;;  %3422 = vmatpush.msra.mxu1 %v5198_v12  ;;  %v5286_v12 = vld [vmem:[%s11327_s2 + $0x2880] sm:$0xff] }
 0x2ba   :  { %3455 = vmatpush.msra.mxu3 %v5237_v15  ;;  %3468 = vmatpush.msrb.mxu0 %v5260_v17  ;;  %v1675_v34 = vadd.f32 %v1674_v58, %v1655_v40  ;;  %v5288_v58 = vld [vmem:[%s11327_s2 + $0x2890] sm:$0xff]  ;;  %v5253_v17 = vld [vmem:[%s11327_s2 + $0x2778] sm:$0xff] }
 0x2bb   :  { %3487 = vmatpush.msrb.mxu1 %v5277_v10  ;;  %3508 = vmatpush.msrb.mxu2 %v5292_v22  ;;  %v9989_v15 = vpop.f32.mrf.mxu2  ;;  %v5270_v10 = vld [vmem:[%s11327_s2 + $0x2800] sm:$0xff]  ;;  %v5285_v22 = vld [vmem:[%s11327_s2 + $0x2878] sm:$0xff] }
 0x2bc   :  { %3456 = vmatpush.msra.mxu3 %v5236_v24  ;;  %3469 = vmatpush.msrb.mxu0 %v5259_v51  ;;  %v1695_v48 = vadd.f32 %v1694_v5, %v1675_v34  ;;  %v5231_v5 = vld [vmem:[%s11327_s2 + $0x26c8] sm:$0xff]  ;;  %v5309_v24 = vld [vmem:[%s11327_s2 + $0x2938] sm:$0xff]  ;;  %v5252_v51 = vld [vmem:[%s11327_s2 + $0x2770] sm:$0xff] }
 0x2bd   :  { %3488 = vmatpush.msrb.mxu1 %v5276_v25  ;;  %3509 = vmatpush.msrb.mxu2 %v5291_v27  ;;  %v5269_v40 = vld [vmem:[%s11327_s2 + $0x27f8] sm:$0xff]  ;;  %v5284_v25 = vld [vmem:[%s11327_s2 + $0x2870] sm:$0xff] }
 0x2be   :  { %3457 = vmatpush.msra.mxu3 %v5235_v33  ;;  %3443 = vmatmul.f32.vlgmr.msra.gmra.mxu2 %v6207_v54  ;;  %v5233_v54 = vld [vmem:[%s11327_s2 + $0x26d8] sm:$0xff]  ;;  %v1715_v57 = vadd.f32 %v9862_v61, %v1695_v48  ;;  %v5255_v61 = vld [vmem:[%s11327_s2 + $0x2788] sm:$0xff]  ;;  %v5308_v33 = vld [vmem:[%s11327_s2 + $0x2930] sm:$0xff] }
 0x2bf   :  { %3470 = vmatpush.msrb.mxu0 %v5258_v35  ;;  %3489 = vmatpush.msrb.mxu1 %v5275_v41  ;;  %v10013_v27 = vpop.f32.mrf.mxu3  ;;  %v5268_v35 = vld [vmem:[%s11327_s2 + $0x27f0] sm:$0xff]  ;;  %v5283_v41 = vld [vmem:[%s11327_s2 + $0x2868] sm:$0xff] }
 0x2c0   :  { %3510 = vmatpush.msrb.mxu2 %v5290_v43  ;;  %3458 = vmatpush.msra.mxu3 %v5234_v44  ;;  %v1735_v2 = vadd.f32 %v1734_v14, %v1715_v57  ;;  %v5230_v14 = vld [vmem:[%s11327_s2 + $0x26c0] sm:$0xff]  ;;  %v5307_v43 = vld [vmem:[%s11327_s2 + $0x2928] sm:$0xff]  ;;  %v5305_v57 = vld [vmem:[%s11327_s2 + $0x2918] sm:$0xff] }
 0x2c1   :  { %3403 = vmatmul.f32.vlgmr.msra.gmra.mxu0 %v6131_v30  ;;  %3490 = vmatpush.msrb.mxu1 %v5274_v49  ;;  %v5232_v30 = vld [vmem:[%s11327_s2 + $0x26d0] sm:$0xff]  ;;  %v5267_v48 = vld [vmem:[%s11327_s2 + $0x27e8] sm:$0xff]  ;;  %v5282_v49 = vld [vmem:[%s11327_s2 + $0x2860] sm:$0xff] }
 0x2c2   :  { %3471 = vmatpush.msrb.mxu0 %v5257_v50  ;;  %3511 = vmatpush.msrb.mxu2 %v5289_v53  ;;  %v1755_v11 = vadd.f32 %v1754_v29, %v1735_v2  ;;  %v10015_v29 = vpop.f32.mrf.mxu1  ;;  %v5306_v53 = vld [vmem:[%s11327_s2 + $0x2920] sm:$0xff] }
 0x2c3   :  { %3459 = vmatpush.msra.mxu3 %v5233_v54  ;;  %3423 = vmatmul.f32.vlgmr.msra.gmra.mxu1 %v6149_v36  ;;  %v1854_v36 = vpop.f32.mrf.mxu0  ;;  %v10045_v50 = vpop.f32.mrf.mxu2 }
 0x2c4   :  { %3472 = vmatpush.msrb.mxu0 %v5256_v55  ;;  %3491 = vmatpush.msrb.mxu1 %v5273_v56  ;;  %v1775_v21 = vadd.f32 %v1774_v42, %v1755_v11  ;;  %v5266_v55 = vld [vmem:[%s11327_s2 + $0x27e0] sm:$0xff]  ;;  %v5281_v56 = vld [vmem:[%s11327_s2 + $0x2858] sm:$0xff]  ;;  %v5303_v11 = vld [vmem:[%s11327_s2 + $0x2908] sm:$0xff] }
 0x2c5   :  { %3512 = vmatpush.msrb.mxu2 %v5288_v58  ;;  %3460 = vmatpush.msra.mxu3 %v5232_v30  ;;  %v5248_v58 = vld [vmem:[%s11327_s2 + $0x2750] sm:$0xff] }
 0x2c6   :  { %3473 = vmatpush.msrb.mxu0 %v5255_v61  ;;  %3492 = vmatpush.msrb.mxu1 %v5272_v1  ;;  %v1795_v34 = vadd.f32 %v9914_v32, %v1775_v21  ;;  %v5250_v32 = vld [vmem:[%s11327_s2 + $0x2760] sm:$0xff]  ;;  %v5280_v61 = vld [vmem:[%s11327_s2 + $0x2850] sm:$0xff]  ;;  %v5263_v21 = vld [vmem:[%s11327_s2 + $0x27c8] sm:$0xff] }
 0x2c7   :  { %3513 = vmatpush.msrb.mxu2 %v5287_v4  ;;  %3461 = vmatpush.msra.mxu3 %v5231_v5  ;;  %v10072_v1 = vpop.f32.mrf.mxu3  ;;  %v5304_v4 = vld [vmem:[%s11327_s2 + $0x2910] sm:$0xff]  ;;  %v5247_v5 = vld [vmem:[%s11327_s2 + $0x2748] sm:$0xff] }
 0x2c8   :  { %3474 = vmatpush.msrb.mxu0 %v5254_v7  ;;  %3493 = vmatpush.msrb.mxu1 %v5271_v9  ;;  %v1815_v44 = vadd.f32 %v9935_v23, %v1795_v34  ;;  %v5249_v23 = vld [vmem:[%s11327_s2 + $0x2758] sm:$0xff]  ;;  %v5279_v7 = vld [vmem:[%s11327_s2 + $0x2848] sm:$0xff] }
 0x2c9   :  { %3514 = vmatpush.msrb.mxu2 %v5286_v12  ;;  %3462 = vmatpush.msra.mxu3 %v5230_v14  ;;  %v5246_v12 = vld [vmem:[%s11327_s2 + $0x2740] sm:$0xff] }
 0x2ca   :  { %3463 = vmatmul.f32.vlgmr.msra.gmra.mxu3 %v6256_v6  ;;  %3475 = vmatpush.msrb.mxu0 %v5253_v17  ;;  %v5251_v6 = vld [vmem:[%s11327_s2 + $0x2768] sm:$0xff]  ;;  %v1835_v54 = vadd.f32 %v9960_v63, %v1815_v44  ;;  %v5265_v63 = vld [vmem:[%s11327_s2 + $0x27d8] sm:$0xff]  ;;  %v2458_v2 = vpop.f32.mrf.mxu1 }
 0x2cb   :  { %3494 = vmatpush.msrb.mxu1 %v5270_v10  ;;  %3515 = vmatpush.msrb.mxu2 %v5285_v22  ;;  %v10030_v42 = vpop.f32.mrf.mxu0  ;;  %v5278_v10 = vld [vmem:[%s11327_s2 + $0x2840] sm:$0xff]  ;;  %v2478_v22 = vpop.f32.mrf.mxu2  ;;  %v5355_v44 = vld [vmem:[%s11327_s2 + $0x2aa8] sm:$0xff] }
 0x2cc   :  { %3527 = vmatpush.msrb.mxu3 %v5309_v24  ;;  %3476 = vmatpush.msrb.mxu0 %v5252_v51  ;;  %v1855_v30 = vadd.f32 %v1854_v36, %v1835_v54  ;;  %v5264_v36 = vld [vmem:[%s11327_s2 + $0x27d0] sm:$0xff]  ;;  %v5302_v24 = vld [vmem:[%s11327_s2 + $0x2900] sm:$0xff]  ;;  %v5325_v51 = vld [vmem:[%s11327_s2 + $0x29b8] sm:$0xff] }
 0x2cd   :  { %3495 = vmatpush.msrb.mxu1 %v5269_v40  ;;  %3516 = vmatpush.msrb.mxu2 %v5284_v25  ;;  %v5357_v40 = vld [vmem:[%s11327_s2 + $0x2ab8] sm:$0xff]  ;;  %v5262_v25 = vld [vmem:[%s11327_s2 + $0x27c0] sm:$0xff] }
 0x2ce   :  { %3528 = vmatpush.msrb.mxu3 %v5308_v33  ;;  %3477 = vmatpush.msrb.mxu0 %v5251_v6  ;;  %v1875_v14 = vadd.f32 %v9962_v0, %v1855_v30  ;;  %v5354_v54 = vld [vmem:[%s11327_s2 + $0x2aa0] sm:$0xff] }
 0x2cf   :  { %3496 = vmatpush.msrb.mxu1 %v5268_v35  ;;  %3517 = vmatpush.msrb.mxu2 %v5283_v41  ;;  %v2498_v34 = vpop.f32.mrf.mxu3  ;;  %v5324_v35 = vld [vmem:[%s11327_s2 + $0x29b0] sm:$0xff] }
 0x2d0   :  { %3529 = vmatpush.msrb.mxu3 %v5307_v43  ;;  %3478 = vmatpush.msrb.mxu0 %v5250_v32  ;;  %v1895_v0 = vadd.f32 %v9989_v15, %v1875_v14  ;;  %v5301_v15 = vld [vmem:[%s11327_s2 + $0x28f8] sm:$0xff]  ;;  %v5323_v43 = vld [vmem:[%s11327_s2 + $0x29a8] sm:$0xff] }
 0x2d1   :  { %3497 = vmatpush.msrb.mxu1 %v5267_v48  ;;  %3518 = vmatpush.msrb.mxu2 %v5282_v49  ;;  %v5299_v48 = vld [vmem:[%s11327_s2 + $0x28e8] sm:$0xff]  ;;  %v5322_v49 = vld [vmem:[%s11327_s2 + $0x29a0] sm:$0xff] }
 0x2d2   :  { %3530 = vmatpush.msrb.mxu3 %v5306_v53  ;;  %3479 = vmatpush.msrb.mxu0 %v5249_v23  ;;  %v1915_v33 = vadd.f32 %v10013_v27, %v1895_v0  ;;  %v5341_v27 = vld [vmem:[%s11327_s2 + $0x2a38] sm:$0xff]  ;;  %v5339_v53 = vld [vmem:[%s11327_s2 + $0x2a28] sm:$0xff]  ;;  %v5350_v0 = vld [vmem:[%s11327_s2 + $0x2a80] sm:$0xff] }
 0x2d3   :  { %3498 = vmatpush.msrb.mxu1 %v5266_v55  ;;  %3519 = vmatpush.msrb.mxu2 %v5281_v56  ;;  %v2438_v9 = vpop.f32.mrf.mxu0  ;;  %v5298_v55 = vld [vmem:[%s11327_s2 + $0x28e0] sm:$0xff]  ;;  %v2538_v56 = vpop.f32.mrf.mxu1 }
 0x2d4   :  { %3531 = vmatpush.msrb.mxu3 %v5305_v57  ;;  %3480 = vmatpush.msrb.mxu0 %v5248_v58  ;;  %v2459_v17 = vadd.f32 %v2458_v2, %v2438_v9  ;;  %v1935_v41 = vadd.f32 %v10030_v42, %v1915_v33  ;;  %v5340_v42 = vld [vmem:[%s11327_s2 + $0x2a30] sm:$0xff]  ;;  %v5321_v57 = vld [vmem:[%s11327_s2 + $0x2998] sm:$0xff]  ;;  %v2558_v2 = vpop.f32.mrf.mxu2  ;;  %v5319_v9 = vld [vmem:[%s11327_s2 + $0x2988] sm:$0xff] }
 0x2d5   :  { %3499 = vmatpush.msrb.mxu1 %v5265_v63  ;;  %3520 = vmatpush.msrb.mxu2 %v5280_v61  ;;  %v5353_v63 = vld [vmem:[%s11327_s2 + $0x2a98] sm:$0xff] }
 0x2d6   :  { %3532 = vmatpush.msrb.mxu3 %v5304_v4  ;;  %3481 = vmatpush.msrb.mxu0 %v5247_v5  ;;  %v2479_v6 = vadd.f32 %v2478_v22, %v2459_v17  ;;  %v1955_v23 = vadd.f32 %v10015_v29, %v1935_v41  ;;  %v5338_v29 = vld [vmem:[%s11327_s2 + $0x2a20] sm:$0xff]  ;;  %v5297_v61 = vld [vmem:[%s11327_s2 + $0x28d8] sm:$0xff]  ;;  %v5320_v4 = vld [vmem:[%s11327_s2 + $0x2990] sm:$0xff] }
 0x2d7   :  { %3500 = vmatpush.msrb.mxu1 %v5264_v36  ;;  %3521 = vmatpush.msrb.mxu2 %v5279_v7  ;;  %v5352_v36 = vld [vmem:[%s11327_s2 + $0x2a90] sm:$0xff]  ;;  %v5351_v17 = vld [vmem:[%s11327_s2 + $0x2a88] sm:$0xff]  ;;  %v2578_v22 = vpop.f32.mrf.mxu3  ;;  %v5317_v33 = vld [vmem:[%s11327_s2 + $0x2978] sm:$0xff] }
 0x2d8   :  { %3533 = vmatpush.msrb.mxu3 %v5303_v11  ;;  %3482 = vmatpush.msrb.mxu0 %v5246_v12  ;;  %v2499_v32 = vadd.f32 %v2498_v34, %v2479_v6  ;;  %v1975_v58 = vadd.f32 %v10045_v50, %v1955_v23  ;;  %v5337_v50 = vld [vmem:[%s11327_s2 + $0x2a18] sm:$0xff]  ;;  %v5296_v7 = vld [vmem:[%s11327_s2 + $0x28d0] sm:$0xff]  ;;  %v5334_v34 = vld [vmem:[%s11327_s2 + $0x2a00] sm:$0xff] }
 0x2d9   :  { %3501 = vmatpush.msrb.mxu1 %v5263_v21  ;;  %3522 = vmatpush.msrb.mxu2 %v5278_v10  ;;  %v5336_v11 = vld [vmem:[%s11327_s2 + $0x2a10] sm:$0xff]  ;;  %v5295_v21 = vld [vmem:[%s11327_s2 + $0x28c8] sm:$0xff]  ;;  %v4762_v10 = vld [vmem:[%s11298_s8 + $0x1] sm:$0x1] }
 0x2da   :  { %3534 = vmatpush.msrb.mxu3 %v5302_v24  ;;  %3483 = vmatmul.f32.vlgmr.msrb.gmra.mxu0 %v6262_v8  ;;  %v5356_v8 = vld [vmem:[%s11327_s2 + $0x2ab0] sm:$0xff]  ;;  %v1995_v12 = vadd.f32 %v10072_v1, %v1975_v58  ;;  %v5318_v1 = vld [vmem:[%s11327_s2 + $0x2980] sm:$0xff]  ;;  %v5335_v24 = vld [vmem:[%s11327_s2 + $0x2a08] sm:$0xff] }
 0x2db   :  { %3523 = vmatmul.f32.vlgmr.msrb.gmra.mxu2 %v6367_v46  ;;  %3547 = vmatpush.msra.mxu0 %v5325_v51  ;;  %v5300_v46 = vld [vmem:[%s11327_s2 + $0x28f0] sm:$0xff]  ;;  %v5294_v51 = vld [vmem:[%s11327_s2 + $0x28c0] sm:$0xff]  ;;  %v5373_v41 = vld [vmem:[%s11327_s2 + $0x2b38] sm:$0xff] }
 0x2dc   :  { %3587 = vmatpush.msra.mxu2 %v5357_v40  ;;  %3502 = vmatpush.msrb.mxu1 %v5262_v25  ;;  %v1054_v40 = vld [vmem:[%s11298_s8] sm:$0x1]  ;;  %v1999_v6 = vadd.f32 %v4762_v10, %v1995_v12  ;;  %v5371_v23 = vld [vmem:[%s11327_s2 + $0x2b28] sm:$0xff]  ;;  %v5344_v12 = vld [vmem:[%s11327_s2 + $0x2a50] sm:$0xff] }
 0x2dd   :  { %3535 = vmatpush.msrb.mxu3 %v5301_v15  ;;  %3503 = vmatmul.f32.vlgmr.msrb.gmra.mxu1 %v6278_v13  ;;  %v2518_v13 = vpop.f32.mrf.mxu0 }
 0x2de   :  { %3548 = vmatpush.msra.mxu0 %v5324_v35  ;;  %3567 = vmatpush.msra.mxu1 %v5341_v27  ;;  %v2519_v30 = vadd.f32 %v2518_v13, %v2499_v32  ;;  %v5349_v35 = vld [vmem:[%s11327_s2 + $0x2a78] sm:$0xff]  ;;  %v2618_v27 = vpop.f32.mrf.mxu1  ;;  %v5348_v32 = vld [vmem:[%s11327_s2 + $0x2a70] sm:$0xff] }
 0x2df   :  { %3588 = vmatpush.msra.mxu2 %v5356_v8  ;;  %3536 = vmatpush.msrb.mxu3 %v5300_v46  ;;  %v5316_v8 = vld [vmem:[%s11327_s2 + $0x2970] sm:$0xff]  ;;  %v1055_v46 = vadd.f32 %v1054_v40, %v7980_v52  ;;  %v2000_v52 = vsub.f32 0.0, %v1999_v6  ;;  %v2658_v58 = vpop.f32.mrf.mxu3  ;;  %v5366_v6 = vld [vmem:[%s11327_s2 + $0x2b00] sm:$0xff] }
 0x2e0   :  { %3549 = vmatpush.msra.mxu0 %v5323_v43  ;;  %3568 = vmatpush.msra.mxu1 %v5340_v42  ;;  %v2539_v5 = vadd.f32 %v2538_v56, %v2519_v30  ;;  %v5333_v42 = vld [vmem:[%s11327_s2 + $0x29f8] sm:$0xff]  ;;  %v5370_v30 = vld [vmem:[%s11327_s2 + $0x2b20] sm:$0xff] }
 0x2e1   :  { %3589 = vmatpush.msra.mxu2 %v5355_v44  ;;  %3537 = vmatpush.msrb.mxu3 %v5299_v48  ;;  %v2638_v44 = vpop.f32.mrf.mxu2  ;;  %v5372_v48 = vld [vmem:[%s11327_s2 + $0x2b30] sm:$0xff] }
 0x2e2   :  { %3550 = vmatpush.msra.mxu0 %v5322_v49  ;;  %3569 = vmatpush.msra.mxu1 %v5339_v53  ;;  %v2559_v14 = vadd.f32 %v2558_v2, %v2539_v5  ;;  %v5332_v49 = vld [vmem:[%s11327_s2 + $0x29f0] sm:$0xff]  ;;  %v5347_v53 = vld [vmem:[%s11327_s2 + $0x2a68] sm:$0xff]  ;;  %v5330_v2 = vld [vmem:[%s11327_s2 + $0x29e0] sm:$0xff] }
 0x2e3   :  { %3590 = vmatpush.msra.mxu2 %v5354_v54  ;;  %3538 = vmatpush.msrb.mxu3 %v5298_v55  ;;  %v5314_v54 = vld [vmem:[%s11327_s2 + $0x2960] sm:$0xff]  ;;  %v1056_v55 = vsub.f32 0.0, %v1055_v46  ;;  %v5369_v5 = vld [vmem:[%s11327_s2 + $0x2b18] sm:$0xff] }
 0x2e4   :  { %3551 = vmatpush.msra.mxu0 %v5321_v57  ;;  %3570 = vmatpush.msra.mxu1 %v5338_v29  ;;  %v2579_v15 = vadd.f32 %v2578_v22, %v2559_v14  ;;  %v5331_v57 = vld [vmem:[%s11327_s2 + $0x29e8] sm:$0xff]  ;;  %v5346_v29 = vld [vmem:[%s11327_s2 + $0x2a60] sm:$0xff]  ;;  %v5328_v22 = vld [vmem:[%s11327_s2 + $0x29d0] sm:$0xff] }
 0x2e5   :  { %3591 = vmatpush.msra.mxu2 %v5353_v63  ;;  %3539 = vmatpush.msrb.mxu3 %v5297_v61  ;;  %v2598_v25 = vpop.f32.mrf.mxu0  ;;  %v5313_v63 = vld [vmem:[%s11327_s2 + $0x2958] sm:$0xff]  ;;  %v2001_v61 = vmul.f32 1.442695, %v2000_v52 }
 0x2e6   :  { %3552 = vmatpush.msra.mxu0 %v5320_v4  ;;  %3571 = vmatpush.msra.mxu1 %v5337_v50  ;;  %v2599_v43 = vadd.f32 %v2598_v25, %v2579_v15  ;;  %v5345_v4 = vld [vmem:[%s11327_s2 + $0x2a58] sm:$0xff]  ;;  %v2698_v14 = vpop.f32.mrf.mxu1  ;;  %v5327_v25 = vld [vmem:[%s11327_s2 + $0x29c8] sm:$0xff] }
 0x2e7   :  { %3592 = vmatpush.msra.mxu2 %v5352_v36  ;;  %3540 = vmatpush.msrb.mxu3 %v5296_v7  ;;  %v5312_v36 = vld [vmem:[%s11327_s2 + $0x2950] sm:$0xff]  ;;  %v1057_v7 = vmul.f32 1.442695, %v1056_v55  ;;  %5634 = vpow2.f32 %v2001_v61  ;;  %v5365_v46 = vld [vmem:[%s11327_s2 + $0x2af8] sm:$0xff]  ;;  %v5402_v61 = vld [vmem:[%s11327_s2 + $0x2c20] sm:$0xff] }
 0x2e8   :  { %3553 = vmatpush.msra.mxu0 %v5319_v9  ;;  %3572 = vmatpush.msra.mxu1 %v5336_v11  ;;  %v2619_v13 = vadd.f32 %v2618_v27, %v2599_v43  ;;  %v5329_v11 = vld [vmem:[%s11327_s2 + $0x29d8] sm:$0xff] }
 0x2e9   :  { %3593 = vmatpush.msra.mxu2 %v5351_v17  ;;  %3541 = vmatpush.msrb.mxu3 %v5295_v21  ;;  %v5368_v17 = vld [vmem:[%s11327_s2 + $0x2b10] sm:$0xff]  ;;  %v5311_v21 = vld [vmem:[%s11327_s2 + $0x2948] sm:$0xff]  ;;  %5636 = vpow2.f32 %v1057_v7  ;;  %v5421_v27 = vld [vmem:[%s11327_s2 + $0x2cb8] sm:$0xff] }
 0x2ea   :  { %3554 = vmatpush.msra.mxu0 %v5318_v1  ;;  %3573 = vmatpush.msra.mxu1 %v5335_v24  ;;  %v2639_v56 = vadd.f32 %v2638_v44, %v2619_v13  ;;  %v5343_v1 = vld [vmem:[%s11327_s2 + $0x2a48] sm:$0xff]  ;;  %v2718_v24 = vpop.f32.mrf.mxu2  ;;  %v5401_v7 = vld [vmem:[%s11327_s2 + $0x2c18] sm:$0xff] }
 0x2eb   :  { %3594 = vmatpush.msra.mxu2 %v5350_v0  ;;  %3542 = vmatpush.msrb.mxu3 %v5294_v51  ;;  %v5367_v0 = vld [vmem:[%s11327_s2 + $0x2b08] sm:$0xff]  ;;  %v5310_v51 = vld [vmem:[%s11327_s2 + $0x2940] sm:$0xff] }
 0x2ec   :  { %3543 = vmatmul.f32.vlgmr.msrb.gmra.mxu3 %v6469_v18  ;;  %3555 = vmatpush.msra.mxu0 %v5317_v33  ;;  %v5315_v18 = vld [vmem:[%s11327_s2 + $0x2968] sm:$0xff]  ;;  %v2659_v9 = vadd.f32 %v2658_v58, %v2639_v56  ;;  %v5342_v33 = vld [vmem:[%s11327_s2 + $0x2a40] sm:$0xff] }
 0x2ed   :  { %3574 = vmatpush.msra.mxu1 %v5334_v34  ;;  %3595 = vmatpush.msra.mxu2 %v5349_v35  ;;  %v2678_v50 = vpop.f32.mrf.mxu0  ;;  %v5389_v34 = vld [vmem:[%s11327_s2 + $0x2bb8] sm:$0xff]  ;;  %v2738_v35 = vpop.f32.mrf.mxu3  ;;  %v5387_v13 = vld [vmem:[%s11327_s2 + $0x2ba8] sm:$0xff]  ;;  %v5386_v56 = vld [vmem:[%s11327_s2 + $0x2ba0] sm:$0xff] }
 0x2ee   :  { %3607 = vmatpush.msra.mxu3 %v5373_v41  ;;  %3556 = vmatpush.msra.mxu0 %v5316_v8  ;;  %v2679_v10 = vadd.f32 %v2678_v50, %v2659_v9  ;;  %v5326_v41 = vld [vmem:[%s11327_s2 + $0x29c0] sm:$0xff]  ;;  %v5635_v8 = vpop.eup %5634  ;;  %v2778_v52 = vpop.f32.mrf.mxu1  ;;  %v5361_v50 = vld [vmem:[%s11327_s2 + $0x2ad8] sm:$0xff]  ;;  %v5416_v9 = vld [vmem:[%s11327_s2 + $0x2c90] sm:$0xff] }
 0x2ef   :  { %3575 = vmatpush.msra.mxu1 %v5333_v42  ;;  %3596 = vmatpush.msra.mxu2 %v5348_v32  ;;  %v5388_v42 = vld [vmem:[%s11327_s2 + $0x2bb0] sm:$0xff]  ;;  %v5405_v32 = vld [vmem:[%s11327_s2 + $0x2c38] sm:$0xff]  ;;  %v5637_v44 = vpop.eup %5636  ;;  %v5418_v58 = vld [vmem:[%s11327_s2 + $0x2ca0] sm:$0xff] }
 0x2f0   :  { %3608 = vmatpush.msra.mxu3 %v5372_v48  ;;  %3557 = vmatpush.msra.mxu0 %v5315_v18  ;;  %v2699_v40 = vadd.f32 %v2698_v14, %v2679_v10  ;;  %v10337_v18 = vadd.f32 1.0, %v5635_v8  ;;  %v5383_v14 = vld [vmem:[%s11327_s2 + $0x2b88] sm:$0xff] }
 0x2f1   :  { %3576 = vmatpush.msra.mxu1 %v5332_v49  ;;  %3597 = vmatpush.msra.mxu2 %v5347_v53  ;;  %v5404_v49 = vld [vmem:[%s11327_s2 + $0x2c30] sm:$0xff]  ;;  %v5415_v10 = vld [vmem:[%s11327_s2 + $0x2c88] sm:$0xff] }
 0x2f2   :  { %3609 = vmatpush.msra.mxu3 %v5371_v23  ;;  %3558 = vmatpush.msra.mxu0 %v5314_v54  ;;  %v2719_v15 = vadd.f32 %v2718_v24, %v2699_v40  ;;  %v5419_v23 = vld [vmem:[%s11327_s2 + $0x2ca8] sm:$0xff]  ;;  %v2798_v55 = vpop.f32.mrf.mxu2  ;;  %5638 = vrcp.f32 %v10337_v18  ;;  %v5382_v24 = vld [vmem:[%s11327_s2 + $0x2b80] sm:$0xff]  ;;  %vm2009_vm2 = vweird.f32 %v10337_v18 }
 0x2f3   :  { %3577 = vmatpush.msra.mxu1 %v5331_v57  ;;  %3598 = vmatpush.msra.mxu2 %v5346_v29  ;;  %v5363_v54 = vld [vmem:[%s11327_s2 + $0x2ae8] sm:$0xff] }
 0x2f4   :  { %3610 = vmatpush.msra.mxu3 %v5370_v30  ;;  %3559 = vmatpush.msra.mxu0 %v5313_v63  ;;  %v2739_v48 = vadd.f32 %v2738_v35, %v2719_v15  ;;  %v5403_v57 = vld [vmem:[%s11327_s2 + $0x2c28] sm:$0xff]  ;;  %v5362_v30 = vld [vmem:[%s11327_s2 + $0x2ae0] sm:$0xff]  ;;  %v5385_v63 = vld [vmem:[%s11327_s2 + $0x2b98] sm:$0xff] }
 0x2f5   :  { %3578 = vmatpush.msra.mxu1 %v5330_v2  ;;  %3599 = vmatpush.msra.mxu2 %v5345_v4  ;;  %v2758_v43 = vpop.f32.mrf.mxu0  ;;  %v5417_v4 = vld [vmem:[%s11327_s2 + $0x2c98] sm:$0xff] }
 0x2f6   :  { %3611 = vmatpush.msra.mxu3 %v5369_v5  ;;  %3560 = vmatpush.msra.mxu0 %v5312_v36  ;;  %v2759_v53 = vadd.f32 %v2758_v43, %v2739_v48  ;;  %v2818_v5 = vpop.f32.mrf.mxu3  ;;  %v5384_v36 = vld [vmem:[%s11327_s2 + $0x2b90] sm:$0xff]  ;;  %v5381_v15 = vld [vmem:[%s11327_s2 + $0x2b78] sm:$0xff] }
 0x2f7   :  { %3579 = vmatpush.msra.mxu1 %v5329_v11  ;;  %3600 = vmatpush.msra.mxu2 %v5344_v12  ;;  %v5360_v11 = vld [vmem:[%s11327_s2 + $0x2ad0] sm:$0xff] }
 0x2f8   :  { %3612 = vmatpush.msra.mxu3 %v5368_v17  ;;  %3561 = vmatpush.msra.mxu0 %v5311_v21  ;;  %v2779_v29 = vadd.f32 %v2778_v52, %v2759_v53  ;;  %v5400_v17 = vld [vmem:[%s11327_s2 + $0x2c10] sm:$0xff]  ;;  %v5435_v53 = vld [vmem:[%s11327_s2 + $0x2d28] sm:$0xff] }
 0x2f9   :  { %3580 = vmatpush.msra.mxu1 %v5328_v22  ;;  %3601 = vmatpush.msra.mxu2 %v5343_v1  ;;  %v5359_v22 = vld [vmem:[%s11327_s2 + $0x2ac8] sm:$0xff]  ;;  %v10404_v1 = vpop.eup %5638  ;;  %v5380_v43 = vld [vmem:[%s11327_s2 + $0x2b70] sm:$0xff] }
 0x2fa   :  { %3613 = vmatpush.msra.mxu3 %v5367_v0  ;;  %3562 = vmatpush.msra.mxu0 %v5310_v51  ;;  %v2799_v2 = vadd.f32 %v2798_v55, %v2779_v29  ;;  %v5399_v0 = vld [vmem:[%s11327_s2 + $0x2c08] sm:$0xff]  ;;  %v2005_v35 = vmul.f32 %v10404_v1, %v10337_v18  ;;  %v5434_v29 = vld [vmem:[%s11327_s2 + $0x2d20] sm:$0xff]  ;;  %vm2010_vm1 = vweird.f32 %v10404_v1 }
 0x2fb   :  { %3581 = vmatpush.msra.mxu1 %v5327_v25  ;;  %3602 = vmatpush.msra.mxu2 %v5342_v33  ;;  %v5414_v25 = vld [vmem:[%s11327_s2 + $0x2c80] sm:$0xff]  ;;  %v5395_v55 = vld [vmem:[%s11327_s2 + $0x2be8] sm:$0xff]  ;;  %vm10532_vm4 = vmor %vm2009_vm2, %vm2010_vm1 }
 0x2fc   :  { %3614 = vmatpush.msra.mxu3 %v5366_v6  ;;  %3563 = vmatmul.f32.vlgmr.msra.gmra.mxu0 %v6475_v20  ;;  %v5420_v20 = vld [vmem:[%s11327_s2 + $0x2cb0] sm:$0xff]  ;;  %v2819_v21 = vadd.f32 %v2818_v5, %v2799_v2  ;;  %v5358_v33 = vld [vmem:[%s11327_s2 + $0x2ac0] sm:$0xff]  ;;  %v2006_v52 = vsub.f32 1.0, %v2005_v35  ;;  %v5409_v2 = vld [vmem:[%s11327_s2 + $0x2c58] sm:$0xff]  ;;  %v2013_v35 = vand.u32 2147483647, %v10337_v18 }
 0x2fd   :  { %3603 = vmatmul.f32.vlgmr.msra.gmra.mxu2 %v6580_v59  ;;  %3627 = vmatpush.msrb.mxu0 %v5389_v34  ;;  %v5364_v59 = vld [vmem:[%s11327_s2 + $0x2af0] sm:$0xff]  ;;  %v2838_v12 = vpop.f32.mrf.mxu0 }
 0x2fe   :  { %3667 = vmatpush.msrb.mxu2 %v5421_v27  ;;  %3582 = vmatpush.msra.mxu1 %v5326_v41  ;;  %v2839_v40 = vadd.f32 %v2838_v12, %v2819_v21  ;;  %v5398_v27 = vld [vmem:[%s11327_s2 + $0x2c00] sm:$0xff]  ;;  %v5413_v41 = vld [vmem:[%s11327_s2 + $0x2c78] sm:$0xff]  ;;  %v5376_v5 = vld [vmem:[%s11327_s2 + $0x2b50] sm:$0xff]  ;;  %vm2014_vm7 = vcmp.eq.f32.partialorder %v2013_v35, 8.507059e+37 }
 0x2ff   :  { %3615 = vmatpush.msra.mxu3 %v5365_v46  ;;  %3583 = vmatmul.f32.vlgmr.msra.gmra.mxu1 %v6491_v26  ;;  %v10352_v26 = vadd.f32 1.0, %v5637_v44  ;;  %v5437_v46 = vld [vmem:[%s11327_s2 + $0x2d38] sm:$0xff]  ;;  %v5412_v44 = vld [vmem:[%s11327_s2 + $0x2c70] sm:$0xff]  ;;  %v5165_v12 = vld [vmem:[%s11298_s8 + $0x2] sm:$0x1] }
 0x300   :  { %3628 = vmatpush.msrb.mxu0 %v5388_v42  ;;  %3647 = vmatpush.msrb.mxu1 %v5405_v32  ;;  %v5397_v32 = vld [vmem:[%s11327_s2 + $0x2bf8] sm:$0xff]  ;;  %v5500_v35 = vld [vmem:[%s11327_s2 + $0x2f30] sm:$0xff] }
 0x301   :  { %3668 = vmatpush.msrb.mxu2 %v5420_v20  ;;  %3616 = vmatpush.msra.mxu3 %v5364_v59  ;;  %5640 = vrcp.f32 %v10352_v26  ;;  %v5436_v20 = vld [vmem:[%s11327_s2 + $0x2d30] sm:$0xff]  ;;  %vm1065_vm5 = vweird.f32 %v10352_v26 }
 0x302   :  { %3629 = vmatpush.msrb.mxu0 %v5387_v13  ;;  %3648 = vmatpush.msrb.mxu1 %v5404_v49  ;;  %v2858_v51 = vpop.f32.mrf.mxu1  ;;  %v5396_v13 = vld [vmem:[%s11327_s2 + $0x2bf0] sm:$0xff]  ;;  %v5411_v49 = vld [vmem:[%s11327_s2 + $0x2c68] sm:$0xff] }
 0x303   :  { %3669 = vmatpush.msrb.mxu2 %v5419_v23  ;;  %3617 = vmatpush.msra.mxu3 %v5363_v54  ;;  %v2859_v8 = vadd.f32 %v2858_v51, %v2839_v40  ;;  %v5378_v23 = vld [vmem:[%s11327_s2 + $0x2b60] sm:$0xff]  ;;  %v5431_v51 = vld [vmem:[%s11327_s2 + $0x2d08] sm:$0xff] }
 0x304   :  { %3630 = vmatpush.msrb.mxu0 %v5386_v56  ;;  %3649 = vmatpush.msrb.mxu1 %v5403_v57  ;;  %v5410_v56 = vld [vmem:[%s11327_s2 + $0x2c60] sm:$0xff] }
 0x305   :  { %3670 = vmatpush.msrb.mxu2 %v5418_v58  ;;  %3618 = vmatpush.msra.mxu3 %v5362_v30  ;;  %v5377_v58 = vld [vmem:[%s11327_s2 + $0x2b58] sm:$0xff]  ;;  %v5374_v40 = vld [vmem:[%s11327_s2 + $0x2b40] sm:$0xff] }
 0x306   :  { %3631 = vmatpush.msrb.mxu0 %v5385_v63  ;;  %3650 = vmatpush.msrb.mxu1 %v5402_v61  ;;  %v2007_v63 = vmul.f32 %v10404_v1, %v2006_v52  ;;  %v5394_v61 = vld [vmem:[%s11327_s2 + $0x2be0] sm:$0xff] }
 0x307   :  { %3671 = vmatpush.msrb.mxu2 %v5417_v4  ;;  %3619 = vmatpush.msra.mxu3 %v5361_v50  ;;  %v10418_v6 = vpop.eup %5640  ;;  %v5433_v50 = vld [vmem:[%s11327_s2 + $0x2d18] sm:$0xff] }
 0x308   :  { %3632 = vmatpush.msrb.mxu0 %v5384_v36  ;;  %3651 = vmatpush.msrb.mxu1 %v5401_v7  ;;  %v1061_v42 = vmul.f32 %v10418_v6, %v10352_v26  ;;  %v5393_v36 = vld [vmem:[%s11327_s2 + $0x2bd8] sm:$0xff]  ;;  %v5408_v7 = vld [vmem:[%s11327_s2 + $0x2c50] sm:$0xff]  ;;  %vm1066_vm3 = vweird.f32 %v10418_v6 }
 0x309   :  { %3672 = vmatpush.msrb.mxu2 %v5416_v9  ;;  %3620 = vmatpush.msra.mxu3 %v5360_v11  ;;  %v2878_v34 = vpop.f32.mrf.mxu2  ;;  %vm10556_vm6 = vmor %vm1065_vm5, %vm1066_vm3 }
 0x30a   :  { %3633 = vmatpush.msrb.mxu0 %v5383_v14  ;;  %3652 = vmatpush.msrb.mxu1 %v5400_v17  ;;  %v2879_v48 = vadd.f32 %v2878_v34, %v2859_v8  ;;  %v1062_v54 = vsub.f32 1.0, %v1061_v42  ;;  %v5432_v14 = vld [vmem:[%s11327_s2 + $0x2d10] sm:$0xff]  ;;  %v5375_v17 = vld [vmem:[%s11327_s2 + $0x2b48] sm:$0xff]  ;;  %v1071_v8 = vand.u32 2147483648, %v10352_v26 }
 0x30b   :  { %3673 = vmatpush.msrb.mxu2 %v5415_v10  ;;  %3621 = vmatpush.msra.mxu3 %v5359_v22  ;;  %v2898_v59 = vpop.f32.mrf.mxu3  ;;  %v5392_v10 = vld [vmem:[%s11327_s2 + $0x2bd0] sm:$0xff]  ;;  %v5407_v22 = vld [vmem:[%s11327_s2 + $0x2c48] sm:$0xff] }
 0x30c   :  { %3634 = vmatpush.msrb.mxu0 %v5382_v24  ;;  %3653 = vmatpush.msrb.mxu1 %v5399_v0  ;;  %v2899_v57 = vadd.f32 %v2898_v59, %v2879_v48  ;;  %v1063_v9 = vmul.f32 %v10418_v6, %v1062_v54  ;;  %v2008_v24 = vadd.f32 %v10404_v1, %v2007_v63  ;;  %v2015_v0 = vand.u32 2147483648, %v10337_v18  ;;  %v5453_v18 = vld [vmem:[%s11327_s2 + $0x2db8] sm:$0xff]  ;;  %v5426_v63 = vld [vmem:[%s11327_s2 + $0x2ce0] sm:$0xff] }
 0x30d   :  { %3674 = vmatpush.msrb.mxu2 %v5414_v25  ;;  %3622 = vmatpush.msra.mxu3 %v5358_v33  ;;  %v5391_v33 = vld [vmem:[%s11327_s2 + $0x2bc8] sm:$0xff]  ;;  %v1072_v59 = vor.u32 1.1754944e-38, %v1071_v8  ;;  %v5473_v48 = vld [vmem:[%s11327_s2 + $0x2e58] sm:$0xff] }
 0x30e   :  { %3623 = vmatmul.f32.vlgmr.msra.gmra.mxu3 %v6677_v37  ;;  %3635 = vmatpush.msrb.mxu0 %v5381_v15  ;;  %v5379_v37 = vld [vmem:[%s11327_s2 + $0x2b68] sm:$0xff]  ;;  %v5406_v15 = vld [vmem:[%s11327_s2 + $0x2c40] sm:$0xff]  ;;  %v1064_v34 = vadd.f32 %v10418_v6, %v1063_v9  ;;  %v2016_v42 = vor.u32 1.1754944e-38, %v2015_v0  ;;  %v5424_v9 = vld [vmem:[%s11327_s2 + $0x2cd0] sm:$0xff] }
 0x30f   :  { %3654 = vmatpush.msrb.mxu1 %v5398_v27  ;;  %3675 = vmatpush.msrb.mxu2 %v5413_v41  ;;  %v5430_v41 = vld [vmem:[%s11327_s2 + $0x2d00] sm:$0xff]  ;;  %v5445_v0 = vld [vmem:[%s11327_s2 + $0x2d78] sm:$0xff]  ;;  %v5443_v27 = vld [vmem:[%s11327_s2 + $0x2d68] sm:$0xff] }
 0x310   :  { %3687 = vmatpush.msrb.mxu3 %v5437_v46  ;;  %3636 = vmatpush.msrb.mxu0 %v5380_v43  ;;  %v1069_v46 = vand.u32 2147483647, %v10352_v26  ;;  %v2012_v43 = vsel %vm10532_vm4, %v10404_v1, %v2008_v24  ;;  %v5429_v26 = vld [vmem:[%s11327_s2 + $0x2cf8] sm:$0xff]  ;;  %v1068_v1 = vsel %vm10556_vm6, %v10418_v6, %v1064_v34  ;;  %v5428_v6 = vld [vmem:[%s11327_s2 + $0x2cf0] sm:$0xff]  ;;  %v5422_v24 = vld [vmem:[%s11327_s2 + $0x2cc0] sm:$0xff] }
 0x311   :  { %3655 = vmatpush.msrb.mxu1 %v5397_v32  ;;  %3676 = vmatpush.msrb.mxu2 %v5412_v44  ;;  %v5485_v32 = vld [vmem:[%s11327_s2 + $0x2eb8] sm:$0xff]  ;;  %v5390_v44 = vld [vmem:[%s11327_s2 + $0x2bc0] sm:$0xff]  ;;  %v2017_v52 = vsel %vm2014_vm7, %v2016_v42, %v2012_v43  ;;  %v5476_v34 = vld [vmem:[%s11327_s2 + $0x2e70] sm:$0xff] }
 0x312   :  { %3688 = vmatpush.msrb.mxu3 %v5436_v20  ;;  %3637 = vmatpush.msrb.mxu0 %v5379_v37  ;;  %v5452_v20 = vld [vmem:[%s11327_s2 + $0x2db0] sm:$0xff]  ;;  %v74_v37 = vld [vmem:[%s11334_s3] sm:$0x1]  ;;  %vm1070_vm8 = vcmp.eq.f32.partialorder %v1069_v46, 8.507059e+37  ;;  %v5499_v8 = vld [vmem:[%s11327_s2 + $0x2f28] sm:$0xff] }
 0x313   :  { %3656 = vmatpush.msrb.mxu1 %v5396_v13  ;;  %3677 = vmatpush.msrb.mxu2 %v5411_v49  ;;  %v2918_v30 = vpop.f32.mrf.mxu0  ;;  %v1073_v49 = vsel %vm1070_vm8, %v1072_v59, %v1068_v1  ;;  %v3889_v54 = vmul.f32 %v2017_v52, %v74_v37  ;;  %v5459_v46 = vld [vmem:[%s11327_s2 + $0x2de8] sm:$0xff]  ;;  %v5474_v43 = vld [vmem:[%s11327_s2 + $0x2e60] sm:$0xff]  ;;  %v5440_v1 = vld [vmem:[%s11327_s2 + $0x2d50] sm:$0xff] }
 0x314   :  { %3689 = vmatpush.msrb.mxu3 %v5435_v53  ;;  %3638 = vmatpush.msrb.mxu0 %v5378_v23  ;;  %v2919_v4 = vadd.f32 %v2918_v30, %v2899_v57  ;;  %v5451_v53 = vld [vmem:[%s11327_s2 + $0x2da8] sm:$0xff]  ;;  %v5468_v23 = vld [vmem:[%s11327_s2 + $0x2e30] sm:$0xff]  ;;  %v5450_v57 = vld [vmem:[%s11327_s2 + $0x2da0] sm:$0xff] }
 0x315   :  { %3657 = vmatpush.msrb.mxu1 %v5395_v55  ;;  %3678 = vmatpush.msrb.mxu2 %v5410_v56  ;;  %v5483_v56 = vld [vmem:[%s11327_s2 + $0x2ea8] sm:$0xff]  ;;  %v5482_v30 = vld [vmem:[%s11327_s2 + $0x2ea0] sm:$0xff]  ;;  %v5496_v37 = vld [vmem:[%s11327_s2 + $0x2f10] sm:$0xff] }
 0x316   :  { %3690 = vmatpush.msrb.mxu3 %v5434_v29  ;;  %3639 = vmatpush.msrb.mxu0 %v5377_v58  ;;  %v2938_v11 = vpop.f32.mrf.mxu1  ;;  %v5467_v29 = vld [vmem:[%s11327_s2 + $0x2e28] sm:$0xff]  ;;  %v5498_v42 = vld [vmem:[%s11327_s2 + $0x2f20] sm:$0xff]  ;;  %v5456_v52 = vld [vmem:[%s11327_s2 + $0x2dd0] sm:$0xff] }
 0x317   :  { %3658 = vmatpush.msrb.mxu1 %v5394_v61  ;;  %3679 = vmatpush.msrb.mxu2 %v5409_v2  ;;  %v2939_v21 = vadd.f32 %v2938_v11, %v2919_v4  ;;  %v5449_v61 = vld [vmem:[%s11327_s2 + $0x2d98] sm:$0xff]  ;;  %v5466_v2 = vld [vmem:[%s11327_s2 + $0x2e20] sm:$0xff]  ;;  %v5447_v11 = vld [vmem:[%s11327_s2 + $0x2d88] sm:$0xff] }
 0x318   :  { %3691 = vmatpush.msrb.mxu3 %v5433_v50  ;;  %3640 = vmatpush.msrb.mxu0 %v5376_v5  ;;  %v5481_v4 = vld [vmem:[%s11327_s2 + $0x2e98] sm:$0xff]  ;;  %v5448_v5 = vld [vmem:[%s11327_s2 + $0x2d90] sm:$0xff]  ;;  %v5439_v59 = vld [vmem:[%s11327_s2 + $0x2d48] sm:$0xff] }
 0x319   :  { %3659 = vmatpush.msrb.mxu1 %v5393_v36  ;;  %3680 = vmatpush.msrb.mxu2 %v5408_v7  ;;  %v2943_v25 = vadd.f32 %v5165_v12, %v2939_v21  ;;  %v5425_v50 = vld [vmem:[%s11327_s2 + $0x2cd8] sm:$0xff]  ;;  %v5480_v7 = vld [vmem:[%s11327_s2 + $0x2e90] sm:$0xff]  ;;  %v5446_v21 = vld [vmem:[%s11327_s2 + $0x2d80] sm:$0xff] }
 0x31a   :  { %3692 = vmatpush.msrb.mxu3 %v5432_v14  ;;  %3641 = vmatpush.msrb.mxu0 %v5375_v17  ;;  %v5465_v36 = vld [vmem:[%s11327_s2 + $0x2e18] sm:$0xff]  ;;  %v5464_v12 = vld [vmem:[%s11327_s2 + $0x2e10] sm:$0xff]  ;;  %v5479_v14 = vld [vmem:[%s11327_s2 + $0x2e88] sm:$0xff] }
 0x31b   :  { %3660 = vmatpush.msrb.mxu1 %v5392_v10  ;;  %3681 = vmatpush.msrb.mxu2 %v5407_v22  ;;  %5642 = vtanh.f32 %v2943_v25  ;;  %v5423_v17 = vld [vmem:[%s11327_s2 + $0x2cc8] sm:$0xff]  ;;  %v5478_v22 = vld [vmem:[%s11327_s2 + $0x2e80] sm:$0xff]  ;;  %v5501_v25 = vld [vmem:[%s11327_s2 + $0x2f38] sm:$0xff] }
 0x31c   :  { %3693 = vmatpush.msrb.mxu3 %v5431_v51  ;;  %3642 = vmatpush.msrb.mxu0 %v5374_v40  ;;  %v5463_v10 = vld [vmem:[%s11327_s2 + $0x2e08] sm:$0xff]  ;;  %v5462_v51 = vld [vmem:[%s11327_s2 + $0x2e00] sm:$0xff]  ;;  %v5477_v40 = vld [vmem:[%s11327_s2 + $0x2e78] sm:$0xff] }
 0x31d   :  { %3661 = vmatpush.msrb.mxu1 %v5391_v33  ;;  %3682 = vmatpush.msrb.mxu2 %v5406_v15  ;;  %v5444_v33 = vld [vmem:[%s11327_s2 + $0x2d70] sm:$0xff]  ;;  %v5461_v15 = vld [vmem:[%s11327_s2 + $0x2df8] sm:$0xff] }
 0x31e   :  { %3694 = vmatpush.msrb.mxu3 %v5430_v41  ;;  %3643 = vmatmul.f32.vlgmr.msrb.gmra.mxu0 %v6683_v39  ;;  %v5469_v39 = vld [vmem:[%s11327_s2 + $0x2e38] sm:$0xff]  ;;  %v5475_v41 = vld [vmem:[%s11327_s2 + $0x2e68] sm:$0xff] }
 0x31f   :  { %3683 = vmatmul.f32.vlgmr.msrb.gmra.mxu2 %v6788_v16  ;;  %3707 = vmatpush.msra.mxu0 %v5453_v18  ;;  %v5484_v16 = vld [vmem:[%s11327_s2 + $0x2eb0] sm:$0xff]  ;;  %v5442_v18 = vld [vmem:[%s11327_s2 + $0x2d60] sm:$0xff] }
 0x320   :  { %3747 = vmatpush.msra.mxu2 %v5485_v32  ;;  %3662 = vmatpush.msrb.mxu1 %v5390_v44  ;;  %v5441_v32 = vld [vmem:[%s11327_s2 + $0x2d58] sm:$0xff]  ;;  %v5458_v44 = vld [vmem:[%s11327_s2 + $0x2de0] sm:$0xff] }
 0x321   :  { %v5643_v13 = vpop.eup %5642  ;;  %3695 = vmatpush.msrb.mxu3 %v5429_v26  ;;  %3663 = vmatmul.f32.vlgmr.msrb.gmra.mxu1 %v6699_v45  ;;  %v5427_v45 = vld [vmem:[%s11327_s2 + $0x2ce8] sm:$0xff]  ;;  %v5497_v26 = vld [vmem:[%s11327_s2 + $0x2f18] sm:$0xff] }
 0x322   :  { %3708 = vmatpush.msra.mxu0 %v5452_v20  ;;  %3727 = vmatpush.msra.mxu1 %v5469_v39  ;;  %v3890_v55 = vmul.f32 %v5643_v13, %v1073_v49  ;;  %v5457_v20 = vld [vmem:[%s11327_s2 + $0x2dd8] sm:$0xff]  ;;  %v5472_v39 = vld [vmem:[%s11327_s2 + $0x2e50] sm:$0xff]  ;;  %v5438_v13 = vld [vmem:[%s11327_s2 + $0x2d40] sm:$0xff] }
 0x323   :  { %3748 = vmatpush.msra.mxu2 %v5484_v16  ;;  %3696 = vmatpush.msrb.mxu3 %v5428_v6  ;;  %v5471_v16 = vld [vmem:[%s11327_s2 + $0x2e48] sm:$0xff] }
 0x324   :  { %v10602_v58 = vadd.f32 %v3890_v55, %v3889_v54  ;;  %3709 = vmatpush.msra.mxu0 %v5451_v53  ;;  %3728 = vmatpush.msra.mxu1 %v5468_v23  ;;  %v5495_v6 = vld [vmem:[%s11327_s2 + $0x2f08] sm:$0xff]  ;;  %v5470_v53 = vld [vmem:[%s11327_s2 + $0x2e40] sm:$0xff]  ;;  %v5517_v54 = vld [vmem:[%s11327_s2 + $0x2fb8] sm:$0xff] }
 0x325   :  { %3749 = vmatpush.msra.mxu2 %v5483_v56  ;;  %3697 = vmatpush.msrb.mxu3 %v5427_v45  ;;  %v5455_v49 = vld [vmem:[%s11327_s2 + $0x2dc8] sm:$0xff]  ;;  %v5494_v23 = vld [vmem:[%s11327_s2 + $0x2f00] sm:$0xff]  ;;  %v5549_v55 = vld [vmem:[%s11327_s2 + $0x30b8] sm:$0xff] }
 0x326   :  { %4208 = vst.msk [vmem:[%s11311_s21] sm:$0x1] %vm4206_vm9, %v10602_v58  ;;  %3710 = vmatpush.msra.mxu0 %v5450_v57  ;;  %3729 = vmatpush.msra.mxu1 %v5467_v29  ;;  %v5454_v56 = vld [vmem:[%s11327_s2 + $0x2dc0] sm:$0xff]  ;;  %v5493_v45 = vld [vmem:[%s11327_s2 + $0x2ef8] sm:$0xff]  ;;  %v5516_v57 = vld [vmem:[%s11327_s2 + $0x2fb0] sm:$0xff] }
 0x327   :  { %3750 = vmatpush.msra.mxu2 %v5482_v30  ;;  %3698 = vmatpush.msrb.mxu3 %v5426_v63  ;;  %v5533_v29 = vld [vmem:[%s11327_s2 + $0x3038] sm:$0xff]  ;;  %v5492_v30 = vld [vmem:[%s11327_s2 + $0x2ef0] sm:$0xff] }
 0x328   :  { %3711 = vmatpush.msra.mxu0 %v5449_v61  ;;  %3730 = vmatpush.msra.mxu1 %v5466_v2  ;;  %v5532_v63 = vld [vmem:[%s11327_s2 + $0x3030] sm:$0xff]  ;;  %v5547_v61 = vld [vmem:[%s11327_s2 + $0x30a8] sm:$0xff] }
 0x329   :  { %3751 = vmatpush.msra.mxu2 %v5481_v4  ;;  %3699 = vmatpush.msrb.mxu3 %v5425_v50  ;;  %v5491_v2 = vld [vmem:[%s11327_s2 + $0x2ee8] sm:$0xff]  ;;  %v5546_v50 = vld [vmem:[%s11327_s2 + $0x30a0] sm:$0xff] }
 0x32a   :  { %3712 = vmatpush.msra.mxu0 %v5448_v5  ;;  %3731 = vmatpush.msra.mxu1 %v5465_v36  ;;  %v5531_v4 = vld [vmem:[%s11327_s2 + $0x3028] sm:$0xff]  ;;  %v5490_v5 = vld [vmem:[%s11327_s2 + $0x2ee0] sm:$0xff]  ;;  %v5513_v36 = vld [vmem:[%s11327_s2 + $0x2f98] sm:$0xff] }
 0x32b   :  { %3752 = vmatpush.msra.mxu2 %v5480_v7  ;;  %3700 = vmatpush.msrb.mxu3 %v5424_v9  ;;  %v5530_v7 = vld [vmem:[%s11327_s2 + $0x3020] sm:$0xff]  ;;  %v5545_v9 = vld [vmem:[%s11327_s2 + $0x3098] sm:$0xff] }
 0x32c   :  { %3713 = vmatpush.msra.mxu0 %v5447_v11  ;;  %3732 = vmatpush.msra.mxu1 %v5464_v12  ;;  %v5489_v11 = vld [vmem:[%s11327_s2 + $0x2ed8] sm:$0xff]  ;;  %v5512_v12 = vld [vmem:[%s11327_s2 + $0x2f90] sm:$0xff] }
 0x32d   :  { %3753 = vmatpush.msra.mxu2 %v5479_v14  ;;  %3701 = vmatpush.msrb.mxu3 %v5423_v17  ;;  %v5529_v14 = vld [vmem:[%s11327_s2 + $0x3018] sm:$0xff]  ;;  %v5544_v17 = vld [vmem:[%s11327_s2 + $0x3090] sm:$0xff] }
 0x32e   :  { %3714 = vmatpush.msra.mxu0 %v5446_v21  ;;  %3733 = vmatpush.msra.mxu1 %v5463_v10  ;;  %v5488_v21 = vld [vmem:[%s11327_s2 + $0x2ed0] sm:$0xff]  ;;  %v5511_v10 = vld [vmem:[%s11327_s2 + $0x2f88] sm:$0xff] }
 0x32f   :  { %3754 = vmatpush.msra.mxu2 %v5478_v22  ;;  %3702 = vmatpush.msrb.mxu3 %v5422_v24  ;;  %v5528_v22 = vld [vmem:[%s11327_s2 + $0x3010] sm:$0xff]  ;;  %v5543_v24 = vld [vmem:[%s11327_s2 + $0x3088] sm:$0xff] }
 0x330   :  { %3703 = vmatmul.f32.vlgmr.msrb.gmra.mxu3 %v6890_v60  ;;  %3715 = vmatpush.msra.mxu0 %v5445_v0  ;;  %v5460_v60 = vld [vmem:[%s11327_s2 + $0x2df0] sm:$0xff]  ;;  %v5487_v0 = vld [vmem:[%s11327_s2 + $0x2ec8] sm:$0xff] }
 0x331   :  { %3734 = vmatpush.msra.mxu1 %v5462_v51  ;;  %3755 = vmatpush.msra.mxu2 %v5477_v40  ;;  %v5510_v51 = vld [vmem:[%s11327_s2 + $0x2f80] sm:$0xff]  ;;  %v5527_v40 = vld [vmem:[%s11327_s2 + $0x3008] sm:$0xff] }
 0x332   :  { %3767 = vmatpush.msra.mxu3 %v5501_v25  ;;  %3716 = vmatpush.msra.mxu0 %v5444_v33  ;;  %v5542_v25 = vld [vmem:[%s11327_s2 + $0x3080] sm:$0xff] }
 0x333   :  { %3735 = vmatpush.msra.mxu1 %v5461_v15  ;;  %3756 = vmatpush.msra.mxu2 %v5476_v34  ;;  %v5486_v33 = vld [vmem:[%s11327_s2 + $0x2ec0] sm:$0xff]  ;;  %v5509_v15 = vld [vmem:[%s11327_s2 + $0x2f78] sm:$0xff] }
 0x334   :  { %3768 = vmatpush.msra.mxu3 %v5500_v35  ;;  %3717 = vmatpush.msra.mxu0 %v5443_v27  ;;  %v5526_v34 = vld [vmem:[%s11327_s2 + $0x3000] sm:$0xff]  ;;  %v5541_v35 = vld [vmem:[%s11327_s2 + $0x3078] sm:$0xff]  ;;  %v5508_v27 = vld [vmem:[%s11327_s2 + $0x2f70] sm:$0xff] }
 0x335   :  { %3736 = vmatpush.msra.mxu1 %v5460_v60  ;;  %3757 = vmatpush.msra.mxu2 %v5475_v41  ;;  %v5557_v60 = vld [vmem:[%s11327_s2 + $0x30f8] sm:$0xff] }
 0x336   :  { %3769 = vmatpush.msra.mxu3 %v5499_v8  ;;  %3718 = vmatpush.msra.mxu0 %v5442_v18  ;;  %v5525_v41 = vld [vmem:[%s11327_s2 + $0x2ff8] sm:$0xff]  ;;  %v5540_v8 = vld [vmem:[%s11327_s2 + $0x3070] sm:$0xff]  ;;  %v5507_v18 = vld [vmem:[%s11327_s2 + $0x2f68] sm:$0xff] }
 0x337   :  { %3737 = vmatpush.msra.mxu1 %v5459_v46  ;;  %3758 = vmatpush.msra.mxu2 %v5474_v43  ;;  %v5556_v46 = vld [vmem:[%s11327_s2 + $0x30f0] sm:$0xff]  ;;  %v5539_v43 = vld [vmem:[%s11327_s2 + $0x3068] sm:$0xff] }
 0x338   :  { %3770 = vmatpush.msra.mxu3 %v5498_v42  ;;  %3719 = vmatpush.msra.mxu0 %v5441_v32  ;;  %v5506_v42 = vld [vmem:[%s11327_s2 + $0x2f60] sm:$0xff]  ;;  %v5555_v32 = vld [vmem:[%s11327_s2 + $0x30e8] sm:$0xff] }
 0x339   :  { %3738 = vmatpush.msra.mxu1 %v5458_v44  ;;  %3759 = vmatpush.msra.mxu2 %v5473_v48  ;;  %v5523_v44 = vld [vmem:[%s11327_s2 + $0x2fe8] sm:$0xff]  ;;  %v5538_v48 = vld [vmem:[%s11327_s2 + $0x3060] sm:$0xff] }
 0x33a   :  { %3771 = vmatpush.msra.mxu3 %v5497_v26  ;;  %3720 = vmatpush.msra.mxu0 %v5440_v1  ;;  %v5505_v26 = vld [vmem:[%s11327_s2 + $0x2f58] sm:$0xff]  ;;  %v5554_v1 = vld [vmem:[%s11327_s2 + $0x30e0] sm:$0xff] }
 0x33b   :  { %3739 = vmatpush.msra.mxu1 %v5457_v20  ;;  %3760 = vmatpush.msra.mxu2 %v5472_v39  ;;  %v5522_v20 = vld [vmem:[%s11327_s2 + $0x2fe0] sm:$0xff]  ;;  %v5537_v39 = vld [vmem:[%s11327_s2 + $0x3058] sm:$0xff] }
 0x33c   :  { %3772 = vmatpush.msra.mxu3 %v5496_v37  ;;  %3721 = vmatpush.msra.mxu0 %v5439_v59  ;;  %v5504_v37 = vld [vmem:[%s11327_s2 + $0x2f50] sm:$0xff]  ;;  %v5553_v59 = vld [vmem:[%s11327_s2 + $0x30d8] sm:$0xff] }
 0x33d   :  { %3740 = vmatpush.msra.mxu1 %v5456_v52  ;;  %3761 = vmatpush.msra.mxu2 %v5471_v16  ;;  %v5521_v52 = vld [vmem:[%s11327_s2 + $0x2fd8] sm:$0xff]  ;;  %v5536_v16 = vld [vmem:[%s11327_s2 + $0x3050] sm:$0xff] }
 0x33e   :  { %3773 = vmatpush.msra.mxu3 %v5495_v6  ;;  %3722 = vmatpush.msra.mxu0 %v5438_v13  ;;  %v5503_v6 = vld [vmem:[%s11327_s2 + $0x2f48] sm:$0xff]  ;;  %v5552_v13 = vld [vmem:[%s11327_s2 + $0x30d0] sm:$0xff] }
 0x33f   :  { %3741 = vmatpush.msra.mxu1 %v5455_v49  ;;  %3762 = vmatpush.msra.mxu2 %v5470_v53  ;;  %v5520_v49 = vld [vmem:[%s11327_s2 + $0x2fd0] sm:$0xff]  ;;  %v5535_v53 = vld [vmem:[%s11327_s2 + $0x3048] sm:$0xff] }
 0x340   :  { %3774 = vmatpush.msra.mxu3 %v5494_v23  ;;  %3723 = vmatmul.f32.vlgmr.msra.gmra.mxu0 %v6896_v62  ;;  %v5548_v62 = vld [vmem:[%s11327_s2 + $0x30b0] sm:$0xff]  ;;  %v5502_v23 = vld [vmem:[%s11327_s2 + $0x2f40] sm:$0xff] }
 0x341   :  { %3763 = vmatmul.f32.vlgmr.msra.gmra.mxu2 %v7001_v47  ;;  %3787 = vmatpush.msrb.mxu0 %v5517_v54  ;;  %v5515_v47 = vld [vmem:[%s11327_s2 + $0x2fa8] sm:$0xff] }
 0x342   :  { %3827 = vmatpush.msrb.mxu2 %v5549_v55  ;;  %3742 = vmatpush.msra.mxu1 %v5454_v56  ;;  %v5551_v54 = vld [vmem:[%s11327_s2 + $0x30c8] sm:$0xff]  ;;  %v5534_v56 = vld [vmem:[%s11327_s2 + $0x3040] sm:$0xff] }
 0x343   :  { %3775 = vmatpush.msra.mxu3 %v5493_v45  ;;  %3743 = vmatmul.f32.vlgmr.msra.gmra.mxu1 %v6912_v3  ;;  %v5514_v3 = vld [vmem:[%s11327_s2 + $0x2fa0] sm:$0xff]  ;;  %v5519_v55 = vld [vmem:[%s11327_s2 + $0x2fc8] sm:$0xff] }
 0x344   :  { %3788 = vmatpush.msrb.mxu0 %v5516_v57  ;;  %3807 = vmatpush.msrb.mxu1 %v5533_v29  ;;  %v5518_v45 = vld [vmem:[%s11327_s2 + $0x2fc0] sm:$0xff]  ;;  %v5671_v29 = vld [vmem:[%s11328_s7 + $0x18] ss:$0 sm:$0xff]  ;;  %s11336_s7 = sld [smem:[#allocation13_spill]] }
 0x345   :  { %3828 = vmatpush.msrb.mxu2 %v5548_v62  ;;  %3776 = vmatpush.msra.mxu3 %v5492_v30  ;;  %v5550_v57 = vld [vmem:[%s11327_s2 + $0x30c0] sm:$0xff]  ;;  %v3384_v62 = vpop.f32.mrf.mxu3  ;;  %v3364_v30 = vpop.f32.mrf.mxu2 }
 0x346   :  { %3789 = vmatpush.msrb.mxu0 %v5515_v47  ;;  %3808 = vmatpush.msrb.mxu1 %v5532_v63  ;;  %v3385_v47 = vadd.f32 %v3384_v62, %v3364_v30  ;;  %v3404_v63 = vpop.f32.mrf.mxu0  ;;  %v3906_v30 = vld [vmem:[%s11300_s10 + $0x10] sm:$0xff] }
 0x347   :  { %3829 = vmatpush.msrb.mxu2 %v5547_v61  ;;  %3777 = vmatpush.msra.mxu3 %v5491_v2  ;;  %v3424_v2 = vpop.f32.mrf.mxu1 }
 0x348   :  { %3790 = vmatpush.msrb.mxu0 %v5514_v3  ;;  %3809 = vmatpush.msrb.mxu1 %v5531_v4  ;;  %v3405_v61 = vadd.f32 %v3404_v63, %v3385_v47  ;;  %v3898_v47 = vld [vmem:[%s11299_s9 + $0x10] sm:$0xff] }
 0x349   :  { %3830 = vmatpush.msrb.mxu2 %v5546_v50  ;;  %3778 = vmatpush.msra.mxu3 %v5490_v5  ;;  %v5581_v63 = vld [vmem:[%s11300_s10 + $0x50] sm:$0xff] }
 0x34a   :  { %3791 = vmatpush.msrb.mxu0 %v5513_v36  ;;  %3810 = vmatpush.msrb.mxu1 %v5530_v7  ;;  %v3425_v3 = vadd.f32 %v3424_v2, %v3405_v61  ;;  %v5573_v2 = vld [vmem:[%s11299_s9 + $0x50] sm:$0xff] }
 0x34b   :  { %3831 = vmatpush.msrb.mxu2 %v5545_v9  ;;  %3779 = vmatpush.msra.mxu3 %v5489_v11 }
 0x34c   :  { %3792 = vmatpush.msrb.mxu0 %v5512_v12  ;;  %3811 = vmatpush.msrb.mxu1 %v5529_v14 }
 0x34d   :  { %3832 = vmatpush.msrb.mxu2 %v5544_v17  ;;  %3780 = vmatpush.msra.mxu3 %v5488_v21  ;;  %v3464_v4 = vpop.f32.mrf.mxu3 }
 0x34e   :  { %3793 = vmatpush.msrb.mxu0 %v5511_v10  ;;  %3812 = vmatpush.msrb.mxu1 %v5528_v22 }
 0x34f   :  { %3833 = vmatpush.msrb.mxu2 %v5543_v24  ;;  %3781 = vmatpush.msra.mxu3 %v5487_v0 }
 0x350   :  { %3794 = vmatpush.msrb.mxu0 %v5510_v51  ;;  %3813 = vmatpush.msrb.mxu1 %v5527_v40 }
 0x351   :  { %3834 = vmatpush.msrb.mxu2 %v5542_v25  ;;  %3782 = vmatpush.msra.mxu3 %v5486_v33 }
 0x352   :  { %3783 = vmatmul.f32.vlgmr.msra.gmra.mxu3 %v7098_v28  ;;  %3795 = vmatpush.msrb.mxu0 %v5509_v15  ;;  %v5524_v28 = vld [vmem:[%s11327_s2 + $0x2ff0] sm:$0xff] }
 0x353   :  { %3814 = vmatpush.msrb.mxu1 %v5526_v34  ;;  %3835 = vmatpush.msrb.mxu2 %v5541_v35 }
 0x354   :  { %3796 = vmatpush.msrb.mxu0 %v5508_v27  ;;  %3855 = vmatpush.msrb.mxu3 %v5557_v60 }
 0x355   :  { %3815 = vmatpush.msrb.mxu1 %v5525_v41  ;;  %3836 = vmatpush.msrb.mxu2 %v5540_v8 }
 0x356   :  { %3797 = vmatpush.msrb.mxu0 %v5507_v18  ;;  %3856 = vmatpush.msrb.mxu3 %v5556_v46  ;;  %v3911_v18 = vld [vmem:[%s11300_s10 + $0x38] sm:$0xff] }
 0x357   :  { %3816 = vmatpush.msrb.mxu1 %v5524_v28  ;;  %3837 = vmatpush.msrb.mxu2 %v5539_v43  ;;  %v3484_v50 = vpop.f32.mrf.mxu0  ;;  %v3903_v46 = vld [vmem:[%s11299_s9 + $0x38] sm:$0xff] }
 0x358   :  { %3798 = vmatpush.msrb.mxu0 %v5506_v42  ;;  %3857 = vmatpush.msrb.mxu3 %v5555_v32  ;;  %v5586_v28 = vld [vmem:[%s11300_s10 + $0x78] sm:$0xff] }
 0x359   :  { %3817 = vmatpush.msrb.mxu1 %v5523_v44  ;;  %3838 = vmatpush.msrb.mxu2 %v5538_v48  ;;  %v5578_v42 = vld [vmem:[%s11299_s9 + $0x78] sm:$0xff]  ;;  %v3910_v44 = vld [vmem:[%s11300_s10 + $0x30] sm:$0xff] }
 0x35a   :  { %3799 = vmatpush.msrb.mxu0 %v5505_v26  ;;  %3858 = vmatpush.msrb.mxu3 %v5554_v1  ;;  %v3902_v48 = vld [vmem:[%s11299_s9 + $0x30] sm:$0xff] }
 0x35b   :  { %3818 = vmatpush.msrb.mxu1 %v5522_v20  ;;  %3839 = vmatpush.msrb.mxu2 %v5537_v39  ;;  %v5585_v26 = vld [vmem:[%s11300_s10 + $0x70] sm:$0xff]  ;;  %v3909_v39 = vld [vmem:[%s11300_s10 + $0x28] sm:$0xff] }
 0x35c   :  { %3800 = vmatpush.msrb.mxu0 %v5504_v37  ;;  %3859 = vmatpush.msrb.mxu3 %v5553_v59  ;;  %v5577_v1 = vld [vmem:[%s11299_s9 + $0x70] sm:$0xff]  ;;  %v3901_v37 = vld [vmem:[%s11299_s9 + $0x28] sm:$0xff] }
 0x35d   :  { %3819 = vmatpush.msrb.mxu1 %v5521_v52  ;;  %3840 = vmatpush.msrb.mxu2 %v5536_v16  ;;  %v5584_v59 = vld [vmem:[%s11300_s10 + $0x68] sm:$0xff] }
 0x35e   :  { %3801 = vmatpush.msrb.mxu0 %v5503_v6  ;;  %3860 = vmatpush.msrb.mxu3 %v5552_v13  ;;  %v5576_v16 = vld [vmem:[%s11299_s9 + $0x68] sm:$0xff]  ;;  %v3908_v13 = vld [vmem:[%s11300_s10 + $0x20] sm:$0xff] }
 0x35f   :  { %3820 = vmatpush.msrb.mxu1 %v5520_v49  ;;  %3841 = vmatpush.msrb.mxu2 %v5535_v53  ;;  %v3900_v49 = vld [vmem:[%s11299_s9 + $0x20] sm:$0xff] }
 0x360   :  { %3802 = vmatpush.msrb.mxu0 %v5502_v23  ;;  %3861 = vmatpush.msrb.mxu3 %v5551_v54  ;;  %v5583_v53 = vld [vmem:[%s11300_s10 + $0x60] sm:$0xff] }
 0x361   :  { %3821 = vmatpush.msrb.mxu1 %v5519_v55  ;;  %3842 = vmatpush.msrb.mxu2 %v5534_v56  ;;  %v5575_v54 = vld [vmem:[%s11299_s9 + $0x60] sm:$0xff]  ;;  %v3907_v55 = vld [vmem:[%s11300_s10 + $0x18] sm:$0xff] }
 0x362   :  { %3803 = vmatmul.f32.vlgmr.msrb.gmra.mxu0 %v7104_v31  ;;  %3843 = vmatmul.f32.vlgmr.msrb.gmra.mxu2 %v7209_v19  ;;  %v3444_v31 = vpop.f32.mrf.mxu2  ;;  %v3899_v56 = vld [vmem:[%s11299_s9 + $0x18] sm:$0xff] }
 0x363   :  { %3822 = vmatpush.msrb.mxu1 %v5518_v45  ;;  %3862 = vmatpush.msrb.mxu3 %v5550_v57  ;;  %v3445_v19 = vadd.f32 %v3444_v31, %v3425_v3  ;;  %v5582_v45 = vld [vmem:[%s11300_s10 + $0x58] sm:$0xff]  ;;  %v3905_v31 = vld [vmem:[%s11300_s10 + $0x8] sm:$0xff] }
 0x364   :  { %3823 = vmatmul.f32.vlgmr.msrb.gmra.mxu1 %v7120_v38  ;;  %5567 = vmatmul.msk.f32.vlgmr.msrb.gmra.mxu3 %vm475_vm0, %v5671_v29  ;;  %v3504_v38 = vpop.f32.mrf.mxu1  ;;  %v5574_v29 = vld [vmem:[%s11299_s9 + $0x58] sm:$0xff] }
 0x365   :  { %v3465_v5 = vadd.f32 %v3464_v4, %v3445_v19  ;;  %3923 = vmatpush.msra.mxu0 %v3911_v18  ;;  %3946 = vmatpush.msra.mxu1 %v3903_v46  ;;  %v3897_v4 = vld [vmem:[%s11299_s9 + $0x8] sm:$0xff]  ;;  %v5621_v18 = vld [vmem:[%s11300_s10 + $0xe0] sm:$0xff] }
 0x366   :  { %4005 = vmatpush.msra.mxu2 %v5586_v28  ;;  %4025 = vmatpush.msra.mxu3 %v5578_v42  ;;  %v5580_v19 = vld [vmem:[%s11300_s10 + $0x48] sm:$0xff]  ;;  %v5613_v46 = vld [vmem:[%s11299_s9 + $0xe0] sm:$0xff]  ;;  %v5601_v42 = vld [vmem:[%s11300_s10 + $0x98] sm:$0xff] }
 0x367   :  { %v3485_v36 = vadd.f32 %v3484_v50, %v3465_v5  ;;  %3924 = vmatpush.msra.mxu0 %v3910_v44  ;;  %3947 = vmatpush.msra.mxu1 %v3902_v48  ;;  %v5572_v50 = vld [vmem:[%s11299_s9 + $0x48] sm:$0xff]  ;;  %v3904_v5 = vld [vmem:[%s11300_s10] sm:$0xff]  ;;  %v5620_v44 = vld [vmem:[%s11300_s10 + $0xd8] sm:$0xff] }
 0x368   :  { %4006 = vmatpush.msra.mxu2 %v5585_v26  ;;  %4026 = vmatpush.msra.mxu3 %v5577_v1  ;;  %v3894_v28 = vld [vmem:[%s11335_s1] sm:$0x1]  ;;  %v5612_v48 = vld [vmem:[%s11299_s9 + $0xd8] sm:$0xff]  ;;  %v5600_v1 = vld [vmem:[%s11300_s10 + $0x90] sm:$0xff] }
 0x369   :  { %v3505_v9 = vadd.f32 %v3504_v38, %v3485_v36  ;;  %3925 = vmatpush.msra.mxu0 %v3909_v39  ;;  %3948 = vmatpush.msra.mxu1 %v3901_v37  ;;  %v3896_v36 = vld [vmem:[%s11299_s9] sm:$0xff]  ;;  %v5619_v39 = vld [vmem:[%s11300_s10 + $0xd0] sm:$0xff] }
 0x36a   :  { %v3524_v7 = vpop.f32.mrf.mxu2  ;;  %4007 = vmatpush.msra.mxu2 %v5584_v59  ;;  %4027 = vmatpush.msra.mxu3 %v5576_v16  ;;  %v5579_v38 = vld [vmem:[%s11300_s10 + $0x40] sm:$0xff]  ;;  %v5611_v37 = vld [vmem:[%s11299_s9 + $0xd0] sm:$0xff]  ;;  %v5599_v59 = vld [vmem:[%s11300_s10 + $0x88] sm:$0xff] }
 0x36b   :  { %v3525_v12 = vadd.f32 %v3524_v7, %v3505_v9  ;;  %3926 = vmatpush.msra.mxu0 %v3908_v13  ;;  %3949 = vmatpush.msra.mxu1 %v3900_v49  ;;  %v5571_v9 = vld [vmem:[%s11299_s9 + $0x40] sm:$0xff]  ;;  %v5618_v16 = vld [vmem:[%s11300_s10 + $0xc8] sm:$0xff] }
 0x36c   :  { %4008 = vmatpush.msra.mxu2 %v5583_v53  ;;  %4028 = vmatpush.msra.mxu3 %v5575_v54  ;;  %v5598_v13 = vld [vmem:[%s11300_s10 + $0x80] sm:$0xff] }
 0x36d   :  { %3927 = vmatpush.msra.mxu0 %v3907_v55  ;;  %3950 = vmatpush.msra.mxu1 %v3899_v56  ;;  %v5590_v49 = vld [vmem:[%s11299_s9 + $0x80] sm:$0xff] }
 0x36e   :  { %4009 = vmatpush.msra.mxu2 %v5582_v45  ;;  %4029 = vmatpush.msra.mxu3 %v5574_v29  ;;  %v5617_v53 = vld [vmem:[%s11300_s10 + $0xc0] sm:$0xff] }
 0x36f   :  { %v3544_v11 = vpop.f32.mrf.mxu3  ;;  %3928 = vmatpush.msra.mxu0 %v3906_v30  ;;  %3951 = vmatpush.msra.mxu1 %v3898_v47 }
 0x370   :  { %v3545_v17 = vadd.f32 %v3544_v11, %v3525_v12  ;;  %4010 = vmatpush.msra.mxu2 %v5581_v63  ;;  %4030 = vmatpush.msra.mxu3 %v5573_v2  ;;  %v5605_v11 = vld [vmem:[%s11300_s10 + $0xb8] sm:$0xff] }
 0x371   :  { %3929 = vmatpush.msra.mxu0 %v3905_v31  ;;  %3952 = vmatpush.msra.mxu1 %v3897_v4  ;;  %v5597_v12 = vld [vmem:[%s11299_s9 + $0xb8] sm:$0xff] }
 0x372   :  { %4011 = vmatpush.msra.mxu2 %v5580_v19  ;;  %4031 = vmatpush.msra.mxu3 %v5572_v50  ;;  %v3958_v19 = vld [vmem:[%s11301_s11] sm:$0x1] }
 0x373   :  { %3930 = vmatpush.msra.mxu0 %v3904_v5  ;;  %3953 = vmatpush.msra.mxu1 %v3896_v36 }
 0x374   :  { %4012 = vmatpush.msra.mxu2 %v5579_v38  ;;  %4032 = vmatpush.msra.mxu3 %v5571_v9  ;;  %v5589_v9 = vld [vmem:[%s11301_s11 + $0x1] sm:$0x1] }
 0x375   :  { %4085 = vmatpush.msrb.mxu0 %v5605_v11  ;;  %4105 = vmatpush.msrb.mxu1 %v5597_v12  ;;  %v4218_v11 = vld [vmem:[%s11302_s12 + $0x38] sm:$0xff] }
 0x376   :  { %5569 = vmatmul.msk.f32.vlgmr.msra.gmra.mxu0 %vm475_vm0, %v3894_v28  ;;  %5587 = vmatmul.msk.f32.vlgmr.msra.gmra.mxu2 %vm475_vm0, %v3894_v28  ;;  %v4254_v12 = vld [vmem:[%s11304_s14 + $0x38] sm:$0xff] }
 0x379   :  { %v3564_v14 = vpop.f32.mrf.mxu0 }
 0x37a   :  { %v3565_v21 = vadd.f32 %v3564_v14, %v3545_v17  ;;  %v5568_v17 = vld [vmem:[%s11298_s8 + $0x3] sm:$0x1] }
 0x37c   :  { %v3584_v10 = vpop.f32.mrf.mxu1 }
 0x37d   :  { %v3585_v24 = vadd.f32 %v3584_v10, %v3565_v21  ;;  %v5624_v21 = vld [vmem:[%s11300_s10 + $0xf8] sm:$0xff] }
 0x37e   :  { %v5616_v10 = vld [vmem:[%s11299_s9 + $0xf8] sm:$0xff]  ;;  %4147 = vmatpush.msrb.mxu2 %v5624_v21  ;;  %v4217_v21 = vld [vmem:[%s11302_s12 + $0x30] sm:$0xff] }
 0x37f   :  { %4167 = vmatpush.msrb.mxu3 %v5616_v10  ;;  %v4253_v10 = vld [vmem:[%s11304_s14 + $0x30] sm:$0xff] }
 0x380   :  { %v3604_v22 = vpop.f32.mrf.mxu2 }
 0x381   :  { %v3605_v51 = vadd.f32 %v3604_v22, %v3585_v24  ;;  %v5604_v24 = vld [vmem:[%s11300_s10 + $0xb0] sm:$0xff] }
 0x382   :  { %4086 = vmatpush.msrb.mxu0 %v5604_v24  ;;  %v4216_v24 = vld [vmem:[%s11302_s12 + $0x28] sm:$0xff] }
 0x391   :  { %v3624_v0 = vpop.f32.mrf.mxu3 }
 0x392   :  { %v3625_v25 = vadd.f32 %v3624_v0, %v3605_v51  ;;  %v5596_v0 = vld [vmem:[%s11299_s9 + $0xb0] sm:$0xff] }
 0x393   :  { %v5623_v51 = vld [vmem:[%s11300_s10 + $0xf0] sm:$0xff]  ;;  %4106 = vmatpush.msrb.mxu1 %v5596_v0  ;;  %v4252_v0 = vld [vmem:[%s11304_s14 + $0x28] sm:$0xff] }
 0x394   :  { %4148 = vmatpush.msrb.mxu2 %v5623_v51 }
 0x39b   :  { %v3644_v40 = vpop.f32.mrf.mxu0 }
 0x39c   :  { %v3645_v33 = vadd.f32 %v3644_v40, %v3625_v25  ;;  %v5615_v25 = vld [vmem:[%s11299_s9 + $0xf0] sm:$0xff] }
 0x39d   :  { %4168 = vmatpush.msrb.mxu3 %v5615_v25  ;;  %v4215_v25 = vld [vmem:[%s11302_s12 + $0x20] sm:$0xff] }
 0x39e   :  { %v3664_v15 = vpop.f32.mrf.mxu1 }
 0x39f   :  { %v3665_v35 = vadd.f32 %v3664_v15, %v3645_v33  ;;  %v5603_v33 = vld [vmem:[%s11300_s10 + $0xa8] sm:$0xff] }
 0x3a0   :  { %v5595_v15 = vld [vmem:[%s11299_s9 + $0xa8] sm:$0xff]  ;;  %4087 = vmatpush.msrb.mxu0 %v5603_v33  ;;  %v4251_v33 = vld [vmem:[%s11304_s14 + $0x20] sm:$0xff] }
 0x3a1   :  { %4107 = vmatpush.msrb.mxu1 %v5595_v15 }
 0x3a2   :  { %v3684_v34 = vpop.f32.mrf.mxu2 }
 0x3a3   :  { %v3685_v60 = vadd.f32 %v3684_v34, %v3665_v35  ;;  %v5622_v35 = vld [vmem:[%s11300_s10 + $0xe8] sm:$0xff] }
 0x3a4   :  { %4149 = vmatpush.msrb.mxu2 %v5622_v35  ;;  %v4250_v35 = vld [vmem:[%s11304_s14 + $0x18] sm:$0xff] }
 0x3a6   :  { %4150 = vmatpush.msrb.mxu2 %v5621_v18 }
 0x3a8   :  { %4151 = vmatpush.msrb.mxu2 %v5620_v44  ;;  %v4211_v44 = vld [vmem:[%s11302_s12] sm:$0xff] }
 0x3aa   :  { %4152 = vmatpush.msrb.mxu2 %v5619_v39 }
 0x3ac   :  { %4153 = vmatpush.msrb.mxu2 %v5618_v16 }
 0x3ae   :  { %4154 = vmatpush.msrb.mxu2 %v5617_v53 }
 0x3af   :  { %5625 = vmatmul.msk.f32.vlgmr.msrb.gmra.mxu2 %vm475_vm0, %v3894_v28 }
 0x3b3   :  { %v3704_v27 = vpop.f32.mrf.mxu3 }
 0x3b4   :  { %v3705_v8 = vadd.f32 %v3704_v27, %v3685_v60  ;;  %v5614_v27 = vld [vmem:[%s11299_s9 + $0xe8] sm:$0xff]  ;;  %v5602_v60 = vld [vmem:[%s11300_s10 + $0xa0] sm:$0xff] }
 0x3b5   :  { %4169 = vmatpush.msrb.mxu3 %v5614_v27  ;;  %4088 = vmatpush.msrb.mxu0 %v5602_v60  ;;  %v5627_v60 = vld [vmem:[%s11301_s11 + $0x3] sm:$0x1] }
 0x3b7   :  { %4170 = vmatpush.msrb.mxu3 %v5613_v46  ;;  %4089 = vmatpush.msrb.mxu0 %v5601_v42  ;;  %v4248_v42 = vld [vmem:[%s11304_s14 + $0x8] sm:$0xff] }
 0x3b9   :  { %4171 = vmatpush.msrb.mxu3 %v5612_v48  ;;  %4090 = vmatpush.msrb.mxu0 %v5600_v1  ;;  %v4247_v48 = vld [vmem:[%s11304_s14] sm:$0xff] }
 0x3bb   :  { %4172 = vmatpush.msrb.mxu3 %v5611_v37  ;;  %4091 = vmatpush.msrb.mxu0 %v5599_v59  ;;  %v4283_v37 = vld [vmem:[%s11306_s16 + $0x38] sm:$0xff]  ;;  %v4282_v59 = vld [vmem:[%s11306_s16 + $0x30] sm:$0xff] }
 0x3bc   :  { %4296 = vmatpush.msra.mxu2 %v4283_v37 }
 0x3bd   :  { %v3724_v41 = vpop.f32.mrf.mxu0  ;;  %4092 = vmatpush.msrb.mxu0 %v5598_v13  ;;  %v4281_v13 = vld [vmem:[%s11306_s16 + $0x28] sm:$0xff] }
 0x3be   :  { %v3725_v43 = vadd.f32 %v3724_v41, %v3705_v8  ;;  %v5594_v41 = vld [vmem:[%s11299_s9 + $0xa0] sm:$0xff]  ;;  %5606 = vmatmul.msk.f32.vlgmr.msrb.gmra.mxu0 %vm475_vm0, %v3894_v28  ;;  %4297 = vmatpush.msra.mxu2 %v4282_v59 }
 0x3bf   :  { %4108 = vmatpush.msrb.mxu1 %v5594_v41  ;;  %4231 = vmatpush.msra.mxu0 %v4218_v11  ;;  %v4213_v41 = vld [vmem:[%s11302_s12 + $0x10] sm:$0xff] }
 0x3c0   :  { %v3744_v32 = vpop.f32.mrf.mxu1  ;;  %4298 = vmatpush.msra.mxu2 %v4281_v13 }
 0x3c1   :  { %v3745_v52 = vadd.f32 %v3744_v32, %v3725_v43  ;;  %v5593_v32 = vld [vmem:[%s11299_s9 + $0x98] sm:$0xff]  ;;  %4232 = vmatpush.msra.mxu0 %v4217_v21 }
 0x3c2   :  { %4109 = vmatpush.msrb.mxu1 %v5593_v32 }
 0x3c3   :  { %4233 = vmatpush.msra.mxu0 %v4216_v24 }
 0x3c4   :  { %v3764_v20 = vpop.f32.mrf.mxu2 }
 0x3c5   :  { %v3765_v23 = vadd.f32 %v3764_v20, %v3745_v52  ;;  %v5592_v20 = vld [vmem:[%s11299_s9 + $0x90] sm:$0xff]  ;;  %v5591_v52 = vld [vmem:[%s11299_s9 + $0x88] sm:$0xff]  ;;  %4234 = vmatpush.msra.mxu0 %v4215_v25 }
 0x3c6   :  { %4110 = vmatpush.msrb.mxu1 %v5592_v20 }
 0x3c8   :  { %4111 = vmatpush.msrb.mxu1 %v5591_v52 }
 0x3ca   :  { %4112 = vmatpush.msrb.mxu1 %v5590_v49 }
 0x3d5   :  { %v3784_v6 = vpop.f32.mrf.mxu3 }
 0x3d6   :  { %v3785_v57 = vadd.f32 %v3784_v6, %v3765_v23  ;;  %v5610_v6 = vld [vmem:[%s11299_s9 + $0xc8] sm:$0xff]  ;;  %v5609_v23 = vld [vmem:[%s11299_s9 + $0xc0] sm:$0xff] }
 0x3d7   :  { %4173 = vmatpush.msrb.mxu3 %v5610_v6 }
 0x3d9   :  { %4174 = vmatpush.msrb.mxu3 %v5609_v23  ;;  %v4280_v23 = vld [vmem:[%s11306_s16 + $0x20] sm:$0xff] }
 0x3da   :  { %4299 = vmatpush.msra.mxu2 %v4280_v23 }
 0x3df   :  { %v3804_v62 = vpop.f32.mrf.mxu0 }
 0x3e0   :  { %v3805_v61 = vadd.f32 %v3804_v62, %v3785_v57 }
 0x3e1   :  { %v3824_v3 = vpop.f32.mrf.mxu1 }
 0x3e2   :  { %v3825_v7 = vadd.f32 %v3824_v3, %v3805_v61 }
 0x3e5   :  { %v3844_v14 = vpop.f32.mrf.mxu2 }
 0x3e6   :  { %v3845_v22 = vadd.f32 %v3844_v14, %v3825_v7 }
 0x3e7   :  { %v3864_v40 = vpop.f32.mrf.mxu3 }
 0x3e8   :  { %v3865_v34 = vadd.f32 %v3864_v40, %v3845_v22 }
 0x3ea   :  { %v3869_v8 = vadd.f32 %v5568_v17, %v3865_v34  ;;  %v4214_v34 = vld [vmem:[%s11302_s12 + $0x18] sm:$0xff] }
 0x3eb   :  { %4235 = vmatpush.msra.mxu0 %v4214_v34 }
 0x3ec   :  { %v3870_v43 = vsub.f32 0.0, %v3869_v8  ;;  %v4249_v8 = vld [vmem:[%s11304_s14 + $0x10] sm:$0xff]  ;;  %s11337_s14 = sld [smem:[#allocation14_spill]] }
 0x3ed   :  { %4236 = vmatpush.msra.mxu0 %v4213_v41  ;;  %v4277_v41 = vld [vmem:[%s11306_s16 + $0x8] sm:$0xff] }
 0x3ee   :  { %v3871_v26 = vmul.f32 1.442695, %v3870_v43  ;;  %v4212_v43 = vld [vmem:[%s11302_s12 + $0x8] sm:$0xff] }
 0x3ef   :  { %4237 = vmatpush.msra.mxu0 %v4212_v43 }
 0x3f0   :  { %5644 = vpow2.f32 %v3871_v26 }
 0x3f1   :  { %4238 = vmatpush.msra.mxu0 %v4211_v44 }
 0x3f2   :  { %v4243_v43 = vld [vmem:[%s11337_s14] sm:$0x1] }
 0x3f6   :  { %v5645_v54 = vpop.eup %5644 }
 0x3f7   :  { %v3873_v55 = vadd.f32 1.0, %v5645_v54 }
 0x3f9   :  { %5646 = vrcp.f32 %v3873_v55  ;;  %v3885_v29 = vand.u32 2147483648, %v3873_v55  ;;  %v3883_v30 = vand.u32 2147483647, %v3873_v55  ;;  %vm3879_vm11 = vweird.f32 %v3873_v55  ;;  %v4014_v5 = vpop.f32.mrf.mxu2 }
 0x3fa   :  { %5648 = vtanh.f32 %v10602_v58  ;;  %v3932_v58 = vpop.f32.mrf.mxu0 }
 0x3fb   :  { %v3886_v63 = vor.u32 1.1754944e-38, %v3885_v29  ;;  %vm3884_vm13 = vcmp.eq.f32.partialorder %v3883_v30, 8.507059e+37 }
 0x3ff   :  { %v5647_v56 = vpop.eup %5646 }
 0x400   :  { %v3875_v45 = vmul.f32 %v5647_v56, %v3873_v55  ;;  %vm3880_vm10 = vweird.f32 %v5647_v56  ;;  %v5649_v2 = vpop.eup %5648  ;;  %v5608_v55 = vld [vmem:[%s11301_s11 + $0x2] sm:$0x1] }
 0x401   :  { %vm3881_vm12 = vmor %vm3879_vm11, %vm3880_vm10 }
 0x402   :  { %v3876_v57 = vsub.f32 1.0, %v3875_v45 }
 0x404   :  { %v3877_v62 = vmul.f32 %v5647_v56, %v3876_v57 }
 0x406   :  { %v3878_v47 = vadd.f32 %v5647_v56, %v3877_v62 }
 0x408   :  { %v3882_v61 = vsel %vm3881_vm12, %v5647_v56, %v3878_v47  ;;  %v4279_v56 = vld [vmem:[%s11306_s16 + $0x18] sm:$0xff]  ;;  %v4278_v47 = vld [vmem:[%s11306_s16 + $0x10] sm:$0xff]  ;;  %vm4308_vm12 = vcmask 0  }
 0x409   :  { %v3887_v3 = vsel %vm3884_vm13, %v3886_v63, %v3882_v61  ;;  %4300 = vmatpush.msra.mxu2 %v4279_v56 }
 0x40a   :  { %v3893_v31 = vmul.f32 %v5649_v2, %v3887_v3 }
 0x40b   :  { %4301 = vmatpush.msra.mxu2 %v4278_v47 }
 0x40c   :  { %5570 = vmatmul.msk.f32.vlgmr.msra.gmra.mxu1 %vm475_vm0, %v3893_v31  ;;  %4207 = vst.msk [vmem:[%s11310_s20] sm:$0x1] %vm4206_vm9, %v3893_v31  ;;  %5588 = vmatmul.msk.f32.vlgmr.msra.gmra.mxu3 %vm475_vm0, %v3893_v31 }
 0x40d   :  { %4264 = vmatpush.msra.mxu1 %v4254_v12  ;;  %4302 = vmatpush.msra.mxu2 %v4277_v41 }
 0x40f   :  { %4265 = vmatpush.msra.mxu1 %v4253_v10 }
 0x411   :  { %4266 = vmatpush.msra.mxu1 %v4252_v0 }
 0x413   :  { %4267 = vmatpush.msra.mxu1 %v4251_v33 }
 0x414   :  { %5607 = vmatmul.msk.f32.vlgmr.msrb.gmra.mxu1 %vm475_vm0, %v3893_v31  ;;  %5626 = vmatmul.msk.f32.vlgmr.msrb.gmra.mxu3 %vm475_vm0, %v3893_v31 }
 0x415   :  { %4268 = vmatpush.msra.mxu1 %v4250_v35 }
 0x417   :  { %4269 = vmatpush.msra.mxu1 %v4249_v8  ;;  %v4276_v8 = vld [vmem:[%s11306_s16] sm:$0xff]  ;;  %s5724_s16 = smov [#allocation3]  }
 0x418   :  { %4303 = vmatpush.msra.mxu2 %v4276_v8  ;;  %s4315_s25 = sshll.u32 %s5724_s16, 4  ;;  %s4316_s25 = int_to_ptr.vmem [resolvable:$true] %s4315_s25 }
 0x419   :  { %4270 = vmatpush.msra.mxu1 %v4248_v42 }
 0x41b   :  { %4271 = vmatpush.msra.mxu1 %v4247_v48 }
 0x432   :  { %v4156_v40 = vpop.f32.mrf.mxu2 }
 0x43b   :  { %v4094_v52 = vpop.f32.mrf.mxu0 }
 0x489   :  { %v3955_v4 = vpop.f32.mrf.mxu1 }
 0x48a   :  { %v3956_v50 = vadd.f32 %v3955_v4, %v3932_v58 }
 0x48c   :  { %v3959_v36 = vadd.f32 %v3958_v19, %v3956_v50 }
 0x48e   :  { %v3960_v38 = vsub.f32 0.0, %v3959_v36 }
 0x48f   :  { %v4034_v7 = vpop.f32.mrf.mxu3 }
 0x490   :  { %v3961_v14 = vmul.f32 1.442695, %v3960_v38  ;;  %v4035_v17 = vadd.f32 %v4034_v7, %v4014_v5 }
 0x491   :  { %v4114_v16 = vpop.f32.mrf.mxu1 }
 0x492   :  { %5650 = vpow2.f32 %v3961_v14  ;;  %v4039_v22 = vadd.f32 %v5589_v9, %v4035_v17  ;;  %v4115_v53 = vadd.f32 %v4114_v16, %v4094_v52  ;;  %v3895_v9 = vld [vmem:[%s11336_s7] sm:$0x1] }
 0x494   :  { %v4040_v51 = vsub.f32 0.0, %v4039_v22  ;;  %v4119_v62 = vadd.f32 %v5608_v55, %v4115_v53 }
 0x496   :  { %v4041_v15 = vmul.f32 1.442695, %v4040_v51 }
 0x497   :  { %v4176_v27 = vpop.f32.mrf.mxu3 }
 0x498   :  { %v5651_v18 = vpop.eup %5650  ;;  %5652 = vpow2.f32 %v4041_v15  ;;  %v4177_v46 = vadd.f32 %v4176_v27, %v4156_v40 }
 0x499   :  { %v3963_v28 = vadd.f32 1.0, %v5651_v18  ;;  %v4219_v18 = vld [vmem:[%s11303_s13] sm:$0x1] }
 0x49a   :  { %v4181_v32 = vadd.f32 %v5627_v60, %v4177_v46  ;;  %v4255_v46 = vld [vmem:[%s11305_s15] sm:$0x1]  ;;  %s5725_s15 = smov [#allocation5]  }
 0x49b   :  { %5654 = vrcp.f32 %v3963_v28  ;;  %v3975_v2 = vand.u32 2147483648, %v3963_v28  ;;  %vm3969_vm15 = vweird.f32 %v3963_v28  ;;  %v3973_v31 = vand.u32 2147483647, %v3963_v28  ;;  %s4326_s1 = sshll.u32 %s5725_s15, 4  ;;  %s4327_s1 = int_to_ptr.vmem [resolvable:$true] %s4326_s1 }
 0x49c   :  { %v4182_v26 = vsub.f32 0.0, %v4181_v32 }
 0x49d   :  { %v3976_v5 = vor.u32 1.1754944e-38, %v3975_v2  ;;  %vm3974_vm4 = vcmp.eq.f32.partialorder %v3973_v31, 8.507059e+37 }
 0x49e   :  { %v5653_v1 = vpop.eup %5652  ;;  %v4183_v20 = vmul.f32 1.442695, %v4182_v26  ;;  %v4284_v26 = vld [vmem:[#allocation2] sm:$0x1] }
 0x49f   :  { %v4043_v39 = vadd.f32 1.0, %v5653_v1 }
 0x4a0   :  { %5656 = vpow2.f32 %v4183_v20 }
 0x4a1   :  { %v5655_v6 = vpop.eup %5654  ;;  %5658 = vrcp.f32 %v4043_v39  ;;  %v4055_v58 = vand.u32 2147483648, %v4043_v39  ;;  %v4053_v50 = vand.u32 2147483647, %v4043_v39  ;;  %vm4049_vm3 = vweird.f32 %v4043_v39 }
 0x4a2   :  { %v3965_v49 = vmul.f32 %v5655_v6, %v3963_v28  ;;  %vm3970_vm14 = vweird.f32 %v5655_v6 }
 0x4a3   :  { %vm3971_vm1 = vmor %vm3969_vm15, %vm3970_vm14  ;;  %v4056_v7 = vor.u32 1.1754944e-38, %v4055_v58  ;;  %vm4054_vm6 = vcmp.eq.f32.partialorder %v4053_v50, 8.507059e+37 }
 0x4a4   :  { %v3966_v54 = vsub.f32 1.0, %v3965_v49 }
 0x4a6   :  { %v5657_v45 = vpop.eup %5656  ;;  %v3967_v57 = vmul.f32 %v5655_v6, %v3966_v54 }
 0x4a7   :  { %v5659_v29 = vpop.eup %5658  ;;  %v4185_v30 = vadd.f32 1.0, %v5657_v45 }
 0x4a8   :  { %v4045_v63 = vmul.f32 %v5659_v29, %v4043_v39  ;;  %v3968_v61 = vadd.f32 %v5655_v6, %v3967_v57  ;;  %vm4050_vm2 = vweird.f32 %v5659_v29 }
 0x4a9   :  { %5660 = vrcp.f32 %v4185_v30  ;;  %vm4051_vm5 = vmor %vm4049_vm3, %vm4050_vm2  ;;  %v4197_v25 = vand.u32 2147483648, %v4185_v30  ;;  %vm4191_vm8 = vweird.f32 %v4185_v30  ;;  %v4195_v33 = vand.u32 2147483647, %v4185_v30 }
 0x4aa   :  { %v4046_v3 = vsub.f32 1.0, %v4045_v63  ;;  %5662 = vtanh.f32 %v4119_v62  ;;  %v3972_v19 = vsel %vm3971_vm1, %v5655_v6, %v3968_v61 }
 0x4ab   :  { %v3977_v11 = vsel %vm3974_vm4, %v3976_v5, %v3972_v19  ;;  %v4198_v34 = vor.u32 1.1754944e-38, %v4197_v25  ;;  %vm4196_vm11 = vcmp.eq.f32.partialorder %v4195_v33, 8.507059e+37 }
 0x4ac   :  { %v4047_v4 = vmul.f32 %v5659_v29, %v4046_v3 }
 0x4ae   :  { %v4048_v36 = vadd.f32 %v5659_v29, %v4047_v4 }
 0x4af   :  { %v5661_v38 = vpop.eup %5660 }
 0x4b0   :  { %v4052_v12 = vsel %vm4051_vm5, %v5659_v29, %v4048_v36  ;;  %v4187_v14 = vmul.f32 %v5661_v38, %v4185_v30  ;;  %v5663_v17 = vpop.eup %5662  ;;  %vm4192_vm7 = vweird.f32 %v5661_v38 }
 0x4b1   :  { %v4057_v21 = vsel %vm4054_vm6, %v4056_v7, %v4052_v12  ;;  %v4202_v22 = vmul.f32 %v5663_v17, %v3977_v11  ;;  %vm4193_vm10 = vmor %vm4191_vm8, %vm4192_vm7 }
 0x4b2   :  { %v4201_v10 = vmul.f32 %v4057_v21, %v3895_v9  ;;  %v4188_v24 = vsub.f32 1.0, %v4187_v14 }
 0x4b4   :  { %v4203_v0 = vadd.f32 %v4202_v22, %v4201_v10  ;;  %v4189_v51 = vmul.f32 %v5661_v38, %v4188_v24 }
 0x4b6   :  { %5664 = vtanh.f32 %v4203_v0  ;;  %4210 = vst.msk [vmem:[%s11313_s23] sm:$0x1] %vm4206_vm9, %v4203_v0  ;;  %v4190_v40 = vadd.f32 %v5661_v38, %v4189_v51 }
 0x4b8   :  { %v4194_v15 = vsel %vm4193_vm10, %v5661_v38, %v4190_v40 }
 0x4b9   :  { %v4199_v27 = vsel %vm4196_vm11, %v4198_v34, %v4194_v15 }
 0x4bc   :  { %v5665_v35 = vpop.eup %5664 }
 0x4bd   :  { %v4205_v60 = vmul.f32 %v5665_v35, %v4199_v27 }
 0x4bf   :  { %4209 = vst.msk [vmem:[%s11312_s22] sm:$0x1] %vm4206_vm9, %v4205_v60  ;;  %5628 = vmatmul.msk.f32.vlgmr.msra.gmra.mxu0 %vm475_vm0, %v4205_v60  ;;  %5629 = vmatmul.msk.f32.vlgmr.msra.gmra.mxu1 %vm475_vm0, %v4205_v60  ;;  %vm4245_vm9 = vcmask 40960  }
 0x53c   :  { %v4240_v28 = vpop.f32.mrf.mxu0  ;;  %v4273_v42 = vpop.f32.mrf.mxu1 }
 0x53d   :  { %v4241_v32 = vadd.f32 %v4240_v28, %v4219_v18  ;;  %v4274_v44 = vadd.f32 %v4273_v42, %v4255_v46 }
 0x53f   :  { %v4244_v48 = vmul.f32 %v4243_v43, %v4241_v32  ;;  %5630 = vmatmul.msk.f32.vlgmr.msra.gmra.mxu2 %vm475_vm0, %v4274_v44 }
 0x541   :  { %4246 = vst.msk [vmem:[#allocation3] sm:$0x1] %vm4245_vm9, %v4244_v48 }
 0x542   :  { %4320 = dma.vmem_to_hbm [thread:$0]  %s4316_s25, 16, %s4318_s26, [#allocation4]  }
 0x5c2   :  { %v4305_v1 = vpop.f32.mrf.mxu2 }
 0x5c3   :  { %v4306_v20 = vadd.f32 %v4305_v1, %v4284_v26 }
 0x5c5   :  { %4309 = vst.msk [vmem:[#allocation5] sm:$0x1] %vm4308_vm12, %v4306_v20 }
 0x5c6   :  { %4331 = dma.vmem_to_hbm [thread:$0]  %s4327_s1, 16, %s4329_s27, [#allocation6]  }
 0x5c7   :  { %5720 = dma.done.wait [#allocation4], 16  }
 0x5c8   :  { %5721 = vsyncadd [#allocation4], 4294967280 }
 0x5c9   :  { %5722 = dma.done.wait [#allocation6], 16  }
 0x5ca   :  { %5723 = vsyncadd [#allocation6], 4294967280 }
 0x5cb   :  { %4356 = vsyncpa [#allocation4], 1 }
 0x5cc   :  { %4357 = vsyncpa [#allocation6], 1 }

</bundles_post_ra>
